<compile_context>
chip_gen: v7x
topology: tpu7x:2x2x1
jax: 0.10.0
libtpu: 0.0.40
codegen_flags: <defaults>
</compile_context>

<pallas_src>
import functools

import jax
import jax.numpy as jnp
from jax.experimental import pallas as pl
from jax.experimental.pallas import tpu as pltpu


def _round_up(x, m):
    return (x + m - 1) // m * m


# ---------------------------------------------------------------------------
# Pallas kernel 1: tiled matmul + bias + optional ReLU (bf16 MXU, f32 accum).
# Grid = (M tiles, N tiles, K tiles); K is the reduction ("arbitrary") axis.
# ---------------------------------------------------------------------------
def _matmul_kernel(x_ref, w_ref, b_ref, o_ref, acc_ref, *, apply_relu):
    @pl.when(pl.program_id(2) == 0)
    def _init():
        acc_ref[...] = jnp.zeros_like(acc_ref)

    acc_ref[...] += jnp.dot(x_ref[...], w_ref[...],
                            preferred_element_type=jnp.float32)

    @pl.when(pl.program_id(2) == pl.num_programs(2) - 1)
    def _finalize():
        out = acc_ref[...] + b_ref[...].astype(jnp.float32)
        if apply_relu:
            out = jnp.maximum(out, 0.0)
        o_ref[...] = out.astype(o_ref.dtype)


def matmul_bias(x, w, b, *, apply_relu=False, tm=256, tn=256, tk=512):
    """x: (M, K), w: (K, N), b: (N,) -> (M, N) float32 (bf16 MXU, f32 accum)."""
    M, K = x.shape
    K2, N = w.shape
    assert K == K2, (K, K2)

    xb = x.astype(jnp.bfloat16)
    wb = w.astype(jnp.bfloat16)
    bf = b.astype(jnp.float32).reshape(1, N)

    # Lane-dense N: zero-pad only the weights/bias to a multiple of 128 so the
    # output tile never becomes a sub-128-lane masked store.
    Np = _round_up(N, 128)
    if Np != N:
        wb = jnp.pad(wb, ((0, 0), (0, Np - N)))
        bf = jnp.pad(bf, ((0, 0), (0, Np - N)))
    tn = tn if (Np % tn == 0) else 128

    # K: tile only when it divides evenly, otherwise one full-K block (a lane
    # extent equal to the full array dim needs no padding).
    if K % tk != 0:
        tk = K
    nk = K // tk

    # M: pick a tile that divides the (minimally padded) M.
    if M >= tm and M % tm == 0:
        tm_ = tm
    elif M >= 128 and M % 128 == 0:
        tm_ = 128
    else:
        tm_ = _round_up(M, 16)
    Mp = _round_up(M, tm_)
    if Mp != M:
        xb = jnp.pad(xb, ((0, Mp - M), (0, 0)))

    grid = (Mp // tm_, Np // tn, nk)
    cost = pl.CostEstimate(
        flops=2 * Mp * Np * K,
        transcendentals=0,
        bytes_accessed=xb.size * 2 + wb.size * 2 + bf.size * 4 + Mp * Np * 4,
    )

    out = pl.pallas_call(
        functools.partial(_matmul_kernel, apply_relu=apply_relu),
        out_shape=jax.ShapeDtypeStruct((Mp, Np), jnp.float32),
        grid_spec=pltpu.PrefetchScalarGridSpec(
            num_scalar_prefetch=0,
            grid=grid,
            in_specs=[
                pl.BlockSpec((tm_, tk), lambda i, j, k: (i, k)),
                pl.BlockSpec((tk, tn), lambda i, j, k: (k, j)),
                pl.BlockSpec((1, tn), lambda i, j, k: (0, j)),
            ],
            out_specs=pl.BlockSpec((tm_, tn), lambda i, j, k: (i, j)),
            scratch_shapes=[pltpu.VMEM((tm_, tn), jnp.float32)],
        ),
        compiler_params=pltpu.CompilerParams(
            dimension_semantics=("parallel", "parallel", "arbitrary"),
            vmem_limit_bytes=32 * 1024 * 1024),
        cost_estimate=cost,
    )(xb, wb, bf)
    return out[:M, :N]


# ---------------------------------------------------------------------------
# Pallas kernel 2: direct 3x3 (stride-1, pad-1) convolution + bias + ReLU.
# No im2col tensor is materialised in HBM: the kernel reads the padded
# activation block and accumulates the kh*kw taps on the MXU itself.
# Grid = (batch, Cout tiles); an fori_loop walks output rows inside the kernel.
# Activations are kept f32 in memory so every in-kernel window load is aligned
# for any tap offset; they are cast to bf16 in-registers right before the dot.
# ---------------------------------------------------------------------------
def _conv_kernel(x_ref, w_ref, b_ref, o_ref, *, apply_relu):
    _, hout, wout, tc = o_ref.shape
    kh, kw = w_ref.shape[0], w_ref.shape[1]
    # Hoisted once (broadcasts are not CSE'd if left inside the loop).
    bias = jnp.broadcast_to(b_ref[...].astype(jnp.float32), (wout, tc))

    def row_body(y, carry):
        acc = bias
        for i in range(kh):
            for j in range(kw):
                patch = x_ref[0, y + i, j:j + wout, :].astype(jnp.bfloat16)
                acc = acc + jnp.dot(patch, w_ref[i, j],
                                    preferred_element_type=jnp.float32)
        if apply_relu:
            acc = jnp.maximum(acc, 0.0)
        o_ref[0, y, :, :] = acc.astype(o_ref.dtype)
        return carry

    jax.lax.fori_loop(0, hout, row_body, 0)


def conv3x3(x, w, b, *, relu=True, tcout=256):
    """x: (B,H,W,Cin), w: (3,3,Cin,Cout), b: (Cout,) -> (B,H,W,Cout) bf16."""
    B, H, W, Cin = x.shape
    KH, KW, Cin2, Cout = w.shape
    assert Cin == Cin2, (Cin, Cin2)
    ph, pw = KH // 2, KW // 2
    Hp, Wp = H + 2 * ph, W + 2 * pw

    xp = jnp.pad(x.astype(jnp.float32), ((0, 0), (ph, ph), (pw, pw), (0, 0)))
    wb = w.astype(jnp.bfloat16)
    bf = b.astype(jnp.float32).reshape(1, Cout)

    tc = min(tcout, Cout)
    assert Cout % tc == 0
    grid = (B, Cout // tc)

    cost = pl.CostEstimate(
        flops=2 * B * H * W * KH * KW * Cin * Cout,
        transcendentals=0,
        bytes_accessed=xp.size * 4 + wb.size * 2 + bf.size * 4
        + B * H * W * Cout * 2,
    )

    out = pl.pallas_call(
        functools.partial(_conv_kernel, apply_relu=relu),
        out_shape=jax.ShapeDtypeStruct((B, H, W, Cout), jnp.bfloat16),
        grid_spec=pltpu.PrefetchScalarGridSpec(
            num_scalar_prefetch=0,
            grid=grid,
            in_specs=[
                pl.BlockSpec((1, Hp, Wp, Cin), lambda bb, cc: (bb, 0, 0, 0)),
                pl.BlockSpec((KH, KW, Cin, tc), lambda bb, cc: (0, 0, 0, cc)),
                pl.BlockSpec((1, tc), lambda bb, cc: (0, cc)),
            ],
            out_specs=pl.BlockSpec((1, H, W, tc), lambda bb, cc: (bb, 0, 0, cc)),
        ),
        compiler_params=pltpu.CompilerParams(
            dimension_semantics=("parallel", "parallel"),
            vmem_limit_bytes=32 * 1024 * 1024),
        cost_estimate=cost,
    )(xp, wb, bf)
    return out


# ---------------------------------------------------------------------------
# Lightweight glue ops (cheap after the head fusion): maxpool + bilinear resize.
# ---------------------------------------------------------------------------
def maxpool2(x):
    """2x2 max pool, stride 2 (NHWC)."""
    B, H, W, C = x.shape
    return x.reshape(B, H // 2, 2, W // 2, 2, C).max(axis=(2, 4))


def upsample_bilinear(x, scale):
    """nn.Upsample(scale_factor=scale, mode='bilinear') (align_corners=False).
    After head fusion this only ever runs on tiny n_class-channel maps."""
    B, H, W, C = x.shape

    def indices(n_in, n_out):
        out = jnp.arange(n_out, dtype=jnp.float32)
        src = (out + 0.5) / scale - 0.5
        src = jnp.clip(src, 0.0, float(n_in - 1))
        lo = jnp.floor(src).astype(jnp.int32)
        hi = jnp.minimum(lo + 1, n_in - 1)
        frac = src - lo.astype(jnp.float32)
        return lo, hi, frac

    lo_h, hi_h, fh = indices(H, H * scale)
    lo_w, hi_w, fw = indices(W, W * scale)

    xh = (jnp.take(x, lo_h, axis=1) * (1.0 - fh)[None, :, None, None]
          + jnp.take(x, hi_h, axis=1) * fh[None, :, None, None])
    xw = (jnp.take(xh, lo_w, axis=2) * (1.0 - fw)[None, None, :, None]
          + jnp.take(xh, hi_w, axis=2) * fw[None, None, :, None])
    return xw


def fused_upsample_head(feats, scales, wk, bk):
    """Equivalent to: upsample each branch, concat channels, 1x1 conv1k.
    The 1x1 conv and bilinear upsampling are both linear and commute, so each
    branch is projected to n_class channels at LOW resolution (Pallas matmul,
    lane-dense output), then only the tiny maps are upsampled and summed."""
    n_class = wk.shape[1]
    zero_bias = jnp.zeros((n_class,), jnp.float32)
    total = None
    off = 0
    for f, s in zip(feats, scales):
        B, h, w, C = f.shape
        slab = jax.lax.slice_in_dim(wk, off, off + C, axis=0)  # (C, n_class)
        off += C
        y = matmul_bias(f.reshape(B * h * w, C), slab, zero_bias,
                        apply_relu=False)
        y = upsample_bilinear(y.reshape(B, h, w, n_class), s)
        total = y if total is None else total + y
    return total + bk.astype(jnp.float32).reshape(1, 1, 1, n_class)


# ---------------------------------------------------------------------------
# Parameter initialization (deterministic, synthetic backbone).
# ---------------------------------------------------------------------------
def init_params(key, n_class):
    def conv_init(k, kh, kw, cin, cout):
        kw_, kb_ = jax.random.split(k)
        fan_in = kh * kw * cin
        bound = 1.0 / jnp.sqrt(float(fan_in))
        w = jax.random.uniform(kw_, (kh, kw, cin, cout), jnp.float32,
                               -bound, bound)
        b = jax.random.uniform(kb_, (cout,), jnp.float32, -bound, bound)
        return w, b

    k1, k2, k3, k4, k5 = jax.random.split(key, 5)
    p = {}
    p["w1"], p["b1"] = conv_init(k1, 3, 3, 3, 64)      # layer1 -> 64ch, /4
    p["w2"], p["b2"] = conv_init(k2, 3, 3, 64, 128)    # layer2 -> 128ch, /8
    p["w3"], p["b3"] = conv_init(k3, 3, 3, 128, 256)   # layer3 -> 256ch, /16
    p["w4"], p["b4"] = conv_init(k4, 3, 3, 256, 512)   # layer4 -> 512ch, /32
    wk, bk = conv_init(k5, 1, 1, 64 + 128 + 256 + 512, n_class)
    p["wk"] = wk.reshape(64 + 128 + 256 + 512, n_class)
    p["bk"] = bk
    return p


# ---------------------------------------------------------------------------
# FCN forward (matches FCN.forward: no sigmoid is applied to the output).
# ---------------------------------------------------------------------------
def fcn_forward(params, x_nchw):
    x = jnp.transpose(x_nchw, (0, 2, 3, 1)).astype(jnp.float32)  # -> NHWC

    # Synthetic backbone with the FCN channel/stride contract.
    h = conv3x3(x, params["w1"], params["b1"], relu=True)
    x1 = maxpool2(maxpool2(h))                                          # /4,  64
    x2 = maxpool2(conv3x3(x1, params["w2"], params["b2"], relu=True))   # /8,  128
    x3 = maxpool2(conv3x3(x2, params["w3"], params["b3"], relu=True))   # /16, 256
    x4 = maxpool2(conv3x3(x3, params["w4"], params["b4"], relu=True))   # /32, 512

    # Fused 1x1 head + upsample-and-sum  (== upsample x4, concat, conv1k).
    out = fused_upsample_head((x1, x2, x3, x4), (4, 8, 16, 32),
                              params["wk"], params["bk"])
    return jnp.transpose(out, (0, 3, 1, 2))  # back to NCHW


if __name__ == "__main__":
    key = jax.random.PRNGKey(0)
    k_param, k_x = jax.random.split(key)

    n_class = 1
    B, C, H, W = 2, 3, 64, 64  # H, W divisible by 32 (stride-32 backbone)
    x = jax.random.normal(k_x, (B, C, H, W), jnp.float32)

    params = init_params(k_param, n_class)

    out = jax.jit(fcn_forward)(params, x)
    out = jax.block_until_ready(out)

    assert out.shape == (B, n_class, H, W), out.shape
    assert jnp.all(jnp.isfinite(out))
    print("KERNEL_OK")
</pallas_src>

<mosaic_0001>
module attributes {stable_mosaic.version = 11 : i64} {
  func.func @_conv_kernel(%arg0: i32, %arg1: i32, %arg2: memref<1x66x66x3xf32, #tpu.memory_space<vmem>>, %arg3: memref<3x3x3x64xbf16, #tpu.memory_space<vmem>>, %arg4: memref<1x64xf32, #tpu.memory_space<vmem>>, %arg5: memref<1x64x64x64xbf16, #tpu.memory_space<vmem>>) attributes {dimension_semantics = [#tpu.dimension_semantics<parallel>, #tpu.dimension_semantics<parallel>], iteration_bounds = array<i64: 2, 1>, scalar_prefetch = 0 : i64, scratch_operands = 0 : i64, tpu.core_type = #tpu.core_type<tc>, window_params = [{transform_indices = @transform_0, window_bounds = array<i64: 1, 66, 66, 3>}, {transform_indices = @transform_1, window_bounds = array<i64: 3, 3, 3, 64>}, {transform_indices = @transform_2, window_bounds = array<i64: 1, 64>}, {transform_indices = @transform_3, window_bounds = array<i64: 1, 64, 64, 64>}]} {
    %c0 = arith.constant 0 : index
    %c0_0 = arith.constant 0 : index
    %0 = vector.load %arg4[%c0, %c0_0] : memref<1x64xf32, #tpu.memory_space<vmem>>, vector<1x64xf32>
    %1 = vector.shape_cast %0 : vector<1x64xf32> to vector<1x64xf32>
    %2 = vector.broadcast %1 : vector<1x64xf32> to vector<64x64xf32>
    %c0_i32 = arith.constant 0 : i32
    %c64_i32 = arith.constant 64 : i32
    %3 = arith.addi %c0_i32, %c64_i32 : i32
    %c1_i32 = arith.constant 1 : i32
    scf.for %arg6 = %c0_i32 to %3 step %c1_i32  : i32 {
      %c0_i32_2 = arith.constant 0 : i32
      %4 = arith.addi %arg6, %c0_i32_2 : i32
      %c0_3 = arith.constant 0 : index
      %5 = arith.index_cast %4 : i32 to index
      %c0_4 = arith.constant 0 : index
      %c0_5 = arith.constant 0 : index
      %6 = vector.load %arg2[%c0_3, %5, %c0_4, %c0_5] : memref<1x66x66x3xf32, #tpu.memory_space<vmem>>, vector<1x1x64x3xf32>
      %7 = vector.shape_cast %6 : vector<1x1x64x3xf32> to vector<64x3xf32>
      %8 = arith.truncf %7 : vector<64x3xf32> to vector<64x3xbf16>
      %c0_6 = arith.constant 0 : index
      %c0_7 = arith.constant 0 : index
      %c0_8 = arith.constant 0 : index
      %c0_9 = arith.constant 0 : index
      %9 = vector.load %arg3[%c0_6, %c0_7, %c0_8, %c0_9] : memref<3x3x3x64xbf16, #tpu.memory_space<vmem>>, vector<1x1x3x64xbf16>
      %10 = vector.shape_cast %9 : vector<1x1x3x64xbf16> to vector<3x64xbf16>
      %cst = arith.constant dense<0.000000e+00> : vector<64x64xf32>
      %11 = tpu.matmul %8, %10, %cst {dimension_numbers = #tpu.dot_dimension_numbers<[1], [0], [0], [1], [0, 0, 1, 1], [], []>} : vector<64x3xbf16>, vector<3x64xbf16>, vector<64x64xf32> -> vector<64x64xf32>
      %12 = arith.addf %2, %11 : vector<64x64xf32>
      %c0_i32_10 = arith.constant 0 : i32
      %13 = arith.addi %arg6, %c0_i32_10 : i32
      %c0_11 = arith.constant 0 : index
      %14 = arith.index_cast %13 : i32 to index
      %c1 = arith.constant 1 : index
      %c0_12 = arith.constant 0 : index
      %15 = vector.load %arg2[%c0_11, %14, %c1, %c0_12] : memref<1x66x66x3xf32, #tpu.memory_space<vmem>>, vector<1x1x64x3xf32>
      %16 = vector.shape_cast %15 : vector<1x1x64x3xf32> to vector<64x3xf32>
      %17 = arith.truncf %16 : vector<64x3xf32> to vector<64x3xbf16>
      %c0_13 = arith.constant 0 : index
      %c1_14 = arith.constant 1 : index
      %c0_15 = arith.constant 0 : index
      %c0_16 = arith.constant 0 : index
      %18 = vector.load %arg3[%c0_13, %c1_14, %c0_15, %c0_16] : memref<3x3x3x64xbf16, #tpu.memory_space<vmem>>, vector<1x1x3x64xbf16>
      %19 = vector.shape_cast %18 : vector<1x1x3x64xbf16> to vector<3x64xbf16>
      %cst_17 = arith.constant dense<0.000000e+00> : vector<64x64xf32>
      %20 = tpu.matmul %17, %19, %cst_17 {dimension_numbers = #tpu.dot_dimension_numbers<[1], [0], [0], [1], [0, 0, 1, 1], [], []>} : vector<64x3xbf16>, vector<3x64xbf16>, vector<64x64xf32> -> vector<64x64xf32>
      %21 = arith.addf %12, %20 : vector<64x64xf32>
      %c0_i32_18 = arith.constant 0 : i32
      %22 = arith.addi %arg6, %c0_i32_18 : i32
      %c0_19 = arith.constant 0 : index
      %23 = arith.index_cast %22 : i32 to index
      %c2 = arith.constant 2 : index
      %c0_20 = arith.constant 0 : index
      %24 = vector.load %arg2[%c0_19, %23, %c2, %c0_20] : memref<1x66x66x3xf32, #tpu.memory_space<vmem>>, vector<1x1x64x3xf32>
      %25 = vector.shape_cast %24 : vector<1x1x64x3xf32> to vector<64x3xf32>
      %26 = arith.truncf %25 : vector<64x3xf32> to vector<64x3xbf16>
      %c0_21 = arith.constant 0 : index
      %c2_22 = arith.constant 2 : index
      %c0_23 = arith.constant 0 : index
      %c0_24 = arith.constant 0 : index
      %27 = vector.load %arg3[%c0_21, %c2_22, %c0_23, %c0_24] : memref<3x3x3x64xbf16, #tpu.memory_space<vmem>>, vector<1x1x3x64xbf16>
      %28 = vector.shape_cast %27 : vector<1x1x3x64xbf16> to vector<3x64xbf16>
      %cst_25 = arith.constant dense<0.000000e+00> : vector<64x64xf32>
      %29 = tpu.matmul %26, %28, %cst_25 {dimension_numbers = #tpu.dot_dimension_numbers<[1], [0], [0], [1], [0, 0, 1, 1], [], []>} : vector<64x3xbf16>, vector<3x64xbf16>, vector<64x64xf32> -> vector<64x64xf32>
      %30 = arith.addf %21, %29 : vector<64x64xf32>
      %c1_i32_26 = arith.constant 1 : i32
      %31 = arith.addi %arg6, %c1_i32_26 : i32
      %c0_27 = arith.constant 0 : index
      %32 = arith.index_cast %31 : i32 to index
      %c0_28 = arith.constant 0 : index
      %c0_29 = arith.constant 0 : index
      %33 = vector.load %arg2[%c0_27, %32, %c0_28, %c0_29] : memref<1x66x66x3xf32, #tpu.memory_space<vmem>>, vector<1x1x64x3xf32>
      %34 = vector.shape_cast %33 : vector<1x1x64x3xf32> to vector<64x3xf32>
      %35 = arith.truncf %34 : vector<64x3xf32> to vector<64x3xbf16>
      %c1_30 = arith.constant 1 : index
      %c0_31 = arith.constant 0 : index
      %c0_32 = arith.constant 0 : index
      %c0_33 = arith.constant 0 : index
      %36 = vector.load %arg3[%c1_30, %c0_31, %c0_32, %c0_33] : memref<3x3x3x64xbf16, #tpu.memory_space<vmem>>, vector<1x1x3x64xbf16>
      %37 = vector.shape_cast %36 : vector<1x1x3x64xbf16> to vector<3x64xbf16>
      %cst_34 = arith.constant dense<0.000000e+00> : vector<64x64xf32>
      %38 = tpu.matmul %35, %37, %cst_34 {dimension_numbers = #tpu.dot_dimension_numbers<[1], [0], [0], [1], [0, 0, 1, 1], [], []>} : vector<64x3xbf16>, vector<3x64xbf16>, vector<64x64xf32> -> vector<64x64xf32>
      %39 = arith.addf %30, %38 : vector<64x64xf32>
      %c1_i32_35 = arith.constant 1 : i32
      %40 = arith.addi %arg6, %c1_i32_35 : i32
      %c0_36 = arith.constant 0 : index
      %41 = arith.index_cast %40 : i32 to index
      %c1_37 = arith.constant 1 : index
      %c0_38 = arith.constant 0 : index
      %42 = vector.load %arg2[%c0_36, %41, %c1_37, %c0_38] : memref<1x66x66x3xf32, #tpu.memory_space<vmem>>, vector<1x1x64x3xf32>
      %43 = vector.shape_cast %42 : vector<1x1x64x3xf32> to vector<64x3xf32>
      %44 = arith.truncf %43 : vector<64x3xf32> to vector<64x3xbf16>
      %c1_39 = arith.constant 1 : index
      %c1_40 = arith.constant 1 : index
      %c0_41 = arith.constant 0 : index
      %c0_42 = arith.constant 0 : index
      %45 = vector.load %arg3[%c1_39, %c1_40, %c0_41, %c0_42] : memref<3x3x3x64xbf16, #tpu.memory_space<vmem>>, vector<1x1x3x64xbf16>
      %46 = vector.shape_cast %45 : vector<1x1x3x64xbf16> to vector<3x64xbf16>
      %cst_43 = arith.constant dense<0.000000e+00> : vector<64x64xf32>
      %47 = tpu.matmul %44, %46, %cst_43 {dimension_numbers = #tpu.dot_dimension_numbers<[1], [0], [0], [1], [0, 0, 1, 1], [], []>} : vector<64x3xbf16>, vector<3x64xbf16>, vector<64x64xf32> -> vector<64x64xf32>
      %48 = arith.addf %39, %47 : vector<64x64xf32>
      %c1_i32_44 = arith.constant 1 : i32
      %49 = arith.addi %arg6, %c1_i32_44 : i32
      %c0_45 = arith.constant 0 : index
      %50 = arith.index_cast %49 : i32 to index
      %c2_46 = arith.constant 2 : index
      %c0_47 = arith.constant 0 : index
      %51 = vector.load %arg2[%c0_45, %50, %c2_46, %c0_47] : memref<1x66x66x3xf32, #tpu.memory_space<vmem>>, vector<1x1x64x3xf32>
      %52 = vector.shape_cast %51 : vector<1x1x64x3xf32> to vector<64x3xf32>
      %53 = arith.truncf %52 : vector<64x3xf32> to vector<64x3xbf16>
      %c1_48 = arith.constant 1 : index
      %c2_49 = arith.constant 2 : index
      %c0_50 = arith.constant 0 : index
      %c0_51 = arith.constant 0 : index
      %54 = vector.load %arg3[%c1_48, %c2_49, %c0_50, %c0_51] : memref<3x3x3x64xbf16, #tpu.memory_space<vmem>>, vector<1x1x3x64xbf16>
      %55 = vector.shape_cast %54 : vector<1x1x3x64xbf16> to vector<3x64xbf16>
      %cst_52 = arith.constant dense<0.000000e+00> : vector<64x64xf32>
      %56 = tpu.matmul %53, %55, %cst_52 {dimension_numbers = #tpu.dot_dimension_numbers<[1], [0], [0], [1], [0, 0, 1, 1], [], []>} : vector<64x3xbf16>, vector<3x64xbf16>, vector<64x64xf32> -> vector<64x64xf32>
      %57 = arith.addf %48, %56 : vector<64x64xf32>
      %c2_i32 = arith.constant 2 : i32
      %58 = arith.addi %arg6, %c2_i32 : i32
      %c0_53 = arith.constant 0 : index
      %59 = arith.index_cast %58 : i32 to index
      %c0_54 = arith.constant 0 : index
      %c0_55 = arith.constant 0 : index
      %60 = vector.load %arg2[%c0_53, %59, %c0_54, %c0_55] : memref<1x66x66x3xf32, #tpu.memory_space<vmem>>, vector<1x1x64x3xf32>
      %61 = vector.shape_cast %60 : vector<1x1x64x3xf32> to vector<64x3xf32>
      %62 = arith.truncf %61 : vector<64x3xf32> to vector<64x3xbf16>
      %c2_56 = arith.constant 2 : index
      %c0_57 = arith.constant 0 : index
      %c0_58 = arith.constant 0 : index
      %c0_59 = arith.constant 0 : index
      %63 = vector.load %arg3[%c2_56, %c0_57, %c0_58, %c0_59] : memref<3x3x3x64xbf16, #tpu.memory_space<vmem>>, vector<1x1x3x64xbf16>
      %64 = vector.shape_cast %63 : vector<1x1x3x64xbf16> to vector<3x64xbf16>
      %cst_60 = arith.constant dense<0.000000e+00> : vector<64x64xf32>
      %65 = tpu.matmul %62, %64, %cst_60 {dimension_numbers = #tpu.dot_dimension_numbers<[1], [0], [0], [1], [0, 0, 1, 1], [], []>} : vector<64x3xbf16>, vector<3x64xbf16>, vector<64x64xf32> -> vector<64x64xf32>
      %66 = arith.addf %57, %65 : vector<64x64xf32>
      %c2_i32_61 = arith.constant 2 : i32
      %67 = arith.addi %arg6, %c2_i32_61 : i32
      %c0_62 = arith.constant 0 : index
      %68 = arith.index_cast %67 : i32 to index
      %c1_63 = arith.constant 1 : index
      %c0_64 = arith.constant 0 : index
      %69 = vector.load %arg2[%c0_62, %68, %c1_63, %c0_64] : memref<1x66x66x3xf32, #tpu.memory_space<vmem>>, vector<1x1x64x3xf32>
      %70 = vector.shape_cast %69 : vector<1x1x64x3xf32> to vector<64x3xf32>
      %71 = arith.truncf %70 : vector<64x3xf32> to vector<64x3xbf16>
      %c2_65 = arith.constant 2 : index
      %c1_66 = arith.constant 1 : index
      %c0_67 = arith.constant 0 : index
      %c0_68 = arith.constant 0 : index
      %72 = vector.load %arg3[%c2_65, %c1_66, %c0_67, %c0_68] : memref<3x3x3x64xbf16, #tpu.memory_space<vmem>>, vector<1x1x3x64xbf16>
      %73 = vector.shape_cast %72 : vector<1x1x3x64xbf16> to vector<3x64xbf16>
      %cst_69 = arith.constant dense<0.000000e+00> : vector<64x64xf32>
      %74 = tpu.matmul %71, %73, %cst_69 {dimension_numbers = #tpu.dot_dimension_numbers<[1], [0], [0], [1], [0, 0, 1, 1], [], []>} : vector<64x3xbf16>, vector<3x64xbf16>, vector<64x64xf32> -> vector<64x64xf32>
      %75 = arith.addf %66, %74 : vector<64x64xf32>
      %c2_i32_70 = arith.constant 2 : i32
      %76 = arith.addi %arg6, %c2_i32_70 : i32
      %c0_71 = arith.constant 0 : index
      %77 = arith.index_cast %76 : i32 to index
      %c2_72 = arith.constant 2 : index
      %c0_73 = arith.constant 0 : index
      %78 = vector.load %arg2[%c0_71, %77, %c2_72, %c0_73] : memref<1x66x66x3xf32, #tpu.memory_space<vmem>>, vector<1x1x64x3xf32>
      %79 = vector.shape_cast %78 : vector<1x1x64x3xf32> to vector<64x3xf32>
      %80 = arith.truncf %79 : vector<64x3xf32> to vector<64x3xbf16>
      %c2_74 = arith.constant 2 : index
      %c2_75 = arith.constant 2 : index
      %c0_76 = arith.constant 0 : index
      %c0_77 = arith.constant 0 : index
      %81 = vector.load %arg3[%c2_74, %c2_75, %c0_76, %c0_77] : memref<3x3x3x64xbf16, #tpu.memory_space<vmem>>, vector<1x1x3x64xbf16>
      %82 = vector.shape_cast %81 : vector<1x1x3x64xbf16> to vector<3x64xbf16>
      %cst_78 = arith.constant dense<0.000000e+00> : vector<64x64xf32>
      %83 = tpu.matmul %80, %82, %cst_78 {dimension_numbers = #tpu.dot_dimension_numbers<[1], [0], [0], [1], [0, 0, 1, 1], [], []>} : vector<64x3xbf16>, vector<3x64xbf16>, vector<64x64xf32> -> vector<64x64xf32>
      %84 = arith.addf %75, %83 : vector<64x64xf32>
      %cst_79 = arith.constant 0.000000e+00 : f32
      %85 = vector.broadcast %cst_79 : f32 to vector<64x64xf32>
      %86 = arith.maximumf %84, %85 : vector<64x64xf32>
      %87 = arith.truncf %86 : vector<64x64xf32> to vector<64x64xbf16>
      %c0_80 = arith.constant 0 : index
      %88 = arith.index_cast %arg6 : i32 to index
      %c0_81 = arith.constant 0 : index
      %c0_82 = arith.constant 0 : index
      %89 = vector.load %arg5[%c0_80, %88, %c0_81, %c0_82] : memref<1x64x64x64xbf16, #tpu.memory_space<vmem>>, vector<1x1x64x64xbf16>
      %90 = vector.shape_cast %89 : vector<1x1x64x64xbf16> to vector<64x64xbf16>
      %91 = vector.shape_cast %87 : vector<64x64xbf16> to vector<1x1x64x64xbf16>
      tpu.vector_store %arg5[%c0_80, %88, %c0_81, %c0_82], %91 {strides = array<i32>} : memref<1x64x64x64xbf16, #tpu.memory_space<vmem>>, vector<1x1x64x64xbf16>,
    }
    %c64_i32_1 = arith.constant 64 : i32
    return
  }
  func.func @transform_0(%arg0: i32, %arg1: i32) -> (i32, i32, i32, i32) {
    %c0_i32 = arith.constant 0 : i32
    %c0_i32_0 = arith.constant 0 : i32
    %c0_i32_1 = arith.constant 0 : i32
    %c0_i32_2 = arith.constant 0 : i32
    return %arg0, %c0_i32, %c0_i32_0, %c0_i32_1 : i32, i32, i32, i32
  }
  func.func @transform_1(%arg0: i32, %arg1: i32) -> (i32, i32, i32, i32) {
    %c0_i32 = arith.constant 0 : i32
    %c0_i32_0 = arith.constant 0 : i32
    %c0_i32_1 = arith.constant 0 : i32
    %c0_i32_2 = arith.constant 0 : i32
    return %c0_i32, %c0_i32_0, %c0_i32_1, %arg1 : i32, i32, i32, i32
  }
  func.func @transform_2(%arg0: i32, %arg1: i32) -> (i32, i32) {
    %c0_i32 = arith.constant 0 : i32
    %c0_i32_0 = arith.constant 0 : i32
    return %c0_i32, %arg1 : i32, i32
  }
  func.func @transform_3(%arg0: i32, %arg1: i32) -> (i32, i32, i32, i32) {
    %c0_i32 = arith.constant 0 : i32
    %c0_i32_0 = arith.constant 0 : i32
    %c0_i32_1 = arith.constant 0 : i32
    return %arg0, %c0_i32, %c0_i32_0, %arg1 : i32, i32, i32, i32
  }
}

module attributes {stable_mosaic.version = 11 : i64} {
  func.func @_conv_kernel(%arg0: i32, %arg1: i32, %arg2: memref<1x18x18x64xf32, #tpu.memory_space<vmem>>, %arg3: memref<3x3x64x128xbf16, #tpu.memory_space<vmem>>, %arg4: memref<1x128xf32, #tpu.memory_space<vmem>>, %arg5: memref<1x16x16x128xbf16, #tpu.memory_space<vmem>>) attributes {dimension_semantics = [#tpu.dimension_semantics<parallel>, #tpu.dimension_semantics<parallel>], iteration_bounds = array<i64: 2, 1>, scalar_prefetch = 0 : i64, scratch_operands = 0 : i64, tpu.core_type = #tpu.core_type<tc>, window_params = [{transform_indices = @transform_0, window_bounds = array<i64: 1, 18, 18, 64>}, {transform_indices = @transform_1, window_bounds = array<i64: 3, 3, 64, 128>}, {transform_indices = @transform_2, window_bounds = array<i64: 1, 128>}, {transform_indices = @transform_3, window_bounds = array<i64: 1, 16, 16, 128>}]} {
    %c0 = arith.constant 0 : index
    %c0_0 = arith.constant 0 : index
    %0 = vector.load %arg4[%c0, %c0_0] : memref<1x128xf32, #tpu.memory_space<vmem>>, vector<1x128xf32>
    %1 = vector.shape_cast %0 : vector<1x128xf32> to vector<1x128xf32>
    %2 = vector.broadcast %1 : vector<1x128xf32> to vector<16x128xf32>
    %c0_i32 = arith.constant 0 : i32
    %c16_i32 = arith.constant 16 : i32
    %3 = arith.addi %c0_i32, %c16_i32 : i32
    %c1_i32 = arith.constant 1 : i32
    scf.for %arg6 = %c0_i32 to %3 step %c1_i32  : i32 {
      %c0_i32_2 = arith.constant 0 : i32
      %4 = arith.addi %arg6, %c0_i32_2 : i32
      %c0_3 = arith.constant 0 : index
      %5 = arith.index_cast %4 : i32 to index
      %c0_4 = arith.constant 0 : index
      %c0_5 = arith.constant 0 : index
      %6 = vector.load %arg2[%c0_3, %5, %c0_4, %c0_5] : memref<1x18x18x64xf32, #tpu.memory_space<vmem>>, vector<1x1x16x64xf32>
      %7 = vector.shape_cast %6 : vector<1x1x16x64xf32> to vector<16x64xf32>
      %8 = arith.truncf %7 : vector<16x64xf32> to vector<16x64xbf16>
      %c0_6 = arith.constant 0 : index
      %c0_7 = arith.constant 0 : index
      %c0_8 = arith.constant 0 : index
      %c0_9 = arith.constant 0 : index
      %9 = vector.load %arg3[%c0_6, %c0_7, %c0_8, %c0_9] : memref<3x3x64x128xbf16, #tpu.memory_space<vmem>>, vector<1x1x64x128xbf16>
      %10 = vector.shape_cast %9 : vector<1x1x64x128xbf16> to vector<64x128xbf16>
      %cst = arith.constant dense<0.000000e+00> : vector<16x128xf32>
      %11 = tpu.matmul %8, %10, %cst {dimension_numbers = #tpu.dot_dimension_numbers<[1], [0], [0], [1], [0, 0, 1, 1], [], []>} : vector<16x64xbf16>, vector<64x128xbf16>, vector<16x128xf32> -> vector<16x128xf32>
      %12 = arith.addf %2, %11 : vector<16x128xf32>
      %c0_i32_10 = arith.constant 0 : i32
      %13 = arith.addi %arg6, %c0_i32_10 : i32
      %c0_11 = arith.constant 0 : index
      %14 = arith.index_cast %13 : i32 to index
      %c1 = arith.constant 1 : index
      %c0_12 = arith.constant 0 : index
      %15 = vector.load %arg2[%c0_11, %14, %c1, %c0_12] : memref<1x18x18x64xf32, #tpu.memory_space<vmem>>, vector<1x1x16x64xf32>
      %16 = vector.shape_cast %15 : vector<1x1x16x64xf32> to vector<16x64xf32>
      %17 = arith.truncf %16 : vector<16x64xf32> to vector<16x64xbf16>
      %c0_13 = arith.constant 0 : index
      %c1_14 = arith.constant 1 : index
      %c0_15 = arith.constant 0 : index
      %c0_16 = arith.constant 0 : index
      %18 = vector.load %arg3[%c0_13, %c1_14, %c0_15, %c0_16] : memref<3x3x64x128xbf16, #tpu.memory_space<vmem>>, vector<1x1x64x128xbf16>
      %19 = vector.shape_cast %18 : vector<1x1x64x128xbf16> to vector<64x128xbf16>
      %cst_17 = arith.constant dense<0.000000e+00> : vector<16x128xf32>
      %20 = tpu.matmul %17, %19, %cst_17 {dimension_numbers = #tpu.dot_dimension_numbers<[1], [0], [0], [1], [0, 0, 1, 1], [], []>} : vector<16x64xbf16>, vector<64x128xbf16>, vector<16x128xf32> -> vector<16x128xf32>
      %21 = arith.addf %12, %20 : vector<16x128xf32>
      %c0_i32_18 = arith.constant 0 : i32
      %22 = arith.addi %arg6, %c0_i32_18 : i32
      %c0_19 = arith.constant 0 : index
      %23 = arith.index_cast %22 : i32 to index
      %c2 = arith.constant 2 : index
      %c0_20 = arith.constant 0 : index
      %24 = vector.load %arg2[%c0_19, %23, %c2, %c0_20] : memref<1x18x18x64xf32, #tpu.memory_space<vmem>>, vector<1x1x16x64xf32>
      %25 = vector.shape_cast %24 : vector<1x1x16x64xf32> to vector<16x64xf32>
      %26 = arith.truncf %25 : vector<16x64xf32> to vector<16x64xbf16>
      %c0_21 = arith.constant 0 : index
      %c2_22 = arith.constant 2 : index
      %c0_23 = arith.constant 0 : index
      %c0_24 = arith.constant 0 : index
      %27 = vector.load %arg3[%c0_21, %c2_22, %c0_23, %c0_24] : memref<3x3x64x128xbf16, #tpu.memory_space<vmem>>, vector<1x1x64x128xbf16>
      %28 = vector.shape_cast %27 : vector<1x1x64x128xbf16> to vector<64x128xbf16>
      %cst_25 = arith.constant dense<0.000000e+00> : vector<16x128xf32>
      %29 = tpu.matmul %26, %28, %cst_25 {dimension_numbers = #tpu.dot_dimension_numbers<[1], [0], [0], [1], [0, 0, 1, 1], [], []>} : vector<16x64xbf16>, vector<64x128xbf16>, vector<16x128xf32> -> vector<16x128xf32>
      %30 = arith.addf %21, %29 : vector<16x128xf32>
      %c1_i32_26 = arith.constant 1 : i32
      %31 = arith.addi %arg6, %c1_i32_26 : i32
      %c0_27 = arith.constant 0 : index
      %32 = arith.index_cast %31 : i32 to index
      %c0_28 = arith.constant 0 : index
      %c0_29 = arith.constant 0 : index
      %33 = vector.load %arg2[%c0_27, %32, %c0_28, %c0_29] : memref<1x18x18x64xf32, #tpu.memory_space<vmem>>, vector<1x1x16x64xf32>
      %34 = vector.shape_cast %33 : vector<1x1x16x64xf32> to vector<16x64xf32>
      %35 = arith.truncf %34 : vector<16x64xf32> to vector<16x64xbf16>
      %c1_30 = arith.constant 1 : index
      %c0_31 = arith.constant 0 : index
      %c0_32 = arith.constant 0 : index
      %c0_33 = arith.constant 0 : index
      %36 = vector.load %arg3[%c1_30, %c0_31, %c0_32, %c0_33] : memref<3x3x64x128xbf16, #tpu.memory_space<vmem>>, vector<1x1x64x128xbf16>
      %37 = vector.shape_cast %36 : vector<1x1x64x128xbf16> to vector<64x128xbf16>
      %cst_34 = arith.constant dense<0.000000e+00> : vector<16x128xf32>
      %38 = tpu.matmul %35, %37, %cst_34 {dimension_numbers = #tpu.dot_dimension_numbers<[1], [0], [0], [1], [0, 0, 1, 1], [], []>} : vector<16x64xbf16>, vector<64x128xbf16>, vector<16x128xf32> -> vector<16x128xf32>
      %39 = arith.addf %30, %38 : vector<16x128xf32>
      %c1_i32_35 = arith.constant 1 : i32
      %40 = arith.addi %arg6, %c1_i32_35 : i32
      %c0_36 = arith.constant 0 : index
      %41 = arith.index_cast %40 : i32 to index
      %c1_37 = arith.constant 1 : index
      %c0_38 = arith.constant 0 : index
      %42 = vector.load %arg2[%c0_36, %41, %c1_37, %c0_38] : memref<1x18x18x64xf32, #tpu.memory_space<vmem>>, vector<1x1x16x64xf32>
      %43 = vector.shape_cast %42 : vector<1x1x16x64xf32> to vector<16x64xf32>
      %44 = arith.truncf %43 : vector<16x64xf32> to vector<16x64xbf16>
      %c1_39 = arith.constant 1 : index
      %c1_40 = arith.constant 1 : index
      %c0_41 = arith.constant 0 : index
      %c0_42 = arith.constant 0 : index
      %45 = vector.load %arg3[%c1_39, %c1_40, %c0_41, %c0_42] : memref<3x3x64x128xbf16, #tpu.memory_space<vmem>>, vector<1x1x64x128xbf16>
      %46 = vector.shape_cast %45 : vector<1x1x64x128xbf16> to vector<64x128xbf16>
      %cst_43 = arith.constant dense<0.000000e+00> : vector<16x128xf32>
      %47 = tpu.matmul %44, %46, %cst_43 {dimension_numbers = #tpu.dot_dimension_numbers<[1], [0], [0], [1], [0, 0, 1, 1], [], []>} : vector<16x64xbf16>, vector<64x128xbf16>, vector<16x128xf32> -> vector<16x128xf32>
      %48 = arith.addf %39, %47 : vector<16x128xf32>
      %c1_i32_44 = arith.constant 1 : i32
      %49 = arith.addi %arg6, %c1_i32_44 : i32
      %c0_45 = arith.constant 0 : index
      %50 = arith.index_cast %49 : i32 to index
      %c2_46 = arith.constant 2 : index
      %c0_47 = arith.constant 0 : index
      %51 = vector.load %arg2[%c0_45, %50, %c2_46, %c0_47] : memref<1x18x18x64xf32, #tpu.memory_space<vmem>>, vector<1x1x16x64xf32>
      %52 = vector.shape_cast %51 : vector<1x1x16x64xf32> to vector<16x64xf32>
      %53 = arith.truncf %52 : vector<16x64xf32> to vector<16x64xbf16>
      %c1_48 = arith.constant 1 : index
      %c2_49 = arith.constant 2 : index
      %c0_50 = arith.constant 0 : index
      %c0_51 = arith.constant 0 : index
      %54 = vector.load %arg3[%c1_48, %c2_49, %c0_50, %c0_51] : memref<3x3x64x128xbf16, #tpu.memory_space<vmem>>, vector<1x1x64x128xbf16>
      %55 = vector.shape_cast %54 : vector<1x1x64x128xbf16> to vector<64x128xbf16>
      %cst_52 = arith.constant dense<0.000000e+00> : vector<16x128xf32>
      %56 = tpu.matmul %53, %55, %cst_52 {dimension_numbers = #tpu.dot_dimension_numbers<[1], [0], [0], [1], [0, 0, 1, 1], [], []>} : vector<16x64xbf16>, vector<64x128xbf16>, vector<16x128xf32> -> vector<16x128xf32>
      %57 = arith.addf %48, %56 : vector<16x128xf32>
      %c2_i32 = arith.constant 2 : i32
      %58 = arith.addi %arg6, %c2_i32 : i32
      %c0_53 = arith.constant 0 : index
      %59 = arith.index_cast %58 : i32 to index
      %c0_54 = arith.constant 0 : index
      %c0_55 = arith.constant 0 : index
      %60 = vector.load %arg2[%c0_53, %59, %c0_54, %c0_55] : memref<1x18x18x64xf32, #tpu.memory_space<vmem>>, vector<1x1x16x64xf32>
      %61 = vector.shape_cast %60 : vector<1x1x16x64xf32> to vector<16x64xf32>
      %62 = arith.truncf %61 : vector<16x64xf32> to vector<16x64xbf16>
      %c2_56 = arith.constant 2 : index
      %c0_57 = arith.constant 0 : index
      %c0_58 = arith.constant 0 : index
      %c0_59 = arith.constant 0 : index
      %63 = vector.load %arg3[%c2_56, %c0_57, %c0_58, %c0_59] : memref<3x3x64x128xbf16, #tpu.memory_space<vmem>>, vector<1x1x64x128xbf16>
      %64 = vector.shape_cast %63 : vector<1x1x64x128xbf16> to vector<64x128xbf16>
      %cst_60 = arith.constant dense<0.000000e+00> : vector<16x128xf32>
      %65 = tpu.matmul %62, %64, %cst_60 {dimension_numbers = #tpu.dot_dimension_numbers<[1], [0], [0], [1], [0, 0, 1, 1], [], []>} : vector<16x64xbf16>, vector<64x128xbf16>, vector<16x128xf32> -> vector<16x128xf32>
      %66 = arith.addf %57, %65 : vector<16x128xf32>
      %c2_i32_61 = arith.constant 2 : i32
      %67 = arith.addi %arg6, %c2_i32_61 : i32
      %c0_62 = arith.constant 0 : index
      %68 = arith.index_cast %67 : i32 to index
      %c1_63 = arith.constant 1 : index
      %c0_64 = arith.constant 0 : index
      %69 = vector.load %arg2[%c0_62, %68, %c1_63, %c0_64] : memref<1x18x18x64xf32, #tpu.memory_space<vmem>>, vector<1x1x16x64xf32>
      %70 = vector.shape_cast %69 : vector<1x1x16x64xf32> to vector<16x64xf32>
      %71 = arith.truncf %70 : vector<16x64xf32> to vector<16x64xbf16>
      %c2_65 = arith.constant 2 : index
      %c1_66 = arith.constant 1 : index
      %c0_67 = arith.constant 0 : index
      %c0_68 = arith.constant 0 : index
      %72 = vector.load %arg3[%c2_65, %c1_66, %c0_67, %c0_68] : memref<3x3x64x128xbf16, #tpu.memory_space<vmem>>, vector<1x1x64x128xbf16>
      %73 = vector.shape_cast %72 : vector<1x1x64x128xbf16> to vector<64x128xbf16>
      %cst_69 = arith.constant dense<0.000000e+00> : vector<16x128xf32>
      %74 = tpu.matmul %71, %73, %cst_69 {dimension_numbers = #tpu.dot_dimension_numbers<[1], [0], [0], [1], [0, 0, 1, 1], [], []>} : vector<16x64xbf16>, vector<64x128xbf16>, vector<16x128xf32> -> vector<16x128xf32>
      %75 = arith.addf %66, %74 : vector<16x128xf32>
      %c2_i32_70 = arith.constant 2 : i32
      %76 = arith.addi %arg6, %c2_i32_70 : i32
      %c0_71 = arith.constant 0 : index
      %77 = arith.index_cast %76 : i32 to index
      %c2_72 = arith.constant 2 : index
      %c0_73 = arith.constant 0 : index
      %78 = vector.load %arg2[%c0_71, %77, %c2_72, %c0_73] : memref<1x18x18x64xf32, #tpu.memory_space<vmem>>, vector<1x1x16x64xf32>
      %79 = vector.shape_cast %78 : vector<1x1x16x64xf32> to vector<16x64xf32>
      %80 = arith.truncf %79 : vector<16x64xf32> to vector<16x64xbf16>
      %c2_74 = arith.constant 2 : index
      %c2_75 = arith.constant 2 : index
      %c0_76 = arith.constant 0 : index
      %c0_77 = arith.constant 0 : index
      %81 = vector.load %arg3[%c2_74, %c2_75, %c0_76, %c0_77] : memref<3x3x64x128xbf16, #tpu.memory_space<vmem>>, vector<1x1x64x128xbf16>
      %82 = vector.shape_cast %81 : vector<1x1x64x128xbf16> to vector<64x128xbf16>
      %cst_78 = arith.constant dense<0.000000e+00> : vector<16x128xf32>
      %83 = tpu.matmul %80, %82, %cst_78 {dimension_numbers = #tpu.dot_dimension_numbers<[1], [0], [0], [1], [0, 0, 1, 1], [], []>} : vector<16x64xbf16>, vector<64x128xbf16>, vector<16x128xf32> -> vector<16x128xf32>
      %84 = arith.addf %75, %83 : vector<16x128xf32>
      %cst_79 = arith.constant 0.000000e+00 : f32
      %85 = vector.broadcast %cst_79 : f32 to vector<16x128xf32>
      %86 = arith.maximumf %84, %85 : vector<16x128xf32>
      %87 = arith.truncf %86 : vector<16x128xf32> to vector<16x128xbf16>
      %c0_80 = arith.constant 0 : index
      %88 = arith.index_cast %arg6 : i32 to index
      %c0_81 = arith.constant 0 : index
      %c0_82 = arith.constant 0 : index
      %89 = vector.load %arg5[%c0_80, %88, %c0_81, %c0_82] : memref<1x16x16x128xbf16, #tpu.memory_space<vmem>>, vector<1x1x16x128xbf16>
      %90 = vector.shape_cast %89 : vector<1x1x16x128xbf16> to vector<16x128xbf16>
      %91 = vector.shape_cast %87 : vector<16x128xbf16> to vector<1x1x16x128xbf16>
      tpu.vector_store %arg5[%c0_80, %88, %c0_81, %c0_82], %91 {strides = array<i32>} : memref<1x16x16x128xbf16, #tpu.memory_space<vmem>>, vector<1x1x16x128xbf16>,
    }
    %c16_i32_1 = arith.constant 16 : i32
    return
  }
  func.func @transform_0(%arg0: i32, %arg1: i32) -> (i32, i32, i32, i32) {
    %c0_i32 = arith.constant 0 : i32
    %c0_i32_0 = arith.constant 0 : i32
    %c0_i32_1 = arith.constant 0 : i32
    %c0_i32_2 = arith.constant 0 : i32
    return %arg0, %c0_i32, %c0_i32_0, %c0_i32_1 : i32, i32, i32, i32
  }
  func.func @transform_1(%arg0: i32, %arg1: i32) -> (i32, i32, i32, i32) {
    %c0_i32 = arith.constant 0 : i32
    %c0_i32_0 = arith.constant 0 : i32
    %c0_i32_1 = arith.constant 0 : i32
    %c0_i32_2 = arith.constant 0 : i32
    return %c0_i32, %c0_i32_0, %c0_i32_1, %arg1 : i32, i32, i32, i32
  }
  func.func @transform_2(%arg0: i32, %arg1: i32) -> (i32, i32) {
    %c0_i32 = arith.constant 0 : i32
    %c0_i32_0 = arith.constant 0 : i32
    return %c0_i32, %arg1 : i32, i32
  }
  func.func @transform_3(%arg0: i32, %arg1: i32) -> (i32, i32, i32, i32) {
    %c0_i32 = arith.constant 0 : i32
    %c0_i32_0 = arith.constant 0 : i32
    %c0_i32_1 = arith.constant 0 : i32
    return %arg0, %c0_i32, %c0_i32_0, %arg1 : i32, i32, i32, i32
  }
}

module attributes {stable_mosaic.version = 11 : i64} {
  func.func @_conv_kernel(%arg0: i32, %arg1: i32, %arg2: memref<1x10x10x128xf32, #tpu.memory_space<vmem>>, %arg3: memref<3x3x128x256xbf16, #tpu.memory_space<vmem>>, %arg4: memref<1x256xf32, #tpu.memory_space<vmem>>, %arg5: memref<1x8x8x256xbf16, #tpu.memory_space<vmem>>) attributes {dimension_semantics = [#tpu.dimension_semantics<parallel>, #tpu.dimension_semantics<parallel>], iteration_bounds = array<i64: 2, 1>, scalar_prefetch = 0 : i64, scratch_operands = 0 : i64, tpu.core_type = #tpu.core_type<tc>, window_params = [{transform_indices = @transform_0, window_bounds = array<i64: 1, 10, 10, 128>}, {transform_indices = @transform_1, window_bounds = array<i64: 3, 3, 128, 256>}, {transform_indices = @transform_2, window_bounds = array<i64: 1, 256>}, {transform_indices = @transform_3, window_bounds = array<i64: 1, 8, 8, 256>}]} {
    %c0 = arith.constant 0 : index
    %c0_0 = arith.constant 0 : index
    %0 = vector.load %arg4[%c0, %c0_0] : memref<1x256xf32, #tpu.memory_space<vmem>>, vector<1x256xf32>
    %1 = vector.shape_cast %0 : vector<1x256xf32> to vector<1x256xf32>
    %2 = vector.broadcast %1 : vector<1x256xf32> to vector<8x256xf32>
    %c0_i32 = arith.constant 0 : i32
    %c8_i32 = arith.constant 8 : i32
    %3 = arith.addi %c0_i32, %c8_i32 : i32
    %c1_i32 = arith.constant 1 : i32
    scf.for %arg6 = %c0_i32 to %3 step %c1_i32  : i32 {
      %c0_i32_2 = arith.constant 0 : i32
      %4 = arith.addi %arg6, %c0_i32_2 : i32
      %c0_3 = arith.constant 0 : index
      %5 = arith.index_cast %4 : i32 to index
      %c0_4 = arith.constant 0 : index
      %c0_5 = arith.constant 0 : index
      %6 = vector.load %arg2[%c0_3, %5, %c0_4, %c0_5] : memref<1x10x10x128xf32, #tpu.memory_space<vmem>>, vector<1x1x8x128xf32>
      %7 = vector.shape_cast %6 : vector<1x1x8x128xf32> to vector<8x128xf32>
      %8 = arith.truncf %7 : vector<8x128xf32> to vector<8x128xbf16>
      %c0_6 = arith.constant 0 : index
      %c0_7 = arith.constant 0 : index
      %c0_8 = arith.constant 0 : index
      %c0_9 = arith.constant 0 : index
      %9 = vector.load %arg3[%c0_6, %c0_7, %c0_8, %c0_9] : memref<3x3x128x256xbf16, #tpu.memory_space<vmem>>, vector<1x1x128x256xbf16>
      %10 = vector.shape_cast %9 : vector<1x1x128x256xbf16> to vector<128x256xbf16>
      %cst = arith.constant dense<0.000000e+00> : vector<8x256xf32>
      %11 = tpu.matmul %8, %10, %cst {dimension_numbers = #tpu.dot_dimension_numbers<[1], [0], [0], [1], [0, 0, 1, 1], [], []>} : vector<8x128xbf16>, vector<128x256xbf16>, vector<8x256xf32> -> vector<8x256xf32>
      %12 = arith.addf %2, %11 : vector<8x256xf32>
      %c0_i32_10 = arith.constant 0 : i32
      %13 = arith.addi %arg6, %c0_i32_10 : i32
      %c0_11 = arith.constant 0 : index
      %14 = arith.index_cast %13 : i32 to index
      %c1 = arith.constant 1 : index
      %c0_12 = arith.constant 0 : index
      %15 = vector.load %arg2[%c0_11, %14, %c1, %c0_12] : memref<1x10x10x128xf32, #tpu.memory_space<vmem>>, vector<1x1x8x128xf32>
      %16 = vector.shape_cast %15 : vector<1x1x8x128xf32> to vector<8x128xf32>
      %17 = arith.truncf %16 : vector<8x128xf32> to vector<8x128xbf16>
      %c0_13 = arith.constant 0 : index
      %c1_14 = arith.constant 1 : index
      %c0_15 = arith.constant 0 : index
      %c0_16 = arith.constant 0 : index
      %18 = vector.load %arg3[%c0_13, %c1_14, %c0_15, %c0_16] : memref<3x3x128x256xbf16, #tpu.memory_space<vmem>>, vector<1x1x128x256xbf16>
      %19 = vector.shape_cast %18 : vector<1x1x128x256xbf16> to vector<128x256xbf16>
      %cst_17 = arith.constant dense<0.000000e+00> : vector<8x256xf32>
      %20 = tpu.matmul %17, %19, %cst_17 {dimension_numbers = #tpu.dot_dimension_numbers<[1], [0], [0], [1], [0, 0, 1, 1], [], []>} : vector<8x128xbf16>, vector<128x256xbf16>, vector<8x256xf32> -> vector<8x256xf32>
      %21 = arith.addf %12, %20 : vector<8x256xf32>
      %c0_i32_18 = arith.constant 0 : i32
      %22 = arith.addi %arg6, %c0_i32_18 : i32
      %c0_19 = arith.constant 0 : index
      %23 = arith.index_cast %22 : i32 to index
      %c2 = arith.constant 2 : index
      %c0_20 = arith.constant 0 : index
      %24 = vector.load %arg2[%c0_19, %23, %c2, %c0_20] : memref<1x10x10x128xf32, #tpu.memory_space<vmem>>, vector<1x1x8x128xf32>
      %25 = vector.shape_cast %24 : vector<1x1x8x128xf32> to vector<8x128xf32>
      %26 = arith.truncf %25 : vector<8x128xf32> to vector<8x128xbf16>
      %c0_21 = arith.constant 0 : index
      %c2_22 = arith.constant 2 : index
      %c0_23 = arith.constant 0 : index
      %c0_24 = arith.constant 0 : index
      %27 = vector.load %arg3[%c0_21, %c2_22, %c0_23, %c0_24] : memref<3x3x128x256xbf16, #tpu.memory_space<vmem>>, vector<1x1x128x256xbf16>
      %28 = vector.shape_cast %27 : vector<1x1x128x256xbf16> to vector<128x256xbf16>
      %cst_25 = arith.constant dense<0.000000e+00> : vector<8x256xf32>
      %29 = tpu.matmul %26, %28, %cst_25 {dimension_numbers = #tpu.dot_dimension_numbers<[1], [0], [0], [1], [0, 0, 1, 1], [], []>} : vector<8x128xbf16>, vector<128x256xbf16>, vector<8x256xf32> -> vector<8x256xf32>
      %30 = arith.addf %21, %29 : vector<8x256xf32>
      %c1_i32_26 = arith.constant 1 : i32
      %31 = arith.addi %arg6, %c1_i32_26 : i32
      %c0_27 = arith.constant 0 : index
      %32 = arith.index_cast %31 : i32 to index
      %c0_28 = arith.constant 0 : index
      %c0_29 = arith.constant 0 : index
      %33 = vector.load %arg2[%c0_27, %32, %c0_28, %c0_29] : memref<1x10x10x128xf32, #tpu.memory_space<vmem>>, vector<1x1x8x128xf32>
      %34 = vector.shape_cast %33 : vector<1x1x8x128xf32> to vector<8x128xf32>
      %35 = arith.truncf %34 : vector<8x128xf32> to vector<8x128xbf16>
      %c1_30 = arith.constant 1 : index
      %c0_31 = arith.constant 0 : index
      %c0_32 = arith.constant 0 : index
      %c0_33 = arith.constant 0 : index
      %36 = vector.load %arg3[%c1_30, %c0_31, %c0_32, %c0_33] : memref<3x3x128x256xbf16, #tpu.memory_space<vmem>>, vector<1x1x128x256xbf16>
      %37 = vector.shape_cast %36 : vector<1x1x128x256xbf16> to vector<128x256xbf16>
      %cst_34 = arith.constant dense<0.000000e+00> : vector<8x256xf32>
      %38 = tpu.matmul %35, %37, %cst_34 {dimension_numbers = #tpu.dot_dimension_numbers<[1], [0], [0], [1], [0, 0, 1, 1], [], []>} : vector<8x128xbf16>, vector<128x256xbf16>, vector<8x256xf32> -> vector<8x256xf32>
      %39 = arith.addf %30, %38 : vector<8x256xf32>
      %c1_i32_35 = arith.constant 1 : i32
      %40 = arith.addi %arg6, %c1_i32_35 : i32
      %c0_36 = arith.constant 0 : index
      %41 = arith.index_cast %40 : i32 to index
      %c1_37 = arith.constant 1 : index
      %c0_38 = arith.constant 0 : index
      %42 = vector.load %arg2[%c0_36, %41, %c1_37, %c0_38] : memref<1x10x10x128xf32, #tpu.memory_space<vmem>>, vector<1x1x8x128xf32>
      %43 = vector.shape_cast %42 : vector<1x1x8x128xf32> to vector<8x128xf32>
      %44 = arith.truncf %43 : vector<8x128xf32> to vector<8x128xbf16>
      %c1_39 = arith.constant 1 : index
      %c1_40 = arith.constant 1 : index
      %c0_41 = arith.constant 0 : index
      %c0_42 = arith.constant 0 : index
      %45 = vector.load %arg3[%c1_39, %c1_40, %c0_41, %c0_42] : memref<3x3x128x256xbf16, #tpu.memory_space<vmem>>, vector<1x1x128x256xbf16>
      %46 = vector.shape_cast %45 : vector<1x1x128x256xbf16> to vector<128x256xbf16>
      %cst_43 = arith.constant dense<0.000000e+00> : vector<8x256xf32>
      %47 = tpu.matmul %44, %46, %cst_43 {dimension_numbers = #tpu.dot_dimension_numbers<[1], [0], [0], [1], [0, 0, 1, 1], [], []>} : vector<8x128xbf16>, vector<128x256xbf16>, vector<8x256xf32> -> vector<8x256xf32>
      %48 = arith.addf %39, %47 : vector<8x256xf32>
      %c1_i32_44 = arith.constant 1 : i32
      %49 = arith.addi %arg6, %c1_i32_44 : i32
      %c0_45 = arith.constant 0 : index
      %50 = arith.index_cast %49 : i32 to index
      %c2_46 = arith.constant 2 : index
      %c0_47 = arith.constant 0 : index
      %51 = vector.load %arg2[%c0_45, %50, %c2_46, %c0_47] : memref<1x10x10x128xf32, #tpu.memory_space<vmem>>, vector<1x1x8x128xf32>
      %52 = vector.shape_cast %51 : vector<1x1x8x128xf32> to vector<8x128xf32>
      %53 = arith.truncf %52 : vector<8x128xf32> to vector<8x128xbf16>
      %c1_48 = arith.constant 1 : index
      %c2_49 = arith.constant 2 : index
      %c0_50 = arith.constant 0 : index
      %c0_51 = arith.constant 0 : index
      %54 = vector.load %arg3[%c1_48, %c2_49, %c0_50, %c0_51] : memref<3x3x128x256xbf16, #tpu.memory_space<vmem>>, vector<1x1x128x256xbf16>
      %55 = vector.shape_cast %54 : vector<1x1x128x256xbf16> to vector<128x256xbf16>
      %cst_52 = arith.constant dense<0.000000e+00> : vector<8x256xf32>
      %56 = tpu.matmul %53, %55, %cst_52 {dimension_numbers = #tpu.dot_dimension_numbers<[1], [0], [0], [1], [0, 0, 1, 1], [], []>} : vector<8x128xbf16>, vector<128x256xbf16>, vector<8x256xf32> -> vector<8x256xf32>
      %57 = arith.addf %48, %56 : vector<8x256xf32>
      %c2_i32 = arith.constant 2 : i32
      %58 = arith.addi %arg6, %c2_i32 : i32
      %c0_53 = arith.constant 0 : index
      %59 = arith.index_cast %58 : i32 to index
      %c0_54 = arith.constant 0 : index
      %c0_55 = arith.constant 0 : index
      %60 = vector.load %arg2[%c0_53, %59, %c0_54, %c0_55] : memref<1x10x10x128xf32, #tpu.memory_space<vmem>>, vector<1x1x8x128xf32>
      %61 = vector.shape_cast %60 : vector<1x1x8x128xf32> to vector<8x128xf32>
      %62 = arith.truncf %61 : vector<8x128xf32> to vector<8x128xbf16>
      %c2_56 = arith.constant 2 : index
      %c0_57 = arith.constant 0 : index
      %c0_58 = arith.constant 0 : index
      %c0_59 = arith.constant 0 : index
      %63 = vector.load %arg3[%c2_56, %c0_57, %c0_58, %c0_59] : memref<3x3x128x256xbf16, #tpu.memory_space<vmem>>, vector<1x1x128x256xbf16>
      %64 = vector.shape_cast %63 : vector<1x1x128x256xbf16> to vector<128x256xbf16>
      %cst_60 = arith.constant dense<0.000000e+00> : vector<8x256xf32>
      %65 = tpu.matmul %62, %64, %cst_60 {dimension_numbers = #tpu.dot_dimension_numbers<[1], [0], [0], [1], [0, 0, 1, 1], [], []>} : vector<8x128xbf16>, vector<128x256xbf16>, vector<8x256xf32> -> vector<8x256xf32>
      %66 = arith.addf %57, %65 : vector<8x256xf32>
      %c2_i32_61 = arith.constant 2 : i32
      %67 = arith.addi %arg6, %c2_i32_61 : i32
      %c0_62 = arith.constant 0 : index
      %68 = arith.index_cast %67 : i32 to index
      %c1_63 = arith.constant 1 : index
      %c0_64 = arith.constant 0 : index
      %69 = vector.load %arg2[%c0_62, %68, %c1_63, %c0_64] : memref<1x10x10x128xf32, #tpu.memory_space<vmem>>, vector<1x1x8x128xf32>
      %70 = vector.shape_cast %69 : vector<1x1x8x128xf32> to vector<8x128xf32>
      %71 = arith.truncf %70 : vector<8x128xf32> to vector<8x128xbf16>
      %c2_65 = arith.constant 2 : index
      %c1_66 = arith.constant 1 : index
      %c0_67 = arith.constant 0 : index
      %c0_68 = arith.constant 0 : index
      %72 = vector.load %arg3[%c2_65, %c1_66, %c0_67, %c0_68] : memref<3x3x128x256xbf16, #tpu.memory_space<vmem>>, vector<1x1x128x256xbf16>
      %73 = vector.shape_cast %72 : vector<1x1x128x256xbf16> to vector<128x256xbf16>
      %cst_69 = arith.constant dense<0.000000e+00> : vector<8x256xf32>
      %74 = tpu.matmul %71, %73, %cst_69 {dimension_numbers = #tpu.dot_dimension_numbers<[1], [0], [0], [1], [0, 0, 1, 1], [], []>} : vector<8x128xbf16>, vector<128x256xbf16>, vector<8x256xf32> -> vector<8x256xf32>
      %75 = arith.addf %66, %74 : vector<8x256xf32>
      %c2_i32_70 = arith.constant 2 : i32
      %76 = arith.addi %arg6, %c2_i32_70 : i32
      %c0_71 = arith.constant 0 : index
      %77 = arith.index_cast %76 : i32 to index
      %c2_72 = arith.constant 2 : index
      %c0_73 = arith.constant 0 : index
      %78 = vector.load %arg2[%c0_71, %77, %c2_72, %c0_73] : memref<1x10x10x128xf32, #tpu.memory_space<vmem>>, vector<1x1x8x128xf32>
      %79 = vector.shape_cast %78 : vector<1x1x8x128xf32> to vector<8x128xf32>
      %80 = arith.truncf %79 : vector<8x128xf32> to vector<8x128xbf16>
      %c2_74 = arith.constant 2 : index
      %c2_75 = arith.constant 2 : index
      %c0_76 = arith.constant 0 : index
      %c0_77 = arith.constant 0 : index
      %81 = vector.load %arg3[%c2_74, %c2_75, %c0_76, %c0_77] : memref<3x3x128x256xbf16, #tpu.memory_space<vmem>>, vector<1x1x128x256xbf16>
      %82 = vector.shape_cast %81 : vector<1x1x128x256xbf16> to vector<128x256xbf16>
      %cst_78 = arith.constant dense<0.000000e+00> : vector<8x256xf32>
      %83 = tpu.matmul %80, %82, %cst_78 {dimension_numbers = #tpu.dot_dimension_numbers<[1], [0], [0], [1], [0, 0, 1, 1], [], []>} : vector<8x128xbf16>, vector<128x256xbf16>, vector<8x256xf32> -> vector<8x256xf32>
      %84 = arith.addf %75, %83 : vector<8x256xf32>
      %cst_79 = arith.constant 0.000000e+00 : f32
      %85 = vector.broadcast %cst_79 : f32 to vector<8x256xf32>
      %86 = arith.maximumf %84, %85 : vector<8x256xf32>
      %87 = arith.truncf %86 : vector<8x256xf32> to vector<8x256xbf16>
      %c0_80 = arith.constant 0 : index
      %88 = arith.index_cast %arg6 : i32 to index
      %c0_81 = arith.constant 0 : index
      %c0_82 = arith.constant 0 : index
      %89 = vector.load %arg5[%c0_80, %88, %c0_81, %c0_82] : memref<1x8x8x256xbf16, #tpu.memory_space<vmem>>, vector<1x1x8x256xbf16>
      %90 = vector.shape_cast %89 : vector<1x1x8x256xbf16> to vector<8x256xbf16>
      %91 = vector.shape_cast %87 : vector<8x256xbf16> to vector<1x1x8x256xbf16>
      tpu.vector_store %arg5[%c0_80, %88, %c0_81, %c0_82], %91 {strides = array<i32>} : memref<1x8x8x256xbf16, #tpu.memory_space<vmem>>, vector<1x1x8x256xbf16>,
    }
    %c8_i32_1 = arith.constant 8 : i32
    return
  }
  func.func @transform_0(%arg0: i32, %arg1: i32) -> (i32, i32, i32, i32) {
    %c0_i32 = arith.constant 0 : i32
    %c0_i32_0 = arith.constant 0 : i32
    %c0_i32_1 = arith.constant 0 : i32
    %c0_i32_2 = arith.constant 0 : i32
    return %arg0, %c0_i32, %c0_i32_0, %c0_i32_1 : i32, i32, i32, i32
  }
  func.func @transform_1(%arg0: i32, %arg1: i32) -> (i32, i32, i32, i32) {
    %c0_i32 = arith.constant 0 : i32
    %c0_i32_0 = arith.constant 0 : i32
    %c0_i32_1 = arith.constant 0 : i32
    %c0_i32_2 = arith.constant 0 : i32
    return %c0_i32, %c0_i32_0, %c0_i32_1, %arg1 : i32, i32, i32, i32
  }
  func.func @transform_2(%arg0: i32, %arg1: i32) -> (i32, i32) {
    %c0_i32 = arith.constant 0 : i32
    %c0_i32_0 = arith.constant 0 : i32
    return %c0_i32, %arg1 : i32, i32
  }
  func.func @transform_3(%arg0: i32, %arg1: i32) -> (i32, i32, i32, i32) {
    %c0_i32 = arith.constant 0 : i32
    %c0_i32_0 = arith.constant 0 : i32
    %c0_i32_1 = arith.constant 0 : i32
    return %arg0, %c0_i32, %c0_i32_0, %arg1 : i32, i32, i32, i32
  }
}

module attributes {stable_mosaic.version = 11 : i64} {
  func.func @_matmul_kernel(%arg0: i32, %arg1: i32, %arg2: i32, %arg3: memref<32x256xbf16, #tpu.memory_space<vmem>>, %arg4: memref<256x128xbf16, #tpu.memory_space<vmem>>, %arg5: memref<1x128xf32, #tpu.memory_space<vmem>>, %arg6: memref<32x128xf32, #tpu.memory_space<vmem>>, %arg7: memref<32x128xf32, #tpu.memory_space<vmem>>) attributes {dimension_semantics = [#tpu.dimension_semantics<parallel>, #tpu.dimension_semantics<parallel>, #tpu.dimension_semantics<arbitrary>], iteration_bounds = array<i64: 1, 1, 1>, scalar_prefetch = 0 : i64, scratch_operands = 1 : i64, tpu.core_type = #tpu.core_type<tc>, window_params = [{transform_indices = @transform_0, window_bounds = array<i64: 32, 256>}, {transform_indices = @transform_1, window_bounds = array<i64: 256, 128>}, {transform_indices = @transform_2, window_bounds = array<i64: 1, 128>}, {transform_indices = @transform_3, window_bounds = array<i64: 32, 128>}]} {
    %c0_i32 = arith.constant 0 : i32
    %0 = arith.cmpi eq, %arg2, %c0_i32 : i32
    %1 = arith.extui %0 : i1 to i32
    %c0_i32_0 = arith.constant 0 : i32
    %2 = arith.cmpi ne, %1, %c0_i32_0 : i32
    scf.if %2 {
      %cst_10 = arith.constant 0.000000e+00 : f32
      %12 = vector.broadcast %cst_10 : f32 to vector<32x128xf32>
      %c0_11 = arith.constant 0 : index
      %c0_12 = arith.constant 0 : index
      %13 = vector.load %arg7[%c0_11, %c0_12] : memref<32x128xf32, #tpu.memory_space<vmem>>, vector<32x128xf32>
      tpu.vector_store %arg7[%c0_11, %c0_12], %12 {strides = array<i32>} : memref<32x128xf32, #tpu.memory_space<vmem>>, vector<32x128xf32>,
    } else {
    }
    %c0 = arith.constant 0 : index
    %c0_1 = arith.constant 0 : index
    %3 = vector.load %arg7[%c0, %c0_1] : memref<32x128xf32, #tpu.memory_space<vmem>>, vector<32x128xf32>
    %c0_2 = arith.constant 0 : index
    %c0_3 = arith.constant 0 : index
    %4 = vector.load %arg3[%c0_2, %c0_3] : memref<32x256xbf16, #tpu.memory_space<vmem>>, vector<32x256xbf16>
    %c0_4 = arith.constant 0 : index
    %c0_5 = arith.constant 0 : index
    %5 = vector.load %arg4[%c0_4, %c0_5] : memref<256x128xbf16, #tpu.memory_space<vmem>>, vector<256x128xbf16>
    %cst = arith.constant dense<0.000000e+00> : vector<32x128xf32>
    %6 = tpu.matmul %4, %5, %cst {dimension_numbers = #tpu.dot_dimension_numbers<[1], [0], [0], [1], [0, 0, 1, 1], [], []>} : vector<32x256xbf16>, vector<256x128xbf16>, vector<32x128xf32> -> vector<32x128xf32>
    %7 = arith.addf %3, %6 : vector<32x128xf32>
    %c0_6 = arith.constant 0 : index
    %c0_7 = arith.constant 0 : index
    %8 = vector.load %arg7[%c0_6, %c0_7] : memref<32x128xf32, #tpu.memory_space<vmem>>, vector<32x128xf32>
    tpu.vector_store %arg7[%c0_6, %c0_7], %7 {strides = array<i32>} : memref<32x128xf32, #tpu.memory_space<vmem>>, vector<32x128xf32>,
    %c0_i32_8 = arith.constant 0 : i32
    %9 = arith.cmpi eq, %arg2, %c0_i32_8 : i32
    %10 = arith.extui %9 : i1 to i32
    %c0_i32_9 = arith.constant 0 : i32
    %11 = arith.cmpi ne, %10, %c0_i32_9 : i32
    scf.if %11 {
      %c0_10 = arith.constant 0 : index
      %c0_11 = arith.constant 0 : index
      %12 = vector.load %arg7[%c0_10, %c0_11] : memref<32x128xf32, #tpu.memory_space<vmem>>, vector<32x128xf32>
      %c0_12 = arith.constant 0 : index
      %c0_13 = arith.constant 0 : index
      %13 = vector.load %arg5[%c0_12, %c0_13] : memref<1x128xf32, #tpu.memory_space<vmem>>, vector<1x128xf32>
      %14 = vector.broadcast %13 : vector<1x128xf32> to vector<32x128xf32>
      %15 = arith.addf %12, %14 : vector<32x128xf32>
      %c0_14 = arith.constant 0 : index
      %c0_15 = arith.constant 0 : index
      %16 = vector.load %arg6[%c0_14, %c0_15] : memref<32x128xf32, #tpu.memory_space<vmem>>, vector<32x128xf32>
      tpu.vector_store %arg6[%c0_14, %c0_15], %15 {strides = array<i32>} : memref<32x128xf32, #tpu.memory_space<vmem>>, vector<32x128xf32>,
    } else {
    }
    return
  }
  func.func @transform_0(%arg0: i32, %arg1: i32, %arg2: i32) -> (i32, i32) {
    %c0_i32 = arith.constant 0 : i32
    return %arg0, %arg2 : i32, i32
  }
  func.func @transform_1(%arg0: i32, %arg1: i32, %arg2: i32) -> (i32, i32) {
    %c0_i32 = arith.constant 0 : i32
    return %arg2, %arg1 : i32, i32
  }
  func.func @transform_2(%arg0: i32, %arg1: i32, %arg2: i32) -> (i32, i32) {
    %c0_i32 = arith.constant 0 : i32
    %c0_i32_0 = arith.constant 0 : i32
    return %c0_i32, %arg1 : i32, i32
  }
  func.func @transform_3(%arg0: i32, %arg1: i32, %arg2: i32) -> (i32, i32) {
    %c0_i32 = arith.constant 0 : i32
    return %arg0, %arg1 : i32, i32
  }
}

module attributes {stable_mosaic.version = 11 : i64} {
  func.func @_conv_kernel(%arg0: i32, %arg1: i32, %arg2: memref<1x6x6x256xf32, #tpu.memory_space<vmem>>, %arg3: memref<3x3x256x256xbf16, #tpu.memory_space<vmem>>, %arg4: memref<1x256xf32, #tpu.memory_space<vmem>>, %arg5: memref<1x4x4x256xbf16, #tpu.memory_space<vmem>>) attributes {dimension_semantics = [#tpu.dimension_semantics<parallel>, #tpu.dimension_semantics<parallel>], iteration_bounds = array<i64: 2, 2>, scalar_prefetch = 0 : i64, scratch_operands = 0 : i64, tpu.core_type = #tpu.core_type<tc>, window_params = [{transform_indices = @transform_0, window_bounds = array<i64: 1, 6, 6, 256>}, {transform_indices = @transform_1, window_bounds = array<i64: 3, 3, 256, 256>}, {transform_indices = @transform_2, window_bounds = array<i64: 1, 256>}, {transform_indices = @transform_3, window_bounds = array<i64: 1, 4, 4, 256>}]} {
    %c0 = arith.constant 0 : index
    %c0_0 = arith.constant 0 : index
    %0 = vector.load %arg4[%c0, %c0_0] : memref<1x256xf32, #tpu.memory_space<vmem>>, vector<1x256xf32>
    %1 = vector.shape_cast %0 : vector<1x256xf32> to vector<1x256xf32>
    %2 = vector.broadcast %1 : vector<1x256xf32> to vector<4x256xf32>
    %c0_i32 = arith.constant 0 : i32
    %c4_i32 = arith.constant 4 : i32
    %3 = arith.addi %c0_i32, %c4_i32 : i32
    %c1_i32 = arith.constant 1 : i32
    scf.for %arg6 = %c0_i32 to %3 step %c1_i32  : i32 {
      %c0_i32_2 = arith.constant 0 : i32
      %4 = arith.addi %arg6, %c0_i32_2 : i32
      %c0_3 = arith.constant 0 : index
      %5 = arith.index_cast %4 : i32 to index
      %c0_4 = arith.constant 0 : index
      %c0_5 = arith.constant 0 : index
      %6 = vector.load %arg2[%c0_3, %5, %c0_4, %c0_5] : memref<1x6x6x256xf32, #tpu.memory_space<vmem>>, vector<1x1x4x256xf32>
      %7 = vector.shape_cast %6 : vector<1x1x4x256xf32> to vector<4x256xf32>
      %8 = arith.truncf %7 : vector<4x256xf32> to vector<4x256xbf16>
      %c0_6 = arith.constant 0 : index
      %c0_7 = arith.constant 0 : index
      %c0_8 = arith.constant 0 : index
      %c0_9 = arith.constant 0 : index
      %9 = vector.load %arg3[%c0_6, %c0_7, %c0_8, %c0_9] : memref<3x3x256x256xbf16, #tpu.memory_space<vmem>>, vector<1x1x256x256xbf16>
      %10 = vector.shape_cast %9 : vector<1x1x256x256xbf16> to vector<256x256xbf16>
      %cst = arith.constant dense<0.000000e+00> : vector<4x256xf32>
      %11 = tpu.matmul %8, %10, %cst {dimension_numbers = #tpu.dot_dimension_numbers<[1], [0], [0], [1], [0, 0, 1, 1], [], []>} : vector<4x256xbf16>, vector<256x256xbf16>, vector<4x256xf32> -> vector<4x256xf32>
      %12 = arith.addf %2, %11 : vector<4x256xf32>
      %c0_i32_10 = arith.constant 0 : i32
      %13 = arith.addi %arg6, %c0_i32_10 : i32
      %c0_11 = arith.constant 0 : index
      %14 = arith.index_cast %13 : i32 to index
      %c1 = arith.constant 1 : index
      %c0_12 = arith.constant 0 : index
      %15 = vector.load %arg2[%c0_11, %14, %c1, %c0_12] : memref<1x6x6x256xf32, #tpu.memory_space<vmem>>, vector<1x1x4x256xf32>
      %16 = vector.shape_cast %15 : vector<1x1x4x256xf32> to vector<4x256xf32>
      %17 = arith.truncf %16 : vector<4x256xf32> to vector<4x256xbf16>
      %c0_13 = arith.constant 0 : index
      %c1_14 = arith.constant 1 : index
      %c0_15 = arith.constant 0 : index
      %c0_16 = arith.constant 0 : index
      %18 = vector.load %arg3[%c0_13, %c1_14, %c0_15, %c0_16] : memref<3x3x256x256xbf16, #tpu.memory_space<vmem>>, vector<1x1x256x256xbf16>
      %19 = vector.shape_cast %18 : vector<1x1x256x256xbf16> to vector<256x256xbf16>
      %cst_17 = arith.constant dense<0.000000e+00> : vector<4x256xf32>
      %20 = tpu.matmul %17, %19, %cst_17 {dimension_numbers = #tpu.dot_dimension_numbers<[1], [0], [0], [1], [0, 0, 1, 1], [], []>} : vector<4x256xbf16>, vector<256x256xbf16>, vector<4x256xf32> -> vector<4x256xf32>
      %21 = arith.addf %12, %20 : vector<4x256xf32>
      %c0_i32_18 = arith.constant 0 : i32
      %22 = arith.addi %arg6, %c0_i32_18 : i32
      %c0_19 = arith.constant 0 : index
      %23 = arith.index_cast %22 : i32 to index
      %c2 = arith.constant 2 : index
      %c0_20 = arith.constant 0 : index
      %24 = vector.load %arg2[%c0_19, %23, %c2, %c0_20] : memref<1x6x6x256xf32, #tpu.memory_space<vmem>>, vector<1x1x4x256xf32>
      %25 = vector.shape_cast %24 : vector<1x1x4x256xf32> to vector<4x256xf32>
      %26 = arith.truncf %25 : vector<4x256xf32> to vector<4x256xbf16>
      %c0_21 = arith.constant 0 : index
      %c2_22 = arith.constant 2 : index
      %c0_23 = arith.constant 0 : index
      %c0_24 = arith.constant 0 : index
      %27 = vector.load %arg3[%c0_21, %c2_22, %c0_23, %c0_24] : memref<3x3x256x256xbf16, #tpu.memory_space<vmem>>, vector<1x1x256x256xbf16>
      %28 = vector.shape_cast %27 : vector<1x1x256x256xbf16> to vector<256x256xbf16>
      %cst_25 = arith.constant dense<0.000000e+00> : vector<4x256xf32>
      %29 = tpu.matmul %26, %28, %cst_25 {dimension_numbers = #tpu.dot_dimension_numbers<[1], [0], [0], [1], [0, 0, 1, 1], [], []>} : vector<4x256xbf16>, vector<256x256xbf16>, vector<4x256xf32> -> vector<4x256xf32>
      %30 = arith.addf %21, %29 : vector<4x256xf32>
      %c1_i32_26 = arith.constant 1 : i32
      %31 = arith.addi %arg6, %c1_i32_26 : i32
      %c0_27 = arith.constant 0 : index
      %32 = arith.index_cast %31 : i32 to index
      %c0_28 = arith.constant 0 : index
      %c0_29 = arith.constant 0 : index
      %33 = vector.load %arg2[%c0_27, %32, %c0_28, %c0_29] : memref<1x6x6x256xf32, #tpu.memory_space<vmem>>, vector<1x1x4x256xf32>
      %34 = vector.shape_cast %33 : vector<1x1x4x256xf32> to vector<4x256xf32>
      %35 = arith.truncf %34 : vector<4x256xf32> to vector<4x256xbf16>
      %c1_30 = arith.constant 1 : index
      %c0_31 = arith.constant 0 : index
      %c0_32 = arith.constant 0 : index
      %c0_33 = arith.constant 0 : index
      %36 = vector.load %arg3[%c1_30, %c0_31, %c0_32, %c0_33] : memref<3x3x256x256xbf16, #tpu.memory_space<vmem>>, vector<1x1x256x256xbf16>
      %37 = vector.shape_cast %36 : vector<1x1x256x256xbf16> to vector<256x256xbf16>
      %cst_34 = arith.constant dense<0.000000e+00> : vector<4x256xf32>
      %38 = tpu.matmul %35, %37, %cst_34 {dimension_numbers = #tpu.dot_dimension_numbers<[1], [0], [0], [1], [0, 0, 1, 1], [], []>} : vector<4x256xbf16>, vector<256x256xbf16>, vector<4x256xf32> -> vector<4x256xf32>
      %39 = arith.addf %30, %38 : vector<4x256xf32>
      %c1_i32_35 = arith.constant 1 : i32
      %40 = arith.addi %arg6, %c1_i32_35 : i32
      %c0_36 = arith.constant 0 : index
      %41 = arith.index_cast %40 : i32 to index
      %c1_37 = arith.constant 1 : index
      %c0_38 = arith.constant 0 : index
      %42 = vector.load %arg2[%c0_36, %41, %c1_37, %c0_38] : memref<1x6x6x256xf32, #tpu.memory_space<vmem>>, vector<1x1x4x256xf32>
      %43 = vector.shape_cast %42 : vector<1x1x4x256xf32> to vector<4x256xf32>
      %44 = arith.truncf %43 : vector<4x256xf32> to vector<4x256xbf16>
      %c1_39 = arith.constant 1 : index
      %c1_40 = arith.constant 1 : index
      %c0_41 = arith.constant 0 : index
      %c0_42 = arith.constant 0 : index
      %45 = vector.load %arg3[%c1_39, %c1_40, %c0_41, %c0_42] : memref<3x3x256x256xbf16, #tpu.memory_space<vmem>>, vector<1x1x256x256xbf16>
      %46 = vector.shape_cast %45 : vector<1x1x256x256xbf16> to vector<256x256xbf16>
      %cst_43 = arith.constant dense<0.000000e+00> : vector<4x256xf32>
      %47 = tpu.matmul %44, %46, %cst_43 {dimension_numbers = #tpu.dot_dimension_numbers<[1], [0], [0], [1], [0, 0, 1, 1], [], []>} : vector<4x256xbf16>, vector<256x256xbf16>, vector<4x256xf32> -> vector<4x256xf32>
      %48 = arith.addf %39, %47 : vector<4x256xf32>
      %c1_i32_44 = arith.constant 1 : i32
      %49 = arith.addi %arg6, %c1_i32_44 : i32
      %c0_45 = arith.constant 0 : index
      %50 = arith.index_cast %49 : i32 to index
      %c2_46 = arith.constant 2 : index
      %c0_47 = arith.constant 0 : index
      %51 = vector.load %arg2[%c0_45, %50, %c2_46, %c0_47] : memref<1x6x6x256xf32, #tpu.memory_space<vmem>>, vector<1x1x4x256xf32>
      %52 = vector.shape_cast %51 : vector<1x1x4x256xf32> to vector<4x256xf32>
      %53 = arith.truncf %52 : vector<4x256xf32> to vector<4x256xbf16>
      %c1_48 = arith.constant 1 : index
      %c2_49 = arith.constant 2 : index
      %c0_50 = arith.constant 0 : index
      %c0_51 = arith.constant 0 : index
      %54 = vector.load %arg3[%c1_48, %c2_49, %c0_50, %c0_51] : memref<3x3x256x256xbf16, #tpu.memory_space<vmem>>, vector<1x1x256x256xbf16>
      %55 = vector.shape_cast %54 : vector<1x1x256x256xbf16> to vector<256x256xbf16>
      %cst_52 = arith.constant dense<0.000000e+00> : vector<4x256xf32>
      %56 = tpu.matmul %53, %55, %cst_52 {dimension_numbers = #tpu.dot_dimension_numbers<[1], [0], [0], [1], [0, 0, 1, 1], [], []>} : vector<4x256xbf16>, vector<256x256xbf16>, vector<4x256xf32> -> vector<4x256xf32>
      %57 = arith.addf %48, %56 : vector<4x256xf32>
      %c2_i32 = arith.constant 2 : i32
      %58 = arith.addi %arg6, %c2_i32 : i32
      %c0_53 = arith.constant 0 : index
      %59 = arith.index_cast %58 : i32 to index
      %c0_54 = arith.constant 0 : index
      %c0_55 = arith.constant 0 : index
      %60 = vector.load %arg2[%c0_53, %59, %c0_54, %c0_55] : memref<1x6x6x256xf32, #tpu.memory_space<vmem>>, vector<1x1x4x256xf32>
      %61 = vector.shape_cast %60 : vector<1x1x4x256xf32> to vector<4x256xf32>
      %62 = arith.truncf %61 : vector<4x256xf32> to vector<4x256xbf16>
      %c2_56 = arith.constant 2 : index
      %c0_57 = arith.constant 0 : index
      %c0_58 = arith.constant 0 : index
      %c0_59 = arith.constant 0 : index
      %63 = vector.load %arg3[%c2_56, %c0_57, %c0_58, %c0_59] : memref<3x3x256x256xbf16, #tpu.memory_space<vmem>>, vector<1x1x256x256xbf16>
      %64 = vector.shape_cast %63 : vector<1x1x256x256xbf16> to vector<256x256xbf16>
      %cst_60 = arith.constant dense<0.000000e+00> : vector<4x256xf32>
      %65 = tpu.matmul %62, %64, %cst_60 {dimension_numbers = #tpu.dot_dimension_numbers<[1], [0], [0], [1], [0, 0, 1, 1], [], []>} : vector<4x256xbf16>, vector<256x256xbf16>, vector<4x256xf32> -> vector<4x256xf32>
      %66 = arith.addf %57, %65 : vector<4x256xf32>
      %c2_i32_61 = arith.constant 2 : i32
      %67 = arith.addi %arg6, %c2_i32_61 : i32
      %c0_62 = arith.constant 0 : index
      %68 = arith.index_cast %67 : i32 to index
      %c1_63 = arith.constant 1 : index
      %c0_64 = arith.constant 0 : index
      %69 = vector.load %arg2[%c0_62, %68, %c1_63, %c0_64] : memref<1x6x6x256xf32, #tpu.memory_space<vmem>>, vector<1x1x4x256xf32>
      %70 = vector.shape_cast %69 : vector<1x1x4x256xf32> to vector<4x256xf32>
      %71 = arith.truncf %70 : vector<4x256xf32> to vector<4x256xbf16>
      %c2_65 = arith.constant 2 : index
      %c1_66 = arith.constant 1 : index
      %c0_67 = arith.constant 0 : index
      %c0_68 = arith.constant 0 : index
      %72 = vector.load %arg3[%c2_65, %c1_66, %c0_67, %c0_68] : memref<3x3x256x256xbf16, #tpu.memory_space<vmem>>, vector<1x1x256x256xbf16>
      %73 = vector.shape_cast %72 : vector<1x1x256x256xbf16> to vector<256x256xbf16>
      %cst_69 = arith.constant dense<0.000000e+00> : vector<4x256xf32>
      %74 = tpu.matmul %71, %73, %cst_69 {dimension_numbers = #tpu.dot_dimension_numbers<[1], [0], [0], [1], [0, 0, 1, 1], [], []>} : vector<4x256xbf16>, vector<256x256xbf16>, vector<4x256xf32> -> vector<4x256xf32>
      %75 = arith.addf %66, %74 : vector<4x256xf32>
      %c2_i32_70 = arith.constant 2 : i32
      %76 = arith.addi %arg6, %c2_i32_70 : i32
      %c0_71 = arith.constant 0 : index
      %77 = arith.index_cast %76 : i32 to index
      %c2_72 = arith.constant 2 : index
      %c0_73 = arith.constant 0 : index
      %78 = vector.load %arg2[%c0_71, %77, %c2_72, %c0_73] : memref<1x6x6x256xf32, #tpu.memory_space<vmem>>, vector<1x1x4x256xf32>
      %79 = vector.shape_cast %78 : vector<1x1x4x256xf32> to vector<4x256xf32>
      %80 = arith.truncf %79 : vector<4x256xf32> to vector<4x256xbf16>
      %c2_74 = arith.constant 2 : index
      %c2_75 = arith.constant 2 : index
      %c0_76 = arith.constant 0 : index
      %c0_77 = arith.constant 0 : index
      %81 = vector.load %arg3[%c2_74, %c2_75, %c0_76, %c0_77] : memref<3x3x256x256xbf16, #tpu.memory_space<vmem>>, vector<1x1x256x256xbf16>
      %82 = vector.shape_cast %81 : vector<1x1x256x256xbf16> to vector<256x256xbf16>
      %cst_78 = arith.constant dense<0.000000e+00> : vector<4x256xf32>
      %83 = tpu.matmul %80, %82, %cst_78 {dimension_numbers = #tpu.dot_dimension_numbers<[1], [0], [0], [1], [0, 0, 1, 1], [], []>} : vector<4x256xbf16>, vector<256x256xbf16>, vector<4x256xf32> -> vector<4x256xf32>
      %84 = arith.addf %75, %83 : vector<4x256xf32>
      %cst_79 = arith.constant 0.000000e+00 : f32
      %85 = vector.broadcast %cst_79 : f32 to vector<4x256xf32>
      %86 = arith.maximumf %84, %85 : vector<4x256xf32>
      %87 = arith.truncf %86 : vector<4x256xf32> to vector<4x256xbf16>
      %c0_80 = arith.constant 0 : index
      %88 = arith.index_cast %arg6 : i32 to index
      %c0_81 = arith.constant 0 : index
      %c0_82 = arith.constant 0 : index
      %89 = vector.load %arg5[%c0_80, %88, %c0_81, %c0_82] : memref<1x4x4x256xbf16, #tpu.memory_space<vmem>>, vector<1x1x4x256xbf16>
      %90 = vector.shape_cast %89 : vector<1x1x4x256xbf16> to vector<4x256xbf16>
      %91 = vector.shape_cast %87 : vector<4x256xbf16> to vector<1x1x4x256xbf16>
      tpu.vector_store %arg5[%c0_80, %88, %c0_81, %c0_82], %91 {strides = array<i32>} : memref<1x4x4x256xbf16, #tpu.memory_space<vmem>>, vector<1x1x4x256xbf16>,
    }
    %c4_i32_1 = arith.constant 4 : i32
    return
  }
  func.func @transform_0(%arg0: i32, %arg1: i32) -> (i32, i32, i32, i32) {
    %c0_i32 = arith.constant 0 : i32
    %c0_i32_0 = arith.constant 0 : i32
    %c0_i32_1 = arith.constant 0 : i32
    %c0_i32_2 = arith.constant 0 : i32
    return %arg0, %c0_i32, %c0_i32_0, %c0_i32_1 : i32, i32, i32, i32
  }
  func.func @transform_1(%arg0: i32, %arg1: i32) -> (i32, i32, i32, i32) {
    %c0_i32 = arith.constant 0 : i32
    %c0_i32_0 = arith.constant 0 : i32
    %c0_i32_1 = arith.constant 0 : i32
    %c0_i32_2 = arith.constant 0 : i32
    return %c0_i32, %c0_i32_0, %c0_i32_1, %arg1 : i32, i32, i32, i32
  }
  func.func @transform_2(%arg0: i32, %arg1: i32) -> (i32, i32) {
    %c0_i32 = arith.constant 0 : i32
    %c0_i32_0 = arith.constant 0 : i32
    return %c0_i32, %arg1 : i32, i32
  }
  func.func @transform_3(%arg0: i32, %arg1: i32) -> (i32, i32, i32, i32) {
    %c0_i32 = arith.constant 0 : i32
    %c0_i32_0 = arith.constant 0 : i32
    %c0_i32_1 = arith.constant 0 : i32
    return %arg0, %c0_i32, %c0_i32_0, %arg1 : i32, i32, i32, i32
  }
}

module attributes {stable_mosaic.version = 11 : i64} {
  func.func @_matmul_kernel(%arg0: i32, %arg1: i32, %arg2: i32, %arg3: memref<16x512xbf16, #tpu.memory_space<vmem>>, %arg4: memref<512x128xbf16, #tpu.memory_space<vmem>>, %arg5: memref<1x128xf32, #tpu.memory_space<vmem>>, %arg6: memref<16x128xf32, #tpu.memory_space<vmem>>, %arg7: memref<16x128xf32, #tpu.memory_space<vmem>>) attributes {dimension_semantics = [#tpu.dimension_semantics<parallel>, #tpu.dimension_semantics<parallel>, #tpu.dimension_semantics<arbitrary>], iteration_bounds = array<i64: 1, 1, 1>, scalar_prefetch = 0 : i64, scratch_operands = 1 : i64, tpu.core_type = #tpu.core_type<tc>, window_params = [{transform_indices = @transform_0, window_bounds = array<i64: 16, 512>}, {transform_indices = @transform_1, window_bounds = array<i64: 512, 128>}, {transform_indices = @transform_2, window_bounds = array<i64: 1, 128>}, {transform_indices = @transform_3, window_bounds = array<i64: 16, 128>}]} {
    %c0_i32 = arith.constant 0 : i32
    %0 = arith.cmpi eq, %arg2, %c0_i32 : i32
    %1 = arith.extui %0 : i1 to i32
    %c0_i32_0 = arith.constant 0 : i32
    %2 = arith.cmpi ne, %1, %c0_i32_0 : i32
    scf.if %2 {
      %cst_10 = arith.constant 0.000000e+00 : f32
      %12 = vector.broadcast %cst_10 : f32 to vector<16x128xf32>
      %c0_11 = arith.constant 0 : index
      %c0_12 = arith.constant 0 : index
      %13 = vector.load %arg7[%c0_11, %c0_12] : memref<16x128xf32, #tpu.memory_space<vmem>>, vector<16x128xf32>
      tpu.vector_store %arg7[%c0_11, %c0_12], %12 {strides = array<i32>} : memref<16x128xf32, #tpu.memory_space<vmem>>, vector<16x128xf32>,
    } else {
    }
    %c0 = arith.constant 0 : index
    %c0_1 = arith.constant 0 : index
    %3 = vector.load %arg7[%c0, %c0_1] : memref<16x128xf32, #tpu.memory_space<vmem>>, vector<16x128xf32>
    %c0_2 = arith.constant 0 : index
    %c0_3 = arith.constant 0 : index
    %4 = vector.load %arg3[%c0_2, %c0_3] : memref<16x512xbf16, #tpu.memory_space<vmem>>, vector<16x512xbf16>
    %c0_4 = arith.constant 0 : index
    %c0_5 = arith.constant 0 : index
    %5 = vector.load %arg4[%c0_4, %c0_5] : memref<512x128xbf16, #tpu.memory_space<vmem>>, vector<512x128xbf16>
    %cst = arith.constant dense<0.000000e+00> : vector<16x128xf32>
    %6 = tpu.matmul %4, %5, %cst {dimension_numbers = #tpu.dot_dimension_numbers<[1], [0], [0], [1], [0, 0, 1, 1], [], []>} : vector<16x512xbf16>, vector<512x128xbf16>, vector<16x128xf32> -> vector<16x128xf32>
    %7 = arith.addf %3, %6 : vector<16x128xf32>
    %c0_6 = arith.constant 0 : index
    %c0_7 = arith.constant 0 : index
    %8 = vector.load %arg7[%c0_6, %c0_7] : memref<16x128xf32, #tpu.memory_space<vmem>>, vector<16x128xf32>
    tpu.vector_store %arg7[%c0_6, %c0_7], %7 {strides = array<i32>} : memref<16x128xf32, #tpu.memory_space<vmem>>, vector<16x128xf32>,
    %c0_i32_8 = arith.constant 0 : i32
    %9 = arith.cmpi eq, %arg2, %c0_i32_8 : i32
    %10 = arith.extui %9 : i1 to i32
    %c0_i32_9 = arith.constant 0 : i32
    %11 = arith.cmpi ne, %10, %c0_i32_9 : i32
    scf.if %11 {
      %c0_10 = arith.constant 0 : index
      %c0_11 = arith.constant 0 : index
      %12 = vector.load %arg7[%c0_10, %c0_11] : memref<16x128xf32, #tpu.memory_space<vmem>>, vector<16x128xf32>
      %c0_12 = arith.constant 0 : index
      %c0_13 = arith.constant 0 : index
      %13 = vector.load %arg5[%c0_12, %c0_13] : memref<1x128xf32, #tpu.memory_space<vmem>>, vector<1x128xf32>
      %14 = vector.broadcast %13 : vector<1x128xf32> to vector<16x128xf32>
      %15 = arith.addf %12, %14 : vector<16x128xf32>
      %c0_14 = arith.constant 0 : index
      %c0_15 = arith.constant 0 : index
      %16 = vector.load %arg6[%c0_14, %c0_15] : memref<16x128xf32, #tpu.memory_space<vmem>>, vector<16x128xf32>
      tpu.vector_store %arg6[%c0_14, %c0_15], %15 {strides = array<i32>} : memref<16x128xf32, #tpu.memory_space<vmem>>, vector<16x128xf32>,
    } else {
    }
    return
  }
  func.func @transform_0(%arg0: i32, %arg1: i32, %arg2: i32) -> (i32, i32) {
    %c0_i32 = arith.constant 0 : i32
    return %arg0, %arg2 : i32, i32
  }
  func.func @transform_1(%arg0: i32, %arg1: i32, %arg2: i32) -> (i32, i32) {
    %c0_i32 = arith.constant 0 : i32
    return %arg2, %arg1 : i32, i32
  }
  func.func @transform_2(%arg0: i32, %arg1: i32, %arg2: i32) -> (i32, i32) {
    %c0_i32 = arith.constant 0 : i32
    %c0_i32_0 = arith.constant 0 : i32
    return %c0_i32, %arg1 : i32, i32
  }
  func.func @transform_3(%arg0: i32, %arg1: i32, %arg2: i32) -> (i32, i32) {
    %c0_i32 = arith.constant 0 : i32
    return %arg0, %arg1 : i32, i32
  }
}

module attributes {stable_mosaic.version = 11 : i64} {
  func.func @_matmul_kernel(%arg0: i32, %arg1: i32, %arg2: i32, %arg3: memref<128x128xbf16, #tpu.memory_space<vmem>>, %arg4: memref<128x128xbf16, #tpu.memory_space<vmem>>, %arg5: memref<1x128xf32, #tpu.memory_space<vmem>>, %arg6: memref<128x128xf32, #tpu.memory_space<vmem>>, %arg7: memref<128x128xf32, #tpu.memory_space<vmem>>) attributes {dimension_semantics = [#tpu.dimension_semantics<parallel>, #tpu.dimension_semantics<parallel>, #tpu.dimension_semantics<arbitrary>], iteration_bounds = array<i64: 1, 1, 1>, scalar_prefetch = 0 : i64, scratch_operands = 1 : i64, tpu.core_type = #tpu.core_type<tc>, window_params = [{transform_indices = @transform_0, window_bounds = array<i64: 128, 128>}, {transform_indices = @transform_1, window_bounds = array<i64: 128, 128>}, {transform_indices = @transform_2, window_bounds = array<i64: 1, 128>}, {transform_indices = @transform_3, window_bounds = array<i64: 128, 128>}]} {
    %c0_i32 = arith.constant 0 : i32
    %0 = arith.cmpi eq, %arg2, %c0_i32 : i32
    %1 = arith.extui %0 : i1 to i32
    %c0_i32_0 = arith.constant 0 : i32
    %2 = arith.cmpi ne, %1, %c0_i32_0 : i32
    scf.if %2 {
      %cst_10 = arith.constant 0.000000e+00 : f32
      %12 = vector.broadcast %cst_10 : f32 to vector<128x128xf32>
      %c0_11 = arith.constant 0 : index
      %c0_12 = arith.constant 0 : index
      %13 = vector.load %arg7[%c0_11, %c0_12] : memref<128x128xf32, #tpu.memory_space<vmem>>, vector<128x128xf32>
      tpu.vector_store %arg7[%c0_11, %c0_12], %12 {strides = array<i32>} : memref<128x128xf32, #tpu.memory_space<vmem>>, vector<128x128xf32>,
    } else {
    }
    %c0 = arith.constant 0 : index
    %c0_1 = arith.constant 0 : index
    %3 = vector.load %arg7[%c0, %c0_1] : memref<128x128xf32, #tpu.memory_space<vmem>>, vector<128x128xf32>
    %c0_2 = arith.constant 0 : index
    %c0_3 = arith.constant 0 : index
    %4 = vector.load %arg3[%c0_2, %c0_3] : memref<128x128xbf16, #tpu.memory_space<vmem>>, vector<128x128xbf16>
    %c0_4 = arith.constant 0 : index
    %c0_5 = arith.constant 0 : index
    %5 = vector.load %arg4[%c0_4, %c0_5] : memref<128x128xbf16, #tpu.memory_space<vmem>>, vector<128x128xbf16>
    %cst = arith.constant dense<0.000000e+00> : vector<128x128xf32>
    %6 = tpu.matmul %4, %5, %cst {dimension_numbers = #tpu.dot_dimension_numbers<[1], [0], [0], [1], [0, 0, 1, 1], [], []>} : vector<128x128xbf16>, vector<128x128xbf16>, vector<128x128xf32> -> vector<128x128xf32>
    %7 = arith.addf %3, %6 : vector<128x128xf32>
    %c0_6 = arith.constant 0 : index
    %c0_7 = arith.constant 0 : index
    %8 = vector.load %arg7[%c0_6, %c0_7] : memref<128x128xf32, #tpu.memory_space<vmem>>, vector<128x128xf32>
    tpu.vector_store %arg7[%c0_6, %c0_7], %7 {strides = array<i32>} : memref<128x128xf32, #tpu.memory_space<vmem>>, vector<128x128xf32>,
    %c0_i32_8 = arith.constant 0 : i32
    %9 = arith.cmpi eq, %arg2, %c0_i32_8 : i32
    %10 = arith.extui %9 : i1 to i32
    %c0_i32_9 = arith.constant 0 : i32
    %11 = arith.cmpi ne, %10, %c0_i32_9 : i32
    scf.if %11 {
      %c0_10 = arith.constant 0 : index
      %c0_11 = arith.constant 0 : index
      %12 = vector.load %arg7[%c0_10, %c0_11] : memref<128x128xf32, #tpu.memory_space<vmem>>, vector<128x128xf32>
      %c0_12 = arith.constant 0 : index
      %c0_13 = arith.constant 0 : index
      %13 = vector.load %arg5[%c0_12, %c0_13] : memref<1x128xf32, #tpu.memory_space<vmem>>, vector<1x128xf32>
      %14 = vector.broadcast %13 : vector<1x128xf32> to vector<128x128xf32>
      %15 = arith.addf %12, %14 : vector<128x128xf32>
      %c0_14 = arith.constant 0 : index
      %c0_15 = arith.constant 0 : index
      %16 = vector.load %arg6[%c0_14, %c0_15] : memref<128x128xf32, #tpu.memory_space<vmem>>, vector<128x128xf32>
      tpu.vector_store %arg6[%c0_14, %c0_15], %15 {strides = array<i32>} : memref<128x128xf32, #tpu.memory_space<vmem>>, vector<128x128xf32>,
    } else {
    }
    return
  }
  func.func @transform_0(%arg0: i32, %arg1: i32, %arg2: i32) -> (i32, i32) {
    %c0_i32 = arith.constant 0 : i32
    return %arg0, %arg2 : i32, i32
  }
  func.func @transform_1(%arg0: i32, %arg1: i32, %arg2: i32) -> (i32, i32) {
    %c0_i32 = arith.constant 0 : i32
    return %arg2, %arg1 : i32, i32
  }
  func.func @transform_2(%arg0: i32, %arg1: i32, %arg2: i32) -> (i32, i32) {
    %c0_i32 = arith.constant 0 : i32
    %c0_i32_0 = arith.constant 0 : i32
    return %c0_i32, %arg1 : i32, i32
  }
  func.func @transform_3(%arg0: i32, %arg1: i32, %arg2: i32) -> (i32, i32) {
    %c0_i32 = arith.constant 0 : i32
    return %arg0, %arg1 : i32, i32
  }
}

module attributes {stable_mosaic.version = 11 : i64} {
  func.func @_matmul_kernel(%arg0: i32, %arg1: i32, %arg2: i32, %arg3: memref<256x64xbf16, #tpu.memory_space<vmem>>, %arg4: memref<64x128xbf16, #tpu.memory_space<vmem>>, %arg5: memref<1x128xf32, #tpu.memory_space<vmem>>, %arg6: memref<256x128xf32, #tpu.memory_space<vmem>>, %arg7: memref<256x128xf32, #tpu.memory_space<vmem>>) attributes {dimension_semantics = [#tpu.dimension_semantics<parallel>, #tpu.dimension_semantics<parallel>, #tpu.dimension_semantics<arbitrary>], iteration_bounds = array<i64: 2, 1, 1>, scalar_prefetch = 0 : i64, scratch_operands = 1 : i64, tpu.core_type = #tpu.core_type<tc>, window_params = [{transform_indices = @transform_0, window_bounds = array<i64: 256, 64>}, {transform_indices = @transform_1, window_bounds = array<i64: 64, 128>}, {transform_indices = @transform_2, window_bounds = array<i64: 1, 128>}, {transform_indices = @transform_3, window_bounds = array<i64: 256, 128>}]} {
    %c0_i32 = arith.constant 0 : i32
    %0 = arith.cmpi eq, %arg2, %c0_i32 : i32
    %1 = arith.extui %0 : i1 to i32
    %c0_i32_0 = arith.constant 0 : i32
    %2 = arith.cmpi ne, %1, %c0_i32_0 : i32
    scf.if %2 {
      %cst_10 = arith.constant 0.000000e+00 : f32
      %12 = vector.broadcast %cst_10 : f32 to vector<256x128xf32>
      %c0_11 = arith.constant 0 : index
      %c0_12 = arith.constant 0 : index
      %13 = vector.load %arg7[%c0_11, %c0_12] : memref<256x128xf32, #tpu.memory_space<vmem>>, vector<256x128xf32>
      tpu.vector_store %arg7[%c0_11, %c0_12], %12 {strides = array<i32>} : memref<256x128xf32, #tpu.memory_space<vmem>>, vector<256x128xf32>,
    } else {
    }
    %c0 = arith.constant 0 : index
    %c0_1 = arith.constant 0 : index
    %3 = vector.load %arg7[%c0, %c0_1] : memref<256x128xf32, #tpu.memory_space<vmem>>, vector<256x128xf32>
    %c0_2 = arith.constant 0 : index
    %c0_3 = arith.constant 0 : index
    %4 = vector.load %arg3[%c0_2, %c0_3] : memref<256x64xbf16, #tpu.memory_space<vmem>>, vector<256x64xbf16>
    %c0_4 = arith.constant 0 : index
    %c0_5 = arith.constant 0 : index
    %5 = vector.load %arg4[%c0_4, %c0_5] : memref<64x128xbf16, #tpu.memory_space<vmem>>, vector<64x128xbf16>
    %cst = arith.constant dense<0.000000e+00> : vector<256x128xf32>
    %6 = tpu.matmul %4, %5, %cst {dimension_numbers = #tpu.dot_dimension_numbers<[1], [0], [0], [1], [0, 0, 1, 1], [], []>} : vector<256x64xbf16>, vector<64x128xbf16>, vector<256x128xf32> -> vector<256x128xf32>
    %7 = arith.addf %3, %6 : vector<256x128xf32>
    %c0_6 = arith.constant 0 : index
    %c0_7 = arith.constant 0 : index
    %8 = vector.load %arg7[%c0_6, %c0_7] : memref<256x128xf32, #tpu.memory_space<vmem>>, vector<256x128xf32>
    tpu.vector_store %arg7[%c0_6, %c0_7], %7 {strides = array<i32>} : memref<256x128xf32, #tpu.memory_space<vmem>>, vector<256x128xf32>,
    %c0_i32_8 = arith.constant 0 : i32
    %9 = arith.cmpi eq, %arg2, %c0_i32_8 : i32
    %10 = arith.extui %9 : i1 to i32
    %c0_i32_9 = arith.constant 0 : i32
    %11 = arith.cmpi ne, %10, %c0_i32_9 : i32
    scf.if %11 {
      %c0_10 = arith.constant 0 : index
      %c0_11 = arith.constant 0 : index
      %12 = vector.load %arg7[%c0_10, %c0_11] : memref<256x128xf32, #tpu.memory_space<vmem>>, vector<256x128xf32>
      %c0_12 = arith.constant 0 : index
      %c0_13 = arith.constant 0 : index
      %13 = vector.load %arg5[%c0_12, %c0_13] : memref<1x128xf32, #tpu.memory_space<vmem>>, vector<1x128xf32>
      %14 = vector.broadcast %13 : vector<1x128xf32> to vector<256x128xf32>
      %15 = arith.addf %12, %14 : vector<256x128xf32>
      %c0_14 = arith.constant 0 : index
      %c0_15 = arith.constant 0 : index
      %16 = vector.load %arg6[%c0_14, %c0_15] : memref<256x128xf32, #tpu.memory_space<vmem>>, vector<256x128xf32>
      tpu.vector_store %arg6[%c0_14, %c0_15], %15 {strides = array<i32>} : memref<256x128xf32, #tpu.memory_space<vmem>>, vector<256x128xf32>,
    } else {
    }
    return
  }
  func.func @transform_0(%arg0: i32, %arg1: i32, %arg2: i32) -> (i32, i32) {
    %c0_i32 = arith.constant 0 : i32
    return %arg0, %arg2 : i32, i32
  }
  func.func @transform_1(%arg0: i32, %arg1: i32, %arg2: i32) -> (i32, i32) {
    %c0_i32 = arith.constant 0 : i32
    return %arg2, %arg1 : i32, i32
  }
  func.func @transform_2(%arg0: i32, %arg1: i32, %arg2: i32) -> (i32, i32) {
    %c0_i32 = arith.constant 0 : i32
    %c0_i32_0 = arith.constant 0 : i32
    return %c0_i32, %arg1 : i32, i32
  }
  func.func @transform_3(%arg0: i32, %arg1: i32, %arg2: i32) -> (i32, i32) {
    %c0_i32 = arith.constant 0 : i32
    return %arg0, %arg1 : i32, i32
  }
}

</mosaic_0001>

<bundles_post_ra>
// kernel: fcn_forward.8
= control target key start
LH: loop header
LB: loop body
LE: loop exit
PB: predicated region body
PF: predicated region fallthrough
CT: control target
= control target key end

     0   :  { %s1759_s12 = smov 0   ;;  %s1761_s13 = smov 0   ;;  %s1993_s0 = inlined_call_operand.vmem [shape: f32[2,66,66,3], index: 0, kind: input, shape index: {}]   ;;  %s1994_s1 = inlined_call_operand.vmem [shape: bf16[3,3,3,64], index: 1, kind: input, shape index: {}]   ;;  %s1995_s2 = inlined_call_operand.vmem [shape: f32[1,64], index: 2, kind: input, shape index: {}]   ;;  %s1996_s3 = inlined_call_operand.vmem [shape: bf16[2,64,64,64], index: 3, kind: output, shape index: {}]  }
   0x1   :  { %s1763_s14 = smov 0  }
   0x2 LB: > { %s25_s15 = sadd.s32 1, %s1728_s13  ;;  %p1344_p0 = scmp.ge.s32.totalorder %s1732_s14, 1  ;;  %s1732_s14 = sphi %s1763_s14, %s13_s14   ;;  %s1728_s13 = sphi %s1761_s13, %s1998_s13   ;;  %s1724_s12 = sphi %s1759_s12, %s1997_s12  }
   0x3   : > { %p27_p1 = scmp.ge.s32.totalorder %s25_s15, 2  ;;  %p168_p2 = scmp.lt.s32.totalorder %s1732_s14, 3 }
   0x5   : > { %s2000_s15 = smov (%p27_p1, %s25_s15), 0  ;;  %p169_p3 = pnand %p1344_p0, %p168_p2 }
   0x6   : > { %p202_p4 = scmp.lt.s32.totalorder (!%p169_p3), %s1724_s12, 1  ;;  %v1780_v0 = vld [vmem:[%s1995_s2] ss:$0 sm:$0xff] (!%p169_p3)  ;;  %s1792_s26 = smov (!%p169_p3), 0  }
   0x7   : > { %172 = sbr.rel (%p169_p3) target bundleno = 319 (0x13f), region = 32 }
   0xe   : > { %s2002_s12 = smov (!%p202_p4, %s1724_s12), 1 }
   0xf   : > { %s1672_s18 = smul.u32 4752, %s2002_s12  ;;  %s1453_s19 = sshll.u32 %s2002_s12, 11 }
  0x10   : > { %s1785_s22 = scalar_lea.vmem %s1996_s3, %s1453_s19 }
  0x11   : > { %s1790_s25 = scalar_lea.vmem %s1993_s0, %s1672_s18 }
  0x12 LB: >> { %v250_v1 = vld [vmem:[%s1994_s1] sm:$0x3]  ;;  %vm264_vm0 = vcmask 1040384   ;;  %vm265_vm1 = vcmask 1041408   ;;  %v1738_v2 = vmov 65535   ;;  %s236_s6 = smul.u32 72, %s1736_s26  ;;  %s1736_s26 = sphi %s1792_s26, %s235_s26  }
  0x13   : >> { %v266_v3 = vsel %vm264_vm0, 4294967295, %v1738_v2  ;;  %v1384_v4 = vld [vmem:[%s1994_s1 + $0x8] sm:$0x3]  ;;  %v1353_v5 = vld [vmem:[%s1994_s1 + $0x2] sm:$0x3]  ;;  %vm251_vm2 = vcmask 23552  }
  0x14   : >> { %v1806_v6 = vsel %vm265_vm1, %v266_v3, 0  ;;  %v1397_v7 = vld [vmem:[%s1994_s1 + $0xa] sm:$0x3]  ;;  %s1819_s9 = scalar_lea.vmem %s1790_s25, %s236_s6  ;;  %v1410_v12 = vld [vmem:[%s1994_s1 + $0xc] sm:$0x3]  ;;  %s1462_s24 = sshll.u32 %s1736_s26, 5 }
  0x15   : >> { %v269_v8 = vand.u32 %v1806_v6, %v250_v1  ;;  %v1814_v9 = vand.u32 %v1384_v4, %v1806_v6  ;;  %v371_v10 = vand.u32 %v1353_v5, %v1806_v6  ;;  %v782_v11 = vand.u32 %v1397_v7, %v1806_v6  ;;  %v1358_v13 = vld [vmem:[%s1994_s1 + $0x4] sm:$0x3]  ;;  %v239_v15 = vld [vmem:[%s1819_s9 + $0x8] sm:$0xff]  ;;  %v1377_v18 = vld [vmem:[%s1819_s9 + $0x51] sm:$0xff]  ;;  %s1959_s27 = scalar_lea.vmem %s1785_s22, %s1462_s24  ;;  %s235_s26 = sadd.s32 1, %s1736_s26  }
  0x16   : >> { %v238_v14 = vld [vmem:[%s1819_s9] sm:$0xff]  ;;  %v1376_v16 = vld [vmem:[%s1819_s9 + $0x49] sm:$0xff]  ;;  %v241_v20 = vld [vmem:[%s1819_s9 + $0x18] sm:$0xff]  ;;  %v887_v28 = vand.u32 %v1410_v12, %v1806_v6  ;;  %v473_v32 = vand.u32 %v1358_v13, %v1806_v6  ;;  %vm1209_vm3 = vcmask 519168   ;;  %p232_p5 = scmp.ge.s32.totalorder %s235_s26, 64  }
  0x17   : >> { %1508 = vmatprep.subr.bf16.mxu1 %v269_v8  ;;  %1548 = vmatprep.subr.bf16.mxu0 %v1814_v9  ;;  %v246_v17 = vpack.c.bf16 %v239_v15, %v238_v14  ;;  %v240_v19 = vld [vmem:[%s1819_s9 + $0x10] sm:$0xff]  ;;  %v661_v21 = vpack.c.bf16 %v1377_v18, %v1376_v16  ;;  %v1378_v23 = vld [vmem:[%s1819_s9 + $0x59] sm:$0xff]  ;;  %v1379_v24 = vld [vmem:[%s1819_s9 + $0x61] sm:$0xff] }
  0x18   : >> { %1509 = vmatpush3.bf16.msra.mxu1 %v269_v8  ;;  %1549 = vmatpush3.bf16.msra.mxu0 %v1814_v9  ;;  %v247_v22 = vpack.c.bf16 %v241_v20, %v240_v19  ;;  %v242_v25 = vld [vmem:[%s1819_s9 + $0x20] sm:$0xff]  ;;  %v662_v26 = vpack.c.bf16 %v1379_v24, %v1378_v23  ;;  %v243_v27 = vld [vmem:[%s1819_s9 + $0x28] sm:$0xff]  ;;  %v1390_v31 = vld [vmem:[%s1819_s9 + $0x52] sm:$0xff] }
  0x19   : >> { %1518 = vmatprep.subr.bf16.mxu1 %v371_v10  ;;  %1558 = vmatprep.subr.bf16.mxu0 %v782_v11  ;;  %v248_v29 = vpack.c.bf16 %v243_v27, %v242_v25  ;;  %v1389_v30 = vld [vmem:[%s1819_s9 + $0x4a] sm:$0xff]  ;;  %v245_v34 = vld [vmem:[%s1819_s9 + $0x38] sm:$0xff]  ;;  %v344_v36 = vld [vmem:[%s1819_s9 + $0x1] sm:$0xff] }
  0x1a   : >> { %1510 = vmatprep.mubr.msk.bf16.mxu1 %vm251_vm2, %v246_v17  ;;  %1550 = vmatprep.mubr.msk.bf16.mxu0 %vm251_vm2, %v661_v21  ;;  %v244_v33 = vld [vmem:[%s1819_s9 + $0x30] sm:$0xff]  ;;  %v763_v35 = vpack.c.bf16 %v1390_v31, %v1389_v30  ;;  %v1391_v40 = vld [vmem:[%s1819_s9 + $0x5a] sm:$0xff]  ;;  %v1392_v41 = vld [vmem:[%s1819_s9 + $0x62] sm:$0xff] }
  0x1b   : >> { %1511 = vmatmul.mubr.msk.bf16.vlgmr.msra.gmra.mrb[0].mxu1 %vm251_vm2, %v247_v22  ;;  %1551 = vmatmul.mubr.msk.bf16.vlgmr.msra.gmra.mrb[0].mxu0 %vm251_vm2, %v662_v26  ;;  %v345_v37 = vld [vmem:[%s1819_s9 + $0x9] sm:$0xff]  ;;  %v249_v38 = vpack.c.bf16 %v245_v34, %v244_v33  ;;  %v1394_v43 = vld [vmem:[%s1819_s9 + $0x72] sm:$0xff]  ;;  %v764_v45 = vpack.c.bf16 %v1392_v41, %v1391_v40  ;;  %v348_v49 = vld [vmem:[%s1819_s9 + $0x21] sm:$0xff] }
  0x1c   : >> { %1519 = vmatpush3.bf16.msra.mxu1 %v371_v10  ;;  %1559 = vmatpush3.bf16.msra.mxu0 %v782_v11  ;;  %v352_v39 = vpack.c.bf16 %v345_v37, %v344_v36  ;;  %v1393_v42 = vld [vmem:[%s1819_s9 + $0x6a] sm:$0xff]  ;;  %v347_v47 = vld [vmem:[%s1819_s9 + $0x19] sm:$0xff]  ;;  %v1371_v52 = vld [vmem:[%s1994_s1 + $0x6] sm:$0x3] }
  0x1d   : >> { %1514 = vmatprep.mubr.msk.bf16.mxu1 %vm251_vm2, %v248_v29  ;;  %1560 = vmatprep.mubr.msk.bf16.mxu0 %vm251_vm2, %v763_v35  ;;  %v1423_v44 = vld [vmem:[%s1994_s1 + $0xe] sm:$0x3]  ;;  %v346_v46 = vld [vmem:[%s1819_s9 + $0x11] sm:$0xff]  ;;  %v765_v48 = vpack.c.bf16 %v1394_v43, %v1393_v42  ;;  %v1395_v55 = vld [vmem:[%s1819_s9 + $0x7a] sm:$0xff]  ;;  %v578_v57 = vand.u32 %v1371_v52, %v1806_v6 }
  0x1e   : >> { %1568 = vmatprep.subr.bf16.mxu0 %v887_v28  ;;  %1528 = vmatprep.subr.bf16.mxu1 %v473_v32  ;;  %v349_v50 = vld [vmem:[%s1819_s9 + $0x29] sm:$0xff]  ;;  %v989_v51 = vand.u32 %v1423_v44, %v1806_v6  ;;  %v353_v53 = vpack.c.bf16 %v347_v47, %v346_v46  ;;  %v1403_v59 = vld [vmem:[%s1819_s9 + $0x98] sm:$0xff]  ;;  %v1404_v5 = vld [vmem:[%s1819_s9 + $0xa0] sm:$0xff] }
  0x1f   : >> { %v354_v54 = vpack.c.bf16 %v349_v50, %v348_v49  ;;  %v1396_v56 = vld [vmem:[%s1819_s9 + $0x82] sm:$0xff]  ;;  %v1402_v58 = vld [vmem:[%s1819_s9 + $0x90] sm:$0xff]  ;;  %v351_v62 = vld [vmem:[%s1819_s9 + $0x39] sm:$0xff] }
  0x20   : >> { %v766_v60 = vpack.c.bf16 %v1396_v56, %v1395_v55  ;;  %v350_v61 = vld [vmem:[%s1819_s9 + $0x31] sm:$0xff]  ;;  %v868_v63 = vpack.c.bf16 %v1403_v59, %v1402_v58  ;;  %v446_v1 = vld [vmem:[%s1819_s9 + $0x2] sm:$0xff]  ;;  %v449_v14 = vld [vmem:[%s1819_s9 + $0x1a] sm:$0xff] }
  0x21   : >> { %v447_v2 = vld [vmem:[%s1819_s9 + $0xa] sm:$0xff]  ;;  %v355_v3 = vpack.c.bf16 %v351_v62, %v350_v61  ;;  %v1407_v10 = vld [vmem:[%s1819_s9 + $0xb8] sm:$0xff]  ;;  %v450_v16 = vld [vmem:[%s1819_s9 + $0x22] sm:$0xff] }
  0x22   : >> { %v454_v4 = vpack.c.bf16 %v447_v2, %v446_v1  ;;  %v1405_v7 = vld [vmem:[%s1819_s9 + $0xa8] sm:$0xff]  ;;  %v1406_v8 = vld [vmem:[%s1819_s9 + $0xb0] sm:$0xff]  ;;  %v1408_v21 = vld [vmem:[%s1819_s9 + $0xc0] sm:$0xff] }
  0x23   : >> { %1515 = vmatmul.mubr.msk.bf16.gmra.mrb[4].mxu1 %vm251_vm2, %v249_v38  ;;  %v1436_v11 = vld [vmem:[%s1994_s1 + $0x10] sm:$0x3]  ;;  %v869_v12 = vpack.c.bf16 %v1405_v7, %v1404_v5  ;;  %v448_v13 = vld [vmem:[%s1819_s9 + $0x12] sm:$0xff]  ;;  %v870_v15 = vpack.c.bf16 %v1407_v10, %v1406_v8  ;;  %v1409_v22 = vld [vmem:[%s1819_s9 + $0xc8] sm:$0xff] }
  0x24   : >> { %1520 = vmatprep.mubr.msk.bf16.mxu1 %vm251_vm2, %v352_v39  ;;  %v451_v17 = vld [vmem:[%s1819_s9 + $0x2a] sm:$0xff]  ;;  %v1091_v18 = vand.u32 %v1436_v11, %v1806_v6  ;;  %v455_v19 = vpack.c.bf16 %v449_v14, %v448_v13  ;;  %v1416_v24 = vld [vmem:[%s1819_s9 + $0x99] sm:$0xff]  ;;  %v871_v6 = vpack.c.bf16 %v1409_v22, %v1408_v21  ;;  %v1421_v44 = vld [vmem:[%s1819_s9 + $0xc1] sm:$0xff] }
  0x25   : >> { %v456_v20 = vpack.c.bf16 %v451_v17, %v450_v16  ;;  %v1415_v23 = vld [vmem:[%s1819_s9 + $0x91] sm:$0xff]  ;;  %v453_v26 = vld [vmem:[%s1819_s9 + $0x3a] sm:$0xff]  ;;  %v1418_v33 = vld [vmem:[%s1819_s9 + $0xa9] sm:$0xff] }
  0x26   : >> { %v452_v25 = vld [vmem:[%s1819_s9 + $0x32] sm:$0xff]  ;;  %v970_v27 = vpack.c.bf16 %v1416_v24, %v1415_v23  ;;  %v1366_v38 = vld [vmem:[%s1819_s9 + $0x60] sm:$0xff]  ;;  %v1367_v40 = vld [vmem:[%s1819_s9 + $0x68] sm:$0xff] }
  0x27   : >> { %1561 = vmatmul.mubr.msk.bf16.vlgmr.msra.gmra.mrb[0].mxu0 %vm251_vm2, %v764_v45  ;;  %v1364_v29 = vld [vmem:[%s1819_s9 + $0x50] sm:$0xff]  ;;  %v457_v30 = vpack.c.bf16 %v453_v26, %v452_v25  ;;  %v1420_v35 = vld [vmem:[%s1819_s9 + $0xb9] sm:$0xff]  ;;  %v1430_v56 = vld [vmem:[%s1819_s9 + $0xa2] sm:$0xff] }
  0x28   : >> { %1569 = vmatpush3.bf16.msra.mxu0 %v887_v28  ;;  %1564 = vmatprep.mubr.msk.bf16.mxu0 %vm251_vm2, %v765_v48  ;;  %v1363_v28 = vld [vmem:[%s1819_s9 + $0x48] sm:$0xff]  ;;  %v1419_v34 = vld [vmem:[%s1819_s9 + $0xb1] sm:$0xff]  ;;  %v1429_v47 = vld [vmem:[%s1819_s9 + $0x9a] sm:$0xff] }
  0x29   : >> { %1578 = vmatprep.subr.bf16.mxu0 %v989_v51  ;;  %v559_v31 = vpack.c.bf16 %v1364_v29, %v1363_v28  ;;  %v1365_v37 = vld [vmem:[%s1819_s9 + $0x58] sm:$0xff]  ;;  %v972_v39 = vpack.c.bf16 %v1420_v35, %v1419_v34  ;;  %v1368_v41 = vld [vmem:[%s1819_s9 + $0x70] sm:$0xff]  ;;  %v1370_v50 = vld [vmem:[%s1819_s9 + $0x80] sm:$0xff] }
  0x2a   : >> { %v560_v42 = vpack.c.bf16 %v1366_v38, %v1365_v37  ;;  %v561_v43 = vpack.c.bf16 %v1368_v41, %v1367_v40  ;;  %v1422_v45 = vld [vmem:[%s1819_s9 + $0xc9] sm:$0xff]  ;;  %v1428_v46 = vld [vmem:[%s1819_s9 + $0x92] sm:$0xff]  ;;  %v1433_v58 = vld [vmem:[%s1819_s9 + $0xba] sm:$0xff] }
  0x2b   : >> { %1521 = vmatmul.mubr.msk.bf16.vlgmr.msra.gmra.mrb[0].mxu1 %vm251_vm2, %v353_v53  ;;  %v973_v48 = vpack.c.bf16 %v1422_v45, %v1421_v44  ;;  %v1369_v49 = vld [vmem:[%s1819_s9 + $0x78] sm:$0xff]  ;;  %v1380_v52 = vld [vmem:[%s1819_s9 + $0x69] sm:$0xff]  ;;  %v1383_v62 = vld [vmem:[%s1819_s9 + $0x81] sm:$0xff] }
  0x2c   : >> { %1529 = vmatpush3.bf16.msra.mxu1 %v473_v32  ;;  %1524 = vmatprep.mubr.msk.bf16.mxu1 %vm251_vm2, %v354_v54  ;;  %v1417_v32 = vld [vmem:[%s1819_s9 + $0xa1] sm:$0xff]  ;;  %v1381_v53 = vld [vmem:[%s1819_s9 + $0x71] sm:$0xff]  ;;  %v562_v54 = vpack.c.bf16 %v1370_v50, %v1369_v49  ;;  %v1382_v61 = vld [vmem:[%s1819_s9 + $0x79] sm:$0xff] }
  0x2d   : >> { %1538 = vmatprep.subr.bf16.mxu1 %v578_v57  ;;  %v971_v36 = vpack.c.bf16 %v1418_v33, %v1417_v32  ;;  %v663_v55 = vpack.c.bf16 %v1381_v53, %v1380_v52  ;;  %v1435_v1 = vld [vmem:[%s1819_s9 + $0xca] sm:$0xff]  ;;  %v664_v2 = vpack.c.bf16 %v1383_v62, %v1382_v61 }
  0x2f   : >> { %1565 = vmatmul.mubr.msk.bf16.gmra.mrb[4].mxu0 %vm251_vm2, %v766_v60 }
  0x30   : >> { %1570 = vmatprep.mubr.msk.bf16.mxu0 %vm251_vm2, %v868_v63  ;;  %v1434_v63 = vld [vmem:[%s1819_s9 + $0xc2] sm:$0xff] }
  0x33   : >> { %1525 = vmatmul.mubr.msk.bf16.gmra.mrb[4].mxu1 %vm251_vm2, %v355_v3  ;;  %v1075_v3 = vpack.c.bf16 %v1435_v1, %v1434_v63 }
  0x34   : >> { %1530 = vmatprep.mubr.msk.bf16.mxu1 %vm251_vm2, %v454_v4 }
  0x37   : >> { %1571 = vmatmul.mubr.msk.bf16.vlgmr.msra.gmra.mrb[0].mxu0 %vm251_vm2, %v869_v12 }
  0x38   : >> { %1579 = vmatpush3.bf16.msra.mxu0 %v989_v51  ;;  %1574 = vmatprep.mubr.msk.bf16.mxu0 %vm251_vm2, %v870_v15  ;;  %v1072_v51 = vpack.c.bf16 %v1429_v47, %v1428_v46 }
  0x39   : >> { %1588 = vmatprep.subr.bf16.mxu0 %v1091_v18 }
  0x3b   : >> { %1531 = vmatmul.mubr.msk.bf16.vlgmr.msra.gmra.mrb[0].mxu1 %vm251_vm2, %v455_v19 }
  0x3c   : >> { %1539 = vmatpush3.bf16.msra.mxu1 %v578_v57  ;;  %1534 = vmatprep.mubr.msk.bf16.mxu1 %vm251_vm2, %v456_v20  ;;  %v1432_v57 = vld [vmem:[%s1819_s9 + $0xb2] sm:$0xff] }
  0x3d   : >> { %1598 = vmatprep.subr.bf16.mxu1 %v1814_v9  ;;  %v1074_v60 = vpack.c.bf16 %v1433_v58, %v1432_v57 }
  0x3f   : >> { %1575 = vmatmul.mubr.msk.bf16.gmra.mrb[4].mxu0 %vm251_vm2, %v871_v6 }
  0x40   : >> { %1580 = vmatprep.mubr.msk.bf16.mxu0 %vm251_vm2, %v970_v27 }
  0x43   : >> { %1535 = vmatmul.mubr.msk.bf16.gmra.mrb[4].mxu1 %vm251_vm2, %v457_v30 }
  0x44   : >> { %1540 = vmatprep.mubr.msk.bf16.mxu1 %vm251_vm2, %v559_v31 }
  0x47   : >> { %1581 = vmatmul.mubr.msk.bf16.vlgmr.msra.gmra.mrb[0].mxu0 %vm251_vm2, %v971_v36 }
  0x48   : >> { %1589 = vmatpush3.bf16.msra.mxu0 %v1091_v18  ;;  %1584 = vmatprep.mubr.msk.bf16.mxu0 %vm251_vm2, %v972_v39 }
  0x4b   : >> { %1541 = vmatmul.mubr.msk.bf16.vlgmr.msra.gmra.mrb[0].mxu1 %vm251_vm2, %v560_v42 }
  0x4c   : >> { %1599 = vmatpush3.bf16.msra.mxu1 %v1814_v9  ;;  %1544 = vmatprep.mubr.msk.bf16.mxu1 %vm251_vm2, %v561_v43  ;;  %v1431_v9 = vld [vmem:[%s1819_s9 + $0xaa] sm:$0xff] }
  0x4d   : >> { %v1073_v59 = vpack.c.bf16 %v1431_v9, %v1430_v56 }
  0x4f   : >> { %1585 = vmatmul.mubr.msk.bf16.gmra.mrb[4].mxu0 %vm251_vm2, %v973_v48 }
  0x50   : >> { %1590 = vmatprep.mubr.msk.bf16.mxu0 %vm251_vm2, %v1072_v51 }
  0x53   : >> { %1545 = vmatmul.mubr.msk.bf16.gmra.mrb[4].mxu1 %vm251_vm2, %v562_v54 }
  0x54   : >> { %1554 = vmatprep.mubr.msk.bf16.mxu1 %vm251_vm2, %v663_v55 }
  0x57   : >> { %1591 = vmatmul.mubr.msk.bf16.vlgmr.msra.gmra.mrb[0].mxu0 %vm251_vm2, %v1073_v59 }
  0x58   : >> { %1594 = vmatprep.mubr.msk.bf16.mxu0 %vm251_vm2, %v1074_v60 }
  0x5f   : >> { %1555 = vmatmul.mubr.msk.bf16.vlgmr.msra.gmra.mrb[4].mxu1 %vm251_vm2, %v664_v2  ;;  %1595 = vmatmul.mubr.msk.bf16.gmra.mrb[4].mxu0 %vm251_vm2, %v1075_v3 }
 0x11e   : >> { %v1542_v4 = vpop.f32.mrb[0].mxu1 }
 0x11f   : >> { %v614_v5 = vpop.f32.mrb[1].mxu1  ;;  %v1600_v10 = vadd.f32 %v1542_v4, %v1780_v0 }
 0x120   : >> { %v1543_v7 = vpop.f32.mrb[2].mxu1  ;;  %v1602_v11 = vadd.f32 %v1780_v0, %v614_v5 }
 0x121   : >> { %v617_v8 = vpop.f32.mrb[3].mxu1  ;;  %v1604_v13 = vadd.f32 %v1543_v7, %v1780_v0 }
 0x122   : >> { %v1606_v16 = vadd.f32 %v1780_v0, %v617_v8 }
 0x12a   : >> { %v1592_v12 = vpop.f32.mrb[0].mxu0 }
 0x12b   : >> { %v1601_v14 = vadd.f32 %v1600_v10, %v1592_v12  ;;  %v1127_v15 = vpop.f32.mrb[1].mxu0 }
 0x12c   : >> { %v1603_v17 = vadd.f32 %v1602_v11, %v1127_v15  ;;  %v1593_v18 = vpop.f32.mrb[2].mxu0 }
 0x12d   : >> { %v1168_v19 = vmax.f32 %v1601_v14, 0.0  ;;  %v1605_v20 = vadd.f32 %v1604_v13, %v1593_v18  ;;  %v1130_v21 = vpop.f32.mrb[3].mxu0 }
 0x12e   : >> { %v1166_v22 = vmax.f32 %v1603_v17, 0.0  ;;  %v1607_v23 = vadd.f32 %v1606_v16, %v1130_v21 }
 0x12f   : >> { %v1456_v24 = vpack.c.bf16 %v1168_v19, %v1168_v19  ;;  %v1169_v6 = vmax.f32 %v1605_v20, 0.0 }
 0x130   : >> { %v1454_v25 = vpack.c.bf16 %v1166_v22, %v1166_v22  ;;  %v1167_v26 = vmax.f32 %v1607_v23, 0.0 }
 0x131   : >> { %1212 = vst.msk [vmem:[%s1959_s27 + $0x8] sm:$0xf] %vm1209_vm3, %v1456_v24  ;;  %v1457_v27 = vpack.c.bf16 %v1169_v6, %v1169_v6 }
 0x132   : >> { %v1556_v28 = vpop.f32.mrb[4].mxu1  ;;  %1210 = vst.msk [vmem:[%s1959_s27] sm:$0xf] %vm1209_vm3, %v1454_v25  ;;  %v1455_v29 = vpack.c.bf16 %v1167_v26, %v1167_v26  ;;  %v1596_v31 = vpop.f32.mrb[4].mxu0 }
 0x133   : >> { %v1608_v30 = vadd.f32 %v1556_v28, %v1780_v0  ;;  %v732_v32 = vpop.f32.mrb[5].mxu1  ;;  %1213 = vst.msk [vmem:[%s1959_s27 + $0xc] sm:$0xf] %vm1209_vm3, %v1457_v27  ;;  %v1143_v34 = vpop.f32.mrb[5].mxu0 }
 0x134   : >> { %v1610_v33 = vadd.f32 %v1780_v0, %v732_v32  ;;  %v1557_v35 = vpop.f32.mrb[6].mxu1  ;;  %1211 = vst.msk [vmem:[%s1959_s27 + $0x4] sm:$0xf] %vm1209_vm3, %v1455_v29  ;;  %v1597_v38 = vpop.f32.mrb[6].mxu0 }
 0x135   : >> { %v1609_v36 = vadd.f32 %v1608_v30, %v1596_v31  ;;  %v1612_v37 = vadd.f32 %v1557_v35, %v1780_v0  ;;  %v735_v39 = vpop.f32.mrb[7].mxu1  ;;  %v1146_v42 = vpop.f32.mrb[7].mxu0 }
 0x136   : >> { %v1611_v40 = vadd.f32 %v1610_v33, %v1143_v34  ;;  %v1614_v41 = vadd.f32 %v1780_v0, %v735_v39 }
 0x137   : >> { %v1172_v43 = vmax.f32 %v1609_v36, 0.0  ;;  %v1613_v44 = vadd.f32 %v1612_v37, %v1597_v38 }
 0x138   : >> { %v1170_v45 = vmax.f32 %v1611_v40, 0.0  ;;  %v1615_v46 = vadd.f32 %v1614_v41, %v1146_v42  ;;  %234 = sbr.rel (!%p232_p5) target bundleno = 18 (0x12), region = 87 }
 0x139   : >> { %v1460_v47 = vpack.c.bf16 %v1172_v43, %v1172_v43  ;;  %v1173_v48 = vmax.f32 %v1613_v44, 0.0 }
 0x13a   : >> { %v1458_v49 = vpack.c.bf16 %v1170_v45, %v1170_v45  ;;  %v1171_v50 = vmax.f32 %v1615_v46, 0.0 }
 0x13b   : >> { %1216 = vst.msk [vmem:[%s1959_s27 + $0x18] sm:$0xf] %vm1209_vm3, %v1460_v47  ;;  %v1461_v51 = vpack.c.bf16 %v1173_v48, %v1173_v48 }
 0x13c   : >> { %1214 = vst.msk [vmem:[%s1959_s27 + $0x10] sm:$0xf] %vm1209_vm3, %v1458_v49  ;;  %v1459_v52 = vpack.c.bf16 %v1171_v50, %v1171_v50 }
 0x13d   : >> { %1217 = vst.msk [vmem:[%s1959_s27 + $0x1c] sm:$0xf] %vm1209_vm3, %v1461_v51 }
 0x13e   : >> { %1215 = vst.msk [vmem:[%s1959_s27 + $0x14] sm:$0xf] %vm1209_vm3, %v1459_v52 }
 0x13f PF: > { %s13_s14 = sadd.s32 1, %s1732_s14   ;;  %s1997_s12 = smov %s1728_s13 }
 0x140   : > { %p10_p6 = scmp.ge.s32.totalorder %s13_s14, 4   ;;  %s1998_s13 = smov %s2000_s15 }
 0x142   :  { %12 = sbr.rel (!%p10_p6) target bundleno = 2 (0x2), region = 98 }

// kernel: fcn_forward.9
= control target key start
LH: loop header
LB: loop body
LE: loop exit
PB: predicated region body
PF: predicated region fallthrough
CT: control target
= control target key end

     0   :  { %s1574_s12 = smov 0   ;;  %s1576_s13 = smov 0   ;;  %s1821_s0 = inlined_call_operand.vmem [shape: f32[2,18,18,64], index: 0, kind: input, shape index: {}]   ;;  %s1822_s1 = inlined_call_operand.vmem [shape: bf16[3,3,64,128], index: 1, kind: input, shape index: {}]   ;;  %s1823_s2 = inlined_call_operand.vmem [shape: f32[1,128], index: 2, kind: input, shape index: {}]   ;;  %s1824_s3 = inlined_call_operand.vmem [shape: bf16[2,16,16,128], index: 3, kind: output, shape index: {}]  }
   0x1   :  { %s1578_s14 = smov 0  }
   0x2 LB: > { %s25_s15 = sadd.s32 1, %s1542_s13  ;;  %p1123_p0 = scmp.ge.s32.totalorder %s1546_s14, 1  ;;  %s1546_s14 = sphi %s1578_s14, %s13_s14   ;;  %s1542_s13 = sphi %s1576_s13, %s1826_s13   ;;  %s1538_s12 = sphi %s1574_s12, %s1825_s12  }
   0x3   : > { %p27_p1 = scmp.ge.s32.totalorder %s25_s15, 2  ;;  %p168_p2 = scmp.lt.s32.totalorder %s1546_s14, 3 }
   0x5   : > { %s1828_s15 = smov (%p27_p1, %s25_s15), 0  ;;  %p169_p3 = pnand %p1123_p0, %p168_p2 }
   0x6   : > { %p202_p4 = scmp.lt.s32.totalorder (!%p169_p3), %s1538_s12, 1  ;;  %v1595_v0 = vld [vmem:[%s1823_s2] ss:$0 sm:$0xff] (!%p169_p3)  ;;  %s1607_s26 = smov (!%p169_p3), 0  }
   0x7   : > { %172 = sbr.rel (%p169_p3) target bundleno = 321 (0x141), region = 32 }
   0xe   : > { %s1830_s12 = smov (!%p202_p4, %s1538_s12), 1 }
   0xf   : > { %s1449_s18 = smul.u32 432, %s1830_s12  ;;  %s1255_s19 = sshll.u32 %s1830_s12, 7 }
  0x10   : > { %s1600_s22 = scalar_lea.vmem %s1824_s3, %s1255_s19 }
  0x11   : > { %s1605_s25 = scalar_lea.vmem %s1821_s0, %s1449_s18 }
  0x12 LB: >> { %v1484_v1 = vld [vmem:[%s1822_s1] sm:$0xff]   ;;  %v1552_v2 = vmov 0.0   ;;  %v1486_v4 = vld [vmem:[%s1822_s1 + $0x8] sm:$0xff]   ;;  %vm1553_vm0 = vmmov 0   ;;  %s236_s6 = smul.u32 24, %s1550_s26  ;;  %v1488_v6 = vld [vmem:[%s1822_s1 + $0x10] sm:$0xff]   ;;  %s1550_s26 = sphi %s1607_s26, %s235_s26  }
  0x13   : >> { %1309 = vmatprep.subr.bf16.mxu1 %v1552_v2  ;;  %1357 = vmatprep.subr.bf16.mxu0 %v1552_v2  ;;  %v1485_v3 = vld [vmem:[%s1822_s1 + $0x80] sm:$0xff]   ;;  %v1487_v5 = vld [vmem:[%s1822_s1 + $0x88] sm:$0xff]   ;;  %v1489_v7 = vld [vmem:[%s1822_s1 + $0x90] sm:$0xff]   ;;  %vm273_vm1 = vcmask 523264  }
  0x14   : >> { %1310 = vmatpush3.bf16.msra.mxu1 %v1484_v1  ;;  %1317 = vmatprep.mubr.msk.bf16.mxu1 %vm1553_vm0, %v1552_v2  ;;  %s1637_s11 = scalar_lea.vmem %s1605_s25, %s236_s6  ;;  %v1490_v8 = vld [vmem:[%s1822_s1 + $0x18] sm:$0xff]   ;;  %v1492_v15 = vld [vmem:[%s1822_s1 + $0x20] sm:$0xff]   ;;  %v1494_v18 = vld [vmem:[%s1822_s1 + $0x28] sm:$0xff]  }
  0x15   : >> { %1358 = vmatpush3.bf16.msra.mxu0 %v1485_v3  ;;  %1311 = vmatprep.subr.bf16.mxu1 %v1552_v2  ;;  %v1491_v9 = vld [vmem:[%s1822_s1 + $0x98] sm:$0xff]   ;;  %v238_v10 = vld [vmem:[%s1637_s11] sm:$0xff]  ;;  %v239_v11 = vld [vmem:[%s1637_s11 + $0x8] sm:$0xff] }
  0x16   : >> { %1359 = vmatprep.subr.bf16.mxu0 %v1552_v2  ;;  %1365 = vmatprep.mubr.msk.bf16.mxu0 %vm1553_vm0, %v1552_v2  ;;  %v1174_v12 = vld [vmem:[%s1637_s11 + $0x19] sm:$0xff]  ;;  %v1175_v13 = vld [vmem:[%s1637_s11 + $0x21] sm:$0xff]  ;;  %v240_v14 = vpack.c.bf16 %v239_v11, %v238_v10  ;;  %v1496_v20 = vld [vmem:[%s1822_s1 + $0x30] sm:$0xff]  }
  0x17   : >> { %v571_v16 = vpack.c.bf16 %v1175_v13, %v1174_v12  ;;  %v1493_v17 = vld [vmem:[%s1822_s1 + $0xa0] sm:$0xff]   ;;  %v1495_v19 = vld [vmem:[%s1822_s1 + $0xa8] sm:$0xff]   ;;  %v1497_v21 = vld [vmem:[%s1822_s1 + $0xb0] sm:$0xff]  }
  0x18   : >> { %1312 = vmatpush3.bf16.msra.mxu1 %v1486_v4  ;;  %v1498_v22 = vld [vmem:[%s1822_s1 + $0x38] sm:$0xff]   ;;  %v320_v24 = vld [vmem:[%s1637_s11 + $0x1] sm:$0xff]  ;;  %v321_v25 = vld [vmem:[%s1637_s11 + $0x9] sm:$0xff] }
  0x19   : >> { %1360 = vmatpush3.bf16.msra.mxu0 %v1487_v5  ;;  %1313 = vmatprep.subr.bf16.mxu1 %v1552_v2  ;;  %v1499_v23 = vld [vmem:[%s1822_s1 + $0xb8] sm:$0xff]   ;;  %v1190_v27 = vld [vmem:[%s1637_s11 + $0x22] sm:$0xff]  ;;  %v322_v28 = vpack.c.bf16 %v321_v25, %v320_v24  ;;  %v1504_v34 = vld [vmem:[%s1822_s1 + $0x50] sm:$0xff]  }
  0x1a   : >> { %1361 = vmatprep.subr.bf16.mxu0 %v1552_v2  ;;  %v1189_v26 = vld [vmem:[%s1637_s11 + $0x1a] sm:$0xff]  ;;  %v1502_v32 = vld [vmem:[%s1822_s1 + $0x48] sm:$0xff]   ;;  %v1505_v35 = vld [vmem:[%s1822_s1 + $0xd0] sm:$0xff]  }
  0x1b   : >> { %v1500_v29 = vld [vmem:[%s1822_s1 + $0x40] sm:$0xff]   ;;  %v653_v30 = vpack.c.bf16 %v1190_v27, %v1189_v26  ;;  %v1503_v33 = vld [vmem:[%s1822_s1 + $0xc8] sm:$0xff]   ;;  %v1506_v36 = vld [vmem:[%s1822_s1 + $0x58] sm:$0xff]  }
  0x1c   : >> { %1314 = vmatpush3.bf16.msra.mxu1 %v1488_v6  ;;  %v1501_v31 = vld [vmem:[%s1822_s1 + $0xc0] sm:$0xff]   ;;  %v403_v38 = vld [vmem:[%s1637_s11 + $0xa] sm:$0xff]  ;;  %v1507_v39 = vld [vmem:[%s1822_s1 + $0xd8] sm:$0xff]  }
  0x1d   : >> { %1362 = vmatpush3.bf16.msra.mxu0 %v1489_v7  ;;  %1315 = vmatprep.subr.bf16.mxu1 %v1552_v2  ;;  %v402_v37 = vld [vmem:[%s1637_s11 + $0x2] sm:$0xff]  ;;  %v1204_v40 = vld [vmem:[%s1637_s11 + $0x30] sm:$0xff]  ;;  %v1205_v41 = vld [vmem:[%s1637_s11 + $0x38] sm:$0xff] }
  0x1e   : >> { %1363 = vmatprep.subr.bf16.mxu0 %v1552_v2  ;;  %v404_v42 = vpack.c.bf16 %v403_v38, %v402_v37  ;;  %v1508_v43 = vld [vmem:[%s1822_s1 + $0x60] sm:$0xff]   ;;  %v738_v44 = vpack.c.bf16 %v1205_v41, %v1204_v40  ;;  %v1510_v46 = vld [vmem:[%s1822_s1 + $0x68] sm:$0xff]   ;;  %v1512_v48 = vld [vmem:[%s1822_s1 + $0x70] sm:$0xff]  }
  0x1f   : >> { %v1509_v45 = vld [vmem:[%s1822_s1 + $0xe0] sm:$0xff]   ;;  %v1511_v47 = vld [vmem:[%s1822_s1 + $0xe8] sm:$0xff]   ;;  %v1513_v49 = vld [vmem:[%s1822_s1 + $0xf0] sm:$0xff]  }
  0x20   : >> { %1316 = vmatpush3.bf16.msra.mxu1 %v1490_v8  ;;  %v1514_v50 = vld [vmem:[%s1822_s1 + $0x78] sm:$0xff]   ;;  %v1160_v52 = vld [vmem:[%s1637_s11 + $0x20] sm:$0xff]  ;;  %v1517_v59 = vld [vmem:[%s1822_s1 + $0x108] sm:$0xff]  }
  0x21   : >> { %1364 = vmatpush3.bf16.msra.mxu0 %v1491_v9  ;;  %1321 = vmatprep.subr.bf16.mxu1 %v1552_v2  ;;  %v1159_v51 = vld [vmem:[%s1637_s11 + $0x18] sm:$0xff]  ;;  %v1516_v58 = vld [vmem:[%s1822_s1 + $0x100] sm:$0xff]   ;;  %v1518_v60 = vld [vmem:[%s1822_s1 + $0x110] sm:$0xff]  }
  0x22   : >> { %1369 = vmatprep.subr.bf16.mxu0 %v1552_v2  ;;  %v1515_v53 = vld [vmem:[%s1822_s1 + $0xf8] sm:$0xff]   ;;  %v489_v56 = vpack.c.bf16 %v1160_v52, %v1159_v51 }
  0x23   : >> { %1318 = vmatmul.mubr.msk.bf16.vlgmr.msra.gmra.mrb[0].mxu1 %vm273_vm1, %v240_v14  ;;  %v1219_v54 = vld [vmem:[%s1637_s11 + $0x31] sm:$0xff]  ;;  %v1220_v55 = vld [vmem:[%s1637_s11 + $0x39] sm:$0xff] }
  0x24   : >> { %1322 = vmatpush3.bf16.msra.mxu1 %v1492_v15  ;;  %1366 = vmatmul.mubr.msk.bf16.vlgmr.msra.gmra.mrb[0].mxu0 %vm273_vm1, %v571_v16  ;;  %v820_v57 = vpack.c.bf16 %v1220_v55, %v1219_v54  ;;  %v1519_v61 = vld [vmem:[%s1822_s1 + $0x118] sm:$0xff]  }
  0x25   : >> { %1370 = vmatpush3.bf16.msra.mxu0 %v1493_v17  ;;  %1323 = vmatprep.subr.bf16.mxu1 %v1552_v2  ;;  %v1234_v62 = vld [vmem:[%s1637_s11 + $0x32] sm:$0xff]  ;;  %v1235_v63 = vld [vmem:[%s1637_s11 + $0x3a] sm:$0xff]  ;;  %s1258_s11 = sshll.u32 %s1550_s26, 3  ;;  %s235_s26 = sadd.s32 1, %s1550_s26  }
  0x26   : >> { %1371 = vmatprep.subr.bf16.mxu0 %v1552_v2  ;;  %1329 = vmatprep.mubr.msk.bf16.mxu1 %vm1553_vm0, %v1552_v2  ;;  %v902_v1 = vpack.c.bf16 %v1235_v63, %v1234_v62  ;;  %s994_s17 = scalar_lea.vmem %s1600_s22, %s1258_s11  ;;  %p232_p5 = scmp.ge.s32.totalorder %s235_s26, 16  }
  0x27   : >> { %1377 = vmatprep.mubr.msk.bf16.mxu0 %vm1553_vm0, %v1552_v2 }
  0x28   : >> { %1324 = vmatpush3.bf16.msra.mxu1 %v1494_v18 }
  0x29   : >> { %1372 = vmatpush3.bf16.msra.mxu0 %v1495_v19  ;;  %1325 = vmatprep.subr.bf16.mxu1 %v1552_v2 }
  0x2a   : >> { %1373 = vmatprep.subr.bf16.mxu0 %v1552_v2 }
  0x2c   : >> { %1326 = vmatpush3.bf16.msra.mxu1 %v1496_v20 }
  0x2d   : >> { %1374 = vmatpush3.bf16.msra.mxu0 %v1497_v21  ;;  %1327 = vmatprep.subr.bf16.mxu1 %v1552_v2 }
  0x2e   : >> { %1375 = vmatprep.subr.bf16.mxu0 %v1552_v2 }
  0x30   : >> { %1328 = vmatpush3.bf16.msra.mxu1 %v1498_v22 }
  0x31   : >> { %1376 = vmatpush3.bf16.msra.mxu0 %v1499_v23  ;;  %1333 = vmatprep.subr.bf16.mxu1 %v1552_v2 }
  0x32   : >> { %1381 = vmatprep.subr.bf16.mxu0 %v1552_v2 }
  0x33   : >> { %1330 = vmatmul.mubr.msk.bf16.vlgmr.msra.gmra.mrb[0].mxu1 %vm273_vm1, %v322_v28 }
  0x34   : >> { %1334 = vmatpush3.bf16.msra.mxu1 %v1500_v29  ;;  %1378 = vmatmul.mubr.msk.bf16.vlgmr.msra.gmra.mrb[0].mxu0 %vm273_vm1, %v653_v30 }
  0x35   : >> { %1382 = vmatpush3.bf16.msra.mxu0 %v1501_v31  ;;  %1335 = vmatprep.subr.bf16.mxu1 %v1552_v2 }
  0x36   : >> { %1383 = vmatprep.subr.bf16.mxu0 %v1552_v2  ;;  %1341 = vmatprep.mubr.msk.bf16.mxu1 %vm1553_vm0, %v1552_v2 }
  0x37   : >> { %1389 = vmatprep.mubr.msk.bf16.mxu0 %vm1553_vm0, %v1552_v2 }
  0x38   : >> { %1336 = vmatpush3.bf16.msra.mxu1 %v1502_v32 }
  0x39   : >> { %1384 = vmatpush3.bf16.msra.mxu0 %v1503_v33  ;;  %1337 = vmatprep.subr.bf16.mxu1 %v1552_v2 }
  0x3a   : >> { %1385 = vmatprep.subr.bf16.mxu0 %v1552_v2 }
  0x3c   : >> { %1338 = vmatpush3.bf16.msra.mxu1 %v1504_v34 }
  0x3d   : >> { %1386 = vmatpush3.bf16.msra.mxu0 %v1505_v35  ;;  %1339 = vmatprep.subr.bf16.mxu1 %v1552_v2 }
  0x3e   : >> { %1387 = vmatprep.subr.bf16.mxu0 %v1552_v2 }
  0x40   : >> { %1340 = vmatpush3.bf16.msra.mxu1 %v1506_v36 }
  0x41   : >> { %1388 = vmatpush3.bf16.msra.mxu0 %v1507_v39  ;;  %1345 = vmatprep.subr.bf16.mxu1 %v1552_v2 }
  0x42   : >> { %1393 = vmatprep.subr.bf16.mxu0 %v1552_v2 }
  0x43   : >> { %1342 = vmatmul.mubr.msk.bf16.vlgmr.msra.gmra.mrb[0].mxu1 %vm273_vm1, %v404_v42 }
  0x44   : >> { %1346 = vmatpush3.bf16.msra.mxu1 %v1508_v43  ;;  %1390 = vmatmul.mubr.msk.bf16.vlgmr.msra.gmra.mrb[0].mxu0 %vm273_vm1, %v738_v44 }
  0x45   : >> { %1394 = vmatpush3.bf16.msra.mxu0 %v1509_v45  ;;  %1347 = vmatprep.subr.bf16.mxu1 %v1552_v2 }
  0x46   : >> { %1395 = vmatprep.subr.bf16.mxu0 %v1552_v2  ;;  %1353 = vmatprep.mubr.msk.bf16.mxu1 %vm1553_vm0, %v1552_v2 }
  0x47   : >> { %1401 = vmatprep.mubr.msk.bf16.mxu0 %vm1553_vm0, %v1552_v2 }
  0x48   : >> { %1348 = vmatpush3.bf16.msra.mxu1 %v1510_v46 }
  0x49   : >> { %1396 = vmatpush3.bf16.msra.mxu0 %v1511_v47  ;;  %1349 = vmatprep.subr.bf16.mxu1 %v1552_v2 }
  0x4a   : >> { %1397 = vmatprep.subr.bf16.mxu0 %v1552_v2 }
  0x4c   : >> { %1350 = vmatpush3.bf16.msra.mxu1 %v1512_v48 }
  0x4d   : >> { %1398 = vmatpush3.bf16.msra.mxu0 %v1513_v49  ;;  %1351 = vmatprep.subr.bf16.mxu1 %v1552_v2 }
  0x4e   : >> { %1399 = vmatprep.subr.bf16.mxu0 %v1552_v2 }
  0x50   : >> { %1352 = vmatpush3.bf16.msra.mxu1 %v1514_v50 }
  0x51   : >> { %1400 = vmatpush3.bf16.msra.mxu0 %v1515_v53 }
  0x52   : >> { %1405 = vmatprep.subr.bf16.mxu0 %v1552_v2 }
  0x53   : >> { %1354 = vmatmul.mubr.msk.bf16.vlgmr.msra.gmra.mrb[0].mxu1 %vm273_vm1, %v489_v56 }
  0x54   : >> { %1402 = vmatmul.mubr.msk.bf16.vlgmr.msra.gmra.mrb[0].mxu0 %vm273_vm1, %v820_v57 }
  0x55   : >> { %1406 = vmatpush3.bf16.msra.mxu0 %v1516_v58  ;;  %1413 = vmatprep.mubr.msk.bf16.mxu0 %vm1553_vm0, %v1552_v2 }
  0x56   : >> { %1407 = vmatprep.subr.bf16.mxu0 %v1552_v2 }
  0x59   : >> { %1408 = vmatpush3.bf16.msra.mxu0 %v1517_v59 }
  0x5a   : >> { %1409 = vmatprep.subr.bf16.mxu0 %v1552_v2 }
  0x5d   : >> { %1410 = vmatpush3.bf16.msra.mxu0 %v1518_v60 }
  0x5e   : >> { %1411 = vmatprep.subr.bf16.mxu0 %v1552_v2 }
  0x61   : >> { %1412 = vmatpush3.bf16.msra.mxu0 %v1519_v61 }
  0x64   : >> { %1414 = vmatmul.mubr.msk.bf16.vlgmr.msra.gmra.mrb[0].mxu0 %vm273_vm1, %v902_v1 }
 0x126   : >> { %v560_v3 = vpop.f32.mrb[0].mxu1 }
 0x127   : >> { %v1355_v4 = vpop.f32.mrb[1].mxu1  ;;  %v1417_v7 = vadd.f32 %v1595_v0, %v560_v3 }
 0x128   : >> { %v563_v5 = vpop.f32.mrb[2].mxu1 }
 0x129   : >> { %v1356_v6 = vpop.f32.mrb[3].mxu1  ;;  %v1419_v9 = vadd.f32 %v1595_v0, %v563_v5 }
 0x137   : >> { %v973_v8 = vpop.f32.mrb[0].mxu0 }
 0x138   : >> { %v1418_v10 = vadd.f32 %v1417_v7, %v973_v8  ;;  %v1415_v11 = vpop.f32.mrb[1].mxu0 }
 0x139   : >> { %v976_v12 = vpop.f32.mrb[2].mxu0 }
 0x13a   : >> { %v1420_v13 = vadd.f32 %v1419_v9, %v976_v12  ;;  %v1416_v2 = vpop.f32.mrb[3].mxu0  ;;  %v982_v14 = vmax.f32 %v1418_v10, 0.0  ;;  %234 = sbr.rel (!%p232_p5) target bundleno = 18 (0x12), region = 87 }
 0x13c   : >> { %v983_v15 = vmax.f32 %v1420_v13, 0.0 }
 0x13e   : >> { %v1262_v16 = vpack.c.bf16 %v983_v15, %v982_v14 }
 0x140   : >> { %1263 = vst [vmem:[%s994_s17] sm:$0xff] %v1262_v16  }
 0x141 PF: > { %s13_s14 = sadd.s32 1, %s1546_s14   ;;  %s1825_s12 = smov %s1542_s13 }
 0x142   : > { %p10_p6 = scmp.ge.s32.totalorder %s13_s14, 4   ;;  %s1826_s13 = smov %s1828_s15 }
 0x144   :  { %12 = sbr.rel (!%p10_p6) target bundleno = 2 (0x2), region = 98 }

// kernel: fcn_forward.10
= control target key start
LH: loop header
LB: loop body
LE: loop exit
PB: predicated region body
PF: predicated region fallthrough
CT: control target
= control target key end

     0   :  { %s2310_s12 = smov 0   ;;  %s2312_s13 = smov 0   ;;  %s2820_s0 = inlined_call_operand.vmem [shape: f32[2,10,10,128], index: 0, kind: input, shape index: {}]   ;;  %s2821_s1 = inlined_call_operand.vmem [shape: bf16[3,3,128,256], index: 1, kind: input, shape index: {}]   ;;  %s2822_s2 = inlined_call_operand.vmem [shape: f32[1,256], index: 2, kind: input, shape index: {}]   ;;  %s2823_s3 = inlined_call_operand.vmem [shape: bf16[2,8,8,256], index: 3, kind: output, shape index: {}]  }
   0x1   :  { %s2314_s14 = smov 0  }
   0x2 LB: > { %s25_s15 = sadd.s32 1, %s2279_s13  ;;  %p1682_p0 = scmp.ge.s32.totalorder %s2283_s14, 1  ;;  %s2283_s14 = sphi %s2314_s14, %s13_s14   ;;  %s2279_s13 = sphi %s2312_s13, %s2825_s13   ;;  %s2275_s12 = sphi %s2310_s12, %s2824_s12  }
   0x3   : > { %p27_p1 = scmp.ge.s32.totalorder %s25_s15, 2  ;;  %p172_p2 = scmp.lt.s32.totalorder %s2283_s14, 3 }
   0x5   : > { %s2827_s15 = smov (%p27_p1, %s25_s15), 0  ;;  %p173_p3 = pnand %p1682_p0, %p172_p2 }
   0x6   : > { %p209_p4 = scmp.lt.s32.totalorder (!%p173_p3), %s2275_s12, 1  ;;  %v238_v0 = vlaneseq (!%p173_p3)  ;;  %v236_v2 = vld [vmem:[%s2822_s2] sm:$0x3] (!%p173_p3)  ;;  %s2345_s26 = smov (!%p173_p3), 0  }
   0x7   : > { %176 = sbr.rel (%p173_p3) target bundleno = 400 (0x190), region = 32 }
   0x8   : > { %v239_v1 = vshrl.u32 (!%p173_p3), %v238_v0, 7 }
   0xa   : > { %v240_v3 = vsub.s32 (!%p173_p3), 0, %v239_v1  ;;  %v244_v4 = vsub.s32 (!%p173_p3), 1, %v239_v1 }
   0xc   : > { %v2341_v5 = vrot.slane (!%p173_p3), %v236_v2, %v240_v3  ;;  %v2343_v6 = vrot.slane (!%p173_p3), %v236_v2, %v244_v4 }
   0xe   : > { %s2829_s12 = smov (!%p209_p4, %s2275_s12), 1 }
   0xf   : > { %s2007_s18 = smul.u32 160, %s2829_s12  ;;  %s1972_s19 = sshll.u32 %s2829_s12, 6 }
  0x10   : > { %s2334_s22 = scalar_lea.vmem %s2823_s3, %s1972_s19 }
  0x11   : > { %s2339_s25 = scalar_lea.vmem %s2820_s0, %s2007_s18 }
  0x12 LB: >> { %v2041_v7 = vld [vmem:[%s2821_s1 + $0x4] ss:$8 sps:$4 sm:$0xff]   ;;  %v2289_v9 = vmov 0   ;;  %v2045_v10 = vld [vmem:[%s2821_s1] ss:$8 sps:$4 sm:$0xff]   ;;  %s1686_s10 = sshll.u32 %s2287_s26, 4  ;;  %s2287_s26 = sphi %s2345_s26, %s253_s26  }
  0x13   : >> { %v2043_v8 = vld [vmem:[%s2821_s1 + $0x204] ss:$8 sps:$4 sm:$0xff]   ;;  %386 = vmatprep.mubr.bf16.mxu1 %v2289_v9  ;;  %957 = vmatprep.mubr.bf16.mxu0 %v2289_v9  ;;  %v2046_v11 = vld [vmem:[%s2821_s1 + $0x200] ss:$8 sps:$4 sm:$0xff]   ;;  %v2047_v12 = vld [vmem:[%s2821_s1 + $0x14] ss:$8 sps:$4 sm:$0xff]   ;;  %s2444_s23 = scalar_lea.vmem %s2339_s25, %s1686_s10 }
  0x14   : >> { %354 = vmatprep.subr.bf16.mxu1 %v2041_v7  ;;  %925 = vmatprep.subr.bf16.mxu0 %v2043_v8  ;;  %v2049_v13 = vld [vmem:[%s2821_s1 + $0x214] ss:$8 sps:$4 sm:$0xff]   ;;  %v2051_v14 = vld [vmem:[%s2821_s1 + $0x10] ss:$8 sps:$4 sm:$0xff]   ;;  %v2053_v16 = vld [vmem:[%s2821_s1 + $0x24] ss:$8 sps:$4 sm:$0xff]  }
  0x15   : >> { %355 = vmatpush1.bf16.msra.mxu1 %v2045_v10  ;;  %926 = vmatpush1.bf16.msra.mxu0 %v2046_v11  ;;  %v2052_v15 = vld [vmem:[%s2821_s1 + $0x210] ss:$8 sps:$4 sm:$0xff]   ;;  %v2055_v17 = vld [vmem:[%s2821_s1 + $0x224] ss:$8 sps:$4 sm:$0xff]   ;;  %v2057_v18 = vld [vmem:[%s2821_s1 + $0x20] ss:$8 sps:$4 sm:$0xff]  }
  0x16   : >> { %356 = vmatprep.subr.bf16.mxu1 %v2047_v12  ;;  %927 = vmatprep.subr.bf16.mxu0 %v2049_v13  ;;  %v2058_v19 = vld [vmem:[%s2821_s1 + $0x220] ss:$8 sps:$4 sm:$0xff]   ;;  %v2059_v20 = vld [vmem:[%s2821_s1 + $0x34] ss:$8 sps:$4 sm:$0xff]   ;;  %v2063_v22 = vld [vmem:[%s2821_s1 + $0x30] ss:$8 sps:$4 sm:$0xff]  }
  0x17   : >> { %v2061_v21 = vld [vmem:[%s2821_s1 + $0x234] ss:$8 sps:$4 sm:$0xff]   ;;  %v2064_v23 = vld [vmem:[%s2821_s1 + $0x230] ss:$8 sps:$4 sm:$0xff]   ;;  %v2065_v24 = vld [vmem:[%s2821_s1 + $0x44] ss:$8 sps:$4 sm:$0xff]  }
  0x18   : >> { %v2067_v25 = vld [vmem:[%s2821_s1 + $0x244] ss:$8 sps:$4 sm:$0xff]   ;;  %v2069_v26 = vld [vmem:[%s2821_s1 + $0x40] ss:$8 sps:$4 sm:$0xff]   ;;  %v2071_v28 = vld [vmem:[%s2821_s1 + $0x54] ss:$8 sps:$4 sm:$0xff]  }
  0x19   : >> { %357 = vmatpush1.bf16.msra.mxu1 %v2051_v14  ;;  %928 = vmatpush1.bf16.msra.mxu0 %v2052_v15  ;;  %v2070_v27 = vld [vmem:[%s2821_s1 + $0x240] ss:$8 sps:$4 sm:$0xff]   ;;  %v2073_v29 = vld [vmem:[%s2821_s1 + $0x254] ss:$8 sps:$4 sm:$0xff]   ;;  %v2075_v30 = vld [vmem:[%s2821_s1 + $0x50] ss:$8 sps:$4 sm:$0xff]  }
  0x1a   : >> { %358 = vmatprep.subr.bf16.mxu1 %v2053_v16  ;;  %929 = vmatprep.subr.bf16.mxu0 %v2055_v17  ;;  %v2076_v31 = vld [vmem:[%s2821_s1 + $0x250] ss:$8 sps:$4 sm:$0xff]   ;;  %v2077_v32 = vld [vmem:[%s2821_s1 + $0x64] ss:$8 sps:$4 sm:$0xff]   ;;  %v2081_v34 = vld [vmem:[%s2821_s1 + $0x60] ss:$8 sps:$4 sm:$0xff]  }
  0x1b   : >> { %v2079_v33 = vld [vmem:[%s2821_s1 + $0x264] ss:$8 sps:$4 sm:$0xff]   ;;  %v2082_v35 = vld [vmem:[%s2821_s1 + $0x260] ss:$8 sps:$4 sm:$0xff]   ;;  %v2083_v36 = vld [vmem:[%s2821_s1 + $0x74] ss:$8 sps:$4 sm:$0xff]  }
  0x1c   : >> { %v2085_v37 = vld [vmem:[%s2821_s1 + $0x274] ss:$8 sps:$4 sm:$0xff]   ;;  %v2087_v38 = vld [vmem:[%s2821_s1 + $0x70] ss:$8 sps:$4 sm:$0xff]   ;;  %v256_v40 = vld [vmem:[%s2444_s23] sm:$0xff]  ;;  %s1974_s7 = sshll.u32 %s2287_s26, 3 }
  0x1d   : >> { %359 = vmatpush1.bf16.msra.mxu1 %v2057_v18  ;;  %930 = vmatpush1.bf16.msra.mxu0 %v2058_v19  ;;  %v2088_v39 = vld [vmem:[%s2821_s1 + $0x270] ss:$8 sps:$4 sm:$0xff]   ;;  %v2091_v42 = vld [vmem:[%s2821_s1 + $0x84] ss:$8 sps:$4 sm:$0xff]   ;;  %v257_v44 = vpack.c.bf16 %v256_v40, %v256_v40  ;;  %v2089_v46 = vld [vmem:[%s2821_s1 + $0x80] ss:$8 sps:$4 sm:$0xff]  }
  0x1e   : >> { %360 = vmatprep.subr.bf16.mxu1 %v2059_v20  ;;  %931 = vmatprep.subr.bf16.mxu0 %v2061_v21  ;;  %v1801_v41 = vld [vmem:[%s2444_s23 + $0x11] sm:$0xff]  ;;  %v2094_v43 = vld [vmem:[%s2821_s1 + $0x284] ss:$8 sps:$4 sm:$0xff]   ;;  %v2092_v47 = vld [vmem:[%s2821_s1 + $0x280] ss:$8 sps:$4 sm:$0xff]   ;;  %s253_s26 = sadd.s32 1, %s2287_s26  }
  0x1f   : >> { %v827_v45 = vpack.c.bf16 %v1801_v41, %v1801_v41  ;;  %v2097_v48 = vld [vmem:[%s2821_s1 + $0x94] ss:$8 sps:$4 sm:$0xff]   ;;  %v2095_v50 = vld [vmem:[%s2821_s1 + $0x90] ss:$8 sps:$4 sm:$0xff]   ;;  %v2103_v52 = vld [vmem:[%s2821_s1 + $0xa4] ss:$8 sps:$4 sm:$0xff]  }
  0x20   : >> { %v2100_v49 = vld [vmem:[%s2821_s1 + $0x294] ss:$8 sps:$4 sm:$0xff]   ;;  %v2098_v51 = vld [vmem:[%s2821_s1 + $0x290] ss:$8 sps:$4 sm:$0xff]   ;;  %v2106_v53 = vld [vmem:[%s2821_s1 + $0x2a4] ss:$8 sps:$4 sm:$0xff]  }
  0x21   : >> { %361 = vmatpush1.bf16.msra.mxu1 %v2063_v22  ;;  %932 = vmatpush1.bf16.msra.mxu0 %v2064_v23  ;;  %v2101_v54 = vld [vmem:[%s2821_s1 + $0xa0] ss:$8 sps:$4 sm:$0xff]   ;;  %v2109_v56 = vld [vmem:[%s2821_s1 + $0xb4] ss:$8 sps:$4 sm:$0xff]   ;;  %v2107_v58 = vld [vmem:[%s2821_s1 + $0xb0] ss:$8 sps:$4 sm:$0xff]  }
  0x22   : >> { %362 = vmatprep.subr.bf16.mxu1 %v2065_v24  ;;  %933 = vmatprep.subr.bf16.mxu0 %v2067_v25  ;;  %v2104_v55 = vld [vmem:[%s2821_s1 + $0x2a0] ss:$8 sps:$4 sm:$0xff]   ;;  %v2112_v57 = vld [vmem:[%s2821_s1 + $0x2b4] ss:$8 sps:$4 sm:$0xff]   ;;  %v2110_v59 = vld [vmem:[%s2821_s1 + $0x2b0] ss:$8 sps:$4 sm:$0xff]  }
  0x23   : >> { %v2115_v60 = vld [vmem:[%s2821_s1 + $0xc4] ss:$8 sps:$4 sm:$0xff]   ;;  %v2113_v62 = vld [vmem:[%s2821_s1 + $0xc0] ss:$8 sps:$4 sm:$0xff]   ;;  %v2121_v0 = vld [vmem:[%s2821_s1 + $0xd4] ss:$8 sps:$4 sm:$0xff]  }
  0x24   : >> { %v2118_v61 = vld [vmem:[%s2821_s1 + $0x2c4] ss:$8 sps:$4 sm:$0xff]   ;;  %v2116_v63 = vld [vmem:[%s2821_s1 + $0x2c0] ss:$8 sps:$4 sm:$0xff]   ;;  %v2124_v1 = vld [vmem:[%s2821_s1 + $0x2d4] ss:$8 sps:$4 sm:$0xff]  }
  0x25   : >> { %363 = vmatpush1.bf16.msra.mxu1 %v2069_v26  ;;  %934 = vmatpush1.bf16.msra.mxu0 %v2070_v27  ;;  %v2119_v2 = vld [vmem:[%s2821_s1 + $0xd0] ss:$8 sps:$4 sm:$0xff]   ;;  %v2127_v4 = vld [vmem:[%s2821_s1 + $0xe4] ss:$8 sps:$4 sm:$0xff]   ;;  %v2125_v8 = vld [vmem:[%s2821_s1 + $0xe0] ss:$8 sps:$4 sm:$0xff]  }
  0x26   : >> { %364 = vmatprep.subr.bf16.mxu1 %v2071_v28  ;;  %935 = vmatprep.subr.bf16.mxu0 %v2073_v29  ;;  %v2122_v3 = vld [vmem:[%s2821_s1 + $0x2d0] ss:$8 sps:$4 sm:$0xff]   ;;  %v2130_v7 = vld [vmem:[%s2821_s1 + $0x2e4] ss:$8 sps:$4 sm:$0xff]   ;;  %v2128_v10 = vld [vmem:[%s2821_s1 + $0x2e0] ss:$8 sps:$4 sm:$0xff]  }
  0x27   : >> { %v2133_v11 = vld [vmem:[%s2821_s1 + $0xf4] ss:$8 sps:$4 sm:$0xff]   ;;  %v2131_v13 = vld [vmem:[%s2821_s1 + $0xf0] ss:$8 sps:$4 sm:$0xff]   ;;  %v2139_v15 = vld [vmem:[%s2821_s1 + $0x104] ss:$8 sps:$4 sm:$0xff]  }
  0x28   : >> { %v2136_v12 = vld [vmem:[%s2821_s1 + $0x2f4] ss:$8 sps:$4 sm:$0xff]   ;;  %v2134_v14 = vld [vmem:[%s2821_s1 + $0x2f0] ss:$8 sps:$4 sm:$0xff]   ;;  %v397_v16 = vld [vmem:[%s2444_s23 + $0x1] sm:$0xff]  ;;  %p250_p5 = scmp.ge.s32.totalorder %s253_s26, 8  }
  0x29   : >> { %365 = vmatpush1.bf16.msra.mxu1 %v2075_v30  ;;  %936 = vmatpush1.bf16.msra.mxu0 %v2076_v31  ;;  %v1834_v17 = vld [vmem:[%s2444_s23 + $0x12] sm:$0xff]  ;;  %v2142_v18 = vld [vmem:[%s2821_s1 + $0x304] ss:$8 sps:$4 sm:$0xff]   ;;  %v2137_v19 = vld [vmem:[%s2821_s1 + $0x100] ss:$8 sps:$4 sm:$0xff]   ;;  %v398_v21 = vpack.c.bf16 %v397_v16, %v397_v16 }
  0x2a   : >> { %366 = vmatprep.subr.bf16.mxu1 %v2077_v32  ;;  %937 = vmatprep.subr.bf16.mxu0 %v2079_v33  ;;  %v2140_v20 = vld [vmem:[%s2821_s1 + $0x300] ss:$8 sps:$4 sm:$0xff]   ;;  %v969_v22 = vpack.c.bf16 %v1834_v17, %v1834_v17  ;;  %v2145_v23 = vld [vmem:[%s2821_s1 + $0x114] ss:$8 sps:$4 sm:$0xff]   ;;  %v2143_v25 = vld [vmem:[%s2821_s1 + $0x110] ss:$8 sps:$4 sm:$0xff]  }
  0x2b   : >> { %v2148_v24 = vld [vmem:[%s2821_s1 + $0x314] ss:$8 sps:$4 sm:$0xff]   ;;  %v2146_v26 = vld [vmem:[%s2821_s1 + $0x310] ss:$8 sps:$4 sm:$0xff]   ;;  %v2151_v27 = vld [vmem:[%s2821_s1 + $0x124] ss:$8 sps:$4 sm:$0xff]  }
  0x2c   : >> { %v2154_v28 = vld [vmem:[%s2821_s1 + $0x324] ss:$8 sps:$4 sm:$0xff]   ;;  %v2149_v29 = vld [vmem:[%s2821_s1 + $0x120] ss:$8 sps:$4 sm:$0xff]   ;;  %v2157_v31 = vld [vmem:[%s2821_s1 + $0x134] ss:$8 sps:$4 sm:$0xff]  }
  0x2d   : >> { %367 = vmatpush1.bf16.msra.mxu1 %v2081_v34  ;;  %938 = vmatpush1.bf16.msra.mxu0 %v2082_v35  ;;  %v2152_v30 = vld [vmem:[%s2821_s1 + $0x320] ss:$8 sps:$4 sm:$0xff]   ;;  %v2160_v32 = vld [vmem:[%s2821_s1 + $0x334] ss:$8 sps:$4 sm:$0xff]   ;;  %v2155_v33 = vld [vmem:[%s2821_s1 + $0x130] ss:$8 sps:$4 sm:$0xff]  }
  0x2e   : >> { %368 = vmatprep.subr.bf16.mxu1 %v2083_v36  ;;  %939 = vmatprep.subr.bf16.mxu0 %v2085_v37  ;;  %v2158_v34 = vld [vmem:[%s2821_s1 + $0x330] ss:$8 sps:$4 sm:$0xff]   ;;  %v2163_v35 = vld [vmem:[%s2821_s1 + $0x144] ss:$8 sps:$4 sm:$0xff]   ;;  %v2161_v37 = vld [vmem:[%s2821_s1 + $0x140] ss:$8 sps:$4 sm:$0xff]  }
  0x2f   : >> { %v2166_v36 = vld [vmem:[%s2821_s1 + $0x344] ss:$8 sps:$4 sm:$0xff]   ;;  %v2172_v40 = vld [vmem:[%s2821_s1 + $0x354] ss:$8 sps:$4 sm:$0xff]   ;;  %v2167_v41 = vld [vmem:[%s2821_s1 + $0x150] ss:$8 sps:$4 sm:$0xff]  }
  0x30   : >> { %v2215_v16 = vld [vmem:[%s2821_s1 + $0x1d0] ss:$8 sps:$4 sm:$0xff]  }
  0x31   : >> { %369 = vmatpush1.bf16.msra.mxu1 %v2087_v38  ;;  %940 = vmatpush1.bf16.msra.mxu0 %v2088_v39  ;;  %v2164_v38 = vld [vmem:[%s2821_s1 + $0x340] ss:$8 sps:$4 sm:$0xff]   ;;  %v2169_v39 = vld [vmem:[%s2821_s1 + $0x154] ss:$8 sps:$4 sm:$0xff]   ;;  %v2218_v17 = vld [vmem:[%s2821_s1 + $0x3d0] ss:$8 sps:$4 sm:$0xff]  }
  0x32   : >> { %496 = vmatprep.subr.bf16.mxu1 %v2091_v42  ;;  %1067 = vmatprep.subr.bf16.mxu0 %v2094_v43  ;;  %v2170_v42 = vld [vmem:[%s2821_s1 + $0x350] ss:$8 sps:$4 sm:$0xff]   ;;  %v2175_v43 = vld [vmem:[%s2821_s1 + $0x164] ss:$8 sps:$4 sm:$0xff]  }
  0x34   : >> { %387 = vmatmul.mubr.bf16.vlgmr.msra.gmra.mrb[0].mxu1 %v257_v44  ;;  %958 = vmatmul.mubr.bf16.vlgmr.msra.gmra.mrb[0].mxu0 %v827_v45  ;;  %v2178_v44 = vld [vmem:[%s2821_s1 + $0x364] ss:$8 sps:$4 sm:$0xff]   ;;  %v2173_v45 = vld [vmem:[%s2821_s1 + $0x160] ss:$8 sps:$4 sm:$0xff]  }
  0x35   : >> { %497 = vmatpush1.bf16.msra.mxu1 %v2089_v46  ;;  %1068 = vmatpush1.bf16.msra.mxu0 %v2092_v47  ;;  %v2176_v46 = vld [vmem:[%s2821_s1 + $0x360] ss:$8 sps:$4 sm:$0xff]   ;;  %v2181_v47 = vld [vmem:[%s2821_s1 + $0x174] ss:$8 sps:$4 sm:$0xff]  }
  0x36   : >> { %498 = vmatprep.subr.bf16.mxu1 %v2097_v48  ;;  %1069 = vmatprep.subr.bf16.mxu0 %v2100_v49  ;;  %v2184_v48 = vld [vmem:[%s2821_s1 + $0x374] ss:$8 sps:$4 sm:$0xff]   ;;  %v2179_v49 = vld [vmem:[%s2821_s1 + $0x170] ss:$8 sps:$4 sm:$0xff]  }
  0x37   : >> { %528 = vmatprep.mubr.bf16.mxu1 %v2289_v9  ;;  %1099 = vmatprep.mubr.bf16.mxu0 %v2289_v9 }
  0x39   : >> { %499 = vmatpush1.bf16.msra.mxu1 %v2095_v50  ;;  %1070 = vmatpush1.bf16.msra.mxu0 %v2098_v51  ;;  %v2182_v50 = vld [vmem:[%s2821_s1 + $0x370] ss:$8 sps:$4 sm:$0xff]   ;;  %v2187_v51 = vld [vmem:[%s2821_s1 + $0x184] ss:$8 sps:$4 sm:$0xff]  }
  0x3a   : >> { %500 = vmatprep.subr.bf16.mxu1 %v2103_v52  ;;  %1071 = vmatprep.subr.bf16.mxu0 %v2106_v53  ;;  %v539_v52 = vld [vmem:[%s2444_s23 + $0x2] sm:$0xff] }
  0x3b   : >> { %v1868_v53 = vld [vmem:[%s2444_s23 + $0x20] sm:$0xff] }
  0x3d   : >> { %501 = vmatpush1.bf16.msra.mxu1 %v2101_v54  ;;  %1072 = vmatpush1.bf16.msra.mxu0 %v2104_v55  ;;  %v2190_v54 = vld [vmem:[%s2821_s1 + $0x384] ss:$8 sps:$4 sm:$0xff]   ;;  %v2185_v55 = vld [vmem:[%s2821_s1 + $0x180] ss:$8 sps:$4 sm:$0xff]  }
  0x3e   : >> { %502 = vmatprep.subr.bf16.mxu1 %v2109_v56  ;;  %1073 = vmatprep.subr.bf16.mxu0 %v2112_v57  ;;  %v2188_v56 = vld [vmem:[%s2821_s1 + $0x380] ss:$8 sps:$4 sm:$0xff]   ;;  %v540_v57 = vpack.c.bf16 %v539_v52, %v539_v52 }
  0x41   : >> { %503 = vmatpush1.bf16.msra.mxu1 %v2107_v58  ;;  %1074 = vmatpush1.bf16.msra.mxu0 %v2110_v59  ;;  %v1114_v58 = vpack.c.bf16 %v1868_v53, %v1868_v53  ;;  %v2193_v59 = vld [vmem:[%s2821_s1 + $0x194] ss:$8 sps:$4 sm:$0xff]  }
  0x42   : >> { %504 = vmatprep.subr.bf16.mxu1 %v2115_v60  ;;  %1075 = vmatprep.subr.bf16.mxu0 %v2118_v61  ;;  %v2196_v60 = vld [vmem:[%s2821_s1 + $0x394] ss:$8 sps:$4 sm:$0xff]   ;;  %v2191_v61 = vld [vmem:[%s2821_s1 + $0x190] ss:$8 sps:$4 sm:$0xff]  }
  0x45   : >> { %505 = vmatpush1.bf16.msra.mxu1 %v2113_v62  ;;  %1076 = vmatpush1.bf16.msra.mxu0 %v2116_v63  ;;  %v2194_v62 = vld [vmem:[%s2821_s1 + $0x390] ss:$8 sps:$4 sm:$0xff]   ;;  %v2199_v63 = vld [vmem:[%s2821_s1 + $0x1a4] ss:$8 sps:$4 sm:$0xff]  }
  0x46   : >> { %506 = vmatprep.subr.bf16.mxu1 %v2121_v0  ;;  %1077 = vmatprep.subr.bf16.mxu0 %v2124_v1  ;;  %v2202_v0 = vld [vmem:[%s2821_s1 + $0x3a4] ss:$8 sps:$4 sm:$0xff]   ;;  %v2197_v1 = vld [vmem:[%s2821_s1 + $0x1a0] ss:$8 sps:$4 sm:$0xff]  }
  0x49   : >> { %507 = vmatpush1.bf16.msra.mxu1 %v2119_v2  ;;  %1078 = vmatpush1.bf16.msra.mxu0 %v2122_v3  ;;  %v2200_v2 = vld [vmem:[%s2821_s1 + $0x3a0] ss:$8 sps:$4 sm:$0xff]   ;;  %v2205_v3 = vld [vmem:[%s2821_s1 + $0x1b4] ss:$8 sps:$4 sm:$0xff]  }
  0x4a   : >> { %508 = vmatprep.subr.bf16.mxu1 %v2127_v4  ;;  %1079 = vmatprep.subr.bf16.mxu0 %v2130_v7  ;;  %v2208_v4 = vld [vmem:[%s2821_s1 + $0x3b4] ss:$8 sps:$4 sm:$0xff]   ;;  %v2203_v7 = vld [vmem:[%s2821_s1 + $0x1b0] ss:$8 sps:$4 sm:$0xff]  }
  0x4d   : >> { %509 = vmatpush1.bf16.msra.mxu1 %v2125_v8  ;;  %1080 = vmatpush1.bf16.msra.mxu0 %v2128_v10  ;;  %v2206_v8 = vld [vmem:[%s2821_s1 + $0x3b0] ss:$8 sps:$4 sm:$0xff]   ;;  %v2211_v10 = vld [vmem:[%s2821_s1 + $0x1c4] ss:$8 sps:$4 sm:$0xff]  }
  0x4e   : >> { %510 = vmatprep.subr.bf16.mxu1 %v2133_v11  ;;  %1081 = vmatprep.subr.bf16.mxu0 %v2136_v12  ;;  %v2214_v11 = vld [vmem:[%s2821_s1 + $0x3c4] ss:$8 sps:$4 sm:$0xff]   ;;  %v2209_v12 = vld [vmem:[%s2821_s1 + $0x1c0] ss:$8 sps:$4 sm:$0xff]  }
  0x51   : >> { %511 = vmatpush1.bf16.msra.mxu1 %v2131_v13  ;;  %1082 = vmatpush1.bf16.msra.mxu0 %v2134_v14  ;;  %v2212_v13 = vld [vmem:[%s2821_s1 + $0x3c0] ss:$8 sps:$4 sm:$0xff]   ;;  %v2217_v14 = vld [vmem:[%s2821_s1 + $0x1d4] ss:$8 sps:$4 sm:$0xff]  }
  0x52   : >> { %638 = vmatprep.subr.bf16.mxu1 %v2139_v15  ;;  %1212 = vmatprep.subr.bf16.mxu0 %v2142_v18  ;;  %v2220_v15 = vld [vmem:[%s2821_s1 + $0x3d4] ss:$8 sps:$4 sm:$0xff]   ;;  %v2223_v18 = vld [vmem:[%s2821_s1 + $0x1e4] ss:$8 sps:$4 sm:$0xff]  }
  0x54   : >> { %529 = vmatmul.mubr.bf16.vlgmr.msra.gmra.mrb[0].mxu1 %v398_v21  ;;  %1100 = vmatmul.mubr.bf16.vlgmr.msra.gmra.mrb[0].mxu0 %v969_v22  ;;  %v2224_v21 = vld [vmem:[%s2821_s1 + $0x3e0] ss:$8 sps:$4 sm:$0xff]   ;;  %v2229_v22 = vld [vmem:[%s2821_s1 + $0x1f4] ss:$8 sps:$4 sm:$0xff]  }
  0x55   : >> { %639 = vmatpush1.bf16.msra.mxu1 %v2137_v19  ;;  %1213 = vmatpush1.bf16.msra.mxu0 %v2140_v20  ;;  %v2226_v19 = vld [vmem:[%s2821_s1 + $0x3e4] ss:$8 sps:$4 sm:$0xff]   ;;  %v2221_v20 = vld [vmem:[%s2821_s1 + $0x1e0] ss:$8 sps:$4 sm:$0xff]  }
  0x56   : >> { %640 = vmatprep.subr.bf16.mxu1 %v2145_v23  ;;  %1214 = vmatprep.subr.bf16.mxu0 %v2148_v24  ;;  %v2232_v23 = vld [vmem:[%s2821_s1 + $0x3f4] ss:$8 sps:$4 sm:$0xff]   ;;  %v2227_v24 = vld [vmem:[%s2821_s1 + $0x1f0] ss:$8 sps:$4 sm:$0xff]  }
  0x57   : >> { %670 = vmatprep.mubr.bf16.mxu1 %v2289_v9  ;;  %1244 = vmatprep.mubr.bf16.mxu0 %v2289_v9 }
  0x59   : >> { %641 = vmatpush1.bf16.msra.mxu1 %v2143_v25  ;;  %1215 = vmatpush1.bf16.msra.mxu0 %v2146_v26  ;;  %v2230_v25 = vld [vmem:[%s2821_s1 + $0x3f0] ss:$8 sps:$4 sm:$0xff]  }
  0x5a   : >> { %642 = vmatprep.subr.bf16.mxu1 %v2151_v27  ;;  %1216 = vmatprep.subr.bf16.mxu0 %v2154_v28  ;;  %v1768_v26 = vld [vmem:[%s2444_s23 + $0x10] sm:$0xff]  ;;  %v1901_v27 = vld [vmem:[%s2444_s23 + $0x21] sm:$0xff] }
  0x5b   : >> { %v2235_v28 = vld [vmem:[%s2821_s1 + $0x404] ss:$8 sps:$4 sm:$0xff]  }
  0x5d   : >> { %643 = vmatpush1.bf16.msra.mxu1 %v2149_v29  ;;  %1217 = vmatpush1.bf16.msra.mxu0 %v2152_v30  ;;  %v685_v29 = vpack.c.bf16 %v1768_v26, %v1768_v26  ;;  %v1256_v30 = vpack.c.bf16 %v1901_v27, %v1901_v27 }
  0x5e   : >> { %644 = vmatprep.subr.bf16.mxu1 %v2157_v31  ;;  %1218 = vmatprep.subr.bf16.mxu0 %v2160_v32  ;;  %v2233_v31 = vld [vmem:[%s2821_s1 + $0x400] ss:$8 sps:$4 sm:$0xff]   ;;  %v2238_v32 = vld [vmem:[%s2821_s1 + $0x414] ss:$8 sps:$4 sm:$0xff]  }
  0x61   : >> { %645 = vmatpush1.bf16.msra.mxu1 %v2155_v33  ;;  %1219 = vmatpush1.bf16.msra.mxu0 %v2158_v34  ;;  %v2236_v33 = vld [vmem:[%s2821_s1 + $0x410] ss:$8 sps:$4 sm:$0xff]   ;;  %v2241_v34 = vld [vmem:[%s2821_s1 + $0x424] ss:$8 sps:$4 sm:$0xff]  }
  0x62   : >> { %646 = vmatprep.subr.bf16.mxu1 %v2163_v35  ;;  %1220 = vmatprep.subr.bf16.mxu0 %v2166_v36  ;;  %v2239_v35 = vld [vmem:[%s2821_s1 + $0x420] ss:$8 sps:$4 sm:$0xff]   ;;  %v2244_v36 = vld [vmem:[%s2821_s1 + $0x434] ss:$8 sps:$4 sm:$0xff]  }
  0x65   : >> { %647 = vmatpush1.bf16.msra.mxu1 %v2161_v37  ;;  %1221 = vmatpush1.bf16.msra.mxu0 %v2164_v38  ;;  %v2247_v37 = vld [vmem:[%s2821_s1 + $0x444] ss:$8 sps:$4 sm:$0xff]   ;;  %v2245_v38 = vld [vmem:[%s2821_s1 + $0x440] ss:$8 sps:$4 sm:$0xff]  }
  0x66   : >> { %648 = vmatprep.subr.bf16.mxu1 %v2169_v39  ;;  %1222 = vmatprep.subr.bf16.mxu0 %v2172_v40  ;;  %v2250_v39 = vld [vmem:[%s2821_s1 + $0x454] ss:$8 sps:$4 sm:$0xff]   ;;  %v2248_v40 = vld [vmem:[%s2821_s1 + $0x450] ss:$8 sps:$4 sm:$0xff]  }
  0x69   : >> { %649 = vmatpush1.bf16.msra.mxu1 %v2167_v41  ;;  %1223 = vmatpush1.bf16.msra.mxu0 %v2170_v42  ;;  %v2253_v41 = vld [vmem:[%s2821_s1 + $0x464] ss:$8 sps:$4 sm:$0xff]   ;;  %v2251_v42 = vld [vmem:[%s2821_s1 + $0x460] ss:$8 sps:$4 sm:$0xff]  }
  0x6a   : >> { %650 = vmatprep.subr.bf16.mxu1 %v2175_v43  ;;  %1224 = vmatprep.subr.bf16.mxu0 %v2178_v44  ;;  %v2256_v43 = vld [vmem:[%s2821_s1 + $0x474] ss:$8 sps:$4 sm:$0xff]   ;;  %v2254_v44 = vld [vmem:[%s2821_s1 + $0x470] ss:$8 sps:$4 sm:$0xff]  }
  0x6d   : >> { %651 = vmatpush1.bf16.msra.mxu1 %v2173_v45  ;;  %1225 = vmatpush1.bf16.msra.mxu0 %v2176_v46  ;;  %v1934_v45 = vld [vmem:[%s2444_s23 + $0x22] sm:$0xff]  ;;  %s1551_s23 = scalar_lea.vmem %s2334_s22, %s1974_s7 }
  0x6e   : >> { %652 = vmatprep.subr.bf16.mxu1 %v2181_v47  ;;  %1226 = vmatprep.subr.bf16.mxu0 %v2184_v48  ;;  %v1398_v46 = vpack.c.bf16 %v1934_v45, %v1934_v45 }
  0x71   : >> { %653 = vmatpush1.bf16.msra.mxu1 %v2179_v49  ;;  %1227 = vmatpush1.bf16.msra.mxu0 %v2182_v50 }
  0x72   : >> { %783 = vmatprep.subr.bf16.mxu1 %v2187_v51  ;;  %1354 = vmatprep.subr.bf16.mxu0 %v2190_v54 }
  0x74   : >> { %671 = vmatmul.mubr.bf16.vlgmr.msra.gmra.mrb[0].mxu1 %v540_v57  ;;  %1245 = vmatmul.mubr.bf16.vlgmr.msra.gmra.mrb[0].mxu0 %v1114_v58 }
  0x75   : >> { %784 = vmatpush1.bf16.msra.mxu1 %v2185_v55  ;;  %1355 = vmatpush1.bf16.msra.mxu0 %v2188_v56 }
  0x76   : >> { %785 = vmatprep.subr.bf16.mxu1 %v2193_v59  ;;  %1356 = vmatprep.subr.bf16.mxu0 %v2196_v60 }
  0x77   : >> { %815 = vmatprep.mubr.bf16.mxu1 %v2289_v9  ;;  %1386 = vmatprep.mubr.bf16.mxu0 %v2289_v9 }
  0x79   : >> { %786 = vmatpush1.bf16.msra.mxu1 %v2191_v61  ;;  %1357 = vmatpush1.bf16.msra.mxu0 %v2194_v62 }
  0x7a   : >> { %787 = vmatprep.subr.bf16.mxu1 %v2199_v63  ;;  %1358 = vmatprep.subr.bf16.mxu0 %v2202_v0 }
  0x7d   : >> { %788 = vmatpush1.bf16.msra.mxu1 %v2197_v1  ;;  %1359 = vmatpush1.bf16.msra.mxu0 %v2200_v2 }
  0x7e   : >> { %789 = vmatprep.subr.bf16.mxu1 %v2205_v3  ;;  %1360 = vmatprep.subr.bf16.mxu0 %v2208_v4 }
  0x81   : >> { %790 = vmatpush1.bf16.msra.mxu1 %v2203_v7  ;;  %1361 = vmatpush1.bf16.msra.mxu0 %v2206_v8 }
  0x82   : >> { %791 = vmatprep.subr.bf16.mxu1 %v2211_v10  ;;  %1362 = vmatprep.subr.bf16.mxu0 %v2214_v11 }
  0x85   : >> { %792 = vmatpush1.bf16.msra.mxu1 %v2209_v12  ;;  %1363 = vmatpush1.bf16.msra.mxu0 %v2212_v13 }
  0x86   : >> { %793 = vmatprep.subr.bf16.mxu1 %v2217_v14  ;;  %1364 = vmatprep.subr.bf16.mxu0 %v2220_v15 }
  0x89   : >> { %794 = vmatpush1.bf16.msra.mxu1 %v2215_v16  ;;  %1365 = vmatpush1.bf16.msra.mxu0 %v2218_v17 }
  0x8a   : >> { %795 = vmatprep.subr.bf16.mxu1 %v2223_v18  ;;  %1366 = vmatprep.subr.bf16.mxu0 %v2226_v19 }
  0x8d   : >> { %796 = vmatpush1.bf16.msra.mxu1 %v2221_v20  ;;  %1367 = vmatpush1.bf16.msra.mxu0 %v2224_v21 }
  0x8e   : >> { %797 = vmatprep.subr.bf16.mxu1 %v2229_v22  ;;  %1368 = vmatprep.subr.bf16.mxu0 %v2232_v23 }
  0x91   : >> { %798 = vmatpush1.bf16.msra.mxu1 %v2227_v24  ;;  %1369 = vmatpush1.bf16.msra.mxu0 %v2230_v25 }
  0x92   : >> { %1496 = vmatprep.subr.bf16.mxu0 %v2235_v28 }
  0x94   : >> { %816 = vmatmul.mubr.bf16.vlgmr.msra.gmra.mrb[0].mxu1 %v685_v29  ;;  %1387 = vmatmul.mubr.bf16.vlgmr.msra.gmra.mrb[0].mxu0 %v1256_v30 }
  0x95   : >> { %1497 = vmatpush1.bf16.msra.mxu0 %v2233_v31  ;;  %1528 = vmatprep.mubr.bf16.mxu0 %v2289_v9  ;;  %v2242_v9 = vld [vmem:[%s2821_s1 + $0x430] ss:$8 sps:$4 sm:$0xff]  }
  0x96   : >> { %1498 = vmatprep.subr.bf16.mxu0 %v2238_v32 }
  0x99   : >> { %1499 = vmatpush1.bf16.msra.mxu0 %v2236_v33 }
  0x9a   : >> { %1500 = vmatprep.subr.bf16.mxu0 %v2241_v34 }
  0x9d   : >> { %1501 = vmatpush1.bf16.msra.mxu0 %v2239_v35 }
  0x9e   : >> { %1502 = vmatprep.subr.bf16.mxu0 %v2244_v36 }
  0xa1   : >> { %1503 = vmatpush1.bf16.msra.mxu0 %v2242_v9 }
  0xa2   : >> { %1504 = vmatprep.subr.bf16.mxu0 %v2247_v37 }
  0xa5   : >> { %1505 = vmatpush1.bf16.msra.mxu0 %v2245_v38 }
  0xa6   : >> { %1506 = vmatprep.subr.bf16.mxu0 %v2250_v39 }
  0xa9   : >> { %1507 = vmatpush1.bf16.msra.mxu0 %v2248_v40 }
  0xaa   : >> { %1508 = vmatprep.subr.bf16.mxu0 %v2253_v41 }
  0xad   : >> { %1509 = vmatpush1.bf16.msra.mxu0 %v2251_v42 }
  0xae   : >> { %1510 = vmatprep.subr.bf16.mxu0 %v2256_v43 }
  0xb1   : >> { %1511 = vmatpush1.bf16.msra.mxu0 %v2254_v44 }
  0xb4   : >> { %1529 = vmatmul.mubr.bf16.vlgmr.msra.gmra.mrb[0].mxu0 %v1398_v46 }
 0x167   : >> { %v817_v47 = vpop.f32.mrb[0].mxu1 }
 0x168   : >> { %v819_v48 = vpop.f32.mrb[1].mxu1  ;;  %v1975_v51 = vadd.f32 %v817_v47, %v2341_v5 }
 0x169   : >> { %v821_v49 = vpop.f32.mrb[2].mxu1  ;;  %v1977_v52 = vadd.f32 %v819_v48, %v2343_v6 }
 0x16a   : >> { %v822_v50 = vpop.f32.mrb[3].mxu1 }
 0x187   : >> { %v1530_v53 = vpop.f32.mrb[0].mxu0 }
 0x188   : >> { %v1976_v54 = vadd.f32 %v1975_v51, %v1530_v53  ;;  %v1532_v55 = vpop.f32.mrb[1].mxu0 }
 0x189   : >> { %v1978_v56 = vadd.f32 %v1977_v52, %v1532_v55  ;;  %v1534_v57 = vpop.f32.mrb[2].mxu0  ;;  %252 = sbr.rel (!%p250_p5) target bundleno = 18 (0x12), region = 87 }
 0x18a   : >> { %v1539_v58 = vmax.f32 %v1976_v54, 0.0  ;;  %v1535_v59 = vpop.f32.mrb[3].mxu0 }
 0x18b   : >> { %v1540_v60 = vmax.f32 %v1978_v56, 0.0 }
 0x18d   : >> { %v1973_v61 = vpack.c.bf16 %v1540_v60, %v1539_v58 }
 0x18f   : >> { %1552 = vst [vmem:[%s1551_s23] sm:$0xff] %v1973_v61 }
 0x190 PF: > { %s13_s14 = sadd.s32 1, %s2283_s14   ;;  %s2824_s12 = smov %s2279_s13 }
 0x191   : > { %p10_p6 = scmp.ge.s32.totalorder %s13_s14, 4   ;;  %s2825_s13 = smov %s2827_s15 }
 0x193   :  { %12 = sbr.rel (!%p10_p6) target bundleno = 2 (0x2), region = 98 }

// kernel: fcn_forward.14
= control target key start
LH: loop header
LB: loop body
LE: loop exit
PB: predicated region body
PF: predicated region fallthrough
CT: control target
= control target key end

     0   :  { %s444_s1 = inlined_call_operand.vmem [shape: bf16[256,128], index: 1, kind: input, shape index: {}]   ;;  %s445_s0 = inlined_call_operand.vmem [shape: bf16[32,256], index: 0, kind: input, shape index: {}]   ;;  %s446_s2 = inlined_call_operand.vmem [shape: f32[1,128], index: 2, kind: input, shape index: {}]   ;;  %s447_s3 = inlined_call_operand.vmem [shape: f32[32,128], index: 3, kind: output, shape index: {}]  }
   0x1   :  { %v327_v0 = vld [vmem:[%s444_s1 + $0x40] sm:$0xff]   ;;  %v329_v2 = vld [vmem:[%s444_s1 + $0x48] sm:$0xff]   ;;  %v331_v4 = vld [vmem:[%s444_s1 + $0x50] sm:$0xff]  }
   0x2   :  { %v328_v1 = vld [vmem:[%s444_s1] sm:$0xff]   ;;  %283 = vmatprep.subr.bf16.mxu0 %v327_v0  ;;  %311 = vmatprep.subr.bf16.mxu1 %v327_v0  ;;  %v330_v3 = vld [vmem:[%s444_s1 + $0x8] sm:$0xff]   ;;  %v332_v5 = vld [vmem:[%s444_s1 + $0x10] sm:$0xff]  }
   0x3   :  { %284 = vmatpush3.bf16.msra.mxu0 %v328_v1  ;;  %319 = vmatpush3.bf16.msra.mxu1 %v328_v1  ;;  %v333_v6 = vld [vmem:[%s444_s1 + $0x58] sm:$0xff]   ;;  %v335_v8 = vld [vmem:[%s444_s1 + $0x60] sm:$0xff]   ;;  %v337_v10 = vld [vmem:[%s444_s1 + $0x68] sm:$0xff]  }
   0x4   :  { %285 = vmatprep.subr.bf16.mxu0 %v329_v2  ;;  %312 = vmatprep.subr.bf16.mxu1 %v329_v2  ;;  %v334_v7 = vld [vmem:[%s444_s1 + $0x18] sm:$0xff]   ;;  %v336_v9 = vld [vmem:[%s444_s1 + $0x20] sm:$0xff]   ;;  %v338_v13 = vld [vmem:[%s444_s1 + $0x28] sm:$0xff]  }
   0x5   :  { %v345_v11 = vld [vmem:[%s445_s0 + $0x4] ss:$8 sps:$4 sm:$0xff]   ;;  %v348_v12 = vld [vmem:[%s445_s0 + $0x14] ss:$8 sps:$4 sm:$0xff]   ;;  %v343_v18 = vld [vmem:[%s445_s0] ss:$8 sps:$4 sm:$0xff]  }
   0x6   :  { %v339_v14 = vld [vmem:[%s444_s1 + $0x70] sm:$0xff]   ;;  %211 = vmatprep.mubr.bf16.mxu0 %v345_v11  ;;  %219 = vmatprep.mubr.bf16.mxu1 %v348_v12  ;;  %v341_v16 = vld [vmem:[%s444_s1 + $0x78] sm:$0xff]   ;;  %v282_v23 = vld [vmem:[%s446_s2] ss:$0 sm:$0xff] }
   0x7   :  { %286 = vmatpush3.bf16.msra.mxu0 %v330_v3  ;;  %320 = vmatpush3.bf16.msra.mxu1 %v330_v3  ;;  %v340_v15 = vld [vmem:[%s444_s1 + $0x30] sm:$0xff]   ;;  %v342_v17 = vld [vmem:[%s444_s1 + $0x38] sm:$0xff]  }
   0x8   :  { %287 = vmatprep.subr.bf16.mxu0 %v331_v4  ;;  %313 = vmatprep.subr.bf16.mxu1 %v331_v4  ;;  %v346_v19 = vld [vmem:[%s445_s0 + $0x10] ss:$8 sps:$4 sm:$0xff]  }
   0xb   :  { %288 = vmatpush3.bf16.msra.mxu0 %v332_v5  ;;  %321 = vmatpush3.bf16.msra.mxu1 %v332_v5 }
   0xc   :  { %289 = vmatprep.subr.bf16.mxu0 %v333_v6  ;;  %314 = vmatprep.subr.bf16.mxu1 %v333_v6 }
   0xf   :  { %290 = vmatpush3.bf16.msra.mxu0 %v334_v7  ;;  %322 = vmatpush3.bf16.msra.mxu1 %v334_v7 }
  0x10   :  { %291 = vmatprep.subr.bf16.mxu0 %v335_v8  ;;  %315 = vmatprep.subr.bf16.mxu1 %v335_v8 }
  0x13   :  { %292 = vmatpush3.bf16.msra.mxu0 %v336_v9  ;;  %323 = vmatpush3.bf16.msra.mxu1 %v336_v9 }
  0x14   :  { %293 = vmatprep.subr.bf16.mxu0 %v337_v10  ;;  %316 = vmatprep.subr.bf16.mxu1 %v337_v10 }
  0x17   :  { %294 = vmatpush3.bf16.msra.mxu0 %v338_v13  ;;  %324 = vmatpush3.bf16.msra.mxu1 %v338_v13 }
  0x18   :  { %295 = vmatprep.subr.bf16.mxu0 %v339_v14  ;;  %317 = vmatprep.subr.bf16.mxu1 %v339_v14 }
  0x1b   :  { %296 = vmatpush3.bf16.msra.mxu0 %v340_v15  ;;  %325 = vmatpush3.bf16.msra.mxu1 %v340_v15 }
  0x1c   :  { %297 = vmatprep.subr.bf16.mxu0 %v341_v16  ;;  %318 = vmatprep.subr.bf16.mxu1 %v341_v16 }
  0x1f   :  { %298 = vmatpush3.bf16.msra.mxu0 %v342_v17  ;;  %326 = vmatpush3.bf16.msra.mxu1 %v342_v17 }
  0x22   :  { %212 = vmatmul.mubr.bf16.vlgmr.msra.gmra.mrb[0].mxu0 %v343_v18  ;;  %220 = vmatmul.mubr.bf16.vlgmr.msra.gmra.mrb[0].mxu1 %v346_v19 }
  0xf5   :  { %v299_v20 = vpop.f32.mrb[0].mxu0  ;;  %v305_v21 = vpop.f32.mrb[0].mxu1 }
  0xf6   :  { %v300_v22 = vpop.f32.mrb[1].mxu0  ;;  %v306_v24 = vpop.f32.mrb[1].mxu1 }
  0xf7   :  { %v301_v25 = vadd.f32 %v300_v22, %v299_v20  ;;  %v307_v26 = vadd.f32 %v306_v24, %v305_v21  ;;  %v302_v27 = vpop.f32.mrb[2].mxu0  ;;  %v308_v28 = vpop.f32.mrb[2].mxu1 }
  0xf8   :  { %v303_v29 = vpop.f32.mrb[3].mxu0  ;;  %v309_v30 = vpop.f32.mrb[3].mxu1 }
  0xf9   :  { %v250_v31 = vadd.f32 %v301_v25, %v282_v23  ;;  %v252_v32 = vadd.f32 %v307_v26, %v282_v23  ;;  %v304_v33 = vadd.f32 %v303_v29, %v302_v27  ;;  %v310_v34 = vadd.f32 %v309_v30, %v308_v28 }
  0xfb   :  { %254 = vst [vmem:[%s447_s3] sm:$0xff] %v250_v31  ;;  %256 = vst [vmem:[%s447_s3 + $0x10] sm:$0xff] %v252_v32  ;;  %v251_v35 = vadd.f32 %v304_v33, %v282_v23  ;;  %v253_v36 = vadd.f32 %v310_v34, %v282_v23 }
  0xfd   :  { %255 = vst [vmem:[%s447_s3 + $0x8] sm:$0xff] %v251_v35  ;;  %257 = vst [vmem:[%s447_s3 + $0x18] sm:$0xff] %v253_v36 }

// kernel: fcn_forward.15
= control target key start
LH: loop header
LB: loop body
LE: loop exit
PB: predicated region body
PF: predicated region fallthrough
CT: control target
= control target key end

     0   :  { %s665_s1 = inlined_call_operand.vmem [shape: bf16[512,128], index: 1, kind: input, shape index: {}]   ;;  %s666_s0 = inlined_call_operand.vmem [shape: bf16[16,512], index: 0, kind: input, shape index: {}]   ;;  %s667_s2 = inlined_call_operand.vmem [shape: f32[1,128], index: 2, kind: input, shape index: {}]   ;;  %s668_s3 = inlined_call_operand.vmem [shape: f32[16,128], index: 3, kind: output, shape index: {}]  }
   0x1   :  { %v490_v0 = vld [vmem:[%s665_s1 + $0x40] sm:$0xff]   ;;  %v494_v4 = vld [vmem:[%s665_s1 + $0x48] sm:$0xff]   ;;  %v498_v8 = vld [vmem:[%s665_s1 + $0x50] sm:$0xff]  }
   0x2   :  { %v491_v1 = vld [vmem:[%s665_s1 + $0xc0] sm:$0xff]   ;;  %446 = vmatprep.subr.bf16.mxu0 %v490_v0  ;;  %v495_v5 = vld [vmem:[%s665_s1 + $0xc8] sm:$0xff]   ;;  %v499_v9 = vld [vmem:[%s665_s1 + $0xd0] sm:$0xff]  }
   0x3   :  { %v492_v2 = vld [vmem:[%s665_s1] sm:$0xff]   ;;  %468 = vmatprep.subr.bf16.mxu1 %v491_v1  ;;  %v496_v6 = vld [vmem:[%s665_s1 + $0x8] sm:$0xff]   ;;  %v500_v10 = vld [vmem:[%s665_s1 + $0x10] sm:$0xff]  }
   0x4   :  { %v493_v3 = vld [vmem:[%s665_s1 + $0x80] sm:$0xff]   ;;  %447 = vmatpush3.bf16.msra.mxu0 %v492_v2  ;;  %v497_v7 = vld [vmem:[%s665_s1 + $0x88] sm:$0xff]   ;;  %v501_v11 = vld [vmem:[%s665_s1 + $0x90] sm:$0xff]  }
   0x5   :  { %469 = vmatpush3.bf16.msra.mxu1 %v493_v3  ;;  %448 = vmatprep.subr.bf16.mxu0 %v494_v4  ;;  %v502_v12 = vld [vmem:[%s665_s1 + $0x58] sm:$0xff]   ;;  %v506_v16 = vld [vmem:[%s665_s1 + $0x60] sm:$0xff]   ;;  %v510_v20 = vld [vmem:[%s665_s1 + $0x68] sm:$0xff]  }
   0x6   :  { %470 = vmatprep.subr.bf16.mxu1 %v495_v5  ;;  %v503_v13 = vld [vmem:[%s665_s1 + $0xd8] sm:$0xff]   ;;  %v507_v17 = vld [vmem:[%s665_s1 + $0xe0] sm:$0xff]   ;;  %v511_v21 = vld [vmem:[%s665_s1 + $0xe8] sm:$0xff]  }
   0x7   :  { %v504_v14 = vld [vmem:[%s665_s1 + $0x18] sm:$0xff]   ;;  %v508_v18 = vld [vmem:[%s665_s1 + $0x20] sm:$0xff]   ;;  %v512_v22 = vld [vmem:[%s665_s1 + $0x28] sm:$0xff]  }
   0x8   :  { %449 = vmatpush3.bf16.msra.mxu0 %v496_v6  ;;  %v505_v15 = vld [vmem:[%s665_s1 + $0x98] sm:$0xff]   ;;  %v509_v19 = vld [vmem:[%s665_s1 + $0xa0] sm:$0xff]   ;;  %v513_v23 = vld [vmem:[%s665_s1 + $0xa8] sm:$0xff]  }
   0x9   :  { %471 = vmatpush3.bf16.msra.mxu1 %v497_v7  ;;  %450 = vmatprep.subr.bf16.mxu0 %v498_v8  ;;  %v514_v24 = vld [vmem:[%s665_s1 + $0x70] sm:$0xff]   ;;  %v518_v28 = vld [vmem:[%s665_s1 + $0x78] sm:$0xff]   ;;  %v445_v45 = vld [vmem:[%s667_s2] ss:$0 sm:$0xff] }
   0xa   :  { %472 = vmatprep.subr.bf16.mxu1 %v499_v9  ;;  %v515_v25 = vld [vmem:[%s665_s1 + $0xf0] sm:$0xff]   ;;  %v519_v29 = vld [vmem:[%s665_s1 + $0xf8] sm:$0xff]  }
   0xb   :  { %v516_v26 = vld [vmem:[%s665_s1 + $0x30] sm:$0xff]   ;;  %v520_v30 = vld [vmem:[%s665_s1 + $0x38] sm:$0xff]  }
   0xc   :  { %451 = vmatpush3.bf16.msra.mxu0 %v500_v10  ;;  %v517_v27 = vld [vmem:[%s665_s1 + $0xb0] sm:$0xff]   ;;  %v521_v31 = vld [vmem:[%s665_s1 + $0xb8] sm:$0xff]  }
   0xd   :  { %473 = vmatpush3.bf16.msra.mxu1 %v501_v11  ;;  %452 = vmatprep.subr.bf16.mxu0 %v502_v12  ;;  %v522_v32 = vld [vmem:[%s666_s0] ss:$16 sps:$4 sm:$0xff]   ;;  %v524_v33 = vld [vmem:[%s666_s0 + $0x4] ss:$16 sps:$4 sm:$0xff]   ;;  %v525_v34 = vld [vmem:[%s666_s0 + $0x8] ss:$16 sps:$4 sm:$0xff]  }
   0xe   :  { %474 = vmatprep.subr.bf16.mxu1 %v503_v13  ;;  %v527_v35 = vld [vmem:[%s666_s0 + $0xc] ss:$16 sps:$4 sm:$0xff]   ;;  %335 = vmatprep.mubr.bf16.mxu0 %v524_v33 }
   0xf   :  { %376 = vmatprep.mubr.bf16.mxu1 %v527_v35 }
  0x10   :  { %453 = vmatpush3.bf16.msra.mxu0 %v504_v14 }
  0x11   :  { %475 = vmatpush3.bf16.msra.mxu1 %v505_v15  ;;  %454 = vmatprep.subr.bf16.mxu0 %v506_v16 }
  0x12   :  { %476 = vmatprep.subr.bf16.mxu1 %v507_v17 }
  0x14   :  { %455 = vmatpush3.bf16.msra.mxu0 %v508_v18 }
  0x15   :  { %477 = vmatpush3.bf16.msra.mxu1 %v509_v19  ;;  %456 = vmatprep.subr.bf16.mxu0 %v510_v20 }
  0x16   :  { %478 = vmatprep.subr.bf16.mxu1 %v511_v21 }
  0x18   :  { %457 = vmatpush3.bf16.msra.mxu0 %v512_v22 }
  0x19   :  { %479 = vmatpush3.bf16.msra.mxu1 %v513_v23  ;;  %458 = vmatprep.subr.bf16.mxu0 %v514_v24 }
  0x1a   :  { %480 = vmatprep.subr.bf16.mxu1 %v515_v25 }
  0x1c   :  { %459 = vmatpush3.bf16.msra.mxu0 %v516_v26 }
  0x1d   :  { %481 = vmatpush3.bf16.msra.mxu1 %v517_v27  ;;  %460 = vmatprep.subr.bf16.mxu0 %v518_v28 }
  0x1e   :  { %482 = vmatprep.subr.bf16.mxu1 %v519_v29 }
  0x20   :  { %461 = vmatpush3.bf16.msra.mxu0 %v520_v30 }
  0x21   :  { %483 = vmatpush3.bf16.msra.mxu1 %v521_v31 }
  0x23   :  { %336 = vmatmul.mubr.bf16.vlgmr.msra.gmra.mrb[0].mxu0 %v522_v32 }
  0x24   :  { %377 = vmatmul.mubr.bf16.vlgmr.msra.gmra.mrb[0].mxu1 %v525_v34 }
  0xf6   :  { %v462_v36 = vpop.f32.mrb[0].mxu0 }
  0xf7   :  { %v484_v37 = vpop.f32.mrb[0].mxu1  ;;  %v463_v38 = vpop.f32.mrb[1].mxu0 }
  0xf8   :  { %v464_v39 = vadd.f32 %v463_v38, %v462_v36  ;;  %v485_v40 = vpop.f32.mrb[1].mxu1  ;;  %v465_v41 = vpop.f32.mrb[2].mxu0 }
  0xf9   :  { %v486_v42 = vadd.f32 %v485_v40, %v484_v37  ;;  %v487_v43 = vpop.f32.mrb[2].mxu1  ;;  %v466_v44 = vpop.f32.mrb[3].mxu0 }
  0xfa   :  { %v467_v46 = vadd.f32 %v466_v44, %v465_v41  ;;  %v488_v47 = vpop.f32.mrb[3].mxu1 }
  0xfb   :  { %v379_v48 = vadd.f32 %v486_v42, %v464_v39  ;;  %v489_v49 = vadd.f32 %v488_v47, %v487_v43 }
  0xfd   :  { %v401_v50 = vadd.f32 %v445_v45, %v379_v48  ;;  %v382_v51 = vadd.f32 %v489_v49, %v467_v46 }
  0xff   :  { %403 = vst [vmem:[%s668_s3] sm:$0xff] %v401_v50  ;;  %v402_v52 = vadd.f32 %v445_v45, %v382_v51 }
 0x101   :  { %404 = vst [vmem:[%s668_s3 + $0x8] sm:$0xff] %v402_v52 }

// kernel: fcn_forward.11
= control target key start
LH: loop header
LB: loop body
LE: loop exit
PB: predicated region body
PF: predicated region fallthrough
CT: control target
= control target key end

     0   :  { %s5074_s12 = smov 0   ;;  %s5076_s13 = smov 0   ;;  %s6121_s0 = inlined_call_operand.vmem [shape: f32[2,6,6,256], index: 0, kind: input, shape index: {}]   ;;  %s6122_s1 = inlined_call_operand.vmem [shape: bf16[3,3,256,512], index: 1, kind: input, shape index: {}]   ;;  %s6123_s2 = inlined_call_operand.vmem [shape: f32[1,512], index: 2, kind: input, shape index: {}]   ;;  %s6124_s3 = inlined_call_operand.vmem [shape: bf16[2,4,4,512], index: 3, kind: output, shape index: {}]  }
   0x1   :  { %s5078_s14 = smov 0   ;;  %s5080_s15 = smov 0  }
   0x2   :  { %s5082_s16 = smov 0   ;;  %s5084_s17 = smov 0  }
   0x3   :  { %s5086_s18 = smov 0   ;;  %s5088_s19 = smov 0  }
   0x4   :  { %s5090_s20 = smov 0  }
   0x5 LB: > { %s3845_s21 = sadd.s32 4294967295, %s5048_s20   ;;  %s22_s22 = sadd.s32 1, %s5040_s18  ;;  %s5048_s20 = sphi %s5090_s20, %s13_s20   ;;  %s5044_s19 = sphi %s5088_s19, %s6133_s19   ;;  %s5040_s18 = sphi %s5086_s18, %s6132_s18   ;;  %s5036_s17 = sphi %s5084_s17, %s6131_s17   ;;  %s5032_s16 = sphi %s5082_s16, %s6130_s16   ;;  %s5028_s15 = sphi %s5080_s15, %s6129_s15   ;;  %s5024_s14 = sphi %s5078_s14, %s6128_s14   ;;  %s5020_s13 = sphi %s5076_s13, %s6127_s13   ;;  %s5016_s12 = sphi %s5074_s12, %s6126_s12  }
   0x6   : > { %p23_p0 = scmp.ge.s32.totalorder %s22_s22, 2  ;;  %s25_s23 = sadd.s32 1, %s5044_s19 }
   0x7   : > { %s58_s24 = sadd.s32 1, %s5028_s15  ;;  %p65_p1 = scmp.ne.s32.totalorder %s5028_s15, %s5024_s14 }
   0x8   : > { %s6135_s22 = smov (%p23_p0, %s22_s22), 0  ;;  %s6137_s23 = smov (!%p23_p0, %s25_s23), %s5044_s19 }
   0x9   : > { %s55_s25 = ssub.s32 %s5040_s18, %s6135_s22  ;;  %p66_p2 = scmp.eq.s32.totalorder %s5048_s20, 0 }
   0xa   : > { %p27_p3 = scmp.ge.s32.totalorder %s6137_s23, 2  ;;  %p56_p4 = scmp.eq.s32.totalorder %s55_s25, 0 }
   0xb   : > { %p67_p5 = por %p66_p2, %p65_p1  ;;  %s112_s26 = sadd.s32 1, %s5020_s13 }
   0xc   : > { %s6139_s23 = smov (%p27_p3, %s6137_s23), 0  ;;  %p122_p6 = scmp.ne.s32.totalorder %s5020_s13, %s5016_s12 }
   0xd   : > { %s5135_s27 = scalar_select %p56_p4, %s5028_s15, %s58_s24  }
   0xe   : > { %s107_s28 = ssub.s32 %s5044_s19, %s6139_s23  ;;  %p123_p7 = scmp.eq.s32.totalorder %s3845_s21, 3 }
   0xf   : > { %s109_s29 = sor.u32 %s107_s28, %s55_s25  ;;  %p3848_p10 = scmp.ge.s32.totalorder %s5048_s20, 4 }
  0x10   : > { %p110_p8 = scmp.eq.s32.totalorder %s109_s29, 0  ;;  %p5141_p9 = por %p123_p7, %p122_p6 }
  0x11   : > { %145 = sbr.rel (%p3848_p10) target bundleno = 172 (0xac), region = 16 }
  0x12   : > { %s5146_s4 = scalar_select %p110_p8, %s5020_s13, %s112_s26  }
  0x18   : > { %156 = sbr.rel (!%p67_p5) target bundleno = 172 (0xac), region = 24  ;;  %s158_s5 = sand.u32 (%p67_p5), 1, %s5028_s15  }
  0x19   : > { %s4424_s6 = sshll.u32 (%p67_p5), %s5040_s18, 3  ;;  %s4459_s7 = smul.u32 (%p67_p5), 2304, %s158_s5 }
  0x1a   : > { %s5154_s10 = scalar_lea.vmem (%p67_p5), %s6122_s1, %s4424_s6 }
  0x1b   : > { %v765_v0 = vld [vmem:[%s5154_s10] sm:$0xff] (%p67_p5)  ;;  %v767_v1 = vld [vmem:[%s5154_s10 + $0x10] sm:$0xff] (%p67_p5)  ;;  %s5162_s11 = scalar_lea.vmem (%p67_p5), [#allocation2], %s4459_s7 }
  0x1c   : > { %v769_v2 = vld [vmem:[%s5154_s10 + $0x20] sm:$0xff] (%p67_p5)  ;;  %v771_v3 = vld [vmem:[%s5154_s10 + $0x30] sm:$0xff] (%p67_p5)  ;;  %766 = vst [vmem:[%s5162_s11] sm:$0xff] (%p67_p5), %v765_v0  ;;  %768 = vst [vmem:[%s5162_s11 + $0x8] sm:$0xff] (%p67_p5), %v767_v1 }
  0x1d   : > { %v773_v4 = vld [vmem:[%s5154_s10 + $0x40] sm:$0xff] (%p67_p5)  ;;  %v775_v5 = vld [vmem:[%s5154_s10 + $0x50] sm:$0xff] (%p67_p5)  ;;  %770 = vst [vmem:[%s5162_s11 + $0x10] sm:$0xff] (%p67_p5), %v769_v2  ;;  %772 = vst [vmem:[%s5162_s11 + $0x18] sm:$0xff] (%p67_p5), %v771_v3 }
  0x1e   : > { %774 = vst [vmem:[%s5162_s11 + $0x20] sm:$0xff] (%p67_p5), %v773_v4  ;;  %776 = vst [vmem:[%s5162_s11 + $0x28] sm:$0xff] (%p67_p5), %v775_v5  ;;  %v777_v6 = vld [vmem:[%s5154_s10 + $0x60] sm:$0xff] (%p67_p5)  ;;  %v779_v7 = vld [vmem:[%s5154_s10 + $0x70] sm:$0xff] (%p67_p5) }
  0x1f   : > { %v781_v8 = vld [vmem:[%s5154_s10 + $0x80] sm:$0xff]  ;;  %778 = vst [vmem:[%s5162_s11 + $0x30] sm:$0xff] %v777_v6  ;;  %780 = vst [vmem:[%s5162_s11 + $0x38] sm:$0xff] %v779_v7  ;;  %v783_v9 = vld [vmem:[%s5154_s10 + $0x90] sm:$0xff] }
  0x20   : > { %782 = vst [vmem:[%s5162_s11 + $0x40] sm:$0xff] %v781_v8  ;;  %v785_v10 = vld [vmem:[%s5154_s10 + $0xa0] sm:$0xff]  ;;  %v787_v11 = vld [vmem:[%s5154_s10 + $0xb0] sm:$0xff]  ;;  %784 = vst [vmem:[%s5162_s11 + $0x48] sm:$0xff] %v783_v9 }
  0x21   : > { %786 = vst [vmem:[%s5162_s11 + $0x50] sm:$0xff] %v785_v10  ;;  %788 = vst [vmem:[%s5162_s11 + $0x58] sm:$0xff] %v787_v11  ;;  %v789_v12 = vld [vmem:[%s5154_s10 + $0xc0] sm:$0xff]  ;;  %v791_v13 = vld [vmem:[%s5154_s10 + $0xd0] sm:$0xff] }
  0x22   : > { %v793_v14 = vld [vmem:[%s5154_s10 + $0xe0] sm:$0xff]  ;;  %790 = vst [vmem:[%s5162_s11 + $0x60] sm:$0xff] %v789_v12  ;;  %792 = vst [vmem:[%s5162_s11 + $0x68] sm:$0xff] %v791_v13  ;;  %v795_v15 = vld [vmem:[%s5154_s10 + $0xf0] sm:$0xff] }
  0x23   : > { %794 = vst [vmem:[%s5162_s11 + $0x70] sm:$0xff] %v793_v14  ;;  %v797_v16 = vld [vmem:[%s5154_s10 + $0x100] sm:$0xff]  ;;  %v799_v17 = vld [vmem:[%s5154_s10 + $0x110] sm:$0xff]  ;;  %796 = vst [vmem:[%s5162_s11 + $0x78] sm:$0xff] %v795_v15 }
  0x24   : > { %798 = vst [vmem:[%s5162_s11 + $0x80] sm:$0xff] %v797_v16  ;;  %800 = vst [vmem:[%s5162_s11 + $0x88] sm:$0xff] %v799_v17  ;;  %v801_v18 = vld [vmem:[%s5154_s10 + $0x120] sm:$0xff]  ;;  %v803_v19 = vld [vmem:[%s5154_s10 + $0x130] sm:$0xff] }
  0x25   : > { %v805_v20 = vld [vmem:[%s5154_s10 + $0x140] sm:$0xff]  ;;  %802 = vst [vmem:[%s5162_s11 + $0x90] sm:$0xff] %v801_v18  ;;  %804 = vst [vmem:[%s5162_s11 + $0x98] sm:$0xff] %v803_v19  ;;  %v807_v21 = vld [vmem:[%s5154_s10 + $0x150] sm:$0xff] }
  0x26   : > { %806 = vst [vmem:[%s5162_s11 + $0xa0] sm:$0xff] %v805_v20  ;;  %v809_v22 = vld [vmem:[%s5154_s10 + $0x160] sm:$0xff]  ;;  %v811_v23 = vld [vmem:[%s5154_s10 + $0x170] sm:$0xff]  ;;  %808 = vst [vmem:[%s5162_s11 + $0xa8] sm:$0xff] %v807_v21 }
  0x27   : > { %810 = vst [vmem:[%s5162_s11 + $0xb0] sm:$0xff] %v809_v22  ;;  %812 = vst [vmem:[%s5162_s11 + $0xb8] sm:$0xff] %v811_v23  ;;  %v813_v24 = vld [vmem:[%s5154_s10 + $0x180] sm:$0xff]  ;;  %v815_v25 = vld [vmem:[%s5154_s10 + $0x190] sm:$0xff] }
  0x28   : > { %v817_v26 = vld [vmem:[%s5154_s10 + $0x1a0] sm:$0xff]  ;;  %814 = vst [vmem:[%s5162_s11 + $0xc0] sm:$0xff] %v813_v24  ;;  %816 = vst [vmem:[%s5162_s11 + $0xc8] sm:$0xff] %v815_v25  ;;  %v819_v27 = vld [vmem:[%s5154_s10 + $0x1b0] sm:$0xff] }
  0x29   : > { %818 = vst [vmem:[%s5162_s11 + $0xd0] sm:$0xff] %v817_v26  ;;  %v821_v28 = vld [vmem:[%s5154_s10 + $0x1c0] sm:$0xff]  ;;  %v823_v29 = vld [vmem:[%s5154_s10 + $0x1d0] sm:$0xff]  ;;  %820 = vst [vmem:[%s5162_s11 + $0xd8] sm:$0xff] %v819_v27 }
  0x2a   : > { %822 = vst [vmem:[%s5162_s11 + $0xe0] sm:$0xff] %v821_v28  ;;  %824 = vst [vmem:[%s5162_s11 + $0xe8] sm:$0xff] %v823_v29  ;;  %v825_v30 = vld [vmem:[%s5154_s10 + $0x1e0] sm:$0xff]  ;;  %v827_v31 = vld [vmem:[%s5154_s10 + $0x1f0] sm:$0xff] }
  0x2b   : > { %v829_v32 = vld [vmem:[%s5154_s10 + $0x200] sm:$0xff]  ;;  %826 = vst [vmem:[%s5162_s11 + $0xf0] sm:$0xff] %v825_v30  ;;  %828 = vst [vmem:[%s5162_s11 + $0xf8] sm:$0xff] %v827_v31  ;;  %v831_v33 = vld [vmem:[%s5154_s10 + $0x210] sm:$0xff] }
  0x2c   : > { %830 = vst [vmem:[%s5162_s11 + $0x100] sm:$0xff] %v829_v32  ;;  %v833_v34 = vld [vmem:[%s5154_s10 + $0x220] sm:$0xff]  ;;  %v835_v35 = vld [vmem:[%s5154_s10 + $0x230] sm:$0xff]  ;;  %832 = vst [vmem:[%s5162_s11 + $0x108] sm:$0xff] %v831_v33 }
  0x2d   : > { %834 = vst [vmem:[%s5162_s11 + $0x110] sm:$0xff] %v833_v34  ;;  %836 = vst [vmem:[%s5162_s11 + $0x118] sm:$0xff] %v835_v35  ;;  %v837_v36 = vld [vmem:[%s5154_s10 + $0x240] sm:$0xff]  ;;  %v839_v37 = vld [vmem:[%s5154_s10 + $0x250] sm:$0xff] }
  0x2e   : > { %v841_v38 = vld [vmem:[%s5154_s10 + $0x260] sm:$0xff]  ;;  %838 = vst [vmem:[%s5162_s11 + $0x120] sm:$0xff] %v837_v36  ;;  %840 = vst [vmem:[%s5162_s11 + $0x128] sm:$0xff] %v839_v37  ;;  %v843_v39 = vld [vmem:[%s5154_s10 + $0x270] sm:$0xff] }
  0x2f   : > { %842 = vst [vmem:[%s5162_s11 + $0x130] sm:$0xff] %v841_v38  ;;  %v845_v40 = vld [vmem:[%s5154_s10 + $0x280] sm:$0xff]  ;;  %v847_v41 = vld [vmem:[%s5154_s10 + $0x290] sm:$0xff]  ;;  %844 = vst [vmem:[%s5162_s11 + $0x138] sm:$0xff] %v843_v39 }
  0x30   : > { %846 = vst [vmem:[%s5162_s11 + $0x140] sm:$0xff] %v845_v40  ;;  %848 = vst [vmem:[%s5162_s11 + $0x148] sm:$0xff] %v847_v41  ;;  %v849_v42 = vld [vmem:[%s5154_s10 + $0x2a0] sm:$0xff]  ;;  %v851_v43 = vld [vmem:[%s5154_s10 + $0x2b0] sm:$0xff] }
  0x31   : > { %v853_v44 = vld [vmem:[%s5154_s10 + $0x2c0] sm:$0xff]  ;;  %850 = vst [vmem:[%s5162_s11 + $0x150] sm:$0xff] %v849_v42  ;;  %852 = vst [vmem:[%s5162_s11 + $0x158] sm:$0xff] %v851_v43  ;;  %v855_v45 = vld [vmem:[%s5154_s10 + $0x2d0] sm:$0xff] }
  0x32   : > { %854 = vst [vmem:[%s5162_s11 + $0x160] sm:$0xff] %v853_v44  ;;  %v857_v46 = vld [vmem:[%s5154_s10 + $0x2e0] sm:$0xff]  ;;  %v859_v47 = vld [vmem:[%s5154_s10 + $0x2f0] sm:$0xff]  ;;  %856 = vst [vmem:[%s5162_s11 + $0x168] sm:$0xff] %v855_v45 }
  0x33   : > { %858 = vst [vmem:[%s5162_s11 + $0x170] sm:$0xff] %v857_v46  ;;  %860 = vst [vmem:[%s5162_s11 + $0x178] sm:$0xff] %v859_v47  ;;  %v861_v48 = vld [vmem:[%s5154_s10 + $0x300] sm:$0xff]  ;;  %v863_v49 = vld [vmem:[%s5154_s10 + $0x310] sm:$0xff] }
  0x34   : > { %v865_v50 = vld [vmem:[%s5154_s10 + $0x320] sm:$0xff]  ;;  %862 = vst [vmem:[%s5162_s11 + $0x180] sm:$0xff] %v861_v48  ;;  %864 = vst [vmem:[%s5162_s11 + $0x188] sm:$0xff] %v863_v49  ;;  %v867_v51 = vld [vmem:[%s5154_s10 + $0x330] sm:$0xff] }
  0x35   : > { %866 = vst [vmem:[%s5162_s11 + $0x190] sm:$0xff] %v865_v50  ;;  %v869_v52 = vld [vmem:[%s5154_s10 + $0x340] sm:$0xff]  ;;  %v871_v53 = vld [vmem:[%s5154_s10 + $0x350] sm:$0xff]  ;;  %868 = vst [vmem:[%s5162_s11 + $0x198] sm:$0xff] %v867_v51 }
  0x36   : > { %870 = vst [vmem:[%s5162_s11 + $0x1a0] sm:$0xff] %v869_v52  ;;  %872 = vst [vmem:[%s5162_s11 + $0x1a8] sm:$0xff] %v871_v53  ;;  %v873_v54 = vld [vmem:[%s5154_s10 + $0x360] sm:$0xff]  ;;  %v875_v55 = vld [vmem:[%s5154_s10 + $0x370] sm:$0xff] }
  0x37   : > { %v877_v56 = vld [vmem:[%s5154_s10 + $0x380] sm:$0xff]  ;;  %874 = vst [vmem:[%s5162_s11 + $0x1b0] sm:$0xff] %v873_v54  ;;  %876 = vst [vmem:[%s5162_s11 + $0x1b8] sm:$0xff] %v875_v55  ;;  %v879_v57 = vld [vmem:[%s5154_s10 + $0x390] sm:$0xff] }
  0x38   : > { %878 = vst [vmem:[%s5162_s11 + $0x1c0] sm:$0xff] %v877_v56  ;;  %v881_v58 = vld [vmem:[%s5154_s10 + $0x3a0] sm:$0xff]  ;;  %v883_v59 = vld [vmem:[%s5154_s10 + $0x3b0] sm:$0xff]  ;;  %880 = vst [vmem:[%s5162_s11 + $0x1c8] sm:$0xff] %v879_v57 }
  0x39   : > { %882 = vst [vmem:[%s5162_s11 + $0x1d0] sm:$0xff] %v881_v58  ;;  %884 = vst [vmem:[%s5162_s11 + $0x1d8] sm:$0xff] %v883_v59  ;;  %v885_v60 = vld [vmem:[%s5154_s10 + $0x3c0] sm:$0xff]  ;;  %v887_v61 = vld [vmem:[%s5154_s10 + $0x3d0] sm:$0xff] }
  0x3a   : > { %v889_v62 = vld [vmem:[%s5154_s10 + $0x3e0] sm:$0xff]  ;;  %886 = vst [vmem:[%s5162_s11 + $0x1e0] sm:$0xff] %v885_v60  ;;  %888 = vst [vmem:[%s5162_s11 + $0x1e8] sm:$0xff] %v887_v61  ;;  %v891_v63 = vld [vmem:[%s5154_s10 + $0x3f0] sm:$0xff] }
  0x3b   : > { %890 = vst [vmem:[%s5162_s11 + $0x1f0] sm:$0xff] %v889_v62  ;;  %v893_v0 = vld [vmem:[%s5154_s10 + $0x400] sm:$0xff]  ;;  %v895_v1 = vld [vmem:[%s5154_s10 + $0x410] sm:$0xff]  ;;  %892 = vst [vmem:[%s5162_s11 + $0x1f8] sm:$0xff] %v891_v63 }
  0x3c   : > { %894 = vst [vmem:[%s5162_s11 + $0x200] sm:$0xff] %v893_v0  ;;  %896 = vst [vmem:[%s5162_s11 + $0x208] sm:$0xff] %v895_v1  ;;  %v897_v2 = vld [vmem:[%s5154_s10 + $0x420] sm:$0xff]  ;;  %v899_v3 = vld [vmem:[%s5154_s10 + $0x430] sm:$0xff] }
  0x3d   : > { %v901_v4 = vld [vmem:[%s5154_s10 + $0x440] sm:$0xff]  ;;  %898 = vst [vmem:[%s5162_s11 + $0x210] sm:$0xff] %v897_v2  ;;  %900 = vst [vmem:[%s5162_s11 + $0x218] sm:$0xff] %v899_v3  ;;  %v903_v5 = vld [vmem:[%s5154_s10 + $0x450] sm:$0xff] }
  0x3e   : > { %902 = vst [vmem:[%s5162_s11 + $0x220] sm:$0xff] %v901_v4  ;;  %v905_v6 = vld [vmem:[%s5154_s10 + $0x460] sm:$0xff]  ;;  %v907_v7 = vld [vmem:[%s5154_s10 + $0x470] sm:$0xff]  ;;  %904 = vst [vmem:[%s5162_s11 + $0x228] sm:$0xff] %v903_v5 }
  0x3f   : > { %906 = vst [vmem:[%s5162_s11 + $0x230] sm:$0xff] %v905_v6  ;;  %908 = vst [vmem:[%s5162_s11 + $0x238] sm:$0xff] %v907_v7  ;;  %v909_v8 = vld [vmem:[%s5154_s10 + $0x480] sm:$0xff]  ;;  %v911_v9 = vld [vmem:[%s5154_s10 + $0x490] sm:$0xff] }
  0x40   : > { %v913_v10 = vld [vmem:[%s5154_s10 + $0x4a0] sm:$0xff]  ;;  %910 = vst [vmem:[%s5162_s11 + $0x240] sm:$0xff] %v909_v8  ;;  %912 = vst [vmem:[%s5162_s11 + $0x248] sm:$0xff] %v911_v9  ;;  %v915_v11 = vld [vmem:[%s5154_s10 + $0x4b0] sm:$0xff] }
  0x41   : > { %914 = vst [vmem:[%s5162_s11 + $0x250] sm:$0xff] %v913_v10  ;;  %v917_v12 = vld [vmem:[%s5154_s10 + $0x4c0] sm:$0xff]  ;;  %v919_v13 = vld [vmem:[%s5154_s10 + $0x4d0] sm:$0xff]  ;;  %916 = vst [vmem:[%s5162_s11 + $0x258] sm:$0xff] %v915_v11 }
  0x42   : > { %918 = vst [vmem:[%s5162_s11 + $0x260] sm:$0xff] %v917_v12  ;;  %920 = vst [vmem:[%s5162_s11 + $0x268] sm:$0xff] %v919_v13  ;;  %v921_v14 = vld [vmem:[%s5154_s10 + $0x4e0] sm:$0xff]  ;;  %v923_v15 = vld [vmem:[%s5154_s10 + $0x4f0] sm:$0xff] }
  0x43   : > { %v925_v16 = vld [vmem:[%s5154_s10 + $0x500] sm:$0xff]  ;;  %922 = vst [vmem:[%s5162_s11 + $0x270] sm:$0xff] %v921_v14  ;;  %924 = vst [vmem:[%s5162_s11 + $0x278] sm:$0xff] %v923_v15  ;;  %v927_v17 = vld [vmem:[%s5154_s10 + $0x510] sm:$0xff] }
  0x44   : > { %926 = vst [vmem:[%s5162_s11 + $0x280] sm:$0xff] %v925_v16  ;;  %v929_v18 = vld [vmem:[%s5154_s10 + $0x520] sm:$0xff]  ;;  %v931_v19 = vld [vmem:[%s5154_s10 + $0x530] sm:$0xff]  ;;  %928 = vst [vmem:[%s5162_s11 + $0x288] sm:$0xff] %v927_v17 }
  0x45   : > { %930 = vst [vmem:[%s5162_s11 + $0x290] sm:$0xff] %v929_v18  ;;  %932 = vst [vmem:[%s5162_s11 + $0x298] sm:$0xff] %v931_v19  ;;  %v933_v20 = vld [vmem:[%s5154_s10 + $0x540] sm:$0xff]  ;;  %v935_v21 = vld [vmem:[%s5154_s10 + $0x550] sm:$0xff] }
  0x46   : > { %v937_v22 = vld [vmem:[%s5154_s10 + $0x560] sm:$0xff]  ;;  %934 = vst [vmem:[%s5162_s11 + $0x2a0] sm:$0xff] %v933_v20  ;;  %936 = vst [vmem:[%s5162_s11 + $0x2a8] sm:$0xff] %v935_v21  ;;  %v939_v23 = vld [vmem:[%s5154_s10 + $0x570] sm:$0xff] }
  0x47   : > { %938 = vst [vmem:[%s5162_s11 + $0x2b0] sm:$0xff] %v937_v22  ;;  %v941_v24 = vld [vmem:[%s5154_s10 + $0x580] sm:$0xff]  ;;  %v943_v25 = vld [vmem:[%s5154_s10 + $0x590] sm:$0xff]  ;;  %940 = vst [vmem:[%s5162_s11 + $0x2b8] sm:$0xff] %v939_v23 }
  0x48   : > { %942 = vst [vmem:[%s5162_s11 + $0x2c0] sm:$0xff] %v941_v24  ;;  %944 = vst [vmem:[%s5162_s11 + $0x2c8] sm:$0xff] %v943_v25  ;;  %v945_v26 = vld [vmem:[%s5154_s10 + $0x5a0] sm:$0xff]  ;;  %v947_v27 = vld [vmem:[%s5154_s10 + $0x5b0] sm:$0xff] }
  0x49   : > { %v949_v28 = vld [vmem:[%s5154_s10 + $0x5c0] sm:$0xff]  ;;  %946 = vst [vmem:[%s5162_s11 + $0x2d0] sm:$0xff] %v945_v26  ;;  %948 = vst [vmem:[%s5162_s11 + $0x2d8] sm:$0xff] %v947_v27  ;;  %v951_v29 = vld [vmem:[%s5154_s10 + $0x5d0] sm:$0xff] }
  0x4a   : > { %950 = vst [vmem:[%s5162_s11 + $0x2e0] sm:$0xff] %v949_v28  ;;  %v953_v30 = vld [vmem:[%s5154_s10 + $0x5e0] sm:$0xff]  ;;  %v955_v31 = vld [vmem:[%s5154_s10 + $0x5f0] sm:$0xff]  ;;  %952 = vst [vmem:[%s5162_s11 + $0x2e8] sm:$0xff] %v951_v29 }
  0x4b   : > { %954 = vst [vmem:[%s5162_s11 + $0x2f0] sm:$0xff] %v953_v30  ;;  %956 = vst [vmem:[%s5162_s11 + $0x2f8] sm:$0xff] %v955_v31  ;;  %v957_v32 = vld [vmem:[%s5154_s10 + $0x600] sm:$0xff]  ;;  %v959_v33 = vld [vmem:[%s5154_s10 + $0x610] sm:$0xff] }
  0x4c   : > { %v961_v34 = vld [vmem:[%s5154_s10 + $0x620] sm:$0xff]  ;;  %958 = vst [vmem:[%s5162_s11 + $0x300] sm:$0xff] %v957_v32  ;;  %960 = vst [vmem:[%s5162_s11 + $0x308] sm:$0xff] %v959_v33  ;;  %v963_v35 = vld [vmem:[%s5154_s10 + $0x630] sm:$0xff] }
  0x4d   : > { %962 = vst [vmem:[%s5162_s11 + $0x310] sm:$0xff] %v961_v34  ;;  %v965_v36 = vld [vmem:[%s5154_s10 + $0x640] sm:$0xff]  ;;  %v967_v37 = vld [vmem:[%s5154_s10 + $0x650] sm:$0xff]  ;;  %964 = vst [vmem:[%s5162_s11 + $0x318] sm:$0xff] %v963_v35 }
  0x4e   : > { %966 = vst [vmem:[%s5162_s11 + $0x320] sm:$0xff] %v965_v36  ;;  %968 = vst [vmem:[%s5162_s11 + $0x328] sm:$0xff] %v967_v37  ;;  %v969_v38 = vld [vmem:[%s5154_s10 + $0x660] sm:$0xff]  ;;  %v971_v39 = vld [vmem:[%s5154_s10 + $0x670] sm:$0xff] }
  0x4f   : > { %v973_v40 = vld [vmem:[%s5154_s10 + $0x680] sm:$0xff]  ;;  %970 = vst [vmem:[%s5162_s11 + $0x330] sm:$0xff] %v969_v38  ;;  %972 = vst [vmem:[%s5162_s11 + $0x338] sm:$0xff] %v971_v39  ;;  %v975_v41 = vld [vmem:[%s5154_s10 + $0x690] sm:$0xff] }
  0x50   : > { %974 = vst [vmem:[%s5162_s11 + $0x340] sm:$0xff] %v973_v40  ;;  %v977_v42 = vld [vmem:[%s5154_s10 + $0x6a0] sm:$0xff]  ;;  %v979_v43 = vld [vmem:[%s5154_s10 + $0x6b0] sm:$0xff]  ;;  %976 = vst [vmem:[%s5162_s11 + $0x348] sm:$0xff] %v975_v41 }
  0x51   : > { %978 = vst [vmem:[%s5162_s11 + $0x350] sm:$0xff] %v977_v42  ;;  %980 = vst [vmem:[%s5162_s11 + $0x358] sm:$0xff] %v979_v43  ;;  %v981_v44 = vld [vmem:[%s5154_s10 + $0x6c0] sm:$0xff]  ;;  %v983_v45 = vld [vmem:[%s5154_s10 + $0x6d0] sm:$0xff] }
  0x52   : > { %v985_v46 = vld [vmem:[%s5154_s10 + $0x6e0] sm:$0xff]  ;;  %982 = vst [vmem:[%s5162_s11 + $0x360] sm:$0xff] %v981_v44  ;;  %984 = vst [vmem:[%s5162_s11 + $0x368] sm:$0xff] %v983_v45  ;;  %v987_v47 = vld [vmem:[%s5154_s10 + $0x6f0] sm:$0xff] }
  0x53   : > { %986 = vst [vmem:[%s5162_s11 + $0x370] sm:$0xff] %v985_v46  ;;  %v989_v48 = vld [vmem:[%s5154_s10 + $0x700] sm:$0xff]  ;;  %v991_v49 = vld [vmem:[%s5154_s10 + $0x710] sm:$0xff]  ;;  %988 = vst [vmem:[%s5162_s11 + $0x378] sm:$0xff] %v987_v47 }
  0x54   : > { %990 = vst [vmem:[%s5162_s11 + $0x380] sm:$0xff] %v989_v48  ;;  %992 = vst [vmem:[%s5162_s11 + $0x388] sm:$0xff] %v991_v49  ;;  %v993_v50 = vld [vmem:[%s5154_s10 + $0x720] sm:$0xff]  ;;  %v995_v51 = vld [vmem:[%s5154_s10 + $0x730] sm:$0xff] }
  0x55   : > { %v997_v52 = vld [vmem:[%s5154_s10 + $0x740] sm:$0xff]  ;;  %994 = vst [vmem:[%s5162_s11 + $0x390] sm:$0xff] %v993_v50  ;;  %996 = vst [vmem:[%s5162_s11 + $0x398] sm:$0xff] %v995_v51  ;;  %v999_v53 = vld [vmem:[%s5154_s10 + $0x750] sm:$0xff] }
  0x56   : > { %998 = vst [vmem:[%s5162_s11 + $0x3a0] sm:$0xff] %v997_v52  ;;  %v1001_v54 = vld [vmem:[%s5154_s10 + $0x760] sm:$0xff]  ;;  %v1003_v55 = vld [vmem:[%s5154_s10 + $0x770] sm:$0xff]  ;;  %1000 = vst [vmem:[%s5162_s11 + $0x3a8] sm:$0xff] %v999_v53 }
  0x57   : > { %1002 = vst [vmem:[%s5162_s11 + $0x3b0] sm:$0xff] %v1001_v54  ;;  %1004 = vst [vmem:[%s5162_s11 + $0x3b8] sm:$0xff] %v1003_v55  ;;  %v1005_v56 = vld [vmem:[%s5154_s10 + $0x780] sm:$0xff]  ;;  %v1007_v57 = vld [vmem:[%s5154_s10 + $0x790] sm:$0xff] }
  0x58   : > { %v1009_v58 = vld [vmem:[%s5154_s10 + $0x7a0] sm:$0xff]  ;;  %1006 = vst [vmem:[%s5162_s11 + $0x3c0] sm:$0xff] %v1005_v56  ;;  %1008 = vst [vmem:[%s5162_s11 + $0x3c8] sm:$0xff] %v1007_v57  ;;  %v1011_v59 = vld [vmem:[%s5154_s10 + $0x7b0] sm:$0xff] }
  0x59   : > { %1010 = vst [vmem:[%s5162_s11 + $0x3d0] sm:$0xff] %v1009_v58  ;;  %v1013_v60 = vld [vmem:[%s5154_s10 + $0x7c0] sm:$0xff]  ;;  %v1015_v61 = vld [vmem:[%s5154_s10 + $0x7d0] sm:$0xff]  ;;  %1012 = vst [vmem:[%s5162_s11 + $0x3d8] sm:$0xff] %v1011_v59 }
  0x5a   : > { %1014 = vst [vmem:[%s5162_s11 + $0x3e0] sm:$0xff] %v1013_v60  ;;  %1016 = vst [vmem:[%s5162_s11 + $0x3e8] sm:$0xff] %v1015_v61  ;;  %v1017_v62 = vld [vmem:[%s5154_s10 + $0x7e0] sm:$0xff]  ;;  %v1019_v63 = vld [vmem:[%s5154_s10 + $0x7f0] sm:$0xff] }
  0x5b   : > { %v1021_v0 = vld [vmem:[%s5154_s10 + $0x800] sm:$0xff]  ;;  %1018 = vst [vmem:[%s5162_s11 + $0x3f0] sm:$0xff] %v1017_v62  ;;  %1020 = vst [vmem:[%s5162_s11 + $0x3f8] sm:$0xff] %v1019_v63  ;;  %v1023_v1 = vld [vmem:[%s5154_s10 + $0x810] sm:$0xff] }
  0x5c   : > { %1022 = vst [vmem:[%s5162_s11 + $0x400] sm:$0xff] %v1021_v0  ;;  %v1025_v2 = vld [vmem:[%s5154_s10 + $0x820] sm:$0xff]  ;;  %v1027_v3 = vld [vmem:[%s5154_s10 + $0x830] sm:$0xff]  ;;  %1024 = vst [vmem:[%s5162_s11 + $0x408] sm:$0xff] %v1023_v1 }
  0x5d   : > { %1026 = vst [vmem:[%s5162_s11 + $0x410] sm:$0xff] %v1025_v2  ;;  %1028 = vst [vmem:[%s5162_s11 + $0x418] sm:$0xff] %v1027_v3  ;;  %v1029_v4 = vld [vmem:[%s5154_s10 + $0x840] sm:$0xff]  ;;  %v1031_v5 = vld [vmem:[%s5154_s10 + $0x850] sm:$0xff] }
  0x5e   : > { %v1033_v6 = vld [vmem:[%s5154_s10 + $0x860] sm:$0xff]  ;;  %1030 = vst [vmem:[%s5162_s11 + $0x420] sm:$0xff] %v1029_v4  ;;  %1032 = vst [vmem:[%s5162_s11 + $0x428] sm:$0xff] %v1031_v5  ;;  %v1035_v7 = vld [vmem:[%s5154_s10 + $0x870] sm:$0xff] }
  0x5f   : > { %1034 = vst [vmem:[%s5162_s11 + $0x430] sm:$0xff] %v1033_v6  ;;  %v1037_v8 = vld [vmem:[%s5154_s10 + $0x880] sm:$0xff]  ;;  %v1039_v9 = vld [vmem:[%s5154_s10 + $0x890] sm:$0xff]  ;;  %1036 = vst [vmem:[%s5162_s11 + $0x438] sm:$0xff] %v1035_v7 }
  0x60   : > { %1038 = vst [vmem:[%s5162_s11 + $0x440] sm:$0xff] %v1037_v8  ;;  %1040 = vst [vmem:[%s5162_s11 + $0x448] sm:$0xff] %v1039_v9  ;;  %v1041_v10 = vld [vmem:[%s5154_s10 + $0x8a0] sm:$0xff]  ;;  %v1043_v11 = vld [vmem:[%s5154_s10 + $0x8b0] sm:$0xff] }
  0x61   : > { %v1045_v12 = vld [vmem:[%s5154_s10 + $0x8c0] sm:$0xff]  ;;  %1042 = vst [vmem:[%s5162_s11 + $0x450] sm:$0xff] %v1041_v10  ;;  %1044 = vst [vmem:[%s5162_s11 + $0x458] sm:$0xff] %v1043_v11  ;;  %v1047_v13 = vld [vmem:[%s5154_s10 + $0x8d0] sm:$0xff] }
  0x62   : > { %1046 = vst [vmem:[%s5162_s11 + $0x460] sm:$0xff] %v1045_v12  ;;  %v1049_v14 = vld [vmem:[%s5154_s10 + $0x8e0] sm:$0xff]  ;;  %v1051_v15 = vld [vmem:[%s5154_s10 + $0x8f0] sm:$0xff]  ;;  %1048 = vst [vmem:[%s5162_s11 + $0x468] sm:$0xff] %v1047_v13 }
  0x63   : > { %1050 = vst [vmem:[%s5162_s11 + $0x470] sm:$0xff] %v1049_v14  ;;  %1052 = vst [vmem:[%s5162_s11 + $0x478] sm:$0xff] %v1051_v15  ;;  %v1053_v16 = vld [vmem:[%s5154_s10 + $0x900] sm:$0xff]  ;;  %v1055_v17 = vld [vmem:[%s5154_s10 + $0x910] sm:$0xff] }
  0x64   : > { %v1057_v18 = vld [vmem:[%s5154_s10 + $0x920] sm:$0xff]  ;;  %1054 = vst [vmem:[%s5162_s11 + $0x480] sm:$0xff] %v1053_v16  ;;  %1056 = vst [vmem:[%s5162_s11 + $0x488] sm:$0xff] %v1055_v17  ;;  %v1059_v19 = vld [vmem:[%s5154_s10 + $0x930] sm:$0xff] }
  0x65   : > { %1058 = vst [vmem:[%s5162_s11 + $0x490] sm:$0xff] %v1057_v18  ;;  %v1061_v20 = vld [vmem:[%s5154_s10 + $0x940] sm:$0xff]  ;;  %v1063_v21 = vld [vmem:[%s5154_s10 + $0x950] sm:$0xff]  ;;  %1060 = vst [vmem:[%s5162_s11 + $0x498] sm:$0xff] %v1059_v19 }
  0x66   : > { %1062 = vst [vmem:[%s5162_s11 + $0x4a0] sm:$0xff] %v1061_v20  ;;  %1064 = vst [vmem:[%s5162_s11 + $0x4a8] sm:$0xff] %v1063_v21  ;;  %v1065_v22 = vld [vmem:[%s5154_s10 + $0x960] sm:$0xff]  ;;  %v1067_v23 = vld [vmem:[%s5154_s10 + $0x970] sm:$0xff] }
  0x67   : > { %v1069_v24 = vld [vmem:[%s5154_s10 + $0x980] sm:$0xff]  ;;  %1066 = vst [vmem:[%s5162_s11 + $0x4b0] sm:$0xff] %v1065_v22  ;;  %1068 = vst [vmem:[%s5162_s11 + $0x4b8] sm:$0xff] %v1067_v23  ;;  %v1071_v25 = vld [vmem:[%s5154_s10 + $0x990] sm:$0xff] }
  0x68   : > { %1070 = vst [vmem:[%s5162_s11 + $0x4c0] sm:$0xff] %v1069_v24  ;;  %v1073_v26 = vld [vmem:[%s5154_s10 + $0x9a0] sm:$0xff]  ;;  %v1075_v27 = vld [vmem:[%s5154_s10 + $0x9b0] sm:$0xff]  ;;  %1072 = vst [vmem:[%s5162_s11 + $0x4c8] sm:$0xff] %v1071_v25 }
  0x69   : > { %1074 = vst [vmem:[%s5162_s11 + $0x4d0] sm:$0xff] %v1073_v26  ;;  %1076 = vst [vmem:[%s5162_s11 + $0x4d8] sm:$0xff] %v1075_v27  ;;  %v1077_v28 = vld [vmem:[%s5154_s10 + $0x9c0] sm:$0xff]  ;;  %v1079_v29 = vld [vmem:[%s5154_s10 + $0x9d0] sm:$0xff] }
  0x6a   : > { %v1081_v30 = vld [vmem:[%s5154_s10 + $0x9e0] sm:$0xff]  ;;  %1078 = vst [vmem:[%s5162_s11 + $0x4e0] sm:$0xff] %v1077_v28  ;;  %1080 = vst [vmem:[%s5162_s11 + $0x4e8] sm:$0xff] %v1079_v29  ;;  %v1083_v31 = vld [vmem:[%s5154_s10 + $0x9f0] sm:$0xff] }
  0x6b   : > { %1082 = vst [vmem:[%s5162_s11 + $0x4f0] sm:$0xff] %v1081_v30  ;;  %v1085_v32 = vld [vmem:[%s5154_s10 + $0xa00] sm:$0xff]  ;;  %v1087_v33 = vld [vmem:[%s5154_s10 + $0xa10] sm:$0xff]  ;;  %1084 = vst [vmem:[%s5162_s11 + $0x4f8] sm:$0xff] %v1083_v31 }
  0x6c   : > { %1086 = vst [vmem:[%s5162_s11 + $0x500] sm:$0xff] %v1085_v32  ;;  %1088 = vst [vmem:[%s5162_s11 + $0x508] sm:$0xff] %v1087_v33  ;;  %v1089_v34 = vld [vmem:[%s5154_s10 + $0xa20] sm:$0xff]  ;;  %v1091_v35 = vld [vmem:[%s5154_s10 + $0xa30] sm:$0xff] }
  0x6d   : > { %v1093_v36 = vld [vmem:[%s5154_s10 + $0xa40] sm:$0xff]  ;;  %1090 = vst [vmem:[%s5162_s11 + $0x510] sm:$0xff] %v1089_v34  ;;  %1092 = vst [vmem:[%s5162_s11 + $0x518] sm:$0xff] %v1091_v35  ;;  %v1095_v37 = vld [vmem:[%s5154_s10 + $0xa50] sm:$0xff] }
  0x6e   : > { %1094 = vst [vmem:[%s5162_s11 + $0x520] sm:$0xff] %v1093_v36  ;;  %v1097_v38 = vld [vmem:[%s5154_s10 + $0xa60] sm:$0xff]  ;;  %v1099_v39 = vld [vmem:[%s5154_s10 + $0xa70] sm:$0xff]  ;;  %1096 = vst [vmem:[%s5162_s11 + $0x528] sm:$0xff] %v1095_v37 }
  0x6f   : > { %1098 = vst [vmem:[%s5162_s11 + $0x530] sm:$0xff] %v1097_v38  ;;  %1100 = vst [vmem:[%s5162_s11 + $0x538] sm:$0xff] %v1099_v39  ;;  %v1101_v40 = vld [vmem:[%s5154_s10 + $0xa80] sm:$0xff]  ;;  %v1103_v41 = vld [vmem:[%s5154_s10 + $0xa90] sm:$0xff] }
  0x70   : > { %v1105_v42 = vld [vmem:[%s5154_s10 + $0xaa0] sm:$0xff]  ;;  %1102 = vst [vmem:[%s5162_s11 + $0x540] sm:$0xff] %v1101_v40  ;;  %1104 = vst [vmem:[%s5162_s11 + $0x548] sm:$0xff] %v1103_v41  ;;  %v1107_v43 = vld [vmem:[%s5154_s10 + $0xab0] sm:$0xff] }
  0x71   : > { %1106 = vst [vmem:[%s5162_s11 + $0x550] sm:$0xff] %v1105_v42  ;;  %v1109_v44 = vld [vmem:[%s5154_s10 + $0xac0] sm:$0xff]  ;;  %v1111_v45 = vld [vmem:[%s5154_s10 + $0xad0] sm:$0xff]  ;;  %1108 = vst [vmem:[%s5162_s11 + $0x558] sm:$0xff] %v1107_v43 }
  0x72   : > { %1110 = vst [vmem:[%s5162_s11 + $0x560] sm:$0xff] %v1109_v44  ;;  %1112 = vst [vmem:[%s5162_s11 + $0x568] sm:$0xff] %v1111_v45  ;;  %v1113_v46 = vld [vmem:[%s5154_s10 + $0xae0] sm:$0xff]  ;;  %v1115_v47 = vld [vmem:[%s5154_s10 + $0xaf0] sm:$0xff] }
  0x73   : > { %v1117_v48 = vld [vmem:[%s5154_s10 + $0xb00] sm:$0xff]  ;;  %1114 = vst [vmem:[%s5162_s11 + $0x570] sm:$0xff] %v1113_v46  ;;  %1116 = vst [vmem:[%s5162_s11 + $0x578] sm:$0xff] %v1115_v47  ;;  %v1119_v49 = vld [vmem:[%s5154_s10 + $0xb10] sm:$0xff] }
  0x74   : > { %1118 = vst [vmem:[%s5162_s11 + $0x580] sm:$0xff] %v1117_v48  ;;  %v1121_v50 = vld [vmem:[%s5154_s10 + $0xb20] sm:$0xff]  ;;  %v1123_v51 = vld [vmem:[%s5154_s10 + $0xb30] sm:$0xff]  ;;  %1120 = vst [vmem:[%s5162_s11 + $0x588] sm:$0xff] %v1119_v49 }
  0x75   : > { %1122 = vst [vmem:[%s5162_s11 + $0x590] sm:$0xff] %v1121_v50  ;;  %1124 = vst [vmem:[%s5162_s11 + $0x598] sm:$0xff] %v1123_v51  ;;  %v1125_v52 = vld [vmem:[%s5154_s10 + $0xb40] sm:$0xff]  ;;  %v1127_v53 = vld [vmem:[%s5154_s10 + $0xb50] sm:$0xff] }
  0x76   : > { %v1129_v54 = vld [vmem:[%s5154_s10 + $0xb60] sm:$0xff]  ;;  %1126 = vst [vmem:[%s5162_s11 + $0x5a0] sm:$0xff] %v1125_v52  ;;  %1128 = vst [vmem:[%s5162_s11 + $0x5a8] sm:$0xff] %v1127_v53  ;;  %v1131_v55 = vld [vmem:[%s5154_s10 + $0xb70] sm:$0xff] }
  0x77   : > { %1130 = vst [vmem:[%s5162_s11 + $0x5b0] sm:$0xff] %v1129_v54  ;;  %v1133_v56 = vld [vmem:[%s5154_s10 + $0xb80] sm:$0xff]  ;;  %v1135_v57 = vld [vmem:[%s5154_s10 + $0xb90] sm:$0xff]  ;;  %1132 = vst [vmem:[%s5162_s11 + $0x5b8] sm:$0xff] %v1131_v55 }
  0x78   : > { %1134 = vst [vmem:[%s5162_s11 + $0x5c0] sm:$0xff] %v1133_v56  ;;  %1136 = vst [vmem:[%s5162_s11 + $0x5c8] sm:$0xff] %v1135_v57  ;;  %v1137_v58 = vld [vmem:[%s5154_s10 + $0xba0] sm:$0xff]  ;;  %v1139_v59 = vld [vmem:[%s5154_s10 + $0xbb0] sm:$0xff] }
  0x79   : > { %v1141_v60 = vld [vmem:[%s5154_s10 + $0xbc0] sm:$0xff]  ;;  %1138 = vst [vmem:[%s5162_s11 + $0x5d0] sm:$0xff] %v1137_v58  ;;  %1140 = vst [vmem:[%s5162_s11 + $0x5d8] sm:$0xff] %v1139_v59  ;;  %v1143_v61 = vld [vmem:[%s5154_s10 + $0xbd0] sm:$0xff] }
  0x7a   : > { %1142 = vst [vmem:[%s5162_s11 + $0x5e0] sm:$0xff] %v1141_v60  ;;  %v1145_v62 = vld [vmem:[%s5154_s10 + $0xbe0] sm:$0xff]  ;;  %v1147_v63 = vld [vmem:[%s5154_s10 + $0xbf0] sm:$0xff]  ;;  %1144 = vst [vmem:[%s5162_s11 + $0x5e8] sm:$0xff] %v1143_v61 }
  0x7b   : > { %1146 = vst [vmem:[%s5162_s11 + $0x5f0] sm:$0xff] %v1145_v62  ;;  %1148 = vst [vmem:[%s5162_s11 + $0x5f8] sm:$0xff] %v1147_v63  ;;  %v1149_v0 = vld [vmem:[%s5154_s10 + $0xc00] sm:$0xff]  ;;  %v1151_v1 = vld [vmem:[%s5154_s10 + $0xc10] sm:$0xff] }
  0x7c   : > { %v1153_v2 = vld [vmem:[%s5154_s10 + $0xc20] sm:$0xff]  ;;  %1150 = vst [vmem:[%s5162_s11 + $0x600] sm:$0xff] %v1149_v0  ;;  %1152 = vst [vmem:[%s5162_s11 + $0x608] sm:$0xff] %v1151_v1  ;;  %v1155_v3 = vld [vmem:[%s5154_s10 + $0xc30] sm:$0xff] }
  0x7d   : > { %1154 = vst [vmem:[%s5162_s11 + $0x610] sm:$0xff] %v1153_v2  ;;  %v1157_v4 = vld [vmem:[%s5154_s10 + $0xc40] sm:$0xff]  ;;  %v1159_v5 = vld [vmem:[%s5154_s10 + $0xc50] sm:$0xff]  ;;  %1156 = vst [vmem:[%s5162_s11 + $0x618] sm:$0xff] %v1155_v3 }
  0x7e   : > { %1158 = vst [vmem:[%s5162_s11 + $0x620] sm:$0xff] %v1157_v4  ;;  %1160 = vst [vmem:[%s5162_s11 + $0x628] sm:$0xff] %v1159_v5  ;;  %v1161_v6 = vld [vmem:[%s5154_s10 + $0xc60] sm:$0xff]  ;;  %v1163_v7 = vld [vmem:[%s5154_s10 + $0xc70] sm:$0xff] }
  0x7f   : > { %v1165_v8 = vld [vmem:[%s5154_s10 + $0xc80] sm:$0xff]  ;;  %1162 = vst [vmem:[%s5162_s11 + $0x630] sm:$0xff] %v1161_v6  ;;  %1164 = vst [vmem:[%s5162_s11 + $0x638] sm:$0xff] %v1163_v7  ;;  %v1167_v9 = vld [vmem:[%s5154_s10 + $0xc90] sm:$0xff] }
  0x80   : > { %1166 = vst [vmem:[%s5162_s11 + $0x640] sm:$0xff] %v1165_v8  ;;  %v1169_v10 = vld [vmem:[%s5154_s10 + $0xca0] sm:$0xff]  ;;  %v1171_v11 = vld [vmem:[%s5154_s10 + $0xcb0] sm:$0xff]  ;;  %1168 = vst [vmem:[%s5162_s11 + $0x648] sm:$0xff] %v1167_v9 }
  0x81   : > { %1170 = vst [vmem:[%s5162_s11 + $0x650] sm:$0xff] %v1169_v10  ;;  %1172 = vst [vmem:[%s5162_s11 + $0x658] sm:$0xff] %v1171_v11  ;;  %v1173_v12 = vld [vmem:[%s5154_s10 + $0xcc0] sm:$0xff]  ;;  %v1175_v13 = vld [vmem:[%s5154_s10 + $0xcd0] sm:$0xff] }
  0x82   : > { %v1177_v14 = vld [vmem:[%s5154_s10 + $0xce0] sm:$0xff]  ;;  %1174 = vst [vmem:[%s5162_s11 + $0x660] sm:$0xff] %v1173_v12  ;;  %1176 = vst [vmem:[%s5162_s11 + $0x668] sm:$0xff] %v1175_v13  ;;  %v1179_v15 = vld [vmem:[%s5154_s10 + $0xcf0] sm:$0xff] }
  0x83   : > { %1178 = vst [vmem:[%s5162_s11 + $0x670] sm:$0xff] %v1177_v14  ;;  %v1181_v16 = vld [vmem:[%s5154_s10 + $0xd00] sm:$0xff]  ;;  %v1183_v17 = vld [vmem:[%s5154_s10 + $0xd10] sm:$0xff]  ;;  %1180 = vst [vmem:[%s5162_s11 + $0x678] sm:$0xff] %v1179_v15 }
  0x84   : > { %1182 = vst [vmem:[%s5162_s11 + $0x680] sm:$0xff] %v1181_v16  ;;  %1184 = vst [vmem:[%s5162_s11 + $0x688] sm:$0xff] %v1183_v17  ;;  %v1185_v18 = vld [vmem:[%s5154_s10 + $0xd20] sm:$0xff]  ;;  %v1187_v19 = vld [vmem:[%s5154_s10 + $0xd30] sm:$0xff] }
  0x85   : > { %v1189_v20 = vld [vmem:[%s5154_s10 + $0xd40] sm:$0xff]  ;;  %1186 = vst [vmem:[%s5162_s11 + $0x690] sm:$0xff] %v1185_v18  ;;  %1188 = vst [vmem:[%s5162_s11 + $0x698] sm:$0xff] %v1187_v19  ;;  %v1191_v21 = vld [vmem:[%s5154_s10 + $0xd50] sm:$0xff] }
  0x86   : > { %1190 = vst [vmem:[%s5162_s11 + $0x6a0] sm:$0xff] %v1189_v20  ;;  %v1193_v22 = vld [vmem:[%s5154_s10 + $0xd60] sm:$0xff]  ;;  %v1195_v23 = vld [vmem:[%s5154_s10 + $0xd70] sm:$0xff]  ;;  %1192 = vst [vmem:[%s5162_s11 + $0x6a8] sm:$0xff] %v1191_v21 }
  0x87   : > { %1194 = vst [vmem:[%s5162_s11 + $0x6b0] sm:$0xff] %v1193_v22  ;;  %1196 = vst [vmem:[%s5162_s11 + $0x6b8] sm:$0xff] %v1195_v23  ;;  %v1197_v24 = vld [vmem:[%s5154_s10 + $0xd80] sm:$0xff]  ;;  %v1199_v25 = vld [vmem:[%s5154_s10 + $0xd90] sm:$0xff] }
  0x88   : > { %v1201_v26 = vld [vmem:[%s5154_s10 + $0xda0] sm:$0xff]  ;;  %1198 = vst [vmem:[%s5162_s11 + $0x6c0] sm:$0xff] %v1197_v24  ;;  %1200 = vst [vmem:[%s5162_s11 + $0x6c8] sm:$0xff] %v1199_v25  ;;  %v1203_v27 = vld [vmem:[%s5154_s10 + $0xdb0] sm:$0xff] }
  0x89   : > { %1202 = vst [vmem:[%s5162_s11 + $0x6d0] sm:$0xff] %v1201_v26  ;;  %v1205_v28 = vld [vmem:[%s5154_s10 + $0xdc0] sm:$0xff]  ;;  %v1207_v29 = vld [vmem:[%s5154_s10 + $0xdd0] sm:$0xff]  ;;  %1204 = vst [vmem:[%s5162_s11 + $0x6d8] sm:$0xff] %v1203_v27 }
  0x8a   : > { %1206 = vst [vmem:[%s5162_s11 + $0x6e0] sm:$0xff] %v1205_v28  ;;  %1208 = vst [vmem:[%s5162_s11 + $0x6e8] sm:$0xff] %v1207_v29  ;;  %v1209_v30 = vld [vmem:[%s5154_s10 + $0xde0] sm:$0xff]  ;;  %v1211_v31 = vld [vmem:[%s5154_s10 + $0xdf0] sm:$0xff] }
  0x8b   : > { %v1213_v32 = vld [vmem:[%s5154_s10 + $0xe00] sm:$0xff]  ;;  %1210 = vst [vmem:[%s5162_s11 + $0x6f0] sm:$0xff] %v1209_v30  ;;  %1212 = vst [vmem:[%s5162_s11 + $0x6f8] sm:$0xff] %v1211_v31  ;;  %v1215_v33 = vld [vmem:[%s5154_s10 + $0xe10] sm:$0xff] }
  0x8c   : > { %1214 = vst [vmem:[%s5162_s11 + $0x700] sm:$0xff] %v1213_v32  ;;  %v1217_v34 = vld [vmem:[%s5154_s10 + $0xe20] sm:$0xff]  ;;  %v1219_v35 = vld [vmem:[%s5154_s10 + $0xe30] sm:$0xff]  ;;  %1216 = vst [vmem:[%s5162_s11 + $0x708] sm:$0xff] %v1215_v33 }
  0x8d   : > { %1218 = vst [vmem:[%s5162_s11 + $0x710] sm:$0xff] %v1217_v34  ;;  %1220 = vst [vmem:[%s5162_s11 + $0x718] sm:$0xff] %v1219_v35  ;;  %v1221_v36 = vld [vmem:[%s5154_s10 + $0xe40] sm:$0xff]  ;;  %v1223_v37 = vld [vmem:[%s5154_s10 + $0xe50] sm:$0xff] }
  0x8e   : > { %v1225_v38 = vld [vmem:[%s5154_s10 + $0xe60] sm:$0xff]  ;;  %1222 = vst [vmem:[%s5162_s11 + $0x720] sm:$0xff] %v1221_v36  ;;  %1224 = vst [vmem:[%s5162_s11 + $0x728] sm:$0xff] %v1223_v37  ;;  %v1227_v39 = vld [vmem:[%s5154_s10 + $0xe70] sm:$0xff] }
  0x8f   : > { %1226 = vst [vmem:[%s5162_s11 + $0x730] sm:$0xff] %v1225_v38  ;;  %v1229_v40 = vld [vmem:[%s5154_s10 + $0xe80] sm:$0xff]  ;;  %v1231_v41 = vld [vmem:[%s5154_s10 + $0xe90] sm:$0xff]  ;;  %1228 = vst [vmem:[%s5162_s11 + $0x738] sm:$0xff] %v1227_v39 }
  0x90   : > { %1230 = vst [vmem:[%s5162_s11 + $0x740] sm:$0xff] %v1229_v40  ;;  %1232 = vst [vmem:[%s5162_s11 + $0x748] sm:$0xff] %v1231_v41  ;;  %v1233_v42 = vld [vmem:[%s5154_s10 + $0xea0] sm:$0xff]  ;;  %v1235_v43 = vld [vmem:[%s5154_s10 + $0xeb0] sm:$0xff] }
  0x91   : > { %v1237_v44 = vld [vmem:[%s5154_s10 + $0xec0] sm:$0xff]  ;;  %1234 = vst [vmem:[%s5162_s11 + $0x750] sm:$0xff] %v1233_v42  ;;  %1236 = vst [vmem:[%s5162_s11 + $0x758] sm:$0xff] %v1235_v43  ;;  %v1239_v45 = vld [vmem:[%s5154_s10 + $0xed0] sm:$0xff] }
  0x92   : > { %1238 = vst [vmem:[%s5162_s11 + $0x760] sm:$0xff] %v1237_v44  ;;  %v1241_v46 = vld [vmem:[%s5154_s10 + $0xee0] sm:$0xff]  ;;  %v1243_v47 = vld [vmem:[%s5154_s10 + $0xef0] sm:$0xff]  ;;  %1240 = vst [vmem:[%s5162_s11 + $0x768] sm:$0xff] %v1239_v45 }
  0x93   : > { %1242 = vst [vmem:[%s5162_s11 + $0x770] sm:$0xff] %v1241_v46  ;;  %1244 = vst [vmem:[%s5162_s11 + $0x778] sm:$0xff] %v1243_v47  ;;  %v1245_v48 = vld [vmem:[%s5154_s10 + $0xf00] sm:$0xff]  ;;  %v1247_v49 = vld [vmem:[%s5154_s10 + $0xf10] sm:$0xff] }
  0x94   : > { %v1249_v50 = vld [vmem:[%s5154_s10 + $0xf20] sm:$0xff]  ;;  %1246 = vst [vmem:[%s5162_s11 + $0x780] sm:$0xff] %v1245_v48  ;;  %1248 = vst [vmem:[%s5162_s11 + $0x788] sm:$0xff] %v1247_v49  ;;  %v1251_v51 = vld [vmem:[%s5154_s10 + $0xf30] sm:$0xff] }
  0x95   : > { %1250 = vst [vmem:[%s5162_s11 + $0x790] sm:$0xff] %v1249_v50  ;;  %v1253_v52 = vld [vmem:[%s5154_s10 + $0xf40] sm:$0xff]  ;;  %v1255_v53 = vld [vmem:[%s5154_s10 + $0xf50] sm:$0xff]  ;;  %1252 = vst [vmem:[%s5162_s11 + $0x798] sm:$0xff] %v1251_v51 }
  0x96   : > { %1254 = vst [vmem:[%s5162_s11 + $0x7a0] sm:$0xff] %v1253_v52  ;;  %1256 = vst [vmem:[%s5162_s11 + $0x7a8] sm:$0xff] %v1255_v53  ;;  %v1257_v54 = vld [vmem:[%s5154_s10 + $0xf60] sm:$0xff]  ;;  %v1259_v55 = vld [vmem:[%s5154_s10 + $0xf70] sm:$0xff] }
  0x97   : > { %v1261_v56 = vld [vmem:[%s5154_s10 + $0xf80] sm:$0xff]  ;;  %1258 = vst [vmem:[%s5162_s11 + $0x7b0] sm:$0xff] %v1257_v54  ;;  %1260 = vst [vmem:[%s5162_s11 + $0x7b8] sm:$0xff] %v1259_v55  ;;  %v1263_v57 = vld [vmem:[%s5154_s10 + $0xf90] sm:$0xff] }
  0x98   : > { %1262 = vst [vmem:[%s5162_s11 + $0x7c0] sm:$0xff] %v1261_v56  ;;  %v1265_v58 = vld [vmem:[%s5154_s10 + $0xfa0] sm:$0xff]  ;;  %v1267_v59 = vld [vmem:[%s5154_s10 + $0xfb0] sm:$0xff]  ;;  %1264 = vst [vmem:[%s5162_s11 + $0x7c8] sm:$0xff] %v1263_v57 }
  0x99   : > { %1266 = vst [vmem:[%s5162_s11 + $0x7d0] sm:$0xff] %v1265_v58  ;;  %1268 = vst [vmem:[%s5162_s11 + $0x7d8] sm:$0xff] %v1267_v59  ;;  %v1269_v60 = vld [vmem:[%s5154_s10 + $0xfc0] sm:$0xff]  ;;  %v1271_v61 = vld [vmem:[%s5154_s10 + $0xfd0] sm:$0xff] }
  0x9a   : > { %v1273_v62 = vld [vmem:[%s5154_s10 + $0xfe0] sm:$0xff]  ;;  %1270 = vst [vmem:[%s5162_s11 + $0x7e0] sm:$0xff] %v1269_v60  ;;  %1272 = vst [vmem:[%s5162_s11 + $0x7e8] sm:$0xff] %v1271_v61  ;;  %v1275_v63 = vld [vmem:[%s5154_s10 + $0xff0] sm:$0xff] }
  0x9b   : > { %1274 = vst [vmem:[%s5162_s11 + $0x7f0] sm:$0xff] %v1273_v62  ;;  %v1277_v0 = vld [vmem:[%s5154_s10 + $0x1000] sm:$0xff]  ;;  %v1279_v1 = vld [vmem:[%s5154_s10 + $0x1010] sm:$0xff]  ;;  %1276 = vst [vmem:[%s5162_s11 + $0x7f8] sm:$0xff] %v1275_v63 }
  0x9c   : > { %1278 = vst [vmem:[%s5162_s11 + $0x800] sm:$0xff] %v1277_v0  ;;  %1280 = vst [vmem:[%s5162_s11 + $0x808] sm:$0xff] %v1279_v1  ;;  %v1281_v2 = vld [vmem:[%s5154_s10 + $0x1020] sm:$0xff]  ;;  %v1283_v3 = vld [vmem:[%s5154_s10 + $0x1030] sm:$0xff] }
  0x9d   : > { %v1285_v4 = vld [vmem:[%s5154_s10 + $0x1040] sm:$0xff]  ;;  %1282 = vst [vmem:[%s5162_s11 + $0x810] sm:$0xff] %v1281_v2  ;;  %1284 = vst [vmem:[%s5162_s11 + $0x818] sm:$0xff] %v1283_v3  ;;  %v1287_v5 = vld [vmem:[%s5154_s10 + $0x1050] sm:$0xff] }
  0x9e   : > { %1286 = vst [vmem:[%s5162_s11 + $0x820] sm:$0xff] %v1285_v4  ;;  %v1289_v6 = vld [vmem:[%s5154_s10 + $0x1060] sm:$0xff]  ;;  %v1291_v7 = vld [vmem:[%s5154_s10 + $0x1070] sm:$0xff]  ;;  %1288 = vst [vmem:[%s5162_s11 + $0x828] sm:$0xff] %v1287_v5 }
  0x9f   : > { %1290 = vst [vmem:[%s5162_s11 + $0x830] sm:$0xff] %v1289_v6  ;;  %1292 = vst [vmem:[%s5162_s11 + $0x838] sm:$0xff] %v1291_v7  ;;  %v1293_v8 = vld [vmem:[%s5154_s10 + $0x1080] sm:$0xff]  ;;  %v1295_v9 = vld [vmem:[%s5154_s10 + $0x1090] sm:$0xff] }
  0xa0   : > { %v1297_v10 = vld [vmem:[%s5154_s10 + $0x10a0] sm:$0xff]  ;;  %1294 = vst [vmem:[%s5162_s11 + $0x840] sm:$0xff] %v1293_v8  ;;  %1296 = vst [vmem:[%s5162_s11 + $0x848] sm:$0xff] %v1295_v9  ;;  %v1299_v11 = vld [vmem:[%s5154_s10 + $0x10b0] sm:$0xff] }
  0xa1   : > { %1298 = vst [vmem:[%s5162_s11 + $0x850] sm:$0xff] %v1297_v10  ;;  %v1301_v12 = vld [vmem:[%s5154_s10 + $0x10c0] sm:$0xff]  ;;  %v1303_v13 = vld [vmem:[%s5154_s10 + $0x10d0] sm:$0xff]  ;;  %1300 = vst [vmem:[%s5162_s11 + $0x858] sm:$0xff] %v1299_v11 }
  0xa2   : > { %1302 = vst [vmem:[%s5162_s11 + $0x860] sm:$0xff] %v1301_v12  ;;  %1304 = vst [vmem:[%s5162_s11 + $0x868] sm:$0xff] %v1303_v13  ;;  %v1305_v14 = vld [vmem:[%s5154_s10 + $0x10e0] sm:$0xff]  ;;  %v1307_v15 = vld [vmem:[%s5154_s10 + $0x10f0] sm:$0xff] }
  0xa3   : > { %v1309_v16 = vld [vmem:[%s5154_s10 + $0x1100] sm:$0xff]  ;;  %1306 = vst [vmem:[%s5162_s11 + $0x870] sm:$0xff] %v1305_v14  ;;  %1308 = vst [vmem:[%s5162_s11 + $0x878] sm:$0xff] %v1307_v15  ;;  %v1311_v17 = vld [vmem:[%s5154_s10 + $0x1110] sm:$0xff] }
  0xa4   : > { %1310 = vst [vmem:[%s5162_s11 + $0x880] sm:$0xff] %v1309_v16  ;;  %v1313_v18 = vld [vmem:[%s5154_s10 + $0x1120] sm:$0xff]  ;;  %v1315_v19 = vld [vmem:[%s5154_s10 + $0x1130] sm:$0xff]  ;;  %1312 = vst [vmem:[%s5162_s11 + $0x888] sm:$0xff] %v1311_v17 }
  0xa5   : > { %1314 = vst [vmem:[%s5162_s11 + $0x890] sm:$0xff] %v1313_v18  ;;  %1316 = vst [vmem:[%s5162_s11 + $0x898] sm:$0xff] %v1315_v19  ;;  %v1317_v20 = vld [vmem:[%s5154_s10 + $0x1140] sm:$0xff]  ;;  %v1319_v21 = vld [vmem:[%s5154_s10 + $0x1150] sm:$0xff] }
  0xa6   : > { %v1321_v22 = vld [vmem:[%s5154_s10 + $0x1160] sm:$0xff]  ;;  %1318 = vst [vmem:[%s5162_s11 + $0x8a0] sm:$0xff] %v1317_v20  ;;  %1320 = vst [vmem:[%s5162_s11 + $0x8a8] sm:$0xff] %v1319_v21  ;;  %v1323_v23 = vld [vmem:[%s5154_s10 + $0x1170] sm:$0xff] }
  0xa7   : > { %1322 = vst [vmem:[%s5162_s11 + $0x8b0] sm:$0xff] %v1321_v22  ;;  %v1325_v24 = vld [vmem:[%s5154_s10 + $0x1180] sm:$0xff]  ;;  %v1327_v25 = vld [vmem:[%s5154_s10 + $0x1190] sm:$0xff]  ;;  %1324 = vst [vmem:[%s5162_s11 + $0x8b8] sm:$0xff] %v1323_v23 }
  0xa8   : > { %1326 = vst [vmem:[%s5162_s11 + $0x8c0] sm:$0xff] %v1325_v24  ;;  %1328 = vst [vmem:[%s5162_s11 + $0x8c8] sm:$0xff] %v1327_v25  ;;  %v1329_v26 = vld [vmem:[%s5154_s10 + $0x11a0] sm:$0xff]  ;;  %v1331_v27 = vld [vmem:[%s5154_s10 + $0x11b0] sm:$0xff] }
  0xa9   : > { %v1333_v28 = vld [vmem:[%s5154_s10 + $0x11c0] sm:$0xff]  ;;  %1330 = vst [vmem:[%s5162_s11 + $0x8d0] sm:$0xff] %v1329_v26  ;;  %1332 = vst [vmem:[%s5162_s11 + $0x8d8] sm:$0xff] %v1331_v27  ;;  %v1335_v29 = vld [vmem:[%s5154_s10 + $0x11d0] sm:$0xff] }
  0xaa   : > { %1334 = vst [vmem:[%s5162_s11 + $0x8e0] sm:$0xff] %v1333_v28  ;;  %v1337_v30 = vld [vmem:[%s5154_s10 + $0x11e0] sm:$0xff]  ;;  %v1339_v31 = vld [vmem:[%s5154_s10 + $0x11f0] sm:$0xff]  ;;  %1336 = vst [vmem:[%s5162_s11 + $0x8e8] sm:$0xff] %v1335_v29 }
  0xab   : > { %1338 = vst [vmem:[%s5162_s11 + $0x8f0] sm:$0xff] %v1337_v30  ;;  %1340 = vst [vmem:[%s5162_s11 + $0x8f8] sm:$0xff] %v1339_v31 }
  0xac PF: > { %p3851_p11 = scmp.ge.s32.totalorder %s5048_s20, 1  ;;  %p1353_p12 = scmp.lt.s32.totalorder %s5048_s20, 5 }
  0xae   : > { %p1354_p13 = pnand %p3851_p11, %p1353_p12 }
  0xaf   : > { %s1360_s21 = sand.u32 (!%p1354_p13), 1, %s5024_s14   ;;  %s1388_s24 = sand.u32 (!%p1354_p13), 1, %s5016_s12   ;;  %v1405_v32 = vlaneseq (!%p1354_p13) }
  0xb0   : > { %1357 = sbr.rel (%p1354_p13) target bundleno = 740 (0x2e4), region = 66  ;;  %s3852_s26 = sshll.u32 (!%p1354_p13), %s1388_s24, 4 }
  0xb1   : > { %s4460_s25 = smul.u32 (!%p1354_p13), 2304, %s1360_s21  ;;  %p1391_p0 = scmp.lt.s32.totalorder (!%p1354_p13), %s5036_s17, 1  ;;  %v1406_v33 = vshrl.u32 (!%p1354_p13), %v1405_v32, 7 }
  0xb2   : > { %s5740_s28 = sshll.u32 (!%p1354_p13), %s5032_s16, 1  ;;  %s5759_s11 = scalar_lea.vmem (!%p1354_p13), [#allocation3], %s3852_s26 }
  0xb3   : > { %p1398_p1 = scmp.lt.s32.totalorder (!%p1354_p13), %s5740_s28, 3  ;;  %v1407_v34 = vsub.s32 (!%p1354_p13), 0, %v1406_v33  ;;  %v1411_v35 = vsub.s32 (!%p1354_p13), 1, %v1406_v33  ;;  %s5757_s16 = scalar_lea.vmem (!%p1354_p13), [#allocation2], %s4460_s25 }
  0xb4   : > { %s5761_s21 = smov (!%p1354_p13), 0  }
  0xb7   : > { %s1392_s29 = scalar_select %p1391_p0, %s5036_s17, 1 }
  0xb8   : > { %s1399_s6 = scalar_select %p1398_p1, %s5740_s28, 3 }
  0xb9   : > { %s4461_s5 = smul.u32 96, %s1392_s29 }
  0xba   : > { %s1400_s10 = scalar_lea.vmem %s6123_s2, %s1399_s6 }
  0xbb   : > { %s5748_s14 = scalar_lea.vmem %s6121_s0, %s4461_s5  ;;  %v1403_v36 = vld [vmem:[%s1400_s10] sm:$0x3] }
  0xbc   : > { %v5753_v37 = vrot.slane %v1403_v36, %v1407_v34  ;;  %v5755_v38 = vrot.slane %v1403_v36, %v1411_v35 }
  0xbd LB: >> { %v4542_v39 = vld [vmem:[%s5757_s16 + $0x4] ss:$8 sps:$4 sm:$0xff]   ;;  %v4546_v41 = vld [vmem:[%s5757_s16] ss:$8 sps:$4 sm:$0xff]   ;;  %v4548_v43 = vld [vmem:[%s5757_s16 + $0x14] ss:$8 sps:$4 sm:$0xff]   ;;  %s5052_s21 = sphi %s5761_s21, %s1420_s21  }
  0xbe   : >> { %v4544_v40 = vld [vmem:[%s5757_s16 + $0x404] ss:$8 sps:$4 sm:$0xff]   ;;  %1620 = vmatprep.subr.bf16.mxu1 %v4542_v39  ;;  %v4547_v42 = vld [vmem:[%s5757_s16 + $0x400] ss:$8 sps:$4 sm:$0xff]   ;;  %v4550_v44 = vld [vmem:[%s5757_s16 + $0x414] ss:$8 sps:$4 sm:$0xff]  }
  0xbf   : >> { %2622 = vmatprep.subr.bf16.mxu0 %v4544_v40  ;;  %1621 = vmatpush1.bf16.msra.mxu1 %v4546_v41  ;;  %v4552_v45 = vld [vmem:[%s5757_s16 + $0x10] ss:$8 sps:$4 sm:$0xff]   ;;  %v4554_v47 = vld [vmem:[%s5757_s16 + $0x24] ss:$8 sps:$4 sm:$0xff]   ;;  %v4558_v49 = vld [vmem:[%s5757_s16 + $0x20] ss:$8 sps:$4 sm:$0xff]  }
  0xc0   : >> { %2623 = vmatpush1.bf16.msra.mxu0 %v4547_v42  ;;  %1622 = vmatprep.subr.bf16.mxu1 %v4548_v43  ;;  %v4553_v46 = vld [vmem:[%s5757_s16 + $0x410] ss:$8 sps:$4 sm:$0xff]   ;;  %v4556_v48 = vld [vmem:[%s5757_s16 + $0x424] ss:$8 sps:$4 sm:$0xff]   ;;  %v4559_v50 = vld [vmem:[%s5757_s16 + $0x420] ss:$8 sps:$4 sm:$0xff]  }
  0xc1   : >> { %2624 = vmatprep.subr.bf16.mxu0 %v4550_v44  ;;  %v4560_v51 = vld [vmem:[%s5757_s16 + $0x34] ss:$8 sps:$4 sm:$0xff]   ;;  %v4564_v53 = vld [vmem:[%s5757_s16 + $0x30] ss:$8 sps:$4 sm:$0xff]   ;;  %v4566_v55 = vld [vmem:[%s5757_s16 + $0x44] ss:$8 sps:$4 sm:$0xff]  }
  0xc2   : >> { %v4562_v52 = vld [vmem:[%s5757_s16 + $0x434] ss:$8 sps:$4 sm:$0xff]   ;;  %v4565_v54 = vld [vmem:[%s5757_s16 + $0x430] ss:$8 sps:$4 sm:$0xff]   ;;  %v4568_v56 = vld [vmem:[%s5757_s16 + $0x444] ss:$8 sps:$4 sm:$0xff]  }
  0xc3   : >> { %1623 = vmatpush1.bf16.msra.mxu1 %v4552_v45  ;;  %v4570_v57 = vld [vmem:[%s5757_s16 + $0x40] ss:$8 sps:$4 sm:$0xff]   ;;  %v4572_v59 = vld [vmem:[%s5757_s16 + $0x54] ss:$8 sps:$4 sm:$0xff]   ;;  %v4576_v61 = vld [vmem:[%s5757_s16 + $0x50] ss:$8 sps:$4 sm:$0xff]  }
  0xc4   : >> { %2625 = vmatpush1.bf16.msra.mxu0 %v4553_v46  ;;  %1624 = vmatprep.subr.bf16.mxu1 %v4554_v47  ;;  %v4571_v58 = vld [vmem:[%s5757_s16 + $0x440] ss:$8 sps:$4 sm:$0xff]   ;;  %v4574_v60 = vld [vmem:[%s5757_s16 + $0x454] ss:$8 sps:$4 sm:$0xff]   ;;  %v4577_v62 = vld [vmem:[%s5757_s16 + $0x450] ss:$8 sps:$4 sm:$0xff]  }
  0xc5   : >> { %2626 = vmatprep.subr.bf16.mxu0 %v4556_v48  ;;  %v4578_v63 = vld [vmem:[%s5757_s16 + $0x64] ss:$8 sps:$4 sm:$0xff]   ;;  %v4582_v1 = vld [vmem:[%s5757_s16 + $0x60] ss:$8 sps:$4 sm:$0xff]   ;;  %v4584_v3 = vld [vmem:[%s5757_s16 + $0x74] ss:$8 sps:$4 sm:$0xff]  }
  0xc6   : >> { %v4580_v0 = vld [vmem:[%s5757_s16 + $0x464] ss:$8 sps:$4 sm:$0xff]   ;;  %v4583_v2 = vld [vmem:[%s5757_s16 + $0x460] ss:$8 sps:$4 sm:$0xff]   ;;  %v4586_v4 = vld [vmem:[%s5757_s16 + $0x474] ss:$8 sps:$4 sm:$0xff]  }
  0xc7   : >> { %1625 = vmatpush1.bf16.msra.mxu1 %v4558_v49  ;;  %v4588_v5 = vld [vmem:[%s5757_s16 + $0x70] ss:$8 sps:$4 sm:$0xff]   ;;  %v4590_v7 = vld [vmem:[%s5757_s16 + $0x84] ss:$8 sps:$4 sm:$0xff]   ;;  %v4594_v9 = vld [vmem:[%s5757_s16 + $0x80] ss:$8 sps:$4 sm:$0xff]  }
  0xc8   : >> { %2627 = vmatpush1.bf16.msra.mxu0 %v4559_v50  ;;  %1626 = vmatprep.subr.bf16.mxu1 %v4560_v51  ;;  %v4589_v6 = vld [vmem:[%s5757_s16 + $0x470] ss:$8 sps:$4 sm:$0xff]   ;;  %v4592_v8 = vld [vmem:[%s5757_s16 + $0x484] ss:$8 sps:$4 sm:$0xff]   ;;  %v4595_v10 = vld [vmem:[%s5757_s16 + $0x480] ss:$8 sps:$4 sm:$0xff]  }
  0xc9   : >> { %2628 = vmatprep.subr.bf16.mxu0 %v4562_v52  ;;  %v4596_v11 = vld [vmem:[%s5757_s16 + $0x94] ss:$8 sps:$4 sm:$0xff]   ;;  %v4600_v13 = vld [vmem:[%s5757_s16 + $0x90] ss:$8 sps:$4 sm:$0xff]   ;;  %v4602_v15 = vld [vmem:[%s5757_s16 + $0xa4] ss:$8 sps:$4 sm:$0xff]  }
  0xca   : >> { %v4598_v12 = vld [vmem:[%s5757_s16 + $0x494] ss:$8 sps:$4 sm:$0xff]   ;;  %v4601_v14 = vld [vmem:[%s5757_s16 + $0x490] ss:$8 sps:$4 sm:$0xff]   ;;  %v4604_v16 = vld [vmem:[%s5757_s16 + $0x4a4] ss:$8 sps:$4 sm:$0xff]  }
  0xcb   : >> { %1627 = vmatpush1.bf16.msra.mxu1 %v4564_v53  ;;  %s4425_s24 = sshll.u32 %s5052_s21, 4  ;;  %v4606_v17 = vld [vmem:[%s5757_s16 + $0xa0] ss:$8 sps:$4 sm:$0xff]   ;;  %v4608_v19 = vld [vmem:[%s5757_s16 + $0xb4] ss:$8 sps:$4 sm:$0xff]   ;;  %s4426_s26 = sshll.u32 %s5052_s21, 2 }
  0xcc   : >> { %2629 = vmatpush1.bf16.msra.mxu0 %v4565_v54  ;;  %1628 = vmatprep.subr.bf16.mxu1 %v4566_v55  ;;  %v4607_v18 = vld [vmem:[%s5757_s16 + $0x4a0] ss:$8 sps:$4 sm:$0xff]   ;;  %v4610_v20 = vld [vmem:[%s5757_s16 + $0x4b4] ss:$8 sps:$4 sm:$0xff]   ;;  %s5814_s25 = scalar_lea.vmem %s5748_s14, %s4425_s24  ;;  %v4612_v22 = vld [vmem:[%s5757_s16 + $0xb0] ss:$8 sps:$4 sm:$0xff]   ;;  %s3673_s29 = scalar_lea.vmem %s5759_s11, %s4426_s26 [#allocation3] }
  0xcd   : >> { %2630 = vmatprep.subr.bf16.mxu0 %v4568_v56  ;;  %v1425_v21 = vld [vmem:[%s5814_s25 + $0x8] sm:$0xf]  ;;  %v4613_v24 = vld [vmem:[%s5757_s16 + $0x4b0] ss:$8 sps:$4 sm:$0xff]   ;;  %v4614_v26 = vld [vmem:[%s5757_s16 + $0xc4] ss:$8 sps:$4 sm:$0xff]  }
  0xce   : >> { %v1427_v23 = vpack.c.bf16 %v1425_v21, %v1425_v21  ;;  %v4085_v25 = vld [vmem:[%s5814_s25 + $0x18] sm:$0x1e]  ;;  %v4616_v27 = vld [vmem:[%s5757_s16 + $0x4c4] ss:$8 sps:$4 sm:$0xff]   ;;  %v4618_v29 = vld [vmem:[%s5757_s16 + $0xc0] ss:$8 sps:$4 sm:$0xff]  }
  0xcf   : >> { %1629 = vmatpush1.bf16.msra.mxu1 %v4570_v57  ;;  %v2412_v28 = vpack.c.bf16 %v4085_v25, %v4085_v25  ;;  %v4619_v32 = vld [vmem:[%s5757_s16 + $0x4c0] ss:$8 sps:$4 sm:$0xff]   ;;  %v4084_v33 = vld [vmem:[%s5814_s25 + $0x10] sm:$0x1e]  ;;  %v4626_v43 = vld [vmem:[%s5757_s16 + $0xe4] ss:$8 sps:$4 sm:$0xff]  }
  0xd0   : >> { %2631 = vmatpush1.bf16.msra.mxu0 %v4571_v58  ;;  %1630 = vmatprep.subr.bf16.mxu1 %v4572_v59  ;;  %v4620_v34 = vld [vmem:[%s5757_s16 + $0xd4] ss:$8 sps:$4 sm:$0xff]   ;;  %v4624_v39 = vld [vmem:[%s5757_s16 + $0xd0] ss:$8 sps:$4 sm:$0xff]   ;;  %v2411_v41 = vpack.c.bf16 %v4084_v33, %v4084_v33  ;;  %v4628_v44 = vld [vmem:[%s5757_s16 + $0x4e4] ss:$8 sps:$4 sm:$0xff]  }
  0xd1   : >> { %2632 = vmatprep.subr.bf16.mxu0 %v4574_v60  ;;  %1652 = vmatprep.mubr.bf16.mxu1 %v1427_v23  ;;  %v2454_v30 = vshrl.u32 %v2412_v28, 16  ;;  %v2456_v31 = vshll.u32 %v2412_v28, 16  ;;  %v4622_v35 = vld [vmem:[%s5757_s16 + $0x4d4] ss:$8 sps:$4 sm:$0xff]   ;;  %v4625_v42 = vld [vmem:[%s5757_s16 + $0x4d0] ss:$8 sps:$4 sm:$0xff]  }
  0xd2   : >> { %v4630_v45 = vld [vmem:[%s5757_s16 + $0xe0] ss:$8 sps:$4 sm:$0xff]   ;;  %v2449_v46 = vshll.u32 %v2411_v41, 16  ;;  %v4632_v48 = vld [vmem:[%s5757_s16 + $0xf4] ss:$8 sps:$4 sm:$0xff]   ;;  %v2447_v52 = vshrl.u32 %v2411_v41, 16 }
  0xd3   : >> { %1631 = vmatpush1.bf16.msra.mxu1 %v4576_v61  ;;  %v2458_v36 = vrot.slane %v2456_v31, 1  ;;  %v4631_v47 = vld [vmem:[%s5757_s16 + $0x4e0] ss:$8 sps:$4 sm:$0xff]   ;;  %v4634_v49 = vld [vmem:[%s5757_s16 + $0x4f4] ss:$8 sps:$4 sm:$0xff]   ;;  %s1420_s21 = sadd.s32 1, %s5052_s21  }
  0xd4   : >> { %2633 = vmatpush1.bf16.msra.mxu0 %v4577_v62  ;;  %1632 = vmatprep.subr.bf16.mxu1 %v4578_v63  ;;  %v4636_v50 = vld [vmem:[%s5757_s16 + $0xf0] ss:$8 sps:$4 sm:$0xff]   ;;  %v2451_v53 = vrot.slane %v2449_v46, 1  ;;  %v1424_v54 = vld [vmem:[%s5814_s25] sm:$0xf]  ;;  %p1417_p2 = scmp.ge.s32.totalorder %s1420_s21, 4  }
  0xd5   : >> { %2634 = vmatprep.subr.bf16.mxu0 %v4580_v0  ;;  %v2459_v40 = vor.u32 %v2458_v36, %v2454_v30  ;;  %v4637_v51 = vld [vmem:[%s5757_s16 + $0x4f0] ss:$8 sps:$4 sm:$0xff]   ;;  %v4640_v55 = vld [vmem:[%s5757_s16 + $0x104] ss:$8 sps:$4 sm:$0xff]   ;;  %v4638_v57 = vld [vmem:[%s5757_s16 + $0x100] ss:$8 sps:$4 sm:$0xff]   ;;  %v1426_v58 = vpack.c.bf16 %v1424_v54, %v1424_v54 }
  0xd6   : >> { %v4643_v56 = vld [vmem:[%s5757_s16 + $0x504] ss:$8 sps:$4 sm:$0xff]   ;;  %v2452_v59 = vor.u32 %v2451_v53, %v2447_v52  ;;  %v4641_v60 = vld [vmem:[%s5757_s16 + $0x500] ss:$8 sps:$4 sm:$0xff]   ;;  %v4646_v61 = vld [vmem:[%s5757_s16 + $0x114] ss:$8 sps:$4 sm:$0xff]  }
  0xd7   : >> { %1633 = vmatpush1.bf16.msra.mxu1 %v4582_v1  ;;  %2654 = vmatprep.mubr.bf16.mxu0 %v2459_v40  ;;  %v4649_v62 = vld [vmem:[%s5757_s16 + $0x514] ss:$8 sps:$4 sm:$0xff]   ;;  %v4644_v63 = vld [vmem:[%s5757_s16 + $0x110] ss:$8 sps:$4 sm:$0xff]   ;;  %v4652_v1 = vld [vmem:[%s5757_s16 + $0x124] ss:$8 sps:$4 sm:$0xff]  }
  0xd8   : >> { %2635 = vmatpush1.bf16.msra.mxu0 %v4583_v2  ;;  %1634 = vmatprep.subr.bf16.mxu1 %v4584_v3  ;;  %v4647_v0 = vld [vmem:[%s5757_s16 + $0x510] ss:$8 sps:$4 sm:$0xff]   ;;  %v4655_v2 = vld [vmem:[%s5757_s16 + $0x524] ss:$8 sps:$4 sm:$0xff]   ;;  %v4650_v3 = vld [vmem:[%s5757_s16 + $0x120] ss:$8 sps:$4 sm:$0xff]  }
  0xd9   : >> { %2636 = vmatprep.subr.bf16.mxu0 %v4586_v4  ;;  %v4653_v4 = vld [vmem:[%s5757_s16 + $0x520] ss:$8 sps:$4 sm:$0xff]   ;;  %v4685_v25 = vld [vmem:[%s5757_s16 + $0x574] ss:$8 sps:$4 sm:$0xff]   ;;  %v4683_v31 = vld [vmem:[%s5757_s16 + $0x570] ss:$8 sps:$4 sm:$0xff]  }
  0xda   : >> { %v4677_v21 = vld [vmem:[%s5757_s16 + $0x560] ss:$8 sps:$4 sm:$0xff]   ;;  %v4694_v40 = vld [vmem:[%s5757_s16 + $0x194] ss:$8 sps:$4 sm:$0xff]   ;;  %v4712_v52 = vld [vmem:[%s5757_s16 + $0x1c4] ss:$8 sps:$4 sm:$0xff]  }
  0xdb   : >> { %1635 = vmatpush1.bf16.msra.mxu1 %v4588_v5  ;;  %v4658_v5 = vld [vmem:[%s5757_s16 + $0x134] ss:$8 sps:$4 sm:$0xff]   ;;  %v4686_v36 = vld [vmem:[%s5757_s16 + $0x180] ss:$8 sps:$4 sm:$0xff]   ;;  %v4715_v53 = vld [vmem:[%s5757_s16 + $0x5c4] ss:$8 sps:$4 sm:$0xff]  }
  0xdc   : >> { %2637 = vmatpush1.bf16.msra.mxu0 %v4589_v6  ;;  %1636 = vmatprep.subr.bf16.mxu1 %v4590_v7  ;;  %v4661_v6 = vld [vmem:[%s5757_s16 + $0x534] ss:$8 sps:$4 sm:$0xff]   ;;  %v4656_v7 = vld [vmem:[%s5757_s16 + $0x130] ss:$8 sps:$4 sm:$0xff]   ;;  %v4698_v46 = vld [vmem:[%s5757_s16 + $0x1a0] ss:$8 sps:$4 sm:$0xff]  }
  0xdd   : >> { %2638 = vmatprep.subr.bf16.mxu0 %v4592_v8  ;;  %v4659_v8 = vld [vmem:[%s5757_s16 + $0x530] ss:$8 sps:$4 sm:$0xff]   ;;  %v4697_v41 = vld [vmem:[%s5757_s16 + $0x594] ss:$8 sps:$4 sm:$0xff]   ;;  %v4710_v54 = vld [vmem:[%s5757_s16 + $0x1c0] ss:$8 sps:$4 sm:$0xff]  }
  0xdf   : >> { %1637 = vmatpush1.bf16.msra.mxu1 %v4594_v9  ;;  %v4664_v9 = vld [vmem:[%s5757_s16 + $0x144] ss:$8 sps:$4 sm:$0xff]  }
  0xe0   : >> { %2639 = vmatpush1.bf16.msra.mxu0 %v4595_v10  ;;  %1638 = vmatprep.subr.bf16.mxu1 %v4596_v11  ;;  %v4667_v10 = vld [vmem:[%s5757_s16 + $0x544] ss:$8 sps:$4 sm:$0xff]   ;;  %v4662_v11 = vld [vmem:[%s5757_s16 + $0x140] ss:$8 sps:$4 sm:$0xff]  }
  0xe1   : >> { %2640 = vmatprep.subr.bf16.mxu0 %v4598_v12  ;;  %v4665_v12 = vld [vmem:[%s5757_s16 + $0x540] ss:$8 sps:$4 sm:$0xff]  }
  0xe3   : >> { %1639 = vmatpush1.bf16.msra.mxu1 %v4600_v13  ;;  %v4670_v13 = vld [vmem:[%s5757_s16 + $0x154] ss:$8 sps:$4 sm:$0xff]  }
  0xe4   : >> { %2641 = vmatpush1.bf16.msra.mxu0 %v4601_v14  ;;  %1640 = vmatprep.subr.bf16.mxu1 %v4602_v15  ;;  %v4673_v14 = vld [vmem:[%s5757_s16 + $0x554] ss:$8 sps:$4 sm:$0xff]   ;;  %v4668_v15 = vld [vmem:[%s5757_s16 + $0x150] ss:$8 sps:$4 sm:$0xff]  }
  0xe5   : >> { %2642 = vmatprep.subr.bf16.mxu0 %v4604_v16  ;;  %v4671_v16 = vld [vmem:[%s5757_s16 + $0x550] ss:$8 sps:$4 sm:$0xff]  }
  0xe7   : >> { %1641 = vmatpush1.bf16.msra.mxu1 %v4606_v17  ;;  %v4676_v17 = vld [vmem:[%s5757_s16 + $0x164] ss:$8 sps:$4 sm:$0xff]  }
  0xe8   : >> { %2643 = vmatpush1.bf16.msra.mxu0 %v4607_v18  ;;  %1642 = vmatprep.subr.bf16.mxu1 %v4608_v19  ;;  %v4679_v18 = vld [vmem:[%s5757_s16 + $0x564] ss:$8 sps:$4 sm:$0xff]   ;;  %v4674_v19 = vld [vmem:[%s5757_s16 + $0x160] ss:$8 sps:$4 sm:$0xff]  }
  0xe9   : >> { %2644 = vmatprep.subr.bf16.mxu0 %v4610_v20  ;;  %v1664_v20 = vld [vmem:[%s5814_s25 + $0x8] sm:$0x1e] }
  0xea   : >> { %v1666_v23 = vpack.c.bf16 %v1664_v20, %v1664_v20  ;;  %v4743_v20 = vld [vmem:[%s5757_s16 + $0x610] ss:$8 sps:$4 sm:$0xff]  }
  0xeb   : >> { %1643 = vmatpush1.bf16.msra.mxu1 %v4612_v22  ;;  %v4682_v22 = vld [vmem:[%s5757_s16 + $0x174] ss:$8 sps:$4 sm:$0xff]  }
  0xec   : >> { %2645 = vmatpush1.bf16.msra.mxu0 %v4613_v24  ;;  %1644 = vmatprep.subr.bf16.mxu1 %v4614_v26  ;;  %v4151_v24 = vld [vmem:[%s5814_s25 + $0x18] sm:$0x3c]  ;;  %v1710_v28 = vshll.u32 %v1666_v23, 16 }
  0xed   : >> { %2646 = vmatprep.subr.bf16.mxu0 %v4616_v27  ;;  %v2668_v26 = vpack.c.bf16 %v4151_v24, %v4151_v24  ;;  %v1708_v27 = vshrl.u32 %v1666_v23, 16  ;;  %v4751_v23 = vld [vmem:[%s5757_s16 + $0x624] ss:$8 sps:$4 sm:$0xff]  }
  0xee   : >> { %v1712_v33 = vrot.slane %v1710_v28, 1  ;;  %v4746_v28 = vld [vmem:[%s5757_s16 + $0x220] ss:$8 sps:$4 sm:$0xff]  }
  0xef   : >> { %1645 = vmatpush1.bf16.msra.mxu1 %v4618_v29  ;;  %v4680_v29 = vld [vmem:[%s5757_s16 + $0x170] ss:$8 sps:$4 sm:$0xff]   ;;  %v2705_v30 = vrot.slane %v2668_v26, 1 }
  0xf0   : >> { %2647 = vmatpush1.bf16.msra.mxu0 %v4619_v32  ;;  %1646 = vmatprep.subr.bf16.mxu1 %v4620_v34  ;;  %v4688_v32 = vld [vmem:[%s5757_s16 + $0x184] ss:$8 sps:$4 sm:$0xff]  }
  0xf1   : >> { %2648 = vmatprep.subr.bf16.mxu0 %v4622_v35  ;;  %v4691_v34 = vld [vmem:[%s5757_s16 + $0x584] ss:$8 sps:$4 sm:$0xff]   ;;  %v1713_v35 = vor.u32 %v1712_v33, %v1708_v27  ;;  %v4755_v33 = vld [vmem:[%s5757_s16 + $0x630] ss:$8 sps:$4 sm:$0xff]  }
  0xf3   : >> { %1647 = vmatpush1.bf16.msra.mxu1 %v4624_v39  ;;  %v4689_v39 = vld [vmem:[%s5757_s16 + $0x580] ss:$8 sps:$4 sm:$0xff]  }
  0xf4   : >> { %2649 = vmatpush1.bf16.msra.mxu0 %v4625_v42  ;;  %1648 = vmatprep.subr.bf16.mxu1 %v4626_v43  ;;  %v4692_v42 = vld [vmem:[%s5757_s16 + $0x190] ss:$8 sps:$4 sm:$0xff]  }
  0xf5   : >> { %2650 = vmatprep.subr.bf16.mxu0 %v4628_v44  ;;  %v4695_v43 = vld [vmem:[%s5757_s16 + $0x590] ss:$8 sps:$4 sm:$0xff]   ;;  %v4700_v44 = vld [vmem:[%s5757_s16 + $0x1a4] ss:$8 sps:$4 sm:$0xff]  }
  0xf7   : >> { %1649 = vmatpush1.bf16.msra.mxu1 %v4630_v45  ;;  %v4703_v45 = vld [vmem:[%s5757_s16 + $0x5a4] ss:$8 sps:$4 sm:$0xff]  }
  0xf8   : >> { %2651 = vmatpush1.bf16.msra.mxu0 %v4631_v47  ;;  %1650 = vmatprep.subr.bf16.mxu1 %v4632_v48  ;;  %v4701_v47 = vld [vmem:[%s5757_s16 + $0x5a0] ss:$8 sps:$4 sm:$0xff]   ;;  %v4706_v48 = vld [vmem:[%s5757_s16 + $0x1b4] ss:$8 sps:$4 sm:$0xff]  }
  0xf9   : >> { %2652 = vmatprep.subr.bf16.mxu0 %v4634_v49  ;;  %v4709_v49 = vld [vmem:[%s5757_s16 + $0x5b4] ss:$8 sps:$4 sm:$0xff]  }
  0xfb   : >> { %1651 = vmatpush1.bf16.msra.mxu1 %v4636_v50  ;;  %v4704_v50 = vld [vmem:[%s5757_s16 + $0x1b0] ss:$8 sps:$4 sm:$0xff]  }
  0xfc   : >> { %2653 = vmatpush1.bf16.msra.mxu0 %v4637_v51  ;;  %1876 = vmatprep.subr.bf16.mxu1 %v4640_v55  ;;  %v4707_v51 = vld [vmem:[%s5757_s16 + $0x5b0] ss:$8 sps:$4 sm:$0xff]   ;;  %v4713_v55 = vld [vmem:[%s5757_s16 + $0x5c0] ss:$8 sps:$4 sm:$0xff]  }
  0xfd   : >> { %2868 = vmatprep.subr.bf16.mxu0 %v4643_v56  ;;  %v1663_v56 = vld [vmem:[%s5814_s25] sm:$0x1e] }
  0xfe   : >> { %1653 = vmatmul.mubr.bf16.vlgmr.msra.gmra.mrb[0].mxu1 %v1426_v58  ;;  %v4721_v58 = vld [vmem:[%s5757_s16 + $0x5d4] ss:$8 sps:$4 sm:$0xff]  }
  0xff   : >> { %2655 = vmatmul.mubr.bf16.vlgmr.msra.gmra.mrb[0].mxu0 %v2452_v59  ;;  %1877 = vmatpush1.bf16.msra.mxu1 %v4638_v57  ;;  %v4718_v57 = vld [vmem:[%s5757_s16 + $0x1d4] ss:$8 sps:$4 sm:$0xff]   ;;  %v1665_v59 = vpack.c.bf16 %v1663_v56, %v1663_v56 }
 0x100   : >> { %2869 = vmatpush1.bf16.msra.mxu0 %v4641_v60  ;;  %1878 = vmatprep.subr.bf16.mxu1 %v4646_v61  ;;  %v4716_v60 = vld [vmem:[%s5757_s16 + $0x1d0] ss:$8 sps:$4 sm:$0xff]   ;;  %v4790_v56 = vld [vmem:[%s5757_s16 + $0x294] ss:$8 sps:$4 sm:$0xff]  }
 0x101   : >> { %2870 = vmatprep.subr.bf16.mxu0 %v4649_v62  ;;  %2900 = vmatprep.mubr.bf16.mxu0 %v2705_v30  ;;  %v4719_v61 = vld [vmem:[%s5757_s16 + $0x5d0] ss:$8 sps:$4 sm:$0xff]   ;;  %v4724_v62 = vld [vmem:[%s5757_s16 + $0x1e4] ss:$8 sps:$4 sm:$0xff]   ;;  %v4754_v30 = vld [vmem:[%s5757_s16 + $0x234] ss:$8 sps:$4 sm:$0xff]  }
 0x102   : >> { %1908 = vmatprep.mubr.bf16.mxu1 %v1713_v35  ;;  %v4763_v35 = vld [vmem:[%s5757_s16 + $0x644] ss:$8 sps:$4 sm:$0xff]  }
 0x103   : >> { %1879 = vmatpush1.bf16.msra.mxu1 %v4644_v63  ;;  %v4727_v63 = vld [vmem:[%s5757_s16 + $0x5e4] ss:$8 sps:$4 sm:$0xff]  }
 0x104   : >> { %2871 = vmatpush1.bf16.msra.mxu0 %v4647_v0  ;;  %1880 = vmatprep.subr.bf16.mxu1 %v4652_v1  ;;  %v4722_v0 = vld [vmem:[%s5757_s16 + $0x1e0] ss:$8 sps:$4 sm:$0xff]   ;;  %v1703_v1 = vshll.u32 %v1665_v59, 16 }
 0x105   : >> { %2872 = vmatprep.subr.bf16.mxu0 %v4655_v2  ;;  %v4725_v2 = vld [vmem:[%s5757_s16 + $0x5e0] ss:$8 sps:$4 sm:$0xff]  }
 0x107   : >> { %1881 = vmatpush1.bf16.msra.mxu1 %v4650_v3  ;;  %v4150_v3 = vld [vmem:[%s5814_s25 + $0x10] sm:$0x3c] }
 0x108   : >> { %2873 = vmatpush1.bf16.msra.mxu0 %v4653_v4  ;;  %1882 = vmatprep.subr.bf16.mxu1 %v4658_v5  ;;  %v4730_v4 = vld [vmem:[%s5757_s16 + $0x1f4] ss:$8 sps:$4 sm:$0xff]  }
 0x109   : >> { %2874 = vmatprep.subr.bf16.mxu0 %v4661_v6  ;;  %v4733_v5 = vld [vmem:[%s5757_s16 + $0x5f4] ss:$8 sps:$4 sm:$0xff]   ;;  %v1701_v6 = vshrl.u32 %v1665_v59, 16  ;;  %v4791_v59 = vld [vmem:[%s5757_s16 + $0x690] ss:$8 sps:$4 sm:$0xff]  }
 0x10b   : >> { %1883 = vmatpush1.bf16.msra.mxu1 %v4656_v7  ;;  %v1705_v7 = vrot.slane %v1703_v1, 1  ;;  %v4805_v1 = vld [vmem:[%s5757_s16 + $0x6b4] ss:$8 sps:$4 sm:$0xff]  }
 0x10c   : >> { %2875 = vmatpush1.bf16.msra.mxu0 %v4659_v8  ;;  %1884 = vmatprep.subr.bf16.mxu1 %v4664_v9  ;;  %v2667_v8 = vpack.c.bf16 %v4150_v3, %v4150_v3  ;;  %v4728_v9 = vld [vmem:[%s5757_s16 + $0x1f0] ss:$8 sps:$4 sm:$0xff]  }
 0x10d   : >> { %2876 = vmatprep.subr.bf16.mxu0 %v4667_v10  ;;  %v4731_v10 = vld [vmem:[%s5757_s16 + $0x5f0] ss:$8 sps:$4 sm:$0xff]  }
 0x10e   : >> { %v4803_v3 = vld [vmem:[%s5757_s16 + $0x6b0] ss:$8 sps:$4 sm:$0xff]  }
 0x10f   : >> { %1885 = vmatpush1.bf16.msra.mxu1 %v4662_v11  ;;  %v4736_v11 = vld [vmem:[%s5757_s16 + $0x204] ss:$8 sps:$4 sm:$0xff]  }
 0x110   : >> { %2877 = vmatpush1.bf16.msra.mxu0 %v4665_v12  ;;  %1886 = vmatprep.subr.bf16.mxu1 %v4670_v13  ;;  %v4739_v12 = vld [vmem:[%s5757_s16 + $0x604] ss:$8 sps:$4 sm:$0xff]   ;;  %v1706_v13 = vor.u32 %v1705_v7, %v1701_v6  ;;  %v4806_v6 = vld [vmem:[%s5757_s16 + $0x2c0] ss:$8 sps:$4 sm:$0xff]  }
 0x111   : >> { %2878 = vmatprep.subr.bf16.mxu0 %v4673_v14  ;;  %v2704_v14 = vrot.slane %v2667_v8, 1  ;;  %v4809_v7 = vld [vmem:[%s5757_s16 + $0x6c0] ss:$8 sps:$4 sm:$0xff]   ;;  %v4814_v8 = vld [vmem:[%s5757_s16 + $0x2d4] ss:$8 sps:$4 sm:$0xff]  }
 0x113   : >> { %1887 = vmatpush1.bf16.msra.mxu1 %v4668_v15  ;;  %v4734_v15 = vld [vmem:[%s5757_s16 + $0x200] ss:$8 sps:$4 sm:$0xff]  }
 0x114   : >> { %2879 = vmatpush1.bf16.msra.mxu0 %v4671_v16  ;;  %1888 = vmatprep.subr.bf16.mxu1 %v4676_v17  ;;  %v4737_v16 = vld [vmem:[%s5757_s16 + $0x600] ss:$8 sps:$4 sm:$0xff]   ;;  %v4742_v17 = vld [vmem:[%s5757_s16 + $0x214] ss:$8 sps:$4 sm:$0xff]  }
 0x115   : >> { %2880 = vmatprep.subr.bf16.mxu0 %v4679_v18  ;;  %v4745_v18 = vld [vmem:[%s5757_s16 + $0x614] ss:$8 sps:$4 sm:$0xff]  }
 0x117   : >> { %1889 = vmatpush1.bf16.msra.mxu1 %v4674_v19  ;;  %v4740_v19 = vld [vmem:[%s5757_s16 + $0x210] ss:$8 sps:$4 sm:$0xff]  }
 0x118   : >> { %2881 = vmatpush1.bf16.msra.mxu0 %v4677_v21  ;;  %1890 = vmatprep.subr.bf16.mxu1 %v4682_v22  ;;  %v1920_v21 = vld [vmem:[%s5814_s25 + $0x8] sm:$0x3c] }
 0x119   : >> { %2882 = vmatprep.subr.bf16.mxu0 %v4685_v25  ;;  %v4748_v22 = vld [vmem:[%s5757_s16 + $0x224] ss:$8 sps:$4 sm:$0xff]   ;;  %v1922_v24 = vpack.c.bf16 %v1920_v21, %v1920_v21  ;;  %v4218_v25 = vld [vmem:[%s5814_s25 + $0x28] sm:$0xf] }
 0x11a   : >> { %v2918_v27 = vpack.c.bf16 %v4218_v25, %v4218_v25  ;;  %v4832_v25 = vld [vmem:[%s5757_s16 + $0x304] ss:$8 sps:$4 sm:$0xff]  }
 0x11b   : >> { %1891 = vmatpush1.bf16.msra.mxu1 %v4680_v29  ;;  %v1959_v26 = vrot.slane %v1922_v24, 1  ;;  %v4749_v29 = vld [vmem:[%s5757_s16 + $0x620] ss:$8 sps:$4 sm:$0xff]  }
 0x11c   : >> { %2883 = vmatpush1.bf16.msra.mxu0 %v4683_v31  ;;  %1892 = vmatprep.subr.bf16.mxu1 %v4688_v32  ;;  %v4757_v31 = vld [vmem:[%s5757_s16 + $0x634] ss:$8 sps:$4 sm:$0xff]   ;;  %v4752_v32 = vld [vmem:[%s5757_s16 + $0x230] ss:$8 sps:$4 sm:$0xff]  }
 0x11d   : >> { %2884 = vmatprep.subr.bf16.mxu0 %v4691_v34  ;;  %v4760_v34 = vld [vmem:[%s5757_s16 + $0x244] ss:$8 sps:$4 sm:$0xff]  }
 0x11f   : >> { %1893 = vmatpush1.bf16.msra.mxu1 %v4686_v36  ;;  %v4758_v36 = vld [vmem:[%s5757_s16 + $0x240] ss:$8 sps:$4 sm:$0xff]  }
 0x120   : >> { %2885 = vmatpush1.bf16.msra.mxu0 %v4689_v39  ;;  %1894 = vmatprep.subr.bf16.mxu1 %v4694_v40  ;;  %v4761_v39 = vld [vmem:[%s5757_s16 + $0x640] ss:$8 sps:$4 sm:$0xff]   ;;  %v4766_v40 = vld [vmem:[%s5757_s16 + $0x254] ss:$8 sps:$4 sm:$0xff]  }
 0x121   : >> { %2886 = vmatprep.subr.bf16.mxu0 %v4697_v41  ;;  %v4769_v41 = vld [vmem:[%s5757_s16 + $0x654] ss:$8 sps:$4 sm:$0xff]  }
 0x123   : >> { %1895 = vmatpush1.bf16.msra.mxu1 %v4692_v42  ;;  %v4764_v42 = vld [vmem:[%s5757_s16 + $0x250] ss:$8 sps:$4 sm:$0xff]  }
 0x124   : >> { %2887 = vmatpush1.bf16.msra.mxu0 %v4695_v43  ;;  %1896 = vmatprep.subr.bf16.mxu1 %v4700_v44  ;;  %v4767_v43 = vld [vmem:[%s5757_s16 + $0x650] ss:$8 sps:$4 sm:$0xff]   ;;  %v4772_v44 = vld [vmem:[%s5757_s16 + $0x264] ss:$8 sps:$4 sm:$0xff]  }
 0x125   : >> { %2888 = vmatprep.subr.bf16.mxu0 %v4703_v45  ;;  %v4775_v45 = vld [vmem:[%s5757_s16 + $0x664] ss:$8 sps:$4 sm:$0xff]  }
 0x127   : >> { %1897 = vmatpush1.bf16.msra.mxu1 %v4698_v46  ;;  %v4770_v46 = vld [vmem:[%s5757_s16 + $0x260] ss:$8 sps:$4 sm:$0xff]  }
 0x128   : >> { %2889 = vmatpush1.bf16.msra.mxu0 %v4701_v47  ;;  %1898 = vmatprep.subr.bf16.mxu1 %v4706_v48  ;;  %v4773_v47 = vld [vmem:[%s5757_s16 + $0x660] ss:$8 sps:$4 sm:$0xff]   ;;  %v4778_v48 = vld [vmem:[%s5757_s16 + $0x274] ss:$8 sps:$4 sm:$0xff]  }
 0x129   : >> { %2890 = vmatprep.subr.bf16.mxu0 %v4709_v49  ;;  %v4781_v49 = vld [vmem:[%s5757_s16 + $0x674] ss:$8 sps:$4 sm:$0xff]  }
 0x12b   : >> { %1899 = vmatpush1.bf16.msra.mxu1 %v4704_v50  ;;  %v4776_v50 = vld [vmem:[%s5757_s16 + $0x270] ss:$8 sps:$4 sm:$0xff]  }
 0x12c   : >> { %2891 = vmatpush1.bf16.msra.mxu0 %v4707_v51  ;;  %1900 = vmatprep.subr.bf16.mxu1 %v4712_v52  ;;  %v4779_v51 = vld [vmem:[%s5757_s16 + $0x670] ss:$8 sps:$4 sm:$0xff]   ;;  %v4784_v52 = vld [vmem:[%s5757_s16 + $0x284] ss:$8 sps:$4 sm:$0xff]  }
 0x12d   : >> { %2892 = vmatprep.subr.bf16.mxu0 %v4715_v53  ;;  %v4787_v53 = vld [vmem:[%s5757_s16 + $0x684] ss:$8 sps:$4 sm:$0xff]  }
 0x12f   : >> { %1901 = vmatpush1.bf16.msra.mxu1 %v4710_v54  ;;  %v4782_v54 = vld [vmem:[%s5757_s16 + $0x280] ss:$8 sps:$4 sm:$0xff]  }
 0x130   : >> { %2893 = vmatpush1.bf16.msra.mxu0 %v4713_v55  ;;  %1902 = vmatprep.subr.bf16.mxu1 %v4718_v57  ;;  %v4785_v55 = vld [vmem:[%s5757_s16 + $0x680] ss:$8 sps:$4 sm:$0xff]   ;;  %v4793_v57 = vld [vmem:[%s5757_s16 + $0x694] ss:$8 sps:$4 sm:$0xff]  }
 0x131   : >> { %2894 = vmatprep.subr.bf16.mxu0 %v4721_v58  ;;  %v4788_v58 = vld [vmem:[%s5757_s16 + $0x290] ss:$8 sps:$4 sm:$0xff]  }
 0x133   : >> { %1903 = vmatpush1.bf16.msra.mxu1 %v4716_v60  ;;  %v4796_v60 = vld [vmem:[%s5757_s16 + $0x2a4] ss:$8 sps:$4 sm:$0xff]  }
 0x134   : >> { %2895 = vmatpush1.bf16.msra.mxu0 %v4719_v61  ;;  %1904 = vmatprep.subr.bf16.mxu1 %v4724_v62  ;;  %v4799_v61 = vld [vmem:[%s5757_s16 + $0x6a4] ss:$8 sps:$4 sm:$0xff]   ;;  %v4794_v62 = vld [vmem:[%s5757_s16 + $0x2a0] ss:$8 sps:$4 sm:$0xff]  }
 0x135   : >> { %2896 = vmatprep.subr.bf16.mxu0 %v4727_v63  ;;  %v4797_v63 = vld [vmem:[%s5757_s16 + $0x6a0] ss:$8 sps:$4 sm:$0xff]  }
 0x137   : >> { %1905 = vmatpush1.bf16.msra.mxu1 %v4722_v0  ;;  %v4802_v0 = vld [vmem:[%s5757_s16 + $0x2b4] ss:$8 sps:$4 sm:$0xff]  }
 0x138   : >> { %2897 = vmatpush1.bf16.msra.mxu0 %v4725_v2  ;;  %1906 = vmatprep.subr.bf16.mxu1 %v4730_v4  ;;  %v4800_v2 = vld [vmem:[%s5757_s16 + $0x2b0] ss:$8 sps:$4 sm:$0xff]   ;;  %v4808_v4 = vld [vmem:[%s5757_s16 + $0x2c4] ss:$8 sps:$4 sm:$0xff]  }
 0x139   : >> { %2898 = vmatprep.subr.bf16.mxu0 %v4733_v5  ;;  %v4811_v5 = vld [vmem:[%s5757_s16 + $0x6c4] ss:$8 sps:$4 sm:$0xff]  }
 0x13b   : >> { %1907 = vmatpush1.bf16.msra.mxu1 %v4728_v9  ;;  %v4817_v9 = vld [vmem:[%s5757_s16 + $0x6d4] ss:$8 sps:$4 sm:$0xff]  }
 0x13c   : >> { %2899 = vmatpush1.bf16.msra.mxu0 %v4731_v10  ;;  %2122 = vmatprep.subr.bf16.mxu1 %v4736_v11  ;;  %v4284_v10 = vld [vmem:[%s5814_s25 + $0x28] sm:$0x1e]  ;;  %v4812_v11 = vld [vmem:[%s5757_s16 + $0x2d0] ss:$8 sps:$4 sm:$0xff]  }
 0x13d   : >> { %3112 = vmatprep.subr.bf16.mxu0 %v4739_v12  ;;  %v4815_v12 = vld [vmem:[%s5757_s16 + $0x6d0] ss:$8 sps:$4 sm:$0xff]  }
 0x13e   : >> { %1909 = vmatmul.mubr.bf16.vlgmr.msra.gmra.mrb[0].mxu1 %v1706_v13  ;;  %v4820_v13 = vld [vmem:[%s5757_s16 + $0x2e4] ss:$8 sps:$4 sm:$0xff]  }
 0x13f   : >> { %2901 = vmatmul.mubr.bf16.vlgmr.msra.gmra.mrb[0].mxu0 %v2704_v14  ;;  %2123 = vmatpush1.bf16.msra.mxu1 %v4734_v15  ;;  %v4823_v14 = vld [vmem:[%s5757_s16 + $0x6e4] ss:$8 sps:$4 sm:$0xff]   ;;  %v3158_v15 = vpack.c.bf16 %v4284_v10, %v4284_v10  ;;  %v4887_v10 = vld [vmem:[%s5757_s16 + $0x790] ss:$8 sps:$4 sm:$0xff]  }
 0x140   : >> { %3113 = vmatpush1.bf16.msra.mxu0 %v4737_v16  ;;  %2124 = vmatprep.subr.bf16.mxu1 %v4742_v17  ;;  %v4818_v16 = vld [vmem:[%s5757_s16 + $0x2e0] ss:$8 sps:$4 sm:$0xff]  }
 0x141   : >> { %3114 = vmatprep.subr.bf16.mxu0 %v4745_v18  ;;  %2154 = vmatprep.mubr.bf16.mxu1 %v1959_v26  ;;  %v4821_v17 = vld [vmem:[%s5757_s16 + $0x6e0] ss:$8 sps:$4 sm:$0xff]   ;;  %v4826_v18 = vld [vmem:[%s5757_s16 + $0x2f4] ss:$8 sps:$4 sm:$0xff]   ;;  %v3202_v21 = vshll.u32 %v3158_v15, 16 }
 0x142   : >> { %3144 = vmatprep.mubr.bf16.mxu0 %v2918_v27  ;;  %v4217_v26 = vld [vmem:[%s5814_s25 + $0x20] sm:$0xf]  ;;  %v4835_v27 = vld [vmem:[%s5757_s16 + $0x704] ss:$8 sps:$4 sm:$0xff]  }
 0x143   : >> { %2125 = vmatpush1.bf16.msra.mxu1 %v4740_v19  ;;  %v1919_v19 = vld [vmem:[%s5814_s25] sm:$0x3c] }
 0x144   : >> { %3115 = vmatpush1.bf16.msra.mxu0 %v4743_v20  ;;  %2126 = vmatprep.subr.bf16.mxu1 %v4748_v22  ;;  %v4829_v20 = vld [vmem:[%s5757_s16 + $0x6f4] ss:$8 sps:$4 sm:$0xff]   ;;  %v4824_v22 = vld [vmem:[%s5757_s16 + $0x2f0] ss:$8 sps:$4 sm:$0xff]   ;;  %v1921_v24 = vpack.c.bf16 %v1919_v19, %v1919_v19  ;;  %v4904_v19 = vld [vmem:[%s5757_s16 + $0x3c4] ss:$8 sps:$4 sm:$0xff]  }
 0x145   : >> { %3116 = vmatprep.subr.bf16.mxu0 %v4751_v23  ;;  %v4827_v23 = vld [vmem:[%s5757_s16 + $0x6f0] ss:$8 sps:$4 sm:$0xff]  }
 0x147   : >> { %2127 = vmatpush1.bf16.msra.mxu1 %v4746_v28  ;;  %v3200_v28 = vshrl.u32 %v3158_v15, 16  ;;  %v4898_v15 = vld [vmem:[%s5757_s16 + $0x3b4] ss:$8 sps:$4 sm:$0xff]  }
 0x148   : >> { %3117 = vmatpush1.bf16.msra.mxu0 %v4749_v29  ;;  %2128 = vmatprep.subr.bf16.mxu1 %v4754_v30  ;;  %v3204_v29 = vrot.slane %v3202_v21, 1  ;;  %v4830_v30 = vld [vmem:[%s5757_s16 + $0x300] ss:$8 sps:$4 sm:$0xff]  }
 0x149   : >> { %3118 = vmatprep.subr.bf16.mxu0 %v4757_v31  ;;  %v1958_v31 = vrot.slane %v1921_v24, 1  ;;  %v4902_v21 = vld [vmem:[%s5757_s16 + $0x3c0] ss:$8 sps:$4 sm:$0xff]   ;;  %v4910_v24 = vld [vmem:[%s5757_s16 + $0x3d4] ss:$8 sps:$4 sm:$0xff]  }
 0x14b   : >> { %2129 = vmatpush1.bf16.msra.mxu1 %v4752_v32  ;;  %v2917_v32 = vpack.c.bf16 %v4217_v26, %v4217_v26 }
 0x14c   : >> { %3119 = vmatpush1.bf16.msra.mxu0 %v4755_v33  ;;  %2130 = vmatprep.subr.bf16.mxu1 %v4760_v34  ;;  %v4019_v33 = vld [vmem:[%s5814_s25 + $0x18] sm:$0xf]  ;;  %v4833_v34 = vld [vmem:[%s5757_s16 + $0x700] ss:$8 sps:$4 sm:$0xff]  }
 0x14d   : >> { %3120 = vmatprep.subr.bf16.mxu0 %v4763_v35  ;;  %v4838_v35 = vld [vmem:[%s5757_s16 + $0x314] ss:$8 sps:$4 sm:$0xff]  }
 0x14f   : >> { %2131 = vmatpush1.bf16.msra.mxu1 %v4758_v36  ;;  %v4841_v36 = vld [vmem:[%s5757_s16 + $0x714] ss:$8 sps:$4 sm:$0xff]  }
 0x150   : >> { %3121 = vmatpush1.bf16.msra.mxu0 %v4761_v39  ;;  %2132 = vmatprep.subr.bf16.mxu1 %v4766_v40  ;;  %v2172_v39 = vpack.c.bf16 %v4019_v33, %v4019_v33  ;;  %v3205_v40 = vor.u32 %v3204_v29, %v3200_v28  ;;  %v4911_v28 = vld [vmem:[%s5757_s16 + $0x7d0] ss:$8 sps:$4 sm:$0xff]   ;;  %v4916_v29 = vld [vmem:[%s5757_s16 + $0x3e4] ss:$8 sps:$4 sm:$0xff]   ;;  %v4917_v33 = vld [vmem:[%s5757_s16 + $0x7e0] ss:$8 sps:$4 sm:$0xff]  }
 0x151   : >> { %3122 = vmatprep.subr.bf16.mxu0 %v4769_v41  ;;  %v4836_v41 = vld [vmem:[%s5757_s16 + $0x310] ss:$8 sps:$4 sm:$0xff]  }
 0x153   : >> { %2133 = vmatpush1.bf16.msra.mxu1 %v4764_v42  ;;  %v4839_v42 = vld [vmem:[%s5757_s16 + $0x710] ss:$8 sps:$4 sm:$0xff]  }
 0x154   : >> { %3123 = vmatpush1.bf16.msra.mxu0 %v4767_v43  ;;  %2134 = vmatprep.subr.bf16.mxu1 %v4772_v44  ;;  %v4844_v43 = vld [vmem:[%s5757_s16 + $0x324] ss:$8 sps:$4 sm:$0xff]  }
 0x155   : >> { %3124 = vmatprep.subr.bf16.mxu0 %v4775_v45  ;;  %v4847_v44 = vld [vmem:[%s5757_s16 + $0x724] ss:$8 sps:$4 sm:$0xff]   ;;  %v4842_v45 = vld [vmem:[%s5757_s16 + $0x320] ss:$8 sps:$4 sm:$0xff]  }
 0x157   : >> { %2135 = vmatpush1.bf16.msra.mxu1 %v4770_v46  ;;  %v4845_v46 = vld [vmem:[%s5757_s16 + $0x720] ss:$8 sps:$4 sm:$0xff]  }
 0x158   : >> { %3125 = vmatpush1.bf16.msra.mxu0 %v4773_v47  ;;  %2136 = vmatprep.subr.bf16.mxu1 %v4778_v48  ;;  %v4850_v47 = vld [vmem:[%s5757_s16 + $0x334] ss:$8 sps:$4 sm:$0xff]  }
 0x159   : >> { %3126 = vmatprep.subr.bf16.mxu0 %v4781_v49  ;;  %v4853_v48 = vld [vmem:[%s5757_s16 + $0x734] ss:$8 sps:$4 sm:$0xff]   ;;  %v4848_v49 = vld [vmem:[%s5757_s16 + $0x330] ss:$8 sps:$4 sm:$0xff]  }
 0x15b   : >> { %2137 = vmatpush1.bf16.msra.mxu1 %v4776_v50  ;;  %v4851_v50 = vld [vmem:[%s5757_s16 + $0x730] ss:$8 sps:$4 sm:$0xff]  }
 0x15c   : >> { %3127 = vmatpush1.bf16.msra.mxu0 %v4779_v51  ;;  %2138 = vmatprep.subr.bf16.mxu1 %v4784_v52  ;;  %v4856_v51 = vld [vmem:[%s5757_s16 + $0x344] ss:$8 sps:$4 sm:$0xff]  }
 0x15d   : >> { %3128 = vmatprep.subr.bf16.mxu0 %v4787_v53  ;;  %v4859_v52 = vld [vmem:[%s5757_s16 + $0x744] ss:$8 sps:$4 sm:$0xff]   ;;  %v4854_v53 = vld [vmem:[%s5757_s16 + $0x340] ss:$8 sps:$4 sm:$0xff]  }
 0x15f   : >> { %2139 = vmatpush1.bf16.msra.mxu1 %v4782_v54  ;;  %v4857_v54 = vld [vmem:[%s5757_s16 + $0x740] ss:$8 sps:$4 sm:$0xff]  }
 0x160   : >> { %3129 = vmatpush1.bf16.msra.mxu0 %v4785_v55  ;;  %2140 = vmatprep.subr.bf16.mxu1 %v4790_v56  ;;  %v4862_v55 = vld [vmem:[%s5757_s16 + $0x354] ss:$8 sps:$4 sm:$0xff]  }
 0x161   : >> { %3130 = vmatprep.subr.bf16.mxu0 %v4793_v57  ;;  %v4865_v56 = vld [vmem:[%s5757_s16 + $0x754] ss:$8 sps:$4 sm:$0xff]   ;;  %v4860_v57 = vld [vmem:[%s5757_s16 + $0x350] ss:$8 sps:$4 sm:$0xff]  }
 0x163   : >> { %2141 = vmatpush1.bf16.msra.mxu1 %v4788_v58  ;;  %v4863_v58 = vld [vmem:[%s5757_s16 + $0x750] ss:$8 sps:$4 sm:$0xff]  }
 0x164   : >> { %3131 = vmatpush1.bf16.msra.mxu0 %v4791_v59  ;;  %2142 = vmatprep.subr.bf16.mxu1 %v4796_v60  ;;  %v4868_v59 = vld [vmem:[%s5757_s16 + $0x364] ss:$8 sps:$4 sm:$0xff]  }
 0x165   : >> { %3132 = vmatprep.subr.bf16.mxu0 %v4799_v61  ;;  %v4871_v60 = vld [vmem:[%s5757_s16 + $0x764] ss:$8 sps:$4 sm:$0xff]   ;;  %v4866_v61 = vld [vmem:[%s5757_s16 + $0x360] ss:$8 sps:$4 sm:$0xff]  }
 0x167   : >> { %2143 = vmatpush1.bf16.msra.mxu1 %v4794_v62  ;;  %v4869_v62 = vld [vmem:[%s5757_s16 + $0x760] ss:$8 sps:$4 sm:$0xff]  }
 0x168   : >> { %3133 = vmatpush1.bf16.msra.mxu0 %v4797_v63  ;;  %2144 = vmatprep.subr.bf16.mxu1 %v4802_v0  ;;  %v4874_v63 = vld [vmem:[%s5757_s16 + $0x374] ss:$8 sps:$4 sm:$0xff]  }
 0x169   : >> { %3134 = vmatprep.subr.bf16.mxu0 %v4805_v1  ;;  %v4877_v0 = vld [vmem:[%s5757_s16 + $0x774] ss:$8 sps:$4 sm:$0xff]   ;;  %v4872_v1 = vld [vmem:[%s5757_s16 + $0x370] ss:$8 sps:$4 sm:$0xff]  }
 0x16b   : >> { %2145 = vmatpush1.bf16.msra.mxu1 %v4800_v2  ;;  %v4875_v2 = vld [vmem:[%s5757_s16 + $0x770] ss:$8 sps:$4 sm:$0xff]  }
 0x16c   : >> { %3135 = vmatpush1.bf16.msra.mxu0 %v4803_v3  ;;  %2146 = vmatprep.subr.bf16.mxu1 %v4808_v4  ;;  %v4880_v3 = vld [vmem:[%s5757_s16 + $0x384] ss:$8 sps:$4 sm:$0xff]  }
 0x16d   : >> { %3136 = vmatprep.subr.bf16.mxu0 %v4811_v5  ;;  %v4883_v4 = vld [vmem:[%s5757_s16 + $0x784] ss:$8 sps:$4 sm:$0xff]   ;;  %v4878_v5 = vld [vmem:[%s5757_s16 + $0x380] ss:$8 sps:$4 sm:$0xff]  }
 0x16f   : >> { %2147 = vmatpush1.bf16.msra.mxu1 %v4806_v6  ;;  %v4881_v6 = vld [vmem:[%s5757_s16 + $0x780] ss:$8 sps:$4 sm:$0xff]  }
 0x170   : >> { %3137 = vmatpush1.bf16.msra.mxu0 %v4809_v7  ;;  %2148 = vmatprep.subr.bf16.mxu1 %v4814_v8  ;;  %v4886_v7 = vld [vmem:[%s5757_s16 + $0x394] ss:$8 sps:$4 sm:$0xff]  }
 0x171   : >> { %3138 = vmatprep.subr.bf16.mxu0 %v4817_v9  ;;  %v4889_v8 = vld [vmem:[%s5757_s16 + $0x794] ss:$8 sps:$4 sm:$0xff]   ;;  %v4884_v9 = vld [vmem:[%s5757_s16 + $0x390] ss:$8 sps:$4 sm:$0xff]  }
 0x173   : >> { %2149 = vmatpush1.bf16.msra.mxu1 %v4812_v11  ;;  %v4892_v11 = vld [vmem:[%s5757_s16 + $0x3a4] ss:$8 sps:$4 sm:$0xff]  }
 0x174   : >> { %3139 = vmatpush1.bf16.msra.mxu0 %v4815_v12  ;;  %2150 = vmatprep.subr.bf16.mxu1 %v4820_v13  ;;  %v4895_v12 = vld [vmem:[%s5757_s16 + $0x7a4] ss:$8 sps:$4 sm:$0xff]   ;;  %v4890_v13 = vld [vmem:[%s5757_s16 + $0x3a0] ss:$8 sps:$4 sm:$0xff]  }
 0x175   : >> { %3140 = vmatprep.subr.bf16.mxu0 %v4823_v14  ;;  %v4893_v14 = vld [vmem:[%s5757_s16 + $0x7a0] ss:$8 sps:$4 sm:$0xff]  }
 0x177   : >> { %2151 = vmatpush1.bf16.msra.mxu1 %v4818_v16  ;;  %v4901_v16 = vld [vmem:[%s5757_s16 + $0x7b4] ss:$8 sps:$4 sm:$0xff]  }
 0x178   : >> { %3141 = vmatpush1.bf16.msra.mxu0 %v4821_v17  ;;  %2152 = vmatprep.subr.bf16.mxu1 %v4826_v18  ;;  %v4896_v17 = vld [vmem:[%s5757_s16 + $0x3b0] ss:$8 sps:$4 sm:$0xff]  }
 0x179   : >> { %3142 = vmatprep.subr.bf16.mxu0 %v4829_v20  ;;  %v4899_v18 = vld [vmem:[%s5757_s16 + $0x7b0] ss:$8 sps:$4 sm:$0xff]   ;;  %v4907_v20 = vld [vmem:[%s5757_s16 + $0x7c4] ss:$8 sps:$4 sm:$0xff]  }
 0x17b   : >> { %2153 = vmatpush1.bf16.msra.mxu1 %v4824_v22  ;;  %v4905_v22 = vld [vmem:[%s5757_s16 + $0x7c0] ss:$8 sps:$4 sm:$0xff]  }
 0x17c   : >> { %3143 = vmatpush1.bf16.msra.mxu0 %v4827_v23  ;;  %2366 = vmatprep.subr.bf16.mxu1 %v4832_v25  ;;  %v4283_v23 = vld [vmem:[%s5814_s25 + $0x20] sm:$0x1e]  ;;  %v4913_v25 = vld [vmem:[%s5757_s16 + $0x7d4] ss:$8 sps:$4 sm:$0xff]  }
 0x17d   : >> { %3368 = vmatprep.subr.bf16.mxu0 %v4835_v27  ;;  %v3157_v26 = vpack.c.bf16 %v4283_v23, %v4283_v23  ;;  %v4908_v27 = vld [vmem:[%s5757_s16 + $0x3d0] ss:$8 sps:$4 sm:$0xff]  }
 0x17e   : >> { %2155 = vmatmul.mubr.bf16.vlgmr.msra.gmra.mrb[0].mxu1 %v1958_v31 }
 0x17f   : >> { %3145 = vmatmul.mubr.bf16.vlgmr.msra.gmra.mrb[0].mxu0 %v2917_v32  ;;  %2367 = vmatpush1.bf16.msra.mxu1 %v4830_v30  ;;  %v4919_v30 = vld [vmem:[%s5757_s16 + $0x7e4] ss:$8 sps:$4 sm:$0xff]   ;;  %v3195_v31 = vshll.u32 %v3157_v26, 16  ;;  %v4914_v32 = vld [vmem:[%s5757_s16 + $0x3e0] ss:$8 sps:$4 sm:$0xff]  }
 0x180   : >> { %3369 = vmatpush1.bf16.msra.mxu0 %v4833_v34  ;;  %2368 = vmatprep.subr.bf16.mxu1 %v4838_v35  ;;  %v4922_v34 = vld [vmem:[%s5757_s16 + $0x3f4] ss:$8 sps:$4 sm:$0xff]  }
 0x181   : >> { %3370 = vmatprep.subr.bf16.mxu0 %v4841_v36  ;;  %2398 = vmatprep.mubr.bf16.mxu1 %v2172_v39  ;;  %v4925_v35 = vld [vmem:[%s5757_s16 + $0x7f4] ss:$8 sps:$4 sm:$0xff]   ;;  %v4350_v36 = vld [vmem:[%s5814_s25 + $0x28] sm:$0x3c]  ;;  %v3193_v39 = vshrl.u32 %v3157_v26, 16 }
 0x182   : >> { %3400 = vmatprep.mubr.bf16.mxu0 %v3205_v40  ;;  %v3197_v40 = vrot.slane %v3195_v31, 1 }
 0x183   : >> { %2369 = vmatpush1.bf16.msra.mxu1 %v4836_v41  ;;  %v4920_v41 = vld [vmem:[%s5757_s16 + $0x3f0] ss:$8 sps:$4 sm:$0xff]  }
 0x184   : >> { %3371 = vmatpush1.bf16.msra.mxu0 %v4839_v42  ;;  %2370 = vmatprep.subr.bf16.mxu1 %v4844_v43  ;;  %v4923_v42 = vld [vmem:[%s5757_s16 + $0x7f0] ss:$8 sps:$4 sm:$0xff]  }
 0x185   : >> { %3372 = vmatprep.subr.bf16.mxu0 %v4847_v44  ;;  %v4018_v43 = vld [vmem:[%s5814_s25 + $0x10] sm:$0xf]  ;;  %v3414_v44 = vpack.c.bf16 %v4350_v36, %v4350_v36 }
 0x187   : >> { %2371 = vmatpush1.bf16.msra.mxu1 %v4842_v45  ;;  %v4928_v45 = vld [vmem:[%s5757_s16 + $0x804] ss:$8 sps:$4 sm:$0xff]  }
 0x188   : >> { %3373 = vmatpush1.bf16.msra.mxu0 %v4845_v46  ;;  %2372 = vmatprep.subr.bf16.mxu1 %v4850_v47  ;;  %v2171_v46 = vpack.c.bf16 %v4018_v43, %v4018_v43  ;;  %v3198_v47 = vor.u32 %v3197_v40, %v3193_v39 }
 0x189   : >> { %3374 = vmatprep.subr.bf16.mxu0 %v4853_v48  ;;  %v4926_v48 = vld [vmem:[%s5757_s16 + $0x800] ss:$8 sps:$4 sm:$0xff]  }
 0x18b   : >> { %2373 = vmatpush1.bf16.msra.mxu1 %v4848_v49  ;;  %v3451_v49 = vrot.slane %v3414_v44, 1 }
 0x18c   : >> { %3375 = vmatpush1.bf16.msra.mxu0 %v4851_v50  ;;  %2374 = vmatprep.subr.bf16.mxu1 %v4856_v51  ;;  %v4931_v50 = vld [vmem:[%s5757_s16 + $0x814] ss:$8 sps:$4 sm:$0xff]   ;;  %v4929_v51 = vld [vmem:[%s5757_s16 + $0x810] ss:$8 sps:$4 sm:$0xff]  }
 0x18d   : >> { %3376 = vmatprep.subr.bf16.mxu0 %v4859_v52  ;;  %v4934_v52 = vld [vmem:[%s5757_s16 + $0x824] ss:$8 sps:$4 sm:$0xff]  }
 0x18f   : >> { %2375 = vmatpush1.bf16.msra.mxu1 %v4854_v53  ;;  %v4932_v53 = vld [vmem:[%s5757_s16 + $0x820] ss:$8 sps:$4 sm:$0xff]  }
 0x190   : >> { %3377 = vmatpush1.bf16.msra.mxu0 %v4857_v54  ;;  %2376 = vmatprep.subr.bf16.mxu1 %v4862_v55  ;;  %v4937_v54 = vld [vmem:[%s5757_s16 + $0x834] ss:$8 sps:$4 sm:$0xff]   ;;  %v4935_v55 = vld [vmem:[%s5757_s16 + $0x830] ss:$8 sps:$4 sm:$0xff]  }
 0x191   : >> { %3378 = vmatprep.subr.bf16.mxu0 %v4865_v56  ;;  %v4940_v56 = vld [vmem:[%s5757_s16 + $0x844] ss:$8 sps:$4 sm:$0xff]  }
 0x193   : >> { %2377 = vmatpush1.bf16.msra.mxu1 %v4860_v57  ;;  %v4938_v57 = vld [vmem:[%s5757_s16 + $0x840] ss:$8 sps:$4 sm:$0xff]  }
 0x194   : >> { %3379 = vmatpush1.bf16.msra.mxu0 %v4863_v58  ;;  %2378 = vmatprep.subr.bf16.mxu1 %v4868_v59  ;;  %v4943_v58 = vld [vmem:[%s5757_s16 + $0x854] ss:$8 sps:$4 sm:$0xff]   ;;  %v4941_v59 = vld [vmem:[%s5757_s16 + $0x850] ss:$8 sps:$4 sm:$0xff]  }
 0x195   : >> { %3380 = vmatprep.subr.bf16.mxu0 %v4871_v60  ;;  %v4946_v60 = vld [vmem:[%s5757_s16 + $0x864] ss:$8 sps:$4 sm:$0xff]  }
 0x197   : >> { %2379 = vmatpush1.bf16.msra.mxu1 %v4866_v61  ;;  %v4944_v61 = vld [vmem:[%s5757_s16 + $0x860] ss:$8 sps:$4 sm:$0xff]  }
 0x198   : >> { %3381 = vmatpush1.bf16.msra.mxu0 %v4869_v62  ;;  %2380 = vmatprep.subr.bf16.mxu1 %v4874_v63  ;;  %v4949_v62 = vld [vmem:[%s5757_s16 + $0x874] ss:$8 sps:$4 sm:$0xff]   ;;  %v4947_v63 = vld [vmem:[%s5757_s16 + $0x870] ss:$8 sps:$4 sm:$0xff]  }
 0x199   : >> { %3382 = vmatprep.subr.bf16.mxu0 %v4877_v0  ;;  %v4952_v0 = vld [vmem:[%s5757_s16 + $0x884] ss:$8 sps:$4 sm:$0xff]  }
 0x19b   : >> { %2381 = vmatpush1.bf16.msra.mxu1 %v4872_v1  ;;  %v4950_v1 = vld [vmem:[%s5757_s16 + $0x880] ss:$8 sps:$4 sm:$0xff]  }
 0x19c   : >> { %3383 = vmatpush1.bf16.msra.mxu0 %v4875_v2  ;;  %2382 = vmatprep.subr.bf16.mxu1 %v4880_v3  ;;  %v4955_v2 = vld [vmem:[%s5757_s16 + $0x894] ss:$8 sps:$4 sm:$0xff]   ;;  %v4953_v3 = vld [vmem:[%s5757_s16 + $0x890] ss:$8 sps:$4 sm:$0xff]  }
 0x19d   : >> { %3384 = vmatprep.subr.bf16.mxu0 %v4883_v4  ;;  %v4958_v4 = vld [vmem:[%s5757_s16 + $0x8a4] ss:$8 sps:$4 sm:$0xff]  }
 0x19f   : >> { %2383 = vmatpush1.bf16.msra.mxu1 %v4878_v5  ;;  %v4956_v5 = vld [vmem:[%s5757_s16 + $0x8a0] ss:$8 sps:$4 sm:$0xff]  }
 0x1a0   : >> { %3385 = vmatpush1.bf16.msra.mxu0 %v4881_v6  ;;  %2384 = vmatprep.subr.bf16.mxu1 %v4886_v7  ;;  %v4961_v6 = vld [vmem:[%s5757_s16 + $0x8b4] ss:$8 sps:$4 sm:$0xff]   ;;  %v4959_v7 = vld [vmem:[%s5757_s16 + $0x8b0] ss:$8 sps:$4 sm:$0xff]  }
 0x1a1   : >> { %3386 = vmatprep.subr.bf16.mxu0 %v4889_v8  ;;  %v4964_v8 = vld [vmem:[%s5757_s16 + $0x8c4] ss:$8 sps:$4 sm:$0xff]  }
 0x1a3   : >> { %2385 = vmatpush1.bf16.msra.mxu1 %v4884_v9  ;;  %v4962_v9 = vld [vmem:[%s5757_s16 + $0x8c0] ss:$8 sps:$4 sm:$0xff]  }
 0x1a4   : >> { %3387 = vmatpush1.bf16.msra.mxu0 %v4887_v10  ;;  %2386 = vmatprep.subr.bf16.mxu1 %v4892_v11  ;;  %v4967_v10 = vld [vmem:[%s5757_s16 + $0x8d4] ss:$8 sps:$4 sm:$0xff]   ;;  %v4965_v11 = vld [vmem:[%s5757_s16 + $0x8d0] ss:$8 sps:$4 sm:$0xff]  }
 0x1a5   : >> { %3388 = vmatprep.subr.bf16.mxu0 %v4895_v12  ;;  %v4970_v12 = vld [vmem:[%s5757_s16 + $0x8e4] ss:$8 sps:$4 sm:$0xff]  }
 0x1a7   : >> { %2387 = vmatpush1.bf16.msra.mxu1 %v4890_v13  ;;  %v4968_v13 = vld [vmem:[%s5757_s16 + $0x8e0] ss:$8 sps:$4 sm:$0xff]  }
 0x1a8   : >> { %3389 = vmatpush1.bf16.msra.mxu0 %v4893_v14  ;;  %2388 = vmatprep.subr.bf16.mxu1 %v4898_v15  ;;  %v4349_v14 = vld [vmem:[%s5814_s25 + $0x20] sm:$0x3c]  ;;  %v4973_v15 = vld [vmem:[%s5757_s16 + $0x8f4] ss:$8 sps:$4 sm:$0xff]  }
 0x1a9   : >> { %3390 = vmatprep.subr.bf16.mxu0 %v4901_v16  ;;  %v3413_v16 = vpack.c.bf16 %v4349_v14, %v4349_v14 }
 0x1ab   : >> { %2389 = vmatpush1.bf16.msra.mxu1 %v4896_v17  ;;  %v4971_v17 = vld [vmem:[%s5757_s16 + $0x8f0] ss:$8 sps:$4 sm:$0xff]  }
 0x1ac   : >> { %3391 = vmatpush1.bf16.msra.mxu0 %v4899_v18  ;;  %2390 = vmatprep.subr.bf16.mxu1 %v4904_v19  ;;  %v3450_v18 = vrot.slane %v3413_v16, 1 }
 0x1ad   : >> { %3392 = vmatprep.subr.bf16.mxu0 %v4907_v20 }
 0x1af   : >> { %2391 = vmatpush1.bf16.msra.mxu1 %v4902_v21 }
 0x1b0   : >> { %3393 = vmatpush1.bf16.msra.mxu0 %v4905_v22  ;;  %2392 = vmatprep.subr.bf16.mxu1 %v4910_v24 }
 0x1b1   : >> { %3394 = vmatprep.subr.bf16.mxu0 %v4913_v25 }
 0x1b3   : >> { %2393 = vmatpush1.bf16.msra.mxu1 %v4908_v27 }
 0x1b4   : >> { %3395 = vmatpush1.bf16.msra.mxu0 %v4911_v28  ;;  %2394 = vmatprep.subr.bf16.mxu1 %v4916_v29 }
 0x1b5   : >> { %3396 = vmatprep.subr.bf16.mxu0 %v4919_v30 }
 0x1b7   : >> { %2395 = vmatpush1.bf16.msra.mxu1 %v4914_v32 }
 0x1b8   : >> { %3397 = vmatpush1.bf16.msra.mxu0 %v4917_v33  ;;  %2396 = vmatprep.subr.bf16.mxu1 %v4922_v34 }
 0x1b9   : >> { %3398 = vmatprep.subr.bf16.mxu0 %v4925_v35 }
 0x1bb   : >> { %2397 = vmatpush1.bf16.msra.mxu1 %v4920_v41 }
 0x1bc   : >> { %3399 = vmatpush1.bf16.msra.mxu0 %v4923_v42 }
 0x1bd   : >> { %3614 = vmatprep.subr.bf16.mxu0 %v4928_v45 }
 0x1be   : >> { %2399 = vmatmul.mubr.bf16.vlgmr.msra.gmra.mrb[0].mxu1 %v2171_v46 }
 0x1bf   : >> { %3401 = vmatmul.mubr.bf16.vlgmr.msra.gmra.mrb[0].mxu0 %v3198_v47 }
 0x1c0   : >> { %3615 = vmatpush1.bf16.msra.mxu0 %v4926_v48  ;;  %3646 = vmatprep.mubr.bf16.mxu0 %v3451_v49 }
 0x1c1   : >> { %3616 = vmatprep.subr.bf16.mxu0 %v4931_v50 }
 0x1c4   : >> { %3617 = vmatpush1.bf16.msra.mxu0 %v4929_v51 }
 0x1c5   : >> { %3618 = vmatprep.subr.bf16.mxu0 %v4934_v52 }
 0x1c8   : >> { %3619 = vmatpush1.bf16.msra.mxu0 %v4932_v53 }
 0x1c9   : >> { %3620 = vmatprep.subr.bf16.mxu0 %v4937_v54 }
 0x1cc   : >> { %3621 = vmatpush1.bf16.msra.mxu0 %v4935_v55 }
 0x1cd   : >> { %3622 = vmatprep.subr.bf16.mxu0 %v4940_v56 }
 0x1d0   : >> { %3623 = vmatpush1.bf16.msra.mxu0 %v4938_v57 }
 0x1d1   : >> { %3624 = vmatprep.subr.bf16.mxu0 %v4943_v58 }
 0x1d4   : >> { %3625 = vmatpush1.bf16.msra.mxu0 %v4941_v59 }
 0x1d5   : >> { %3626 = vmatprep.subr.bf16.mxu0 %v4946_v60 }
 0x1d8   : >> { %3627 = vmatpush1.bf16.msra.mxu0 %v4944_v61 }
 0x1d9   : >> { %3628 = vmatprep.subr.bf16.mxu0 %v4949_v62 }
 0x1dc   : >> { %3629 = vmatpush1.bf16.msra.mxu0 %v4947_v63 }
 0x1dd   : >> { %3630 = vmatprep.subr.bf16.mxu0 %v4952_v0 }
 0x1e0   : >> { %3631 = vmatpush1.bf16.msra.mxu0 %v4950_v1 }
 0x1e1   : >> { %3632 = vmatprep.subr.bf16.mxu0 %v4955_v2 }
 0x1e4   : >> { %3633 = vmatpush1.bf16.msra.mxu0 %v4953_v3 }
 0x1e5   : >> { %3634 = vmatprep.subr.bf16.mxu0 %v4958_v4 }
 0x1e8   : >> { %3635 = vmatpush1.bf16.msra.mxu0 %v4956_v5 }
 0x1e9   : >> { %3636 = vmatprep.subr.bf16.mxu0 %v4961_v6 }
 0x1ec   : >> { %3637 = vmatpush1.bf16.msra.mxu0 %v4959_v7 }
 0x1ed   : >> { %3638 = vmatprep.subr.bf16.mxu0 %v4964_v8 }
 0x1f0   : >> { %3639 = vmatpush1.bf16.msra.mxu0 %v4962_v9 }
 0x1f1   : >> { %3640 = vmatprep.subr.bf16.mxu0 %v4967_v10 }
 0x1f4   : >> { %3641 = vmatpush1.bf16.msra.mxu0 %v4965_v11 }
 0x1f5   : >> { %3642 = vmatprep.subr.bf16.mxu0 %v4970_v12 }
 0x1f8   : >> { %3643 = vmatpush1.bf16.msra.mxu0 %v4968_v13 }
 0x1f9   : >> { %3644 = vmatprep.subr.bf16.mxu0 %v4973_v15 }
 0x1fc   : >> { %3645 = vmatpush1.bf16.msra.mxu0 %v4971_v17 }
 0x1ff   : >> { %3647 = vmatmul.mubr.bf16.vlgmr.msra.gmra.mrb[0].mxu0 %v3450_v18 }
 0x291   : >> { %v2400_v19 = vpop.f32.mrb[0].mxu1 }
 0x292   : >> { %v2402_v20 = vpop.f32.mrb[1].mxu1  ;;  %v4427_v23 = vadd.f32 %v2400_v19, %v5753_v37 }
 0x293   : >> { %v2404_v21 = vpop.f32.mrb[2].mxu1  ;;  %v4429_v24 = vadd.f32 %v2402_v20, %v5755_v38 }
 0x294   : >> { %v2405_v22 = vpop.f32.mrb[3].mxu1 }
 0x2d2   : >> { %v3648_v25 = vpop.f32.mrb[0].mxu0 }
 0x2d3   : >> { %v4428_v26 = vadd.f32 %v4427_v23, %v3648_v25  ;;  %v3650_v27 = vpop.f32.mrb[1].mxu0 }
 0x2d4   : >> { %v4430_v28 = vadd.f32 %v4429_v24, %v3650_v27  ;;  %v3652_v29 = vpop.f32.mrb[2].mxu0  ;;  %1419 = sbr.rel (!%p1417_p2) target bundleno = 189 (0xbd), region = 171 }
 0x2d5   : >> { %v3657_v30 = vmax.f32 %v4428_v26, 0.0  ;;  %v3653_v31 = vpop.f32.mrb[3].mxu0 }
 0x2d6   : >> { %v3658_v32 = vmax.f32 %v4430_v28, 0.0 }
 0x2d8   : >> { %v4415_v33 = vpack.c.bf16 %v3658_v32, %v3657_v30 }
 0x2da   : >> { %4417 = vst.sshfl [vmem:[%s3673_s29] sm:$0x33 pattern:$0x76325410] %v4415_v33 }
 0x2db   : > { %3681 = sbr.rel (!%p5141_p9) target bundleno = 740 (0x2e4), region = 81  ;;  %s4420_s5 = sshll.u32 (%p5141_p9), %s5036_s17, 4 }
 0x2dc   : > { %s3684_s6 = sadd.s32 (%p5141_p9), %s4420_s5, %s5740_s28 }
 0x2dd   : > { %s4421_s7 = sshll.u32 (%p5141_p9), %s3684_s6, 1 }
 0x2de   : > { %s3686_s9 = scalar_lea.vmem (%p5141_p9), %s6124_s3, %s4421_s7 }
 0x2e1   : > { %v3702_v34 = vld [vmem:[%s5759_s11] sm:$0xf] (%p5141_p9)  ;;  %v3704_v35 = vld [vmem:[%s5759_s11 + $0x4] sm:$0xf] (%p5141_p9)  ;;  %v3706_v36 = vld [vmem:[%s5759_s11 + $0x8] sm:$0xf] (%p5141_p9) }
 0x2e2   : > { %v3708_v39 = vld [vmem:[%s5759_s11 + $0xc] sm:$0xf]  ;;  %3703 = vst [vmem:[%s3686_s9] sm:$0xf] %v3702_v34  ;;  %3705 = vst [vmem:[%s3686_s9 + $0x8] sm:$0xf] %v3704_v35 }
 0x2e3   : > { %3707 = vst [vmem:[%s3686_s9 + $0x10] sm:$0xf] %v3706_v36  ;;  %3709 = vst [vmem:[%s3686_s9 + $0x18] sm:$0xf] %v3708_v39 }
 0x2e4 PF: > { %s13_s20 = sadd.s32 1, %s5048_s20   ;;  %s6126_s12 = smov %s5020_s13 }
 0x2e5   : > { %p10_p3 = scmp.ge.s32.totalorder %s13_s20, 6   ;;  %s6127_s13 = smov %s5146_s4 }
 0x2e6   : > { %s6128_s14 = smov %s5028_s15  ;;  %s6129_s15 = smov %s5135_s27 }
 0x2e7   : > { %s6130_s16 = smov %s5040_s18  ;;  %s6131_s17 = smov %s5044_s19 }
 0x2e8   : > { %s6132_s18 = smov %s6135_s22  ;;  %s6133_s19 = smov %s6139_s23 }
 0x2e9   :  { %12 = sbr.rel (!%p10_p3) target bundleno = 5 (0x5), region = 182 }

// kernel: fcn_forward.13
= control target key start
LH: loop header
LB: loop body
LE: loop exit
PB: predicated region body
PF: predicated region fallthrough
CT: control target
= control target key end

     0   :  { %s586_s1 = inlined_call_operand.vmem [shape: bf16[128,128], index: 1, kind: input, shape index: {}]   ;;  %s587_s0 = inlined_call_operand.vmem [shape: bf16[128,128], index: 0, kind: input, shape index: {}]   ;;  %s588_s2 = inlined_call_operand.vmem [shape: f32[1,128], index: 2, kind: input, shape index: {}]   ;;  %s589_s3 = inlined_call_operand.vmem [shape: f32[128,128], index: 3, kind: output, shape index: {}]  }
   0x1   :  { %v451_v0 = vld [vmem:[%s586_s1] sm:$0xff]   ;;  %v452_v1 = vld [vmem:[%s586_s1 + $0x8] sm:$0xff]   ;;  %v453_v2 = vld [vmem:[%s586_s1 + $0x10] sm:$0xff]  }
   0x2   :  { %403 = vmatprep.subr.bf16.mxu0 %v451_v0  ;;  %435 = vmatprep.subr.bf16.mxu1 %v451_v0  ;;  %v454_v3 = vld [vmem:[%s586_s1 + $0x18] sm:$0xff]   ;;  %v459_v4 = vld [vmem:[%s587_s0] sm:$0xff]   ;;  %v456_v7 = vld [vmem:[%s586_s1 + $0x28] sm:$0xff]  }
   0x3   :  { %404 = vmatpush3.bf16.msra.mxu0 %v451_v0  ;;  %443 = vmatpush3.bf16.msra.mxu1 %v451_v0  ;;  %v460_v5 = vld [vmem:[%s587_s0 + $0x20] sm:$0xff]   ;;  %v457_v8 = vld [vmem:[%s586_s1 + $0x30] sm:$0xff]   ;;  %v458_v9 = vld [vmem:[%s586_s1 + $0x38] sm:$0xff]  }
   0x4   :  { %405 = vmatprep.subr.bf16.mxu0 %v452_v1  ;;  %436 = vmatprep.subr.bf16.mxu1 %v452_v1  ;;  %v455_v6 = vld [vmem:[%s586_s1 + $0x20] sm:$0xff]   ;;  %v461_v10 = vld [vmem:[%s587_s0 + $0x8] sm:$0xff]   ;;  %v463_v12 = vld [vmem:[%s587_s0 + $0x10] sm:$0xff]  }
   0x5   :  { %419 = vmatprep.mubr.bf16.mxu0 %v459_v4  ;;  %427 = vmatprep.mubr.bf16.mxu1 %v460_v5  ;;  %v462_v11 = vld [vmem:[%s587_s0 + $0x28] sm:$0xff]   ;;  %v464_v13 = vld [vmem:[%s587_s0 + $0x30] sm:$0xff]   ;;  %v465_v14 = vld [vmem:[%s587_s0 + $0x18] sm:$0xff]  }
   0x6   :  { %v466_v15 = vld [vmem:[%s587_s0 + $0x38] sm:$0xff]   ;;  %v386_v16 = vld [vmem:[%s588_s2] ss:$0 sm:$0xff] }
   0x7   :  { %406 = vmatpush3.bf16.msra.mxu0 %v452_v1  ;;  %444 = vmatpush3.bf16.msra.mxu1 %v452_v1 }
   0x8   :  { %407 = vmatprep.subr.bf16.mxu0 %v453_v2  ;;  %437 = vmatprep.subr.bf16.mxu1 %v453_v2 }
   0xb   :  { %408 = vmatpush3.bf16.msra.mxu0 %v453_v2  ;;  %445 = vmatpush3.bf16.msra.mxu1 %v453_v2 }
   0xc   :  { %409 = vmatprep.subr.bf16.mxu0 %v454_v3  ;;  %438 = vmatprep.subr.bf16.mxu1 %v454_v3 }
   0xf   :  { %410 = vmatpush3.bf16.msra.mxu0 %v454_v3  ;;  %446 = vmatpush3.bf16.msra.mxu1 %v454_v3 }
  0x10   :  { %411 = vmatprep.subr.bf16.mxu0 %v455_v6  ;;  %439 = vmatprep.subr.bf16.mxu1 %v455_v6 }
  0x13   :  { %412 = vmatpush3.bf16.msra.mxu0 %v455_v6  ;;  %447 = vmatpush3.bf16.msra.mxu1 %v455_v6 }
  0x14   :  { %413 = vmatprep.subr.bf16.mxu0 %v456_v7  ;;  %440 = vmatprep.subr.bf16.mxu1 %v456_v7 }
  0x17   :  { %414 = vmatpush3.bf16.msra.mxu0 %v456_v7  ;;  %448 = vmatpush3.bf16.msra.mxu1 %v456_v7 }
  0x18   :  { %415 = vmatprep.subr.bf16.mxu0 %v457_v8  ;;  %441 = vmatprep.subr.bf16.mxu1 %v457_v8 }
  0x1b   :  { %416 = vmatpush3.bf16.msra.mxu0 %v457_v8  ;;  %449 = vmatpush3.bf16.msra.mxu1 %v457_v8 }
  0x1c   :  { %417 = vmatprep.subr.bf16.mxu0 %v458_v9  ;;  %442 = vmatprep.subr.bf16.mxu1 %v458_v9 }
  0x1f   :  { %418 = vmatpush3.bf16.msra.mxu0 %v458_v9  ;;  %450 = vmatpush3.bf16.msra.mxu1 %v458_v9 }
  0x22   :  { %420 = vmatmul.mubr.bf16.vlgmr.msra.gmra.mrb[0].mxu0 %v461_v10  ;;  %428 = vmatmul.mubr.bf16.vlgmr.msra.gmra.mrb[0].mxu1 %v462_v11 }
  0x23   :  { %423 = vmatprep.mubr.bf16.mxu0 %v463_v12  ;;  %431 = vmatprep.mubr.bf16.mxu1 %v464_v13 }
  0x2a   :  { %424 = vmatmul.mubr.bf16.gmra.mrb[4].mxu0 %v465_v14  ;;  %432 = vmatmul.mubr.bf16.gmra.mrb[4].mxu1 %v466_v15 }
  0xf5   :  { %v421_v17 = vpop.f32.mrb[0].mxu0  ;;  %v429_v18 = vpop.f32.mrb[0].mxu1 }
  0xf6   :  { %v336_v19 = vadd.f32 %v421_v17, %v386_v16  ;;  %v344_v20 = vadd.f32 %v429_v18, %v386_v16  ;;  %v213_v21 = vpop.f32.mrb[1].mxu0  ;;  %v245_v22 = vpop.f32.mrb[1].mxu1 }
  0xf7   :  { %v334_v23 = vadd.f32 %v386_v16, %v213_v21  ;;  %v342_v24 = vadd.f32 %v386_v16, %v245_v22  ;;  %v422_v25 = vpop.f32.mrb[2].mxu0  ;;  %v430_v26 = vpop.f32.mrb[2].mxu1 }
  0xf8   :  { %352 = vst [vmem:[%s589_s3 + $0x10] sm:$0xff] %v336_v19  ;;  %360 = vst [vmem:[%s589_s3 + $0x50] sm:$0xff] %v344_v20  ;;  %v337_v27 = vadd.f32 %v422_v25, %v386_v16  ;;  %v345_v28 = vadd.f32 %v430_v26, %v386_v16  ;;  %v216_v29 = vpop.f32.mrb[3].mxu0  ;;  %v248_v30 = vpop.f32.mrb[3].mxu1 }
  0xf9   :  { %350 = vst [vmem:[%s589_s3] sm:$0xff] %v334_v23  ;;  %358 = vst [vmem:[%s589_s3 + $0x40] sm:$0xff] %v342_v24  ;;  %v335_v31 = vadd.f32 %v386_v16, %v216_v29  ;;  %v343_v32 = vadd.f32 %v386_v16, %v248_v30 }
  0xfa   :  { %353 = vst [vmem:[%s589_s3 + $0x18] sm:$0xff] %v337_v27  ;;  %361 = vst [vmem:[%s589_s3 + $0x58] sm:$0xff] %v345_v28 }
  0xfb   :  { %351 = vst [vmem:[%s589_s3 + $0x8] sm:$0xff] %v335_v31  ;;  %359 = vst [vmem:[%s589_s3 + $0x48] sm:$0xff] %v343_v32 }
  0xfd   :  { %v425_v33 = vpop.f32.mrb[4].mxu0  ;;  %v433_v34 = vpop.f32.mrb[4].mxu1 }
  0xfe   :  { %v340_v35 = vadd.f32 %v425_v33, %v386_v16  ;;  %v348_v36 = vadd.f32 %v433_v34, %v386_v16  ;;  %v229_v37 = vpop.f32.mrb[5].mxu0  ;;  %v261_v38 = vpop.f32.mrb[5].mxu1 }
  0xff   :  { %v338_v39 = vadd.f32 %v386_v16, %v229_v37  ;;  %v346_v40 = vadd.f32 %v386_v16, %v261_v38  ;;  %v426_v41 = vpop.f32.mrb[6].mxu0  ;;  %v434_v42 = vpop.f32.mrb[6].mxu1 }
 0x100   :  { %356 = vst [vmem:[%s589_s3 + $0x30] sm:$0xff] %v340_v35  ;;  %364 = vst [vmem:[%s589_s3 + $0x70] sm:$0xff] %v348_v36  ;;  %v341_v43 = vadd.f32 %v426_v41, %v386_v16  ;;  %v349_v44 = vadd.f32 %v434_v42, %v386_v16  ;;  %v232_v45 = vpop.f32.mrb[7].mxu0  ;;  %v264_v46 = vpop.f32.mrb[7].mxu1 }
 0x101   :  { %354 = vst [vmem:[%s589_s3 + $0x20] sm:$0xff] %v338_v39  ;;  %362 = vst [vmem:[%s589_s3 + $0x60] sm:$0xff] %v346_v40  ;;  %v339_v47 = vadd.f32 %v386_v16, %v232_v45  ;;  %v347_v48 = vadd.f32 %v386_v16, %v264_v46 }
 0x102   :  { %357 = vst [vmem:[%s589_s3 + $0x38] sm:$0xff] %v341_v43  ;;  %365 = vst [vmem:[%s589_s3 + $0x78] sm:$0xff] %v349_v44 }
 0x103   :  { %355 = vst [vmem:[%s589_s3 + $0x28] sm:$0xff] %v339_v47  ;;  %363 = vst [vmem:[%s589_s3 + $0x68] sm:$0xff] %v347_v48 }

// kernel: fcn_forward.12
= control target key start
LH: loop header
LB: loop body
LE: loop exit
PB: predicated region body
PF: predicated region fallthrough
CT: control target
= control target key end

     0   :  { %s1169_s12 = smov 0   ;;  %s1171_s13 = smov 0   ;;  %s1323_s0 = inlined_call_operand.vmem [shape: bf16[512,64], index: 0, kind: input, shape index: {}]   ;;  %s1324_s1 = inlined_call_operand.vmem [shape: bf16[64,128], index: 1, kind: input, shape index: {}]   ;;  %s1325_s2 = inlined_call_operand.vmem [shape: f32[1,128], index: 2, kind: input, shape index: {}]   ;;  %s1326_s3 = inlined_call_operand.vmem [shape: f32[512,128], index: 3, kind: output, shape index: {}]  }
   0x1   :  { %s1173_s14 = smov 0  }
   0x2 LB: > { %s32_s15 = sadd.s32 1, %s1143_s13  ;;  %p969_p0 = scmp.ge.s32.totalorder %s1147_s14, 1  ;;  %s1147_s14 = sphi %s1173_s14, %s13_s14   ;;  %s1143_s13 = sphi %s1171_s13, %s1328_s13   ;;  %s1139_s12 = sphi %s1169_s12, %s1327_s12  }
   0x3   : > { %p34_p1 = scmp.ge.s32.totalorder %s32_s15, 2  ;;  %p188_p2 = scmp.lt.s32.totalorder %s1147_s14, 3 }
   0x5   : > { %s1330_s15 = smov (%p34_p1, %s32_s15), 0  ;;  %p189_p3 = pnand %p969_p0, %p188_p2 }
   0x6   : > { %v1105_v0 = vld [vmem:[%s1324_s1] sm:$0xff] (!%p189_p3)   ;;  %s970_s18 = sshll.u32 (!%p189_p3), %s1139_s12, 5  ;;  %v1106_v1 = vld [vmem:[%s1324_s1 + $0x8] sm:$0xff] (!%p189_p3)   ;;  %v1107_v2 = vld [vmem:[%s1324_s1 + $0x10] sm:$0xff] (!%p189_p3)   ;;  %vm472_vm0 = vcmask (!%p189_p3), 523264  }
   0x7   : > { %192 = sbr.rel (%p189_p3) target bundleno = 265 (0x109), region = 32  ;;  %p230_p4 = scmp.lt.s32.totalorder (!%p189_p3), %s970_s18, 63  ;;  %1033 = vmatprep.subr.bf16.mxu0 (!%p189_p3), %v1105_v0  ;;  %1073 = vmatprep.subr.bf16.mxu1 (!%p189_p3), %v1105_v0  ;;  %v1108_v3 = vld [vmem:[%s1324_s1 + $0x18] sm:$0xff] (!%p189_p3)   ;;  %v1243_v20 = vld [vmem:[%s1325_s2] ss:$0 sm:$0xff] (!%p189_p3) }
   0x8   : > { %1034 = vmatpush3.bf16.msra.mxu0 (!%p189_p3), %v1105_v0  ;;  %1077 = vmatpush3.bf16.msra.mxu1 (!%p189_p3), %v1105_v0 }
   0x9   : > { %1035 = vmatprep.subr.bf16.mxu0 (!%p189_p3), %v1106_v1  ;;  %1074 = vmatprep.subr.bf16.mxu1 (!%p189_p3), %v1106_v1 }
   0xc   : > { %1036 = vmatpush3.bf16.msra.mxu0 (!%p189_p3), %v1106_v1  ;;  %1078 = vmatpush3.bf16.msra.mxu1 (!%p189_p3), %v1106_v1 }
   0xd   : > { %1037 = vmatprep.subr.bf16.mxu0 (!%p189_p3), %v1107_v2  ;;  %1075 = vmatprep.subr.bf16.mxu1 (!%p189_p3), %v1107_v2 }
   0xe   : > { %s1332_s18 = smov (!%p230_p4, %s970_s18), 63 }
   0xf   : > { %s971_s23 = sshll.u32 %s1332_s18, 2  ;;  %s973_s29 = sshll.u32 %s1332_s18, 3 }
  0x10   : > { %s1205_s28 = scalar_lea.vmem %s1323_s0, %s971_s23  ;;  %1038 = vmatpush3.bf16.msra.mxu0 %v1107_v2  ;;  %1079 = vmatpush3.bf16.msra.mxu1 %v1107_v2  ;;  %s1248_s7 = scalar_lea.vmem %s1326_s3, %s973_s29 }
  0x11   : > { %v1109_v4 = vld [vmem:[%s1205_s28] sm:$0xff]   ;;  %1039 = vmatprep.subr.bf16.mxu0 %v1108_v3  ;;  %1076 = vmatprep.subr.bf16.mxu1 %v1108_v3  ;;  %v1111_v6 = vld [vmem:[%s1205_s28 + $0x8] sm:$0xff]   ;;  %v1113_v8 = vld [vmem:[%s1205_s28 + $0x10] sm:$0xff]  }
  0x12   : > { %v1110_v5 = vld [vmem:[%s1205_s28 + $0x40] sm:$0xff]   ;;  %1041 = vmatprep.mubr.msk.bf16.mxu0 %vm472_vm0, %v1109_v4  ;;  %v1112_v7 = vld [vmem:[%s1205_s28 + $0x48] sm:$0xff]   ;;  %v1114_v9 = vld [vmem:[%s1205_s28 + $0x50] sm:$0xff]  }
  0x13   : > { %1057 = vmatprep.mubr.msk.bf16.mxu1 %vm472_vm0, %v1110_v5  ;;  %v1115_v10 = vld [vmem:[%s1205_s28 + $0x18] sm:$0xff]   ;;  %v1117_v12 = vld [vmem:[%s1205_s28 + $0x20] sm:$0xff]   ;;  %v1119_v14 = vld [vmem:[%s1205_s28 + $0x28] sm:$0xff]  }
  0x14   : > { %1040 = vmatpush3.bf16.msra.mxu0 %v1108_v3  ;;  %1080 = vmatpush3.bf16.msra.mxu1 %v1108_v3  ;;  %v1116_v11 = vld [vmem:[%s1205_s28 + $0x58] sm:$0xff]   ;;  %v1118_v13 = vld [vmem:[%s1205_s28 + $0x60] sm:$0xff]   ;;  %v1120_v15 = vld [vmem:[%s1205_s28 + $0x68] sm:$0xff]  }
  0x15   : > { %v1121_v16 = vld [vmem:[%s1205_s28 + $0x30] sm:$0xff]   ;;  %v1123_v18 = vld [vmem:[%s1205_s28 + $0x38] sm:$0xff]  }
  0x16   : > { %v1122_v17 = vld [vmem:[%s1205_s28 + $0x70] sm:$0xff]   ;;  %v1124_v19 = vld [vmem:[%s1205_s28 + $0x78] sm:$0xff]  }
  0x17   : > { %1042 = vmatmul.mubr.msk.bf16.vlgmr.msra.gmra.mrb[0].mxu0 %vm472_vm0, %v1111_v6  ;;  %1058 = vmatmul.mubr.msk.bf16.vlgmr.msra.gmra.mrb[0].mxu1 %vm472_vm0, %v1112_v7 }
  0x18   : > { %1045 = vmatprep.mubr.msk.bf16.mxu0 %vm472_vm0, %v1113_v8  ;;  %1061 = vmatprep.mubr.msk.bf16.mxu1 %vm472_vm0, %v1114_v9 }
  0x1f   : > { %1046 = vmatmul.mubr.msk.bf16.gmra.mrb[4].mxu0 %vm472_vm0, %v1115_v10  ;;  %1062 = vmatmul.mubr.msk.bf16.gmra.mrb[4].mxu1 %vm472_vm0, %v1116_v11 }
  0x20   : > { %1049 = vmatprep.mubr.msk.bf16.mxu0 %vm472_vm0, %v1117_v12  ;;  %1065 = vmatprep.mubr.msk.bf16.mxu1 %vm472_vm0, %v1118_v13 }
  0x27   : > { %1050 = vmatmul.mubr.msk.bf16.gmra.mrb[8].mxu0 %vm472_vm0, %v1119_v14  ;;  %1066 = vmatmul.mubr.msk.bf16.gmra.mrb[8].mxu1 %vm472_vm0, %v1120_v15 }
  0x28   : > { %1053 = vmatprep.mubr.msk.bf16.mxu0 %vm472_vm0, %v1121_v16  ;;  %1069 = vmatprep.mubr.msk.bf16.mxu1 %vm472_vm0, %v1122_v17 }
  0x2f   : > { %1054 = vmatmul.mubr.msk.bf16.gmra.mrb[12].mxu0 %vm472_vm0, %v1123_v18  ;;  %1070 = vmatmul.mubr.msk.bf16.gmra.mrb[12].mxu1 %vm472_vm0, %v1124_v19 }
  0xea   : > { %v1043_v21 = vpop.f32.mrb[0].mxu0  ;;  %v1059_v22 = vpop.f32.mrb[0].mxu1 }
  0xeb   : > { %v790_v23 = vadd.f32 %v1043_v21, %v1243_v20  ;;  %v806_v24 = vadd.f32 %v1059_v22, %v1243_v20  ;;  %v555_v25 = vpop.f32.mrb[1].mxu0  ;;  %v619_v26 = vpop.f32.mrb[1].mxu1 }
  0xec   : > { %v788_v27 = vadd.f32 %v1243_v20, %v555_v25  ;;  %v804_v28 = vadd.f32 %v1243_v20, %v619_v26  ;;  %v1044_v29 = vpop.f32.mrb[2].mxu0  ;;  %v1060_v30 = vpop.f32.mrb[2].mxu1 }
  0xed   : > { %822 = vst [vmem:[%s1248_s7 + $0x10] sm:$0xff] %v790_v23  ;;  %838 = vst [vmem:[%s1248_s7 + $0x90] sm:$0xff] %v806_v24  ;;  %v791_v31 = vadd.f32 %v1044_v29, %v1243_v20  ;;  %v807_v32 = vadd.f32 %v1060_v30, %v1243_v20  ;;  %v558_v33 = vpop.f32.mrb[3].mxu0  ;;  %v622_v34 = vpop.f32.mrb[3].mxu1 }
  0xee   : > { %820 = vst [vmem:[%s1248_s7] sm:$0xff] %v788_v27  ;;  %836 = vst [vmem:[%s1248_s7 + $0x80] sm:$0xff] %v804_v28  ;;  %v789_v35 = vadd.f32 %v1243_v20, %v558_v33  ;;  %v805_v36 = vadd.f32 %v1243_v20, %v622_v34 }
  0xef   : > { %823 = vst [vmem:[%s1248_s7 + $0x18] sm:$0xff] %v791_v31  ;;  %839 = vst [vmem:[%s1248_s7 + $0x98] sm:$0xff] %v807_v32 }
  0xf0   : > { %821 = vst [vmem:[%s1248_s7 + $0x8] sm:$0xff] %v789_v35  ;;  %837 = vst [vmem:[%s1248_s7 + $0x88] sm:$0xff] %v805_v36 }
  0xf2   : > { %v1047_v37 = vpop.f32.mrb[4].mxu0  ;;  %v1063_v38 = vpop.f32.mrb[4].mxu1 }
  0xf3   : > { %v794_v39 = vadd.f32 %v1047_v37, %v1243_v20  ;;  %v810_v40 = vadd.f32 %v1063_v38, %v1243_v20  ;;  %v571_v41 = vpop.f32.mrb[5].mxu0  ;;  %v635_v42 = vpop.f32.mrb[5].mxu1 }
  0xf4   : > { %v792_v43 = vadd.f32 %v1243_v20, %v571_v41  ;;  %v808_v44 = vadd.f32 %v1243_v20, %v635_v42  ;;  %v1048_v45 = vpop.f32.mrb[6].mxu0  ;;  %v1064_v46 = vpop.f32.mrb[6].mxu1 }
  0xf5   : > { %826 = vst [vmem:[%s1248_s7 + $0x30] sm:$0xff] %v794_v39  ;;  %842 = vst [vmem:[%s1248_s7 + $0xb0] sm:$0xff] %v810_v40  ;;  %v795_v47 = vadd.f32 %v1048_v45, %v1243_v20  ;;  %v811_v48 = vadd.f32 %v1064_v46, %v1243_v20  ;;  %v574_v49 = vpop.f32.mrb[7].mxu0  ;;  %v638_v50 = vpop.f32.mrb[7].mxu1 }
  0xf6   : > { %824 = vst [vmem:[%s1248_s7 + $0x20] sm:$0xff] %v792_v43  ;;  %840 = vst [vmem:[%s1248_s7 + $0xa0] sm:$0xff] %v808_v44  ;;  %v793_v51 = vadd.f32 %v1243_v20, %v574_v49  ;;  %v809_v52 = vadd.f32 %v1243_v20, %v638_v50 }
  0xf7   : > { %827 = vst [vmem:[%s1248_s7 + $0x38] sm:$0xff] %v795_v47  ;;  %843 = vst [vmem:[%s1248_s7 + $0xb8] sm:$0xff] %v811_v48 }
  0xf8   : > { %825 = vst [vmem:[%s1248_s7 + $0x28] sm:$0xff] %v793_v51  ;;  %841 = vst [vmem:[%s1248_s7 + $0xa8] sm:$0xff] %v809_v52 }
  0xfa   : > { %v1051_v53 = vpop.f32.mrb[8].mxu0  ;;  %v1067_v54 = vpop.f32.mrb[8].mxu1 }
  0xfb   : > { %v798_v55 = vadd.f32 %v1051_v53, %v1243_v20  ;;  %v814_v56 = vadd.f32 %v1067_v54, %v1243_v20  ;;  %v587_v57 = vpop.f32.mrb[9].mxu0  ;;  %v651_v58 = vpop.f32.mrb[9].mxu1 }
  0xfc   : > { %v796_v59 = vadd.f32 %v1243_v20, %v587_v57  ;;  %v812_v60 = vadd.f32 %v1243_v20, %v651_v58  ;;  %v1052_v61 = vpop.f32.mrb[10].mxu0  ;;  %v1068_v62 = vpop.f32.mrb[10].mxu1 }
  0xfd   : > { %830 = vst [vmem:[%s1248_s7 + $0x50] sm:$0xff] %v798_v55  ;;  %846 = vst [vmem:[%s1248_s7 + $0xd0] sm:$0xff] %v814_v56  ;;  %v799_v63 = vadd.f32 %v1052_v61, %v1243_v20  ;;  %v815_v0 = vadd.f32 %v1068_v62, %v1243_v20  ;;  %v590_v1 = vpop.f32.mrb[11].mxu0  ;;  %v654_v2 = vpop.f32.mrb[11].mxu1 }
  0xfe   : > { %828 = vst [vmem:[%s1248_s7 + $0x40] sm:$0xff] %v796_v59  ;;  %844 = vst [vmem:[%s1248_s7 + $0xc0] sm:$0xff] %v812_v60  ;;  %v797_v3 = vadd.f32 %v1243_v20, %v590_v1  ;;  %v813_v4 = vadd.f32 %v1243_v20, %v654_v2 }
  0xff   : > { %831 = vst [vmem:[%s1248_s7 + $0x58] sm:$0xff] %v799_v63  ;;  %847 = vst [vmem:[%s1248_s7 + $0xd8] sm:$0xff] %v815_v0 }
 0x100   : > { %829 = vst [vmem:[%s1248_s7 + $0x48] sm:$0xff] %v797_v3  ;;  %845 = vst [vmem:[%s1248_s7 + $0xc8] sm:$0xff] %v813_v4 }
 0x102   : > { %v1055_v5 = vpop.f32.mrb[12].mxu0  ;;  %v1071_v6 = vpop.f32.mrb[12].mxu1 }
 0x103   : > { %v802_v7 = vadd.f32 %v1055_v5, %v1243_v20  ;;  %v818_v8 = vadd.f32 %v1071_v6, %v1243_v20  ;;  %v603_v9 = vpop.f32.mrb[13].mxu0  ;;  %v667_v10 = vpop.f32.mrb[13].mxu1 }
 0x104   : > { %v800_v11 = vadd.f32 %v1243_v20, %v603_v9  ;;  %v816_v12 = vadd.f32 %v1243_v20, %v667_v10  ;;  %v1056_v13 = vpop.f32.mrb[14].mxu0  ;;  %v1072_v14 = vpop.f32.mrb[14].mxu1 }
 0x105   : > { %834 = vst [vmem:[%s1248_s7 + $0x70] sm:$0xff] %v802_v7  ;;  %850 = vst [vmem:[%s1248_s7 + $0xf0] sm:$0xff] %v818_v8  ;;  %v803_v15 = vadd.f32 %v1056_v13, %v1243_v20  ;;  %v819_v16 = vadd.f32 %v1072_v14, %v1243_v20  ;;  %v606_v17 = vpop.f32.mrb[15].mxu0  ;;  %v670_v18 = vpop.f32.mrb[15].mxu1 }
 0x106   : > { %832 = vst [vmem:[%s1248_s7 + $0x60] sm:$0xff] %v800_v11  ;;  %848 = vst [vmem:[%s1248_s7 + $0xe0] sm:$0xff] %v816_v12  ;;  %v801_v19 = vadd.f32 %v1243_v20, %v606_v17  ;;  %v817_v21 = vadd.f32 %v1243_v20, %v670_v18 }
 0x107   : > { %835 = vst [vmem:[%s1248_s7 + $0x78] sm:$0xff] %v803_v15  ;;  %851 = vst [vmem:[%s1248_s7 + $0xf8] sm:$0xff] %v819_v16 }
 0x108   : > { %833 = vst [vmem:[%s1248_s7 + $0x68] sm:$0xff] %v801_v19  ;;  %849 = vst [vmem:[%s1248_s7 + $0xe8] sm:$0xff] %v817_v21 }
 0x109 PF: > { %s13_s14 = sadd.s32 1, %s1147_s14   ;;  %s1327_s12 = smov %s1143_s13 }
 0x10a   : > { %p10_p5 = scmp.ge.s32.totalorder %s13_s14, 4   ;;  %s1328_s13 = smov %s1330_s15 }
 0x10c   :  { %12 = sbr.rel (!%p10_p5) target bundleno = 2 (0x2), region = 76 }

</bundles_post_ra>
